<compile_context>
chip_gen: v7x
topology: tpu7x:2x2x1
jax: 0.10.0
libtpu: 0.0.40
codegen_flags: <defaults>
</compile_context>

<pallas_src>
import functools

import jax
import jax.numpy as jnp
from jax.experimental import pallas as pl
from jax.experimental.pallas import tpu as pltpu

IN_DIM = 306
HID = 1000
OUT_DIM = 360
BN_EPS = 1e-5

IN_PAD = 320     # 306 -> multiple of 8 (sublane); full-dim block so lane rule is satisfied
HID_PAD = 1024   # 1000 -> multiple of 128
OUT_PAD = 384    # 360  -> multiple of 128


def _round_up(n, m):
    return ((n + m - 1) // m) * m


def _pad2(a, rows, cols):
    r, c = a.shape
    return jnp.pad(a, ((0, rows - r), (0, cols - c)))


# ---------------------------------------------------------------------------
# Kernel
# ---------------------------------------------------------------------------
def mlp3_kernel(x_ref,
                w1_ref, b1_ref,
                w2_ref, b2_ref,
                w3_ref, b3_ref,
                w4_ref, b4_ref,
                o_ref):
    """One batch tile: 4 matmuls (bf16 weights, f32 accumulate) + bias/ReLU/sigmoid."""
    h = x_ref[...].astype(jnp.bfloat16)
    h = jnp.maximum(
        jnp.dot(h, w1_ref[...], preferred_element_type=jnp.float32) + b1_ref[...], 0.0)
    h = jnp.maximum(
        jnp.dot(h.astype(jnp.bfloat16), w2_ref[...],
                preferred_element_type=jnp.float32) + b2_ref[...], 0.0)
    h = jnp.maximum(
        jnp.dot(h.astype(jnp.bfloat16), w3_ref[...],
                preferred_element_type=jnp.float32) + b3_ref[...], 0.0)
    z = jnp.dot(h.astype(jnp.bfloat16), w4_ref[...],
                preferred_element_type=jnp.float32) + b4_ref[...]
    o_ref[...] = jax.nn.sigmoid(z).astype(o_ref.dtype)


# ---------------------------------------------------------------------------
# Wrapper
# ---------------------------------------------------------------------------
@jax.jit
def mlp3_forward(x, prepared):
    """x: (B, F) with F >= 306. prepared: output of prepare_params(). Returns (B, 360) f32."""
    B, F = x.shape

    # Feed a (B, IN_PAD) view of x. Columns 306..IN_PAD multiply zero-padded rows of W1,
    # so no explicit x[:, :306] copy is needed when F >= IN_PAD.
    if F == IN_PAD:
        x_in = x
    elif F > IN_PAD:
        x_in = x[:, :IN_PAD]
    else:  # IN_DIM <= F < IN_PAD
        x_in = jnp.pad(x, ((0, 0), (0, IN_PAD - F)))

    TB = min(256, _round_up(B, 8))
    grid = (pl.cdiv(B, TB),)

    (w1, b1), (w2, b2), (w3, b3), (w4, b4) = prepared["layers"]
    flat_inputs = [x_in, w1, b1, w2, b2, w3, b3, w4, b4]

    def full_spec(a):
        # Grid-invariant block: DMA'd once, stays VMEM-resident across batch steps.
        return pl.BlockSpec(a.shape, lambda i: (0, 0))

    in_specs = [pl.BlockSpec((TB, IN_PAD), lambda i: (i, 0))]
    in_specs += [full_spec(a) for a in flat_inputs[1:]]

    out = pl.pallas_call(
        mlp3_kernel,
        out_shape=jax.ShapeDtypeStruct((B, OUT_PAD), jnp.float32),
        grid=grid,
        in_specs=in_specs,
        out_specs=pl.BlockSpec((TB, OUT_PAD), lambda i: (i, 0)),
        compiler_params=pltpu.CompilerParams(
            dimension_semantics=("parallel",),
            vmem_limit_bytes=32 * 1024 * 1024,
        ),
    )(*flat_inputs)
    return out[:, :OUT_DIM]


# ---------------------------------------------------------------------------
# Parameter init / preparation
# ---------------------------------------------------------------------------
def init_params(key):
    """Matches the PyTorch module's __init__ shapes.

    Linear weights use PyTorch's default U(-1/sqrt(fan_in), 1/sqrt(fan_in)), stored
    transposed as (in, out). BatchNorm params: gamma=1, beta=0, running_mean=0,
    running_var=1. Biases / BN params stored as (1, N).
    """
    dims = [(IN_DIM, HID), (HID, HID), (HID, HID)]
    hidden = []
    for (din, dout) in dims:
        key, kw, kb = jax.random.split(key, 3)
        bound = 1.0 / jnp.sqrt(jnp.float32(din))
        w = jax.random.uniform(kw, (din, dout), jnp.float32, -bound, bound)
        b = jax.random.uniform(kb, (1, dout), jnp.float32, -bound, bound)
        gamma = jnp.ones((1, dout), jnp.float32)
        beta = jnp.zeros((1, dout), jnp.float32)
        mean = jnp.zeros((1, dout), jnp.float32)
        var = jnp.ones((1, dout), jnp.float32)
        hidden.append((w, b, gamma, beta, mean, var))

    key, kw, kb = jax.random.split(key, 3)
    bound = 1.0 / jnp.sqrt(jnp.float32(HID))
    w4 = jax.random.uniform(kw, (HID, OUT_DIM), jnp.float32, -bound, bound)
    b4 = jax.random.uniform(kb, (1, OUT_DIM), jnp.float32, -bound, bound)
    return {"hidden": hidden, "out": (w4, b4)}


def prepare_params(params):
    """Fold eval-mode BN into the Linear layers, zero-pad to MXU-friendly dims, cast
    weights to bf16. Done once, outside the kernel."""
    pads = [(IN_PAD, HID_PAD), (HID_PAD, HID_PAD), (HID_PAD, HID_PAD)]
    layers = []
    for (w, b, g, be, m, v), (rp, cp) in zip(params["hidden"], pads):
        s = g * jax.lax.rsqrt(v + BN_EPS)          # (1, dout)
        w_f = w * s                                 # fold scale into weights
        b_f = (b - m) * s + be                      # fold shift into bias
        layers.append((_pad2(w_f, rp, cp).astype(jnp.bfloat16),
                       _pad2(b_f, 1, cp)))
    w4, b4 = params["out"]
    layers.append((_pad2(w4, HID_PAD, OUT_PAD).astype(jnp.bfloat16),
                   _pad2(b4, 1, OUT_PAD)))
    return {"layers": layers}


# ---------------------------------------------------------------------------
# References (for sanity checks)
# ---------------------------------------------------------------------------
def reference_forward_f32(x, params):
    """Pure-f32 JAX reference of the eval-mode forward pass (original params)."""
    h = x[:, :IN_DIM]
    for (w, b, g, be, m, v) in params["hidden"]:
        z = h @ w + b
        z = (z - m) / jnp.sqrt(v + BN_EPS) * g + be
        h = jnp.maximum(z, 0.0)
    w4, b4 = params["out"]
    return jax.nn.sigmoid(h @ w4 + b4)


def reference_forward_prepared(x, prepared):
    """JAX reference using the same folded/padded bf16 weights as the kernel."""
    B, F = x.shape
    if F >= IN_PAD:
        h = x[:, :IN_PAD]
    else:
        h = jnp.pad(x, ((0, 0), (0, IN_PAD - F)))
    ws = prepared["layers"]
    for (w, b) in ws[:-1]:
        z = jnp.dot(h.astype(jnp.bfloat16), w, preferred_element_type=jnp.float32) + b
        h = jnp.maximum(z, 0.0)
    w4, b4 = ws[-1]
    z = jnp.dot(h.astype(jnp.bfloat16), w4, preferred_element_type=jnp.float32) + b4
    return jax.nn.sigmoid(z)[:, :OUT_DIM]


# ---------------------------------------------------------------------------
if __name__ == "__main__":
    key = jax.random.PRNGKey(0)
    kx, kp = jax.random.split(key)

    B, F = 8, 320  # F > 306 so the "x[:, :306]" semantics are exercised
    x = jax.random.normal(kx, (B, F), jnp.float32)
    params = init_params(kp)
    prepared = prepare_params(params)

    y = mlp3_forward(x, prepared)
    y = jax.block_until_ready(y)
    assert y.shape == (B, OUT_DIM)

    # Tight check against a reference using the identical bf16/folded numeric path.
    y_ref_bf16 = reference_forward_prepared(x, prepared)
    assert jnp.allclose(y, y_ref_bf16, atol=5e-3, rtol=0), float(
        jnp.max(jnp.abs(y - y_ref_bf16)))

    # Loose check against the original full-f32 BN-eval reference.
    y_ref_f32 = reference_forward_f32(x, params)
    assert jnp.allclose(y, y_ref_f32, atol=5e-2, rtol=0), float(
        jnp.max(jnp.abs(y - y_ref_f32)))

    print("KERNEL_OK")
</pallas_src>

<mosaic_0001>
module attributes {stable_mosaic.version = 11 : i64} {
  func.func @mlp3_kernel(%arg0: i32, %arg1: memref<8x320xf32, #tpu.memory_space<vmem>>, %arg2: memref<320x1024xbf16, #tpu.memory_space<vmem>>, %arg3: memref<1x1024xf32, #tpu.memory_space<vmem>>, %arg4: memref<1024x1024xbf16, #tpu.memory_space<vmem>>, %arg5: memref<1x1024xf32, #tpu.memory_space<vmem>>, %arg6: memref<1024x1024xbf16, #tpu.memory_space<vmem>>, %arg7: memref<1x1024xf32, #tpu.memory_space<vmem>>, %arg8: memref<1024x384xbf16, #tpu.memory_space<vmem>>, %arg9: memref<1x384xf32, #tpu.memory_space<vmem>>, %arg10: memref<8x384xf32, #tpu.memory_space<vmem>>) attributes {dimension_semantics = [#tpu.dimension_semantics<parallel>], iteration_bounds = array<i64: 1>, scalar_prefetch = 0 : i64, scratch_operands = 0 : i64, tpu.core_type = #tpu.core_type<tc>, window_params = [{transform_indices = @transform_0, window_bounds = array<i64: 8, 320>}, {pipeline_mode = #tpu.pipeline_mode<synchronous>, transform_indices = @transform_1, window_bounds = array<i64: 320, 1024>}, {pipeline_mode = #tpu.pipeline_mode<synchronous>, transform_indices = @transform_2, window_bounds = array<i64: 1, 1024>}, {pipeline_mode = #tpu.pipeline_mode<synchronous>, transform_indices = @transform_3, window_bounds = array<i64: 1024, 1024>}, {pipeline_mode = #tpu.pipeline_mode<synchronous>, transform_indices = @transform_4, window_bounds = array<i64: 1, 1024>}, {pipeline_mode = #tpu.pipeline_mode<synchronous>, transform_indices = @transform_5, window_bounds = array<i64: 1024, 1024>}, {pipeline_mode = #tpu.pipeline_mode<synchronous>, transform_indices = @transform_6, window_bounds = array<i64: 1, 1024>}, {pipeline_mode = #tpu.pipeline_mode<synchronous>, transform_indices = @transform_7, window_bounds = array<i64: 1024, 384>}, {pipeline_mode = #tpu.pipeline_mode<synchronous>, transform_indices = @transform_8, window_bounds = array<i64: 1, 384>}, {transform_indices = @transform_9, window_bounds = array<i64: 8, 384>}]} {
    %c0 = arith.constant 0 : index
    %c0_0 = arith.constant 0 : index
    %0 = vector.load %arg1[%c0, %c0_0] : memref<8x320xf32, #tpu.memory_space<vmem>>, vector<8x320xf32>
    %1 = arith.truncf %0 : vector<8x320xf32> to vector<8x320xbf16>
    %c0_1 = arith.constant 0 : index
    %c0_2 = arith.constant 0 : index
    %2 = vector.load %arg2[%c0_1, %c0_2] : memref<320x1024xbf16, #tpu.memory_space<vmem>>, vector<320x1024xbf16>
    %cst = arith.constant dense<0.000000e+00> : vector<8x1024xf32>
    %3 = tpu.matmul %1, %2, %cst {dimension_numbers = #tpu.dot_dimension_numbers<[1], [0], [0], [1], [0, 0, 1, 1], [], []>} : vector<8x320xbf16>, vector<320x1024xbf16>, vector<8x1024xf32> -> vector<8x1024xf32>
    %c0_3 = arith.constant 0 : index
    %c0_4 = arith.constant 0 : index
    %4 = vector.load %arg3[%c0_3, %c0_4] : memref<1x1024xf32, #tpu.memory_space<vmem>>, vector<1x1024xf32>
    %5 = vector.broadcast %4 : vector<1x1024xf32> to vector<8x1024xf32>
    %6 = arith.addf %3, %5 : vector<8x1024xf32>
    %cst_5 = arith.constant 0.000000e+00 : f32
    %7 = vector.broadcast %cst_5 : f32 to vector<8x1024xf32>
    %8 = arith.maximumf %6, %7 : vector<8x1024xf32>
    %9 = arith.truncf %8 : vector<8x1024xf32> to vector<8x1024xbf16>
    %c0_6 = arith.constant 0 : index
    %c0_7 = arith.constant 0 : index
    %10 = vector.load %arg4[%c0_6, %c0_7] : memref<1024x1024xbf16, #tpu.memory_space<vmem>>, vector<1024x1024xbf16>
    %cst_8 = arith.constant dense<0.000000e+00> : vector<8x1024xf32>
    %11 = tpu.matmul %9, %10, %cst_8 {dimension_numbers = #tpu.dot_dimension_numbers<[1], [0], [0], [1], [0, 0, 1, 1], [], []>} : vector<8x1024xbf16>, vector<1024x1024xbf16>, vector<8x1024xf32> -> vector<8x1024xf32>
    %c0_9 = arith.constant 0 : index
    %c0_10 = arith.constant 0 : index
    %12 = vector.load %arg5[%c0_9, %c0_10] : memref<1x1024xf32, #tpu.memory_space<vmem>>, vector<1x1024xf32>
    %13 = vector.broadcast %12 : vector<1x1024xf32> to vector<8x1024xf32>
    %14 = arith.addf %11, %13 : vector<8x1024xf32>
    %cst_11 = arith.constant 0.000000e+00 : f32
    %15 = vector.broadcast %cst_11 : f32 to vector<8x1024xf32>
    %16 = arith.maximumf %14, %15 : vector<8x1024xf32>
    %17 = arith.truncf %16 : vector<8x1024xf32> to vector<8x1024xbf16>
    %c0_12 = arith.constant 0 : index
    %c0_13 = arith.constant 0 : index
    %18 = vector.load %arg6[%c0_12, %c0_13] : memref<1024x1024xbf16, #tpu.memory_space<vmem>>, vector<1024x1024xbf16>
    %cst_14 = arith.constant dense<0.000000e+00> : vector<8x1024xf32>
    %19 = tpu.matmul %17, %18, %cst_14 {dimension_numbers = #tpu.dot_dimension_numbers<[1], [0], [0], [1], [0, 0, 1, 1], [], []>} : vector<8x1024xbf16>, vector<1024x1024xbf16>, vector<8x1024xf32> -> vector<8x1024xf32>
    %c0_15 = arith.constant 0 : index
    %c0_16 = arith.constant 0 : index
    %20 = vector.load %arg7[%c0_15, %c0_16] : memref<1x1024xf32, #tpu.memory_space<vmem>>, vector<1x1024xf32>
    %21 = vector.broadcast %20 : vector<1x1024xf32> to vector<8x1024xf32>
    %22 = arith.addf %19, %21 : vector<8x1024xf32>
    %cst_17 = arith.constant 0.000000e+00 : f32
    %23 = vector.broadcast %cst_17 : f32 to vector<8x1024xf32>
    %24 = arith.maximumf %22, %23 : vector<8x1024xf32>
    %25 = arith.truncf %24 : vector<8x1024xf32> to vector<8x1024xbf16>
    %c0_18 = arith.constant 0 : index
    %c0_19 = arith.constant 0 : index
    %26 = vector.load %arg8[%c0_18, %c0_19] : memref<1024x384xbf16, #tpu.memory_space<vmem>>, vector<1024x384xbf16>
    %cst_20 = arith.constant dense<0.000000e+00> : vector<8x384xf32>
    %27 = tpu.matmul %25, %26, %cst_20 {dimension_numbers = #tpu.dot_dimension_numbers<[1], [0], [0], [1], [0, 0, 1, 1], [], []>} : vector<8x1024xbf16>, vector<1024x384xbf16>, vector<8x384xf32> -> vector<8x384xf32>
    %c0_21 = arith.constant 0 : index
    %c0_22 = arith.constant 0 : index
    %28 = vector.load %arg9[%c0_21, %c0_22] : memref<1x384xf32, #tpu.memory_space<vmem>>, vector<1x384xf32>
    %29 = vector.broadcast %28 : vector<1x384xf32> to vector<8x384xf32>
    %30 = arith.addf %27, %29 : vector<8x384xf32>
    %31 = arith.negf %30 : vector<8x384xf32>
    %32 = math.exp %31 : vector<8x384xf32>
    %cst_23 = arith.constant 1.000000e+00 : f32
    %33 = vector.broadcast %cst_23 : f32 to vector<8x384xf32>
    %34 = arith.addf %33, %32 : vector<8x384xf32>
    %35 = arith.divf %33, %34 : vector<8x384xf32>
    %c0_24 = arith.constant 0 : index
    %c0_25 = arith.constant 0 : index
    %36 = vector.load %arg10[%c0_24, %c0_25] : memref<8x384xf32, #tpu.memory_space<vmem>>, vector<8x384xf32>
    tpu.vector_store %arg10[%c0_24, %c0_25], %35 {strides = array<i32>} : memref<8x384xf32, #tpu.memory_space<vmem>>, vector<8x384xf32>,
    return
  }
  func.func @transform_0(%arg0: i32) -> (i32, i32) {
    %c0_i32 = arith.constant 0 : i32
    %c0_i32_0 = arith.constant 0 : i32
    return %arg0, %c0_i32 : i32, i32
  }
  func.func @transform_1(%arg0: i32) -> (i32, i32) {
    %c0_i32 = arith.constant 0 : i32
    %c0_i32_0 = arith.constant 0 : i32
    %c0_i32_1 = arith.constant 0 : i32
    return %c0_i32, %c0_i32_0 : i32, i32
  }
  func.func @transform_2(%arg0: i32) -> (i32, i32) {
    %c0_i32 = arith.constant 0 : i32
    %c0_i32_0 = arith.constant 0 : i32
    %c0_i32_1 = arith.constant 0 : i32
    return %c0_i32, %c0_i32_0 : i32, i32
  }
  func.func @transform_3(%arg0: i32) -> (i32, i32) {
    %c0_i32 = arith.constant 0 : i32
    %c0_i32_0 = arith.constant 0 : i32
    %c0_i32_1 = arith.constant 0 : i32
    return %c0_i32, %c0_i32_0 : i32, i32
  }
  func.func @transform_4(%arg0: i32) -> (i32, i32) {
    %c0_i32 = arith.constant 0 : i32
    %c0_i32_0 = arith.constant 0 : i32
    %c0_i32_1 = arith.constant 0 : i32
    return %c0_i32, %c0_i32_0 : i32, i32
  }
  func.func @transform_5(%arg0: i32) -> (i32, i32) {
    %c0_i32 = arith.constant 0 : i32
    %c0_i32_0 = arith.constant 0 : i32
    %c0_i32_1 = arith.constant 0 : i32
    return %c0_i32, %c0_i32_0 : i32, i32
  }
  func.func @transform_6(%arg0: i32) -> (i32, i32) {
    %c0_i32 = arith.constant 0 : i32
    %c0_i32_0 = arith.constant 0 : i32
    %c0_i32_1 = arith.constant 0 : i32
    return %c0_i32, %c0_i32_0 : i32, i32
  }
  func.func @transform_7(%arg0: i32) -> (i32, i32) {
    %c0_i32 = arith.constant 0 : i32
    %c0_i32_0 = arith.constant 0 : i32
    %c0_i32_1 = arith.constant 0 : i32
    return %c0_i32, %c0_i32_0 : i32, i32
  }
  func.func @transform_8(%arg0: i32) -> (i32, i32) {
    %c0_i32 = arith.constant 0 : i32
    %c0_i32_0 = arith.constant 0 : i32
    %c0_i32_1 = arith.constant 0 : i32
    return %c0_i32, %c0_i32_0 : i32, i32
  }
  func.func @transform_9(%arg0: i32) -> (i32, i32) {
    %c0_i32 = arith.constant 0 : i32
    %c0_i32_0 = arith.constant 0 : i32
    return %arg0, %c0_i32 : i32, i32
  }
}

</mosaic_0001>

<bundles_post_ra>
// kernel: mlp3_forward.1
= control target key start
LH: loop header
LB: loop body
LE: loop exit
PB: predicated region body
PF: predicated region fallthrough
CT: control target
= control target key end

     0   :  { %14 = vsyncpa [#allocation3], 0  ;;  %s13339_s0 = inlined_call_operand.hbm [shape: f32[8,320], index: 0, kind: input, shape index: {}]   ;;  %s13340_s1 = inlined_call_operand.hbm [shape: bf16[320,1024], index: 1, kind: input, shape index: {}]   ;;  %s13341_s2 = inlined_call_operand.hbm [shape: f32[1,1024], index: 2, kind: input, shape index: {}]   ;;  %s13342_s3 = inlined_call_operand.hbm [shape: bf16[1024,1024], index: 3, kind: input, shape index: {}]   ;;  %s13343_s4 = inlined_call_operand.hbm [shape: f32[1,1024], index: 4, kind: input, shape index: {}]   ;;  %s13344_s5 = inlined_call_operand.hbm [shape: bf16[1024,1024], index: 5, kind: input, shape index: {}]   ;;  %s13345_s6 = inlined_call_operand.hbm [shape: f32[1,1024], index: 6, kind: input, shape index: {}]   ;;  %s13346_s7 = inlined_call_operand.hbm [shape: bf16[1024,384], index: 7, kind: input, shape index: {}]   ;;  %s13347_s8 = inlined_call_operand.hbm [shape: f32[1,384], index: 8, kind: input, shape index: {}]   ;;  %s13348_s9 = inlined_call_operand.hbm [shape: f32[8,384], index: 9, kind: output, shape index: {}]  }
   0x1   :  { %15 = vsyncpa [#allocation6], 0 }
   0x2   :  { %16 = vsyncpa [#allocation9], 0 }
   0x3   :  { %17 = vsyncpa [#allocation12], 0 }
   0x4   :  { %18 = vsyncpa [#allocation15], 0 }
   0x5   :  { %19 = vsyncpa [#allocation4], 0  ;;  %s12871_s30 = smov [#allocation5]   ;;  %s12639_s13 = scalar_lea.hbm %s13340_s1, 20480 }
   0x6   :  { %s35_s10 = sshll.u32 %s12871_s30, 4  ;;  %p12640_p0 = scmp.ne.s32.totalorder %s13340_s1, %s12639_s13  ;;  %s36_s10 = int_to_ptr.vmem [resolvable:$true] %s35_s10 }
   0x7   :  { %p12643_p1 = scmp.lt.u32.totalorder %s12639_s13, %s13340_s1 }
   0x9   :  { %p12645_p2 = pnand %p12643_p1, %p12640_p0 }
   0xb   :  { %12648 = shalt.err (!%p12645_p2)
}
   0xc   :  { %s12649_s18 = scalar_lea.vmem %s36_s10, 20480  ;;  %p12654_p4 = scmp.lt.s32.totalorder %s36_s10, %s36_s10 }
   0xd   :  { %p12650_p3 = scmp.ne.s32.totalorder %s36_s10, %s12649_s18  ;;  %p12655_p5 = scmp.lt.s32.totalorder %s12649_s18, %s12649_s18 }
   0xf   :  { %p12656_p6 = por %p12655_p5, %p12654_p4 }
  0x11   :  { %p12657_p7 = pnand %p12656_p6, %p12650_p3 }
  0x13   :  { %12660 = shalt.err (!%p12657_p7)
}
  0x14   :  { %s12872_s19 = smov 512   ;;  %s12873_s20 = smov 32  }
  0x15   :  { %41 = dma.hbm_to_vmem [thread:$0]  %s13340_s1, 20480, %s36_s10, [#allocation6], %s12872_s19, %s12872_s19, %s12873_s20  }
  0x16   :  { %s12874_s23 = smov [#allocation8]   ;;  %s12875_s25 = smov [#allocation11]  }
  0x17   :  { %s57_s24 = sshll.u32 %s12874_s23, 4  ;;  %s79_s26 = sshll.u32 %s12875_s25, 4  ;;  %s58_s24 = int_to_ptr.vmem [resolvable:$true] %s57_s24  ;;  %s80_s26 = int_to_ptr.vmem [resolvable:$true] %s79_s26 }
  0x18   :  { %s12661_s29 = scalar_lea.hbm %s13342_s3, 65536 }
  0x19   :  { %p12662_p8 = scmp.ne.s32.totalorder %s13342_s3, %s12661_s29  ;;  %p12665_p9 = scmp.lt.u32.totalorder %s12661_s29, %s13342_s3 }
  0x1b   :  { %p12667_p10 = pnand %p12665_p9, %p12662_p8 }
  0x1d   :  { %12670 = shalt.err (!%p12667_p10)
}
  0x1e   :  { %s12671_s1 = scalar_lea.vmem %s58_s24, 65536  ;;  %p12676_p12 = scmp.lt.s32.totalorder %s58_s24, %s58_s24 }
  0x1f   :  { %p12672_p11 = scmp.ne.s32.totalorder %s58_s24, %s12671_s1  ;;  %p12677_p13 = scmp.lt.s32.totalorder %s12671_s1, %s12671_s1 }
  0x21   :  { %p12678_p0 = por %p12677_p13, %p12676_p12 }
  0x23   :  { %p12679_p1 = pnand %p12678_p0, %p12672_p11 }
  0x25   :  { %12682 = shalt.err (!%p12679_p1)
}
  0x26   :  { %63 = dma.hbm_to_vmem [thread:$0]  %s13342_s3, 65536, %s58_s24, [#allocation9], %s12872_s19, %s12872_s19, %s12873_s20  }
  0x27   :  { %s12683_s17 = scalar_lea.hbm %s13344_s5, 65536 }
  0x28   :  { %p12684_p2 = scmp.ne.s32.totalorder %s13344_s5, %s12683_s17  ;;  %p12687_p3 = scmp.lt.u32.totalorder %s12683_s17, %s13344_s5 }
  0x2a   :  { %p12689_p4 = pnand %p12687_p3, %p12684_p2 }
  0x2c   :  { %12692 = shalt.err (!%p12689_p4)
}
  0x2d   :  { %s12693_s25 = scalar_lea.vmem %s80_s26, 65536  ;;  %p12698_p6 = scmp.lt.s32.totalorder %s80_s26, %s80_s26 }
  0x2e   :  { %p12694_p5 = scmp.ne.s32.totalorder %s80_s26, %s12693_s25  ;;  %p12699_p7 = scmp.lt.s32.totalorder %s12693_s25, %s12693_s25 }
  0x30   :  { %p12700_p8 = por %p12699_p7, %p12698_p6 }
  0x32   :  { %p12701_p9 = pnand %p12700_p8, %p12694_p5 }
  0x34   :  { %12704 = shalt.err (!%p12701_p9)
}
  0x35   :  { %85 = dma.hbm_to_vmem [thread:$0]  %s13344_s5, 65536, %s80_s26, [#allocation12], %s12872_s19, %s12872_s19, %s12873_s20  }
  0x36   :  { %s12876_s27 = smov [#allocation14]   ;;  %s12705_s11 = scalar_lea.hbm %s13346_s7, 24576 }
  0x37   :  { %s101_s28 = sshll.u32 %s12876_s27, 4  ;;  %p12706_p10 = scmp.ne.s32.totalorder %s13346_s7, %s12705_s11  ;;  %s102_s28 = int_to_ptr.vmem [resolvable:$true] %s101_s28 }
  0x38   :  { %p12709_p11 = scmp.lt.u32.totalorder %s12705_s11, %s13346_s7 }
  0x3a   :  { %p12711_p12 = pnand %p12709_p11, %p12706_p10 }
  0x3c   :  { %12714 = shalt.err (!%p12711_p12)
}
  0x3d   :  { %s12715_s14 = scalar_lea.vmem %s102_s28, 24576  ;;  %p12720_p0 = scmp.lt.s32.totalorder %s102_s28, %s102_s28 }
  0x3e   :  { %p12716_p13 = scmp.ne.s32.totalorder %s102_s28, %s12715_s14  ;;  %p12721_p1 = scmp.lt.s32.totalorder %s12715_s14, %s12715_s14 }
  0x40   :  { %p12722_p2 = por %p12721_p1, %p12720_p0 }
  0x42   :  { %p12723_p3 = pnand %p12722_p2, %p12716_p13 }
  0x44   :  { %12726 = shalt.err (!%p12723_p3)
}
  0x45   :  { %s12877_s5 = smov 192   ;;  %s12878_s19 = smov 12  }
  0x46   :  { %107 = dma.hbm_to_vmem [thread:$0]  %s13346_s7, 24576, %s102_s28, [#allocation15], %s12877_s5, %s12877_s5, %s12878_s19  }
  0x47   :  { %s12879_s15 = smov [#allocation2]   ;;  %s12880_s17 = smov [#allocation7]  }
  0x48   :  { %s26_s16 = sshll.u32 %s12879_s15, 4  ;;  %s48_s18 = sshll.u32 %s12880_s17, 4  ;;  %s27_s16 = int_to_ptr.vmem [resolvable:$true] %s26_s16  ;;  %s49_s18 = int_to_ptr.vmem [resolvable:$true] %s48_s18 }
  0x49   :  { %s12727_s23 = scalar_lea.hbm %s13339_s0, 384 }
  0x4a   :  { %p12728_p4 = scmp.ne.s32.totalorder %s13339_s0, %s12727_s23  ;;  %p12731_p5 = scmp.lt.u32.totalorder %s12727_s23, %s13339_s0 }
  0x4c   :  { %p12733_p6 = pnand %p12731_p5, %p12728_p4 }
  0x4e   :  { %12736 = shalt.err (!%p12733_p6)
}
  0x4f   :  { %s12737_s7 = scalar_lea.vmem %s27_s16, 384  ;;  %p12742_p8 = scmp.lt.s32.totalorder %s27_s16, %s27_s16 }
  0x50   :  { %p12738_p7 = scmp.ne.s32.totalorder %s27_s16, %s12737_s7  ;;  %p12743_p9 = scmp.lt.s32.totalorder %s12737_s7, %s12737_s7 }
  0x52   :  { %p12744_p10 = por %p12743_p9, %p12742_p8 }
  0x54   :  { %p12745_p11 = pnand %p12744_p10, %p12738_p7 }
  0x56   :  { %12748 = shalt.err (!%p12745_p11)
}
  0x57   :  { %29 = dma.hbm_to_vmem [thread:$0]  %s13339_s0, 384, %s27_s16, [#allocation3]  }
  0x58   :  { %s12749_s12 = scalar_lea.hbm %s13341_s2, 128 }
  0x59   :  { %p12750_p12 = scmp.ne.s32.totalorder %s13341_s2, %s12749_s12  ;;  %p12753_p13 = scmp.lt.u32.totalorder %s12749_s12, %s13341_s2 }
  0x5b   :  { %p12755_p0 = pnand %p12753_p13, %p12750_p12 }
  0x5d   :  { %12758 = shalt.err (!%p12755_p0)
}
  0x5e   :  { %s12759_s5 = scalar_lea.vmem %s49_s18, 128  ;;  %p12764_p2 = scmp.lt.s32.totalorder %s49_s18, %s49_s18 }
  0x5f   :  { %p12760_p1 = scmp.ne.s32.totalorder %s49_s18, %s12759_s5  ;;  %p12765_p3 = scmp.lt.s32.totalorder %s12759_s5, %s12759_s5 }
  0x61   :  { %p12766_p4 = por %p12765_p3, %p12764_p2 }
  0x63   :  { %p12767_p5 = pnand %p12766_p4, %p12760_p1 }
  0x65   :  { %12770 = shalt.err (!%p12767_p5)
}
  0x66   :  { %51 = dma.hbm_to_vmem [thread:$0]  %s13341_s2, 128, %s49_s18, [#allocation6]  }
  0x67   :  { %s12881_s20 = smov [#allocation10]   ;;  %s12882_s15 = smov [#allocation13]  }
  0x68   :  { %s70_s26 = sshll.u32 %s12881_s20, 4  ;;  %s92_s16 = sshll.u32 %s12882_s15, 4  ;;  %s71_s26 = int_to_ptr.vmem [resolvable:$true] %s70_s26  ;;  %s93_s16 = int_to_ptr.vmem [resolvable:$true] %s92_s16 }
  0x69   :  { %s12771_s22 = scalar_lea.hbm %s13343_s4, 128 }
  0x6a   :  { %p12772_p6 = scmp.ne.s32.totalorder %s13343_s4, %s12771_s22  ;;  %p12775_p7 = scmp.lt.u32.totalorder %s12771_s22, %s13343_s4 }
  0x6c   :  { %p12777_p8 = pnand %p12775_p7, %p12772_p6 }
  0x6e   :  { %12780 = shalt.err (!%p12777_p8)
}
  0x6f   :  { %s12781_s2 = scalar_lea.vmem %s71_s26, 128  ;;  %p12786_p10 = scmp.lt.s32.totalorder %s71_s26, %s71_s26 }
  0x70   :  { %p12782_p9 = scmp.ne.s32.totalorder %s71_s26, %s12781_s2  ;;  %p12787_p11 = scmp.lt.s32.totalorder %s12781_s2, %s12781_s2 }
  0x72   :  { %p12788_p12 = por %p12787_p11, %p12786_p10 }
  0x74   :  { %p12789_p13 = pnand %p12788_p12, %p12782_p9 }
  0x76   :  { %12792 = shalt.err (!%p12789_p13)
}
  0x77   :  { %73 = dma.hbm_to_vmem [thread:$0]  %s13343_s4, 128, %s71_s26, [#allocation9]  }
  0x78   :  { %s12793_s29 = scalar_lea.hbm %s13345_s6, 128 }
  0x79   :  { %p12794_p0 = scmp.ne.s32.totalorder %s13345_s6, %s12793_s29  ;;  %p12797_p1 = scmp.lt.u32.totalorder %s12793_s29, %s13345_s6 }
  0x7b   :  { %p12799_p2 = pnand %p12797_p1, %p12794_p0 }
  0x7d   :  { %12802 = shalt.err (!%p12799_p2)
}
  0x7e   :  { %s12803_s1 = scalar_lea.vmem %s93_s16, 128  ;;  %p12808_p4 = scmp.lt.s32.totalorder %s93_s16, %s93_s16 }
  0x7f   :  { %p12804_p3 = scmp.ne.s32.totalorder %s93_s16, %s12803_s1  ;;  %p12809_p5 = scmp.lt.s32.totalorder %s12803_s1, %s12803_s1 }
  0x81   :  { %p12810_p6 = por %p12809_p5, %p12808_p4 }
  0x83   :  { %p12811_p7 = pnand %p12810_p6, %p12804_p3 }
  0x85   :  { %12814 = shalt.err (!%p12811_p7)
}
  0x86   :  { %95 = dma.hbm_to_vmem [thread:$0]  %s13345_s6, 128, %s93_s16, [#allocation12]  }
  0x87   :  { %s12883_s14 = smov [#allocation16]   ;;  %s12815_s20 = scalar_lea.hbm %s13347_s8, 48 }
  0x88   :  { %s114_s5 = sshll.u32 %s12883_s14, 4  ;;  %p12816_p8 = scmp.ne.s32.totalorder %s13347_s8, %s12815_s20  ;;  %s115_s5 = int_to_ptr.vmem [resolvable:$true] %s114_s5 }
  0x89   :  { %p12819_p9 = scmp.lt.u32.totalorder %s12815_s20, %s13347_s8 }
  0x8b   :  { %p12821_p10 = pnand %p12819_p9, %p12816_p8 }
  0x8d   :  { %12824 = shalt.err (!%p12821_p10)
}
  0x8e   :  { %s12825_s22 = scalar_lea.vmem %s115_s5, 48  ;;  %s12829_s6 = scalar_lea.vmem %s115_s5, 64 }
  0x8f   :  { %p12826_p11 = scmp.ne.s32.totalorder %s115_s5, %s12825_s22  ;;  %p12830_p12 = scmp.lt.s32.totalorder %s115_s5, %s115_s5 }
  0x90   :  { %p12831_p13 = scmp.lt.s32.totalorder %s12829_s6, %s12825_s22 }
  0x92   :  { %p12832_p0 = por %p12831_p13, %p12830_p12 }
  0x94   :  { %p12833_p1 = pnand %p12832_p0, %p12826_p11 }
  0x96   :  { %12836 = shalt.err (!%p12833_p1)
}
  0x97   :  { %117 = dma.hbm_to_vmem [thread:$0]  %s13347_s8, 48, %s115_s5, [#allocation15]  }
  0x98   :  { %12859 = dma.done.wait [#allocation3], 384  }
  0x99   :  { %12860 = vsyncadd [#allocation3], 4294966912 }
  0x9a   :  { %12861 = dma.done.wait [#allocation6], 20608  }
  0x9b   :  { %12862 = vsyncadd [#allocation6], 4294946688 }
  0x9c   :  { %12863 = dma.done.wait [#allocation9], 65664  }
  0x9d   :  { %12864 = vsyncadd [#allocation9], 4294901632 }
  0x9e   :  { %12865 = dma.done.wait [#allocation12], 65664  }
  0x9f   :  { %12866 = vsyncadd [#allocation12], 4294901632 }
  0xa0   :  { %12867 = dma.done.wait [#allocation15], 24624  }
  0xa1   :  { %12868 = vsyncadd [#allocation15], 4294942672  ;;  %v12884_v0 = vmov 0   ;;  %v152_v1 = vld [vmem:[#allocation5] sm:$0xff]  ;;  %v147_v30 = vld [vmem:[#allocation2 + $0x8] sm:$0xff]  ;;  %vm1154_vm0 = vcmask 523264  }
  0xa2   :  { %1231 = vmatprep.mubr.bf16.mxu0 %v12884_v0  ;;  %v156_v2 = vld [vmem:[#allocation5 + $0x20] sm:$0xff]  ;;  %v13054_v34 = vpack.c.bf16 %v147_v30, %v147_v30  ;;  %v148_v47 = vld [vmem:[#allocation2 + $0x10] sm:$0xff]  ;;  %v154_v49 = vld [vmem:[#allocation5 + $0x10] sm:$0xff]  ;;  %s12885_s8 = smov [#allocation17]  }
  0xa3   :  { %v160_v3 = vld [vmem:[#allocation5 + $0x40] sm:$0xff]  ;;  %v10736_v4 = vcombine.high %v152_v1, %v156_v2  ;;  %v10735_v5 = vcombine.low %v152_v1, %v156_v2  ;;  %v158_v50 = vld [vmem:[#allocation5 + $0x30] sm:$0xff]  ;;  %v13057_v54 = vpack.c.bf16 %v148_v47, %v148_v47  ;;  %s10722_s25 = sshll.u32 %s12885_s8, 4  ;;  %s10723_s25 = int_to_ptr.vmem [resolvable:$true] %s10722_s25 }
  0xa4   :  { %v164_v6 = vld [vmem:[#allocation5 + $0x60] sm:$0xff]  ;;  %1190 = vmatprep.mubr.bf16.mxu1 %v13054_v34  ;;  %v10740_v51 = vcombine.high %v154_v49, %v158_v50  ;;  %v162_v52 = vld [vmem:[#allocation5 + $0x50] sm:$0xff]  ;;  %v10739_v57 = vcombine.low %v154_v49, %v158_v50  ;;  %s12837_s3 = scalar_lea.vmem %s10723_s25, 384  ;;  %p12842_p3 = scmp.lt.s32.totalorder %s10723_s25, %s10723_s25 }
  0xa5   :  { %v10744_v7 = vcombine.high %v160_v3, %v164_v6  ;;  %v168_v8 = vld [vmem:[#allocation5 + $0x80] sm:$0xff]  ;;  %1158 = vmatprep.subr.bf16.mxu1 %v10736_v4  ;;  %v10743_v10 = vcombine.low %v160_v3, %v164_v6  ;;  %v166_v55 = vld [vmem:[#allocation5 + $0x70] sm:$0xff]  ;;  %p12838_p2 = scmp.ne.s32.totalorder %s10723_s25, %s12837_s3  ;;  %p12843_p4 = scmp.lt.s32.totalorder %s12837_s3, %s12837_s3 }
  0xa6   :  { %v172_v9 = vld [vmem:[#allocation5 + $0xa0] sm:$0xff]  ;;  %1159 = vmatpush1.bf16.msra.mxu1 %v10735_v5  ;;  %v10748_v60 = vcombine.high %v162_v52, %v166_v55  ;;  %v170_v61 = vld [vmem:[#allocation5 + $0x90] sm:$0xff]  ;;  %v10747_v2 = vcombine.low %v162_v52, %v166_v55 }
  0xa7   :  { %1160 = vmatprep.subr.bf16.mxu1 %v10744_v7  ;;  %v10752_v11 = vcombine.high %v168_v8, %v172_v9  ;;  %v176_v12 = vld [vmem:[#allocation5 + $0xc0] sm:$0xff]  ;;  %v10751_v14 = vcombine.low %v168_v8, %v172_v9  ;;  %v174_v62 = vld [vmem:[#allocation5 + $0xb0] sm:$0xff]  ;;  %p12844_p5 = por %p12843_p4, %p12842_p3 }
  0xa8   :  { %v180_v13 = vld [vmem:[#allocation5 + $0xe0] sm:$0xff]  ;;  %v10756_v5 = vcombine.high %v170_v61, %v174_v62  ;;  %v178_v6 = vld [vmem:[#allocation5 + $0xd0] sm:$0xff] }
  0xa9   :  { %v280_v15 = vld [vmem:[#allocation5 + $0x400] sm:$0xff]  ;;  %v10760_v16 = vcombine.high %v176_v12, %v180_v13  ;;  %v10759_v27 = vcombine.low %v176_v12, %v180_v13  ;;  %v182_v7 = vld [vmem:[#allocation5 + $0xf0] sm:$0xff]  ;;  %p12845_p6 = pnand %p12844_p5, %p12838_p2 }
  0xaa   :  { %1161 = vmatpush1.bf16.msra.mxu1 %v10743_v10  ;;  %v184_v17 = vld [vmem:[#allocation5 + $0x100] sm:$0xff]  ;;  %v10755_v10 = vcombine.low %v170_v61, %v174_v62  ;;  %v10764_v13 = vcombine.high %v178_v6, %v182_v7  ;;  %v202_v30 = vld [vmem:[#allocation5 + $0x190] sm:$0xff] }
  0xab   :  { %1162 = vmatprep.subr.bf16.mxu1 %v10752_v11  ;;  %v284_v18 = vld [vmem:[#allocation5 + $0x420] sm:$0xff]  ;;  %v218_v47 = vld [vmem:[#allocation5 + $0x210] sm:$0xff] }
  0xac   :  { %v188_v19 = vld [vmem:[#allocation5 + $0x120] sm:$0xff]  ;;  %v10864_v20 = vcombine.high %v280_v15, %v284_v18  ;;  %v10863_v21 = vcombine.low %v280_v15, %v284_v18  ;;  %v190_v15 = vld [vmem:[#allocation5 + $0x130] sm:$0xff]  ;;  %v10763_v18 = vcombine.low %v178_v6, %v182_v7  ;;  %v165_v6 = vld [vmem:[#allocation5 + $0x68] sm:$0xff] }
  0xad   :  { %v288_v22 = vld [vmem:[#allocation5 + $0x440] sm:$0xff]  ;;  %v10768_v28 = vcombine.high %v184_v17, %v188_v19  ;;  %v10767_v37 = vcombine.low %v184_v17, %v188_v19 }
  0xae   :  { %v292_v23 = vld [vmem:[#allocation5 + $0x460] sm:$0xff]  ;;  %1163 = vmatpush1.bf16.msra.mxu1 %v10751_v14  ;;  %1199 = vmatprep.subr.bf16.mxu0 %v10864_v20  ;;  %v186_v14 = vld [vmem:[#allocation5 + $0x110] sm:$0xff] }
  0xaf   :  { %v10872_v24 = vcombine.high %v288_v22, %v292_v23  ;;  %v296_v25 = vld [vmem:[#allocation5 + $0x480] sm:$0xff]  ;;  %1164 = vmatprep.subr.bf16.mxu1 %v10760_v16  ;;  %1200 = vmatpush1.bf16.msra.mxu0 %v10863_v21  ;;  %v10871_v29 = vcombine.low %v288_v22, %v292_v23  ;;  %v10772_v21 = vcombine.high %v186_v14, %v190_v15  ;;  %v194_v22 = vld [vmem:[#allocation5 + $0x150] sm:$0xff] }
  0xb0   :  { %v300_v26 = vld [vmem:[#allocation5 + $0x4a0] sm:$0xff]  ;;  %v198_v23 = vld [vmem:[#allocation5 + $0x170] sm:$0xff] }
  0xb1   :  { %v192_v31 = vld [vmem:[#allocation5 + $0x140] sm:$0xff]  ;;  %1201 = vmatprep.subr.bf16.mxu0 %v10872_v24  ;;  %v10880_v33 = vcombine.high %v296_v25, %v300_v26  ;;  %v10879_v39 = vcombine.low %v296_v25, %v300_v26 }
  0xb2   :  { %v196_v32 = vld [vmem:[#allocation5 + $0x160] sm:$0xff]  ;;  %1165 = vmatpush1.bf16.msra.mxu1 %v10759_v27  ;;  %v10771_v27 = vcombine.low %v186_v14, %v190_v15  ;;  %v169_v14 = vld [vmem:[#allocation5 + $0x88] sm:$0xff] }
  0xb3   :  { %v304_v35 = vld [vmem:[#allocation5 + $0x4c0] sm:$0xff]  ;;  %1166 = vmatprep.subr.bf16.mxu1 %v10768_v28  ;;  %v10776_v38 = vcombine.high %v192_v31, %v196_v32  ;;  %1202 = vmatpush1.bf16.msra.mxu0 %v10871_v29  ;;  %v10775_v43 = vcombine.low %v192_v31, %v196_v32  ;;  %v10780_v29 = vcombine.high %v194_v22, %v198_v23  ;;  %v206_v31 = vld [vmem:[#allocation5 + $0x1b0] sm:$0xff]  ;;  %v173_v15 = vld [vmem:[#allocation5 + $0xa8] sm:$0xff] }
  0xb4   :  { %v308_v36 = vld [vmem:[#allocation5 + $0x4e0] sm:$0xff]  ;;  %1203 = vmatprep.subr.bf16.mxu0 %v10880_v33 }
  0xb5   :  { %v200_v40 = vld [vmem:[#allocation5 + $0x180] sm:$0xff]  ;;  %v10888_v42 = vcombine.high %v304_v35, %v308_v36  ;;  %v10887_v46 = vcombine.low %v304_v35, %v308_v36 }
  0xb6   :  { %v204_v41 = vld [vmem:[#allocation5 + $0x1a0] sm:$0xff]  ;;  %1167 = vmatpush1.bf16.msra.mxu1 %v10767_v37  ;;  %v10779_v37 = vcombine.low %v194_v22, %v198_v23  ;;  %v177_v22 = vld [vmem:[#allocation5 + $0xc8] sm:$0xff] }
  0xb7   :  { %1168 = vmatprep.subr.bf16.mxu1 %v10776_v38  ;;  %v10784_v44 = vcombine.high %v200_v40, %v204_v41  ;;  %v208_v45 = vld [vmem:[#allocation5 + $0x1c0] sm:$0xff]  ;;  %1204 = vmatpush1.bf16.msra.mxu0 %v10879_v39  ;;  %v10783_v53 = vcombine.low %v200_v40, %v204_v41  ;;  %v10788_v38 = vcombine.high %v202_v30, %v206_v31  ;;  %v210_v39 = vld [vmem:[#allocation5 + $0x1d0] sm:$0xff]  ;;  %v181_v23 = vld [vmem:[#allocation5 + $0xe8] sm:$0xff] }
  0xb8   :  { %v212_v48 = vld [vmem:[#allocation5 + $0x1e0] sm:$0xff]  ;;  %1205 = vmatprep.subr.bf16.mxu0 %v10888_v42  ;;  %v214_v40 = vld [vmem:[#allocation5 + $0x1f0] sm:$0xff] }
  0xb9   :  { %v10792_v56 = vcombine.high %v208_v45, %v212_v48  ;;  %v216_v58 = vld [vmem:[#allocation5 + $0x200] sm:$0xff]  ;;  %v10791_v63 = vcombine.low %v208_v45, %v212_v48  ;;  %v10787_v45 = vcombine.low %v202_v30, %v206_v31  ;;  %v222_v48 = vld [vmem:[#allocation5 + $0x230] sm:$0xff]  ;;  %v185_v30 = vld [vmem:[#allocation5 + $0x108] sm:$0xff] }
  0xba   :  { %1169 = vmatpush1.bf16.msra.mxu1 %v10775_v43  ;;  %v220_v59 = vld [vmem:[#allocation5 + $0x220] sm:$0xff]  ;;  %v10804_v55 = vcombine.high %v218_v47, %v222_v48  ;;  %v10803_v62 = vcombine.low %v218_v47, %v222_v48  ;;  %v189_v31 = vld [vmem:[#allocation5 + $0x128] sm:$0xff] }
  0xbb   :  { %1170 = vmatprep.subr.bf16.mxu1 %v10784_v44  ;;  %1206 = vmatpush1.bf16.msra.mxu0 %v10887_v46  ;;  %v10800_v1 = vcombine.high %v216_v58, %v220_v59  ;;  %v224_v3 = vld [vmem:[#allocation5 + $0x240] sm:$0xff]  ;;  %v10799_v8 = vcombine.low %v216_v58, %v220_v59  ;;  %v10796_v46 = vcombine.high %v210_v39, %v214_v40  ;;  %v153_v59 = vld [vmem:[#allocation5 + $0x8] sm:$0xff] }
  0xbc   :  { %1322 = vmatprep.subr.bf16.mxu0 %v10740_v51  ;;  %v228_v4 = vld [vmem:[#allocation5 + $0x260] sm:$0xff]  ;;  %v201_v47 = vld [vmem:[#allocation5 + $0x188] sm:$0xff] }
  0xbd   :  { %v10808_v9 = vcombine.high %v224_v3, %v228_v4  ;;  %v232_v11 = vld [vmem:[#allocation5 + $0x280] sm:$0xff]  ;;  %v10807_v16 = vcombine.low %v224_v3, %v228_v4  ;;  %v238_v3 = vld [vmem:[#allocation5 + $0x2b0] sm:$0xff]  ;;  %v205_v48 = vld [vmem:[#allocation5 + $0x1a8] sm:$0xff] }
  0xbe   :  { %1171 = vmatpush1.bf16.msra.mxu1 %v10783_v53  ;;  %10895 = vmatmul.mubr.msk.bf16.vlgmr.msra.gmra.mrb[0].mxu0 %vm1154_vm0, %v13057_v54  ;;  %v236_v12 = vld [vmem:[#allocation5 + $0x2a0] sm:$0xff]  ;;  %v10795_v53 = vcombine.low %v210_v39, %v214_v40  ;;  %v193_v39 = vld [vmem:[#allocation5 + $0x148] sm:$0xff] }
  0xbf   :  { %1172 = vmatprep.subr.bf16.mxu1 %v10792_v56  ;;  %1323 = vmatpush1.bf16.msra.mxu0 %v10739_v57  ;;  %v10816_v17 = vcombine.high %v232_v11, %v236_v12  ;;  %v240_v19 = vld [vmem:[#allocation5 + $0x2c0] sm:$0xff]  ;;  %v10815_v24 = vcombine.low %v232_v11, %v236_v12  ;;  %v226_v56 = vld [vmem:[#allocation5 + $0x250] sm:$0xff]  ;;  %v197_v40 = vld [vmem:[#allocation5 + $0x168] sm:$0xff] }
  0xc0   :  { %1324 = vmatprep.subr.bf16.mxu0 %v10748_v60  ;;  %1354 = vmatprep.mubr.bf16.mxu0 %v13054_v34  ;;  %v244_v20 = vld [vmem:[#allocation5 + $0x2e0] sm:$0xff]  ;;  %v230_v57 = vld [vmem:[#allocation5 + $0x270] sm:$0xff]  ;;  %v157_v60 = vld [vmem:[#allocation5 + $0x28] sm:$0xff] }
  0xc1   :  { %v10824_v25 = vcombine.high %v240_v19, %v244_v20  ;;  %v248_v26 = vld [vmem:[#allocation5 + $0x300] sm:$0xff]  ;;  %v10823_v32 = vcombine.low %v240_v19, %v244_v20  ;;  %v10738_v7 = vcombine.high %v153_v59, %v157_v60  ;;  %v254_v19 = vld [vmem:[#allocation5 + $0x330] sm:$0xff] }
  0xc2   :  { %1173 = vmatpush1.bf16.msra.mxu1 %v10791_v63  ;;  %v252_v28 = vld [vmem:[#allocation5 + $0x320] sm:$0xff]  ;;  %v146_v63 = vld [vmem:[#allocation2] sm:$0xff] }
  0xc3   :  { %1174 = vmatprep.subr.bf16.mxu1 %v10800_v1  ;;  %1325 = vmatpush1.bf16.msra.mxu0 %v10747_v2  ;;  %v256_v33 = vld [vmem:[#allocation5 + $0x340] sm:$0xff]  ;;  %v10832_v36 = vcombine.high %v248_v26, %v252_v28  ;;  %v10831_v41 = vcombine.low %v248_v26, %v252_v28  ;;  %v10812_v1 = vcombine.high %v226_v56, %v230_v57  ;;  %v234_v2 = vld [vmem:[#allocation5 + $0x290] sm:$0xff] }
  0xc4   :  { %1326 = vmatprep.subr.bf16.mxu0 %v10756_v5  ;;  %v260_v35 = vld [vmem:[#allocation5 + $0x360] sm:$0xff]  ;;  %v161_v5 = vld [vmem:[#allocation5 + $0x48] sm:$0xff]  ;;  %v10820_v11 = vcombine.high %v234_v2, %v238_v3  ;;  %v13062_v12 = vpack.c.bf16 %v146_v63, %v146_v63  ;;  %v258_v26 = vld [vmem:[#allocation5 + $0x350] sm:$0xff]  ;;  %v10785_v63 = vcombine.low %v201_v47, %v205_v48 }
  0xc5   :  { %v264_v42 = vld [vmem:[#allocation5 + $0x380] sm:$0xff]  ;;  %v10840_v44 = vcombine.high %v256_v33, %v260_v35  ;;  %v10839_v49 = vcombine.low %v256_v33, %v260_v35  ;;  %v266_v35 = vld [vmem:[#allocation5 + $0x390] sm:$0xff] }
  0xc6   :  { %1175 = vmatpush1.bf16.msra.mxu1 %v10799_v8  ;;  %v268_v43 = vld [vmem:[#allocation5 + $0x3a0] sm:$0xff]  ;;  %v10811_v8 = vcombine.low %v226_v56, %v230_v57  ;;  %v209_v56 = vld [vmem:[#allocation5 + $0x1c8] sm:$0xff] }
  0xc7   :  { %1176 = vmatprep.subr.bf16.mxu1 %v10808_v9  ;;  %1327 = vmatpush1.bf16.msra.mxu0 %v10755_v10  ;;  %v272_v50 = vld [vmem:[#allocation5 + $0x3c0] sm:$0xff]  ;;  %v10848_v52 = vcombine.high %v264_v42, %v268_v43  ;;  %v10847_v58 = vcombine.low %v264_v42, %v268_v43  ;;  %v242_v9 = vld [vmem:[#allocation5 + $0x2d0] sm:$0xff]  ;;  %v213_v57 = vld [vmem:[#allocation5 + $0x1e8] sm:$0xff] }
  0xc8   :  { %1328 = vmatprep.subr.bf16.mxu0 %v10764_v13  ;;  %v276_v51 = vld [vmem:[#allocation5 + $0x3e0] sm:$0xff]  ;;  %v246_v10 = vld [vmem:[#allocation5 + $0x2f0] sm:$0xff]  ;;  %v10737_v13 = vcombine.low %v153_v59, %v157_v60 }
  0xc9   :  { %v10856_v61 = vcombine.high %v272_v50, %v276_v51  ;;  %v10855_v4 = vcombine.low %v272_v50, %v276_v51  ;;  %v10828_v20 = vcombine.high %v242_v9, %v246_v10  ;;  %v274_v43 = vld [vmem:[#allocation5 + $0x3d0] sm:$0xff] }
  0xca   :  { %1177 = vmatpush1.bf16.msra.mxu1 %v10807_v16  ;;  %v10746_v16 = vcombine.high %v161_v5, %v165_v6  ;;  %v282_v51 = vld [vmem:[#allocation5 + $0x410] sm:$0xff] }
  0xcb   :  { %1178 = vmatprep.subr.bf16.mxu1 %v10816_v17  ;;  %1329 = vmatpush1.bf16.msra.mxu0 %v10763_v18  ;;  %v10819_v17 = vcombine.low %v234_v2, %v238_v3  ;;  %v250_v18 = vld [vmem:[#allocation5 + $0x310] sm:$0xff]  ;;  %v221_v2 = vld [vmem:[#allocation5 + $0x228] sm:$0xff]  ;;  %v10794_v3 = vcombine.high %v209_v56, %v213_v57 }
  0xcc   :  { %1330 = vmatprep.subr.bf16.mxu0 %v10772_v21  ;;  %v10745_v21 = vcombine.low %v161_v5, %v165_v6  ;;  %v10836_v28 = vcombine.high %v250_v18, %v254_v19  ;;  %v10835_v33 = vcombine.low %v250_v18, %v254_v19  ;;  %v290_v60 = vld [vmem:[#allocation5 + $0x450] sm:$0xff]  ;;  %v233_v18 = vld [vmem:[#allocation5 + $0x288] sm:$0xff] }
  0xcd   :  { %v298_v5 = vld [vmem:[#allocation5 + $0x490] sm:$0xff]  ;;  %v237_v19 = vld [vmem:[#allocation5 + $0x2a8] sm:$0xff] }
  0xce   :  { %1179 = vmatpush1.bf16.msra.mxu1 %v10815_v24  ;;  %v10754_v24 = vcombine.high %v169_v14, %v173_v15  ;;  %v302_v6 = vld [vmem:[#allocation5 + $0x4b0] sm:$0xff] }
  0xcf   :  { %1180 = vmatprep.subr.bf16.mxu1 %v10824_v25  ;;  %1331 = vmatpush1.bf16.msra.mxu0 %v10771_v27  ;;  %v10827_v25 = vcombine.low %v242_v9, %v246_v10  ;;  %v262_v27 = vld [vmem:[#allocation5 + $0x370] sm:$0xff]  ;;  %v225_v9 = vld [vmem:[#allocation5 + $0x248] sm:$0xff] }
  0xd0   :  { %1332 = vmatprep.subr.bf16.mxu0 %v10780_v29  ;;  %v10753_v29 = vcombine.low %v169_v14, %v173_v15  ;;  %v10843_v42 = vcombine.low %v258_v26, %v262_v27  ;;  %v229_v10 = vld [vmem:[#allocation5 + $0x268] sm:$0xff]  ;;  %v10884_v14 = vcombine.high %v298_v5, %v302_v6  ;;  %v306_v15 = vld [vmem:[#allocation5 + $0x4d0] sm:$0xff] }
  0xd2   :  { %1181 = vmatpush1.bf16.msra.mxu1 %v10823_v32  ;;  %v10762_v32 = vcombine.high %v177_v22, %v181_v23 }
  0xd3   :  { %1182 = vmatprep.subr.bf16.mxu1 %v10832_v36  ;;  %1333 = vmatpush1.bf16.msra.mxu0 %v10779_v37  ;;  %v270_v36 = vld [vmem:[#allocation5 + $0x3b0] sm:$0xff]  ;;  %v10844_v37 = vcombine.high %v258_v26, %v262_v27  ;;  %v241_v26 = vld [vmem:[#allocation5 + $0x2c8] sm:$0xff] }
  0xd4   :  { %1334 = vmatprep.subr.bf16.mxu0 %v10788_v38  ;;  %v10761_v38 = vcombine.low %v177_v22, %v181_v23  ;;  %v10851_v50 = vcombine.low %v266_v35, %v270_v36  ;;  %v1502_v23 = vld [vmem:[#allocation8] sm:$0xff] }
  0xd5   :  { %v245_v27 = vld [vmem:[#allocation5 + $0x2e8] sm:$0xff] }
  0xd6   :  { %1183 = vmatpush1.bf16.msra.mxu1 %v10831_v41  ;;  %v10770_v41 = vcombine.high %v185_v30, %v189_v31 }
  0xd7   :  { %1184 = vmatprep.subr.bf16.mxu1 %v10840_v44  ;;  %1335 = vmatpush1.bf16.msra.mxu0 %v10787_v45  ;;  %v278_v44 = vld [vmem:[#allocation5 + $0x3f0] sm:$0xff]  ;;  %v10852_v45 = vcombine.high %v266_v35, %v270_v36  ;;  %v249_v35 = vld [vmem:[#allocation5 + $0x308] sm:$0xff] }
  0xd8   :  { %1336 = vmatprep.subr.bf16.mxu0 %v10796_v46  ;;  %v10769_v46 = vcombine.low %v185_v30, %v189_v31  ;;  %v10859_v59 = vcombine.low %v274_v43, %v278_v44  ;;  %v1510_v31 = vld [vmem:[#allocation8 + $0x40] sm:$0xff] }
  0xd9   :  { %v253_v36 = vld [vmem:[#allocation5 + $0x328] sm:$0xff] }
  0xda   :  { %1185 = vmatpush1.bf16.msra.mxu1 %v10839_v49  ;;  %v10778_v49 = vcombine.high %v193_v39, %v197_v40 }
  0xdb   :  { %1186 = vmatprep.subr.bf16.mxu1 %v10848_v52  ;;  %1337 = vmatpush1.bf16.msra.mxu0 %v10795_v53  ;;  %v286_v52 = vld [vmem:[#allocation5 + $0x430] sm:$0xff]  ;;  %v10860_v53 = vcombine.high %v274_v43, %v278_v44  ;;  %v257_v43 = vld [vmem:[#allocation5 + $0x348] sm:$0xff] }
  0xdc   :  { %1338 = vmatprep.subr.bf16.mxu0 %v10804_v55  ;;  %v10777_v55 = vcombine.low %v193_v39, %v197_v40  ;;  %v1518_v40 = vld [vmem:[#allocation8 + $0x80] sm:$0xff] }
  0xdd   :  { %v261_v44 = vld [vmem:[#allocation5 + $0x368] sm:$0xff] }
  0xde   :  { %1187 = vmatpush1.bf16.msra.mxu1 %v10847_v58  ;;  %v10786_v58 = vcombine.high %v201_v47, %v205_v48  ;;  %v1526_v48 = vld [vmem:[#allocation8 + $0xc0] sm:$0xff] }
  0xdf   :  { %1188 = vmatprep.subr.bf16.mxu1 %v10856_v61  ;;  %1339 = vmatpush1.bf16.msra.mxu0 %v10803_v62  ;;  %v294_v61 = vld [vmem:[#allocation5 + $0x470] sm:$0xff]  ;;  %v10868_v62 = vcombine.high %v282_v51, %v286_v52 }
  0xe0   :  { %1340 = vmatprep.subr.bf16.mxu0 %v10812_v1  ;;  %v217_v1 = vld [vmem:[#allocation5 + $0x208] sm:$0xff] }
  0xe2   :  { %1189 = vmatpush1.bf16.msra.mxu1 %v10855_v4  ;;  %v10867_v4 = vcombine.low %v282_v51, %v286_v52  ;;  %v265_v51 = vld [vmem:[#allocation5 + $0x388] sm:$0xff] }
  0xe3   :  { %1240 = vmatprep.subr.bf16.mxu1 %v10738_v7  ;;  %1341 = vmatpush1.bf16.msra.mxu0 %v10811_v8  ;;  %v10876_v7 = vcombine.high %v290_v60, %v294_v61  ;;  %v10793_v8 = vcombine.low %v209_v56, %v213_v57  ;;  %v269_v52 = vld [vmem:[#allocation5 + $0x3a8] sm:$0xff] }
  0xe4   :  { %1342 = vmatprep.subr.bf16.mxu0 %v10820_v11  ;;  %v10802_v11 = vcombine.high %v217_v1, %v221_v2  ;;  %v1534_v57 = vld [vmem:[#allocation8 + $0x100] sm:$0xff] }
  0xe5   :  { %1191 = vmatmul.mubr.bf16.vlgmr.msra.gmra.mrb[0].mxu1 %v13062_v12 }
  0xe6   :  { %1241 = vmatpush1.bf16.msra.mxu1 %v10737_v13  ;;  %1272 = vmatprep.mubr.bf16.mxu1 %v13054_v34  ;;  %v10875_v13 = vcombine.low %v290_v60, %v294_v61  ;;  %v273_v60 = vld [vmem:[#allocation5 + $0x3c8] sm:$0xff] }
  0xe7   :  { %1242 = vmatprep.subr.bf16.mxu1 %v10746_v16  ;;  %1343 = vmatpush1.bf16.msra.mxu0 %v10819_v17  ;;  %v310_v16 = vld [vmem:[#allocation5 + $0x4f0] sm:$0xff]  ;;  %v10801_v17 = vcombine.low %v217_v1, %v221_v2  ;;  %v277_v61 = vld [vmem:[#allocation5 + $0x3e8] sm:$0xff] }
  0xe8   :  { %1344 = vmatprep.subr.bf16.mxu0 %v10828_v20  ;;  %v10810_v20 = vcombine.high %v225_v9, %v229_v10  ;;  %v10892_v22 = vcombine.high %v306_v15, %v310_v16  ;;  %v1542_v2 = vld [vmem:[#allocation8 + $0x140] sm:$0xff] }
  0xea   :  { %1243 = vmatpush1.bf16.msra.mxu1 %v10745_v21  ;;  %v10883_v21 = vcombine.low %v298_v5, %v302_v6  ;;  %v281_v5 = vld [vmem:[#allocation5 + $0x408] sm:$0xff] }
  0xeb   :  { %1244 = vmatprep.subr.bf16.mxu1 %v10754_v24  ;;  %1345 = vmatpush1.bf16.msra.mxu0 %v10827_v25  ;;  %v1506_v24 = vld [vmem:[#allocation8 + $0x20] sm:$0xff]  ;;  %v10809_v25 = vcombine.low %v225_v9, %v229_v10 }
  0xec   :  { %1346 = vmatprep.subr.bf16.mxu0 %v10836_v28  ;;  %v10818_v28 = vcombine.high %v233_v18, %v237_v19  ;;  %v10900_v30 = vcombine.high %v1502_v23, %v1506_v24  ;;  %v285_v6 = vld [vmem:[#allocation5 + $0x428] sm:$0xff] }
  0xed   :  { %v1550_v10 = vld [vmem:[#allocation8 + $0x180] sm:$0xff] }
  0xee   :  { %1245 = vmatpush1.bf16.msra.mxu1 %v10753_v29  ;;  %v10891_v29 = vcombine.low %v306_v15, %v310_v16  ;;  %v293_v15 = vld [vmem:[#allocation5 + $0x468] sm:$0xff]  ;;  %v10866_v16 = vcombine.high %v281_v5, %v285_v6 }
  0xef   :  { %1246 = vmatprep.subr.bf16.mxu1 %v10762_v32  ;;  %1347 = vmatpush1.bf16.msra.mxu0 %v10835_v33  ;;  %v1514_v32 = vld [vmem:[#allocation8 + $0x60] sm:$0xff]  ;;  %v10817_v33 = vcombine.low %v233_v18, %v237_v19 }
  0xf0   :  { %1348 = vmatprep.subr.bf16.mxu0 %v10844_v37  ;;  %v10826_v37 = vcombine.high %v241_v26, %v245_v27  ;;  %v10908_v39 = vcombine.high %v1510_v31, %v1514_v32  ;;  %v1558_v19 = vld [vmem:[#allocation8 + $0x1c0] sm:$0xff] }
  0xf2   :  { %1247 = vmatpush1.bf16.msra.mxu1 %v10761_v38  ;;  %v10899_v38 = vcombine.low %v1502_v23, %v1506_v24  ;;  %v301_v23 = vld [vmem:[#allocation5 + $0x4a8] sm:$0xff] }
  0xf3   :  { %1248 = vmatprep.subr.bf16.mxu1 %v10770_v41  ;;  %1349 = vmatpush1.bf16.msra.mxu0 %v10843_v42  ;;  %v1522_v41 = vld [vmem:[#allocation8 + $0xa0] sm:$0xff]  ;;  %v10825_v42 = vcombine.low %v241_v26, %v245_v27 }
  0xf4   :  { %1350 = vmatprep.subr.bf16.mxu0 %v10852_v45  ;;  %v10834_v45 = vcombine.high %v249_v35, %v253_v36  ;;  %v10916_v47 = vcombine.high %v1518_v40, %v1522_v41  ;;  %v1566_v27 = vld [vmem:[#allocation8 + $0x200] sm:$0xff] }
  0xf6   :  { %1249 = vmatpush1.bf16.msra.mxu1 %v10769_v46  ;;  %v10907_v46 = vcombine.low %v1510_v31, %v1514_v32  ;;  %v309_v31 = vld [vmem:[#allocation5 + $0x4e8] sm:$0xff] }
  0xf7   :  { %1250 = vmatprep.subr.bf16.mxu1 %v10778_v49  ;;  %1351 = vmatpush1.bf16.msra.mxu0 %v10851_v50  ;;  %v1530_v49 = vld [vmem:[#allocation8 + $0xe0] sm:$0xff]  ;;  %v10833_v50 = vcombine.low %v249_v35, %v253_v36 }
  0xf8   :  { %1352 = vmatprep.subr.bf16.mxu0 %v10860_v53  ;;  %v10842_v53 = vcombine.high %v257_v43, %v261_v44  ;;  %v10924_v56 = vcombine.high %v1526_v48, %v1530_v49  ;;  %v1574_v36 = vld [vmem:[#allocation8 + $0x240] sm:$0xff] }
  0xfa   :  { %1251 = vmatpush1.bf16.msra.mxu1 %v10777_v55  ;;  %v10915_v55 = vcombine.low %v1518_v40, %v1522_v41  ;;  %v159_v40 = vld [vmem:[#allocation5 + $0x38] sm:$0xff] }
  0xfb   :  { %1252 = vmatprep.subr.bf16.mxu1 %v10786_v58  ;;  %1353 = vmatpush1.bf16.msra.mxu0 %v10859_v59  ;;  %v1538_v58 = vld [vmem:[#allocation8 + $0x120] sm:$0xff]  ;;  %v10841_v59 = vcombine.low %v257_v43, %v261_v44 }
  0xfc   :  { %1363 = vmatprep.subr.bf16.mxu0 %v10868_v62  ;;  %v10850_v62 = vcombine.high %v265_v51, %v269_v52  ;;  %v10932_v1 = vcombine.high %v1534_v57, %v1538_v58  ;;  %v1582_v44 = vld [vmem:[#allocation8 + $0x280] sm:$0xff] }
  0xfe   :  { %1253 = vmatpush1.bf16.msra.mxu1 %v10785_v63  ;;  %1355 = vmatmul.mubr.bf16.vlgmr.msra.gmra.mrb[4].mxu0 %v13062_v12  ;;  %v10923_v63 = vcombine.low %v1526_v48, %v1530_v49  ;;  %v167_v48 = vld [vmem:[#allocation5 + $0x78] sm:$0xff] }
  0xff   :  { %1254 = vmatprep.subr.bf16.mxu1 %v10794_v3  ;;  %1364 = vmatpush1.bf16.msra.mxu0 %v10867_v4  ;;  %v1546_v3 = vld [vmem:[#allocation8 + $0x160] sm:$0xff]  ;;  %v10849_v4 = vcombine.low %v265_v51, %v269_v52 }
 0x100   :  { %1365 = vmatprep.subr.bf16.mxu0 %v10876_v7  ;;  %1395 = vmatprep.mubr.bf16.mxu0 %v12884_v0  ;;  %v10858_v7 = vcombine.high %v273_v60, %v277_v61  ;;  %v10940_v9 = vcombine.high %v1542_v2, %v1546_v3  ;;  %v1590_v52 = vld [vmem:[#allocation8 + $0x2c0] sm:$0xff] }
 0x102   :  { %1255 = vmatpush1.bf16.msra.mxu1 %v10793_v8  ;;  %v10931_v8 = vcombine.low %v1534_v57, %v1538_v58  ;;  %v175_v57 = vld [vmem:[#allocation5 + $0xb8] sm:$0xff] }
 0x103   :  { %1256 = vmatprep.subr.bf16.mxu1 %v10802_v11  ;;  %1366 = vmatpush1.bf16.msra.mxu0 %v10875_v13  ;;  %v1554_v11 = vld [vmem:[#allocation8 + $0x1a0] sm:$0xff]  ;;  %v10857_v13 = vcombine.low %v273_v60, %v277_v61 }
 0x104   :  { %1367 = vmatprep.subr.bf16.mxu0 %v10884_v14  ;;  %v289_v14 = vld [vmem:[#allocation5 + $0x448] sm:$0xff]  ;;  %v10948_v18 = vcombine.high %v1550_v10, %v1554_v11 }
 0x105   :  { %v10874_v24 = vcombine.high %v289_v14, %v293_v15  ;;  %v1598_v61 = vld [vmem:[#allocation8 + $0x300] sm:$0xff] }
 0x106   :  { %1257 = vmatpush1.bf16.msra.mxu1 %v10801_v17  ;;  %v10939_v17 = vcombine.low %v1542_v2, %v1546_v3  ;;  %v183_v2 = vld [vmem:[#allocation5 + $0xf8] sm:$0xff] }
 0x107   :  { %1258 = vmatprep.subr.bf16.mxu1 %v10810_v20  ;;  %1368 = vmatpush1.bf16.msra.mxu0 %v10883_v21  ;;  %v1562_v20 = vld [vmem:[#allocation8 + $0x1e0] sm:$0xff]  ;;  %v10865_v21 = vcombine.low %v281_v5, %v285_v6 }
 0x108   :  { %1369 = vmatprep.subr.bf16.mxu0 %v10892_v22  ;;  %v297_v22 = vld [vmem:[#allocation5 + $0x488] sm:$0xff]  ;;  %v10956_v26 = vcombine.high %v1558_v19, %v1562_v20 }
 0x109   :  { %v10882_v32 = vcombine.high %v297_v22, %v301_v23  ;;  %v1606_v6 = vld [vmem:[#allocation8 + $0x340] sm:$0xff] }
 0x10a   :  { %1259 = vmatpush1.bf16.msra.mxu1 %v10809_v25  ;;  %v10947_v25 = vcombine.low %v1550_v10, %v1554_v11  ;;  %v191_v10 = vld [vmem:[#allocation5 + $0x138] sm:$0xff] }
 0x10b   :  { %1260 = vmatprep.subr.bf16.mxu1 %v10818_v28  ;;  %1370 = vmatpush1.bf16.msra.mxu0 %v10891_v29  ;;  %v1570_v28 = vld [vmem:[#allocation8 + $0x220] sm:$0xff]  ;;  %v10873_v29 = vcombine.low %v289_v14, %v293_v15 }
 0x10c   :  { %4616 = vmatprep.subr.bf16.mxu0 %v10900_v30  ;;  %v305_v30 = vld [vmem:[#allocation5 + $0x4c8] sm:$0xff]  ;;  %v10964_v35 = vcombine.high %v1566_v27, %v1570_v28 }
 0x10d   :  { %v10890_v41 = vcombine.high %v305_v30, %v309_v31  ;;  %v1614_v15 = vld [vmem:[#allocation8 + $0x380] sm:$0xff] }
 0x10e   :  { %1261 = vmatpush1.bf16.msra.mxu1 %v10817_v33  ;;  %10897 = vmatmul.mubr.msk.bf16.vlgmr.msra.gmra.mrb[4].mxu0 %vm1154_vm0, %v13057_v54  ;;  %v10955_v33 = vcombine.low %v1558_v19, %v1562_v20 }
 0x10f   :  { %1262 = vmatprep.subr.bf16.mxu1 %v10826_v37  ;;  %4617 = vmatpush1.bf16.msra.mxu0 %v10899_v38  ;;  %v1578_v37 = vld [vmem:[#allocation8 + $0x260] sm:$0xff]  ;;  %v10881_v38 = vcombine.low %v297_v22, %v301_v23 }
 0x110   :  { %4618 = vmatprep.subr.bf16.mxu0 %v10908_v39  ;;  %v155_v39 = vld [vmem:[#allocation5 + $0x18] sm:$0xff]  ;;  %v10972_v43 = vcombine.high %v1574_v36, %v1578_v37  ;;  %v1626_v22 = vld [vmem:[#allocation8 + $0x3e0] sm:$0xff] }
 0x111   :  { %v10742_v49 = vcombine.high %v155_v39, %v159_v40 }
 0x112   :  { %1263 = vmatpush1.bf16.msra.mxu1 %v10825_v42  ;;  %v10963_v42 = vcombine.low %v1566_v27, %v1570_v28  ;;  %v203_v27 = vld [vmem:[#allocation5 + $0x198] sm:$0xff] }
 0x113   :  { %1264 = vmatprep.subr.bf16.mxu1 %v10834_v45  ;;  %4619 = vmatpush1.bf16.msra.mxu0 %v10907_v46  ;;  %v1586_v45 = vld [vmem:[#allocation8 + $0x2a0] sm:$0xff]  ;;  %v10889_v46 = vcombine.low %v305_v30, %v309_v31  ;;  %v207_v28 = vld [vmem:[#allocation5 + $0x1b8] sm:$0xff] }
 0x114   :  { %4620 = vmatprep.subr.bf16.mxu0 %v10916_v47  ;;  %v163_v47 = vld [vmem:[#allocation5 + $0x58] sm:$0xff]  ;;  %v10980_v51 = vcombine.high %v1582_v44, %v1586_v45  ;;  %v13075_v30 = vld [vmem:[#allocation8 + $0x400] sm:$0xff] }
 0x115   :  { %v10750_v58 = vcombine.high %v163_v47, %v167_v48  ;;  %v13077_v31 = vld [vmem:[#allocation8 + $0x420] sm:$0xff] }
 0x116   :  { %1265 = vmatpush1.bf16.msra.mxu1 %v10833_v50  ;;  %v10971_v50 = vcombine.low %v1574_v36, %v1578_v37  ;;  %v211_v37 = vld [vmem:[#allocation5 + $0x1d8] sm:$0xff] }
 0x117   :  { %1266 = vmatprep.subr.bf16.mxu1 %v10842_v53  ;;  %4621 = vmatpush1.bf16.msra.mxu0 %v10915_v55  ;;  %v1594_v53 = vld [vmem:[#allocation8 + $0x2e0] sm:$0xff]  ;;  %v10741_v55 = vcombine.low %v155_v39, %v159_v40  ;;  %v11028_v39 = vcombine.high %v13075_v30, %v13077_v31  ;;  %v10789_v40 = vcombine.low %v203_v27, %v207_v28 }
 0x118   :  { %4622 = vmatprep.subr.bf16.mxu0 %v10924_v56  ;;  %v171_v56 = vld [vmem:[#allocation5 + $0x98] sm:$0xff]  ;;  %v10988_v60 = vcombine.high %v1590_v52, %v1594_v53 }
 0x119   :  { %v10758_v3 = vcombine.high %v171_v56, %v175_v57 }
 0x11a   :  { %1267 = vmatpush1.bf16.msra.mxu1 %v10841_v59  ;;  %v10979_v59 = vcombine.low %v1582_v44, %v1586_v45 }
 0x11b   :  { %1268 = vmatprep.subr.bf16.mxu1 %v10850_v62  ;;  %4623 = vmatpush1.bf16.msra.mxu0 %v10923_v63  ;;  %v1602_v62 = vld [vmem:[#allocation8 + $0x320] sm:$0xff]  ;;  %v10749_v63 = vcombine.low %v163_v47, %v167_v48  ;;  %v231_v47 = vld [vmem:[#allocation5 + $0x278] sm:$0xff] }
 0x11c   :  { %4624 = vmatprep.subr.bf16.mxu0 %v10932_v1  ;;  %v179_v1 = vld [vmem:[#allocation5 + $0xd8] sm:$0xff]  ;;  %v10996_v5 = vcombine.high %v1598_v61, %v1602_v62 }
 0x11d   :  { %v10766_v11 = vcombine.high %v179_v1, %v183_v2 }
 0x11e   :  { %1269 = vmatpush1.bf16.msra.mxu1 %v10849_v4  ;;  %v10987_v4 = vcombine.low %v1590_v52, %v1594_v53 }
 0x11f   :  { %1270 = vmatprep.subr.bf16.mxu1 %v10858_v7  ;;  %4625 = vmatpush1.bf16.msra.mxu0 %v10931_v8  ;;  %v1610_v7 = vld [vmem:[#allocation8 + $0x360] sm:$0xff]  ;;  %v10757_v8 = vcombine.low %v171_v56, %v175_v57  ;;  %v247_v56 = vld [vmem:[#allocation5 + $0x2f8] sm:$0xff] }
 0x120   :  { %4626 = vmatprep.subr.bf16.mxu0 %v10940_v9  ;;  %v187_v9 = vld [vmem:[#allocation5 + $0x118] sm:$0xff]  ;;  %v11004_v14 = vcombine.high %v1606_v6, %v1610_v7  ;;  %v11003_v20 = vcombine.low %v1606_v6, %v1610_v7 }
 0x121   :  { %v10774_v19 = vcombine.high %v187_v9, %v191_v10 }
 0x122   :  { %1271 = vmatpush1.bf16.msra.mxu1 %v10857_v13  ;;  %v10995_v13 = vcombine.low %v1598_v61, %v1602_v62 }
 0x123   :  { %1281 = vmatprep.subr.bf16.mxu1 %v10866_v16  ;;  %4627 = vmatpush1.bf16.msra.mxu0 %v10939_v17  ;;  %v10765_v16 = vcombine.low %v179_v1, %v183_v2  ;;  %v195_v17 = vld [vmem:[#allocation5 + $0x158] sm:$0xff] }
 0x124   :  { %4628 = vmatprep.subr.bf16.mxu0 %v10948_v18  ;;  %v199_v18 = vld [vmem:[#allocation5 + $0x178] sm:$0xff] }
 0x125   :  { %1273 = vmatmul.mubr.bf16.vlgmr.msra.gmra.mrb[4].mxu1 %v13062_v12  ;;  %v263_v1 = vld [vmem:[#allocation5 + $0x378] sm:$0xff] }
 0x126   :  { %1282 = vmatpush1.bf16.msra.mxu1 %v10865_v21  ;;  %1313 = vmatprep.mubr.bf16.mxu1 %v12884_v0  ;;  %v1622_v21 = vld [vmem:[#allocation8 + $0x3c0] sm:$0xff] }
 0x127   :  { %1283 = vmatprep.subr.bf16.mxu1 %v10874_v24  ;;  %4629 = vmatpush1.bf16.msra.mxu0 %v10947_v25  ;;  %v10773_v24 = vcombine.low %v187_v9, %v191_v10  ;;  %v10782_v25 = vcombine.high %v195_v17, %v199_v18  ;;  %v11019_v36 = vcombine.low %v1622_v21, %v1626_v22  ;;  %v279_v9 = vld [vmem:[#allocation5 + $0x3f8] sm:$0xff] }
 0x128   :  { %4630 = vmatprep.subr.bf16.mxu0 %v10956_v26 }
 0x12a   :  { %1284 = vmatpush1.bf16.msra.mxu1 %v10873_v29  ;;  %v11020_v29 = vcombine.high %v1622_v21, %v1626_v22  ;;  %v303_v21 = vld [vmem:[#allocation5 + $0x4b8] sm:$0xff] }
 0x12b   :  { %1285 = vmatprep.subr.bf16.mxu1 %v10882_v32  ;;  %4631 = vmatpush1.bf16.msra.mxu0 %v10955_v33  ;;  %v10781_v32 = vcombine.low %v195_v17, %v199_v18  ;;  %v11027_v33 = vcombine.low %v13075_v30, %v13077_v31  ;;  %v295_v17 = vld [vmem:[#allocation5 + $0x478] sm:$0xff] }
 0x12c   :  { %4632 = vmatprep.subr.bf16.mxu0 %v10964_v35  ;;  %v10790_v35 = vcombine.high %v203_v27, %v207_v28  ;;  %v1503_v28 = vld [vmem:[#allocation8 + $0x8] sm:$0xff] }
 0x12e   :  { %1286 = vmatpush1.bf16.msra.mxu1 %v10881_v38  ;;  %v215_v38 = vld [vmem:[#allocation5 + $0x1f8] sm:$0xff] }
 0x12f   :  { %1287 = vmatprep.subr.bf16.mxu1 %v10890_v41  ;;  %4633 = vmatpush1.bf16.msra.mxu0 %v10963_v42  ;;  %v10798_v41 = vcombine.high %v211_v37, %v215_v38  ;;  %v219_v42 = vld [vmem:[#allocation5 + $0x218] sm:$0xff]  ;;  %v10797_v44 = vcombine.low %v211_v37, %v215_v38  ;;  %v1519_v38 = vld [vmem:[#allocation8 + $0x88] sm:$0xff] }
 0x130   :  { %4634 = vmatprep.subr.bf16.mxu0 %v10972_v43  ;;  %v223_v43 = vld [vmem:[#allocation5 + $0x238] sm:$0xff] }
 0x131   :  { %v10806_v45 = vcombine.high %v219_v42, %v223_v43  ;;  %v10805_v48 = vcombine.low %v219_v42, %v223_v43  ;;  %v1527_v42 = vld [vmem:[#allocation8 + $0xc8] sm:$0xff] }
 0x132   :  { %1288 = vmatpush1.bf16.msra.mxu1 %v10889_v46  ;;  %v227_v46 = vld [vmem:[#allocation5 + $0x258] sm:$0xff]  ;;  %v1531_v43 = vld [vmem:[#allocation8 + $0xe8] sm:$0xff] }
 0x133   :  { %1404 = vmatprep.subr.bf16.mxu1 %v10742_v49  ;;  %4635 = vmatpush1.bf16.msra.mxu0 %v10971_v50  ;;  %v10814_v49 = vcombine.high %v227_v46, %v231_v47  ;;  %v235_v50 = vld [vmem:[#allocation5 + $0x298] sm:$0xff]  ;;  %v10813_v52 = vcombine.low %v227_v46, %v231_v47  ;;  %v1535_v46 = vld [vmem:[#allocation8 + $0x108] sm:$0xff] }
 0x134   :  { %4636 = vmatprep.subr.bf16.mxu0 %v10980_v51  ;;  %v239_v51 = vld [vmem:[#allocation5 + $0x2b8] sm:$0xff]  ;;  %v1539_v47 = vld [vmem:[#allocation8 + $0x128] sm:$0xff] }
 0x135   :  { %10896 = vmatmul.mubr.msk.bf16.vlgmr.msra.gmra.mrb[4].mxu1 %vm1154_vm0, %v13057_v54  ;;  %v10822_v53 = vcombine.high %v235_v50, %v239_v51  ;;  %v10821_v57 = vcombine.low %v235_v50, %v239_v51  ;;  %v1543_v50 = vld [vmem:[#allocation8 + $0x148] sm:$0xff] }
 0x136   :  { %1405 = vmatpush1.bf16.msra.mxu1 %v10741_v55  ;;  %1436 = vmatprep.mubr.bf16.mxu1 %v13054_v34  ;;  %v1618_v34 = vld [vmem:[#allocation8 + $0x3a0] sm:$0xff]  ;;  %v243_v55 = vld [vmem:[#allocation5 + $0x2d8] sm:$0xff]  ;;  %v1547_v51 = vld [vmem:[#allocation8 + $0x168] sm:$0xff] }
 0x137   :  { %1406 = vmatprep.subr.bf16.mxu1 %v10750_v58  ;;  %4637 = vmatpush1.bf16.msra.mxu0 %v10979_v59  ;;  %v11012_v23 = vcombine.high %v1614_v15, %v1618_v34  ;;  %v11011_v26 = vcombine.low %v1614_v15, %v1618_v34  ;;  %v10830_v58 = vcombine.high %v243_v55, %v247_v56  ;;  %v251_v59 = vld [vmem:[#allocation5 + $0x318] sm:$0xff] }
 0x138   :  { %4638 = vmatprep.subr.bf16.mxu0 %v10988_v60  ;;  %v255_v60 = vld [vmem:[#allocation5 + $0x338] sm:$0xff]  ;;  %v10829_v61 = vcombine.low %v243_v55, %v247_v56  ;;  %v10942_v55 = vcombine.high %v1543_v50, %v1547_v51 }
 0x139   :  { %v10838_v62 = vcombine.high %v251_v59, %v255_v60  ;;  %v10837_v2 = vcombine.low %v251_v59, %v255_v60  ;;  %v10941_v60 = vcombine.low %v1543_v50, %v1547_v51 }
 0x13a   :  { %1407 = vmatpush1.bf16.msra.mxu1 %v10749_v63  ;;  %v259_v63 = vld [vmem:[#allocation5 + $0x358] sm:$0xff] }
 0x13b   :  { %1408 = vmatprep.subr.bf16.mxu1 %v10758_v3  ;;  %4639 = vmatpush1.bf16.msra.mxu0 %v10987_v4  ;;  %v10846_v3 = vcombine.high %v259_v63, %v263_v1  ;;  %v267_v4 = vld [vmem:[#allocation5 + $0x398] sm:$0xff]  ;;  %v10845_v6 = vcombine.low %v259_v63, %v263_v1  ;;  %v1563_v63 = vld [vmem:[#allocation8 + $0x1e8] sm:$0xff] }
 0x13c   :  { %4640 = vmatprep.subr.bf16.mxu0 %v10996_v5  ;;  %v271_v5 = vld [vmem:[#allocation5 + $0x3b8] sm:$0xff] }
 0x13d   :  { %v10854_v7 = vcombine.high %v267_v4, %v271_v5  ;;  %v10853_v10 = vcombine.low %v267_v4, %v271_v5  ;;  %v1571_v4 = vld [vmem:[#allocation8 + $0x228] sm:$0xff] }
 0x13e   :  { %1409 = vmatpush1.bf16.msra.mxu1 %v10757_v8  ;;  %v275_v8 = vld [vmem:[#allocation5 + $0x3d8] sm:$0xff] }
 0x13f   :  { %1410 = vmatprep.subr.bf16.mxu1 %v10766_v11  ;;  %4641 = vmatpush1.bf16.msra.mxu0 %v10995_v13  ;;  %v10862_v11 = vcombine.high %v275_v8, %v279_v9  ;;  %v283_v13 = vld [vmem:[#allocation5 + $0x418] sm:$0xff]  ;;  %v10861_v15 = vcombine.low %v275_v8, %v279_v9  ;;  %v1579_v8 = vld [vmem:[#allocation8 + $0x268] sm:$0xff] }
 0x140   :  { %4642 = vmatprep.subr.bf16.mxu0 %v11004_v14  ;;  %v287_v14 = vld [vmem:[#allocation5 + $0x438] sm:$0xff] }
 0x141   :  { %v10870_v34 = vcombine.high %v283_v13, %v287_v14  ;;  %v10869_v18 = vcombine.low %v283_v13, %v287_v14  ;;  %v1587_v13 = vld [vmem:[#allocation8 + $0x2a8] sm:$0xff] }
 0x142   :  { %1411 = vmatpush1.bf16.msra.mxu1 %v10765_v16  ;;  %v291_v16 = vld [vmem:[#allocation5 + $0x458] sm:$0xff] }
 0x143   :  { %1412 = vmatprep.subr.bf16.mxu1 %v10774_v19  ;;  %4643 = vmatpush1.bf16.msra.mxu0 %v11003_v20  ;;  %v10878_v19 = vcombine.high %v291_v16, %v295_v17  ;;  %v299_v20 = vld [vmem:[#allocation5 + $0x498] sm:$0xff]  ;;  %v10877_v22 = vcombine.low %v291_v16, %v295_v17  ;;  %v1595_v16 = vld [vmem:[#allocation8 + $0x2e8] sm:$0xff]  ;;  %v314_v17 = vlaneseq }
 0x144   :  { %4644 = vmatprep.subr.bf16.mxu0 %v11012_v23  ;;  %v10886_v23 = vcombine.high %v299_v20, %v303_v21 }
 0x146   :  { %1413 = vmatpush1.bf16.msra.mxu1 %v10773_v24  ;;  %v307_v24 = vld [vmem:[#allocation5 + $0x4d8] sm:$0xff] }
 0x147   :  { %1414 = vmatprep.subr.bf16.mxu1 %v10782_v25  ;;  %4645 = vmatpush1.bf16.msra.mxu0 %v11011_v26  ;;  %v311_v25 = vld [vmem:[#allocation5 + $0x4f8] sm:$0xff]  ;;  %v10885_v26 = vcombine.low %v299_v20, %v303_v21  ;;  %v1599_v20 = vld [vmem:[#allocation8 + $0x308] sm:$0xff] }
 0x148   :  { %4646 = vmatprep.subr.bf16.mxu0 %v11020_v29  ;;  %v10894_v27 = vcombine.high %v307_v24, %v311_v25  ;;  %v1507_v29 = vld [vmem:[#allocation8 + $0x28] sm:$0xff] }
 0x149   :  { %v10901_v37 = vcombine.low %v1503_v28, %v1507_v29  ;;  %v1603_v21 = vld [vmem:[#allocation8 + $0x328] sm:$0xff] }
 0x14a   :  { %1415 = vmatpush1.bf16.msra.mxu1 %v10781_v32  ;;  %v10893_v32 = vcombine.low %v307_v24, %v311_v25  ;;  %v10998_v24 = vcombine.high %v1599_v20, %v1603_v21  ;;  %v1607_v25 = vld [vmem:[#allocation8 + $0x348] sm:$0xff] }
 0x14b   :  { %1416 = vmatprep.subr.bf16.mxu1 %v10790_v35  ;;  %4647 = vmatpush1.bf16.msra.mxu0 %v11019_v36  ;;  %v10902_v35 = vcombine.high %v1503_v28, %v1507_v29  ;;  %v1511_v36 = vld [vmem:[#allocation8 + $0x48] sm:$0xff]  ;;  %v10997_v28 = vcombine.low %v1599_v20, %v1603_v21  ;;  %v13096_v29 = vld [vmem:[#allocation7] sm:$0xff] }
 0x14c   :  { %4657 = vmatprep.subr.bf16.mxu0 %v11028_v39  ;;  %v1523_v39 = vld [vmem:[#allocation8 + $0xa8] sm:$0xff] }
 0x14d   :  { %v1663_v20 = vld [vmem:[#allocation8 + $0x508] sm:$0xff] }
 0x14e   :  { %1417 = vmatpush1.bf16.msra.mxu1 %v10789_v40  ;;  %v1667_v21 = vld [vmem:[#allocation8 + $0x528] sm:$0xff] }
 0x14f   :  { %1418 = vmatprep.subr.bf16.mxu1 %v10798_v41  ;;  %v10918_v41 = vcombine.high %v1519_v38, %v1523_v39 }
 0x152   :  { %1419 = vmatpush1.bf16.msra.mxu1 %v10797_v44  ;;  %v10917_v44 = vcombine.low %v1519_v38, %v1523_v39 }
 0x153   :  { %1420 = vmatprep.subr.bf16.mxu1 %v10806_v45  ;;  %v10926_v45 = vcombine.high %v1527_v42, %v1531_v43 }
 0x156   :  { %1421 = vmatpush1.bf16.msra.mxu1 %v10805_v48  ;;  %v10925_v48 = vcombine.low %v1527_v42, %v1531_v43  ;;  %v1627_v42 = vld [vmem:[#allocation8 + $0x3e8] sm:$0xff] }
 0x157   :  { %1422 = vmatprep.subr.bf16.mxu1 %v10814_v49  ;;  %v10934_v49 = vcombine.high %v1535_v46, %v1539_v47 }
 0x15a   :  { %1423 = vmatpush1.bf16.msra.mxu1 %v10813_v52 }
 0x15b   :  { %1424 = vmatprep.subr.bf16.mxu1 %v10822_v53 }
 0x15e   :  { %1425 = vmatpush1.bf16.msra.mxu1 %v10821_v57  ;;  %v1551_v57 = vld [vmem:[#allocation8 + $0x188] sm:$0xff] }
 0x15f   :  { %1426 = vmatprep.subr.bf16.mxu1 %v10830_v58  ;;  %v1555_v58 = vld [vmem:[#allocation8 + $0x1a8] sm:$0xff] }
 0x160   :  { %v10949_v1 = vcombine.low %v1551_v57, %v1555_v58 }
 0x162   :  { %1427 = vmatpush1.bf16.msra.mxu1 %v10829_v61  ;;  %v10950_v61 = vcombine.high %v1551_v57, %v1555_v58 }
 0x163   :  { %1428 = vmatprep.subr.bf16.mxu1 %v10838_v62  ;;  %v1559_v62 = vld [vmem:[#allocation8 + $0x1c8] sm:$0xff] }
 0x164   :  { %v10957_v5 = vcombine.low %v1559_v62, %v1563_v63 }
 0x166   :  { %1429 = vmatpush1.bf16.msra.mxu1 %v10837_v2  ;;  %v10958_v2 = vcombine.high %v1559_v62, %v1563_v63 }
 0x167   :  { %1430 = vmatprep.subr.bf16.mxu1 %v10846_v3  ;;  %v1567_v3 = vld [vmem:[#allocation8 + $0x208] sm:$0xff] }
 0x168   :  { %v10965_v9 = vcombine.low %v1567_v3, %v1571_v4 }
 0x16a   :  { %1431 = vmatpush1.bf16.msra.mxu1 %v10845_v6  ;;  %v10966_v6 = vcombine.high %v1567_v3, %v1571_v4  ;;  %v1646_v3 = vld [vmem:[#allocation8 + $0x480] sm:$0xff] }
 0x16b   :  { %1432 = vmatprep.subr.bf16.mxu1 %v10854_v7  ;;  %v1575_v7 = vld [vmem:[#allocation8 + $0x248] sm:$0xff]  ;;  %v1650_v4 = vld [vmem:[#allocation8 + $0x4a0] sm:$0xff] }
 0x16c   :  { %v10973_v14 = vcombine.low %v1575_v7, %v1579_v8 }
 0x16e   :  { %1433 = vmatpush1.bf16.msra.mxu1 %v10853_v10  ;;  %v10974_v10 = vcombine.high %v1575_v7, %v1579_v8  ;;  %v1647_v7 = vld [vmem:[#allocation8 + $0x488] sm:$0xff] }
 0x16f   :  { %1434 = vmatprep.subr.bf16.mxu1 %v10862_v11  ;;  %v1583_v11 = vld [vmem:[#allocation8 + $0x288] sm:$0xff] }
 0x170   :  { %v1651_v8 = vld [vmem:[#allocation8 + $0x4a8] sm:$0xff] }
 0x171   :  { %v11045_v31 = vcombine.low %v1647_v7, %v1651_v8 }
 0x172   :  { %1435 = vmatpush1.bf16.msra.mxu1 %v10861_v15  ;;  %v10982_v15 = vcombine.high %v1583_v11, %v1587_v13 }
 0x173   :  { %1445 = vmatprep.subr.bf16.mxu1 %v10870_v34  ;;  %v1591_v34 = vld [vmem:[#allocation8 + $0x2c8] sm:$0xff] }
 0x175   :  { %1437 = vmatmul.mubr.bf16.vlgmr.msra.gmra.mrb[8].mxu1 %v13062_v12  ;;  %v1515_v12 = vld [vmem:[#allocation8 + $0x68] sm:$0xff] }
 0x176   :  { %1446 = vmatpush1.bf16.msra.mxu1 %v10869_v18  ;;  %1477 = vmatprep.mubr.bf16.mxu1 %v12884_v0  ;;  %v10910_v0 = vcombine.high %v1511_v36, %v1515_v12  ;;  %v10909_v40 = vcombine.low %v1511_v36, %v1515_v12  ;;  %v10981_v18 = vcombine.low %v1583_v11, %v1587_v13  ;;  %v1615_v36 = vld [vmem:[#allocation8 + $0x388] sm:$0xff]  ;;  %v1654_v11 = vld [vmem:[#allocation8 + $0x4c0] sm:$0xff] }
 0x177   :  { %1447 = vmatprep.subr.bf16.mxu1 %v10878_v19  ;;  %v10990_v19 = vcombine.high %v1591_v34, %v1595_v16  ;;  %v1619_v12 = vld [vmem:[#allocation8 + $0x3a8] sm:$0xff]  ;;  %v1658_v13 = vld [vmem:[#allocation8 + $0x4e0] sm:$0xff] }
 0x178   :  { %v11014_v39 = vcombine.high %v1615_v36, %v1619_v12  ;;  %v11052_v30 = vcombine.high %v1654_v11, %v1658_v13 }
 0x17a   :  { %1448 = vmatpush1.bf16.msra.mxu1 %v10877_v22  ;;  %v13091_v22 = vshrl.u32 %v314_v17, 7  ;;  %v1666_v17 = vld [vmem:[#allocation8 + $0x520] sm:$0xff] }
 0x17b   :  { %1449 = vmatprep.subr.bf16.mxu1 %v10886_v23  ;;  %v10989_v23 = vcombine.low %v1591_v34, %v1595_v16  ;;  %v1655_v34 = vld [vmem:[#allocation8 + $0x4c8] sm:$0xff] }
 0x17c   :  { %v1659_v16 = vld [vmem:[#allocation8 + $0x4e8] sm:$0xff] }
 0x17e   :  { %1450 = vmatpush1.bf16.msra.mxu1 %v10885_v26  ;;  %v1611_v26 = vld [vmem:[#allocation8 + $0x368] sm:$0xff] }
 0x17f   :  { %1451 = vmatprep.subr.bf16.mxu1 %v10894_v27  ;;  %v13094_v27 = vsub.s32 0, %v13091_v22  ;;  %v11005_v38 = vcombine.low %v1607_v25, %v1611_v26 }
 0x182   :  { %1452 = vmatpush1.bf16.msra.mxu1 %v10893_v32  ;;  %v13099_v32 = vsub.s32 1, %v13091_v22 }
 0x183   :  { %4780 = vmatprep.subr.bf16.mxu1 %v10902_v35  ;;  %v11006_v35 = vcombine.high %v1607_v25, %v1611_v26  ;;  %v1670_v25 = vld [vmem:[#allocation8 + $0x540] sm:$0xff] }
 0x184   :  { %v1674_v26 = vld [vmem:[#allocation8 + $0x560] sm:$0xff] }
 0x185   :  { %10898 = vmatmul.mubr.msk.bf16.vlgmr.msra.gmra.mrb[8].mxu1 %vm1154_vm0, %v13057_v54  ;;  %v10933_v54 = vcombine.low %v1535_v46, %v1539_v47  ;;  %v11013_v47 = vcombine.low %v1615_v36, %v1619_v12  ;;  %v1671_v36 = vld [vmem:[#allocation8 + $0x548] sm:$0xff] }
 0x186   :  { %4781 = vmatpush1.bf16.msra.mxu1 %v10901_v37  ;;  %v317_v37 = vrot.slane %v13096_v29, %v13094_v27  ;;  %v1675_v12 = vld [vmem:[#allocation8 + $0x568] sm:$0xff] }
 0x187   :  { %4782 = vmatprep.subr.bf16.mxu1 %v10910_v0  ;;  %v321_v0 = vrot.slane %v13096_v29, %v13099_v32 }
 0x18a   :  { %4783 = vmatpush1.bf16.msra.mxu1 %v10909_v40 }
 0x18b   :  { %4784 = vmatprep.subr.bf16.mxu1 %v10918_v41  ;;  %v1623_v41 = vld [vmem:[#allocation8 + $0x3c8] sm:$0xff] }
 0x18c   :  { %v11022_v50 = vcombine.high %v1623_v41, %v1627_v42  ;;  %v11021_v58 = vcombine.low %v1623_v41, %v1627_v42  ;;  %v11067_v41 = vcombine.low %v1670_v25, %v1674_v26  ;;  %v1679_v42 = vld [vmem:[#allocation8 + $0x588] sm:$0xff] }
 0x18e   :  { %4785 = vmatpush1.bf16.msra.mxu1 %v10917_v44 }
 0x18f   :  { %4786 = vmatprep.subr.bf16.mxu1 %v10926_v45 }
 0x191   :  { %v13087_v52 = vpop.f32.mrb[0].mxu0 }
 0x192   :  { %4787 = vmatpush1.bf16.msra.mxu1 %v10925_v48  ;;  %v13089_v53 = vpop.f32.mrb[1].mxu0 }
 0x193   :  { %4788 = vmatprep.subr.bf16.mxu1 %v10934_v49  ;;  %v1237_v56 = vpop.f32.mrb[2].mxu0 }
 0x194   :  { %v1238_v59 = vpop.f32.mrb[3].mxu0  ;;  %v1635_v56 = vld [vmem:[#allocation8 + $0x428] sm:$0xff] }
 0x195   :  { %v1638_v59 = vld [vmem:[#allocation8 + $0x440] sm:$0xff] }
 0x196   :  { %4789 = vmatpush1.bf16.msra.mxu1 %v10933_v54 }
 0x197   :  { %4790 = vmatprep.subr.bf16.mxu1 %v10942_v55  ;;  %v1631_v55 = vld [vmem:[#allocation8 + $0x408] sm:$0xff] }
 0x198   :  { %v11030_v63 = vcombine.high %v1631_v55, %v1635_v56 }
 0x19a   :  { %4791 = vmatpush1.bf16.msra.mxu1 %v10941_v60  ;;  %v1642_v60 = vld [vmem:[#allocation8 + $0x460] sm:$0xff] }
 0x19b   :  { %4792 = vmatprep.subr.bf16.mxu1 %v10950_v61 }
 0x19e   :  { %4793 = vmatpush1.bf16.msra.mxu1 %v10949_v1  ;;  %v1643_v1 = vld [vmem:[#allocation8 + $0x468] sm:$0xff] }
 0x19f   :  { %4794 = vmatprep.subr.bf16.mxu1 %v10958_v2  ;;  %v11036_v2 = vcombine.high %v1638_v59, %v1642_v60 }
 0x1a2   :  { %4795 = vmatpush1.bf16.msra.mxu1 %v10957_v5 }
 0x1a3   :  { %4796 = vmatprep.subr.bf16.mxu1 %v10966_v6  ;;  %v11035_v6 = vcombine.low %v1638_v59, %v1642_v60  ;;  %v1695_v60 = vld [vmem:[#allocation8 + $0x608] sm:$0xff] }
 0x1a6   :  { %4797 = vmatpush1.bf16.msra.mxu1 %v10965_v9  ;;  %v11044_v9 = vcombine.high %v1646_v3, %v1650_v4 }
 0x1a7   :  { %4798 = vmatprep.subr.bf16.mxu1 %v10974_v10 }
 0x1aa   :  { %4799 = vmatpush1.bf16.msra.mxu1 %v10973_v14  ;;  %v11046_v14 = vcombine.high %v1647_v7, %v1651_v8 }
 0x1ab   :  { %4800 = vmatprep.subr.bf16.mxu1 %v10982_v15  ;;  %v11043_v15 = vcombine.low %v1646_v3, %v1650_v4 }
 0x1ae   :  { %4801 = vmatpush1.bf16.msra.mxu1 %v10981_v18  ;;  %v11054_v18 = vcombine.high %v1655_v34, %v1659_v16 }
 0x1af   :  { %4802 = vmatprep.subr.bf16.mxu1 %v10990_v19  ;;  %v11051_v19 = vcombine.low %v1654_v11, %v1658_v13  ;;  %v1714_v11 = vld [vmem:[#allocation8 + $0x6a0] sm:$0xff] }
 0x1b2   :  { %4803 = vmatpush1.bf16.msra.mxu1 %v10989_v23 }
 0x1b3   :  { %4804 = vmatprep.subr.bf16.mxu1 %v10998_v24  ;;  %v11053_v24 = vcombine.low %v1655_v34, %v1659_v16  ;;  %v1711_v16 = vld [vmem:[#allocation8 + $0x688] sm:$0xff] }
 0x1b6   :  { %4805 = vmatpush1.bf16.msra.mxu1 %v10997_v28  ;;  %v11062_v28 = vcombine.high %v1663_v20, %v1667_v21 }
 0x1b7   :  { %4806 = vmatprep.subr.bf16.mxu1 %v11006_v35 }
 0x1b8   :  { %v1192_v40 = vpop.f32.mrb[0].mxu1 }
 0x1b9   :  { %v1193_v43 = vadd.f32 %v1192_v40, %v317_v37  ;;  %v1194_v44 = vpop.f32.mrb[1].mxu1  ;;  %v11068_v37 = vcombine.high %v1670_v25, %v1674_v26  ;;  %v11070_v40 = vcombine.high %v1671_v36, %v1675_v12 }
 0x1ba   :  { %v1195_v45 = vadd.f32 %v1194_v44, %v321_v0  ;;  %v1196_v46 = vpop.f32.mrb[2].mxu1  ;;  %4807 = vmatpush1.bf16.msra.mxu1 %v11005_v38  ;;  %v11061_v0 = vcombine.low %v1663_v20, %v1667_v21  ;;  %v1678_v38 = vld [vmem:[#allocation8 + $0x580] sm:$0xff] }
 0x1bb   :  { %v1234_v48 = vadd.f32 %v13087_v52, %v1193_v43  ;;  %v1197_v49 = vpop.f32.mrb[3].mxu1  ;;  %4808 = vmatprep.subr.bf16.mxu1 %v11014_v39  ;;  %v1639_v52 = vld [vmem:[#allocation8 + $0x448] sm:$0xff]  ;;  %v1682_v39 = vld [vmem:[#allocation8 + $0x5a0] sm:$0xff] }
 0x1bc   :  { %v1236_v51 = vadd.f32 %v13089_v53, %v1195_v45  ;;  %v11029_v53 = vcombine.low %v1631_v55, %v1635_v56  ;;  %v11038_v5 = vcombine.high %v1639_v52, %v1643_v1  ;;  %v11037_v10 = vcombine.low %v1639_v52, %v1643_v1  ;;  %v1683_v43 = vld [vmem:[#allocation8 + $0x5a8] sm:$0xff]  ;;  %v1686_v46 = vld [vmem:[#allocation8 + $0x5c0] sm:$0xff] }
 0x1bd   :  { %v1486_v54 = vmax.f32 %v1234_v48, 0.0  ;;  %v11076_v44 = vcombine.high %v1678_v38, %v1682_v39  ;;  %v11069_v45 = vcombine.low %v1671_v36, %v1675_v12  ;;  %v11078_v48 = vcombine.high %v1679_v42, %v1683_v43  ;;  %v1694_v56 = vld [vmem:[#allocation8 + $0x600] sm:$0xff] }
 0x1be   :  { %v1487_v57 = vmax.f32 %v1236_v51, 0.0  ;;  %4809 = vmatpush1.bf16.msra.mxu1 %v11013_v47  ;;  %v1690_v47 = vld [vmem:[#allocation8 + $0x5e0] sm:$0xff]  ;;  %v11075_v49 = vcombine.low %v1678_v38, %v1682_v39  ;;  %v1691_v51 = vld [vmem:[#allocation8 + $0x5e8] sm:$0xff]  ;;  %v11077_v55 = vcombine.low %v1679_v42, %v1683_v43 }
 0x1bf   :  { %v13107_v61 = vpack.c.bf16 %v1486_v54, %v1486_v54  ;;  %4810 = vmatprep.subr.bf16.mxu1 %v11022_v50  ;;  %v1687_v50 = vld [vmem:[#allocation8 + $0x5c8] sm:$0xff]  ;;  %v11084_v54 = vcombine.high %v1686_v46, %v1690_v47  ;;  %v11083_v59 = vcombine.low %v1686_v46, %v1690_v47 }
 0x1c0   :  { %v13109_v62 = vpack.c.bf16 %v1487_v57, %v1487_v57  ;;  %v1698_v57 = vld [vmem:[#allocation8 + $0x620] sm:$0xff]  ;;  %v11085_v1 = vcombine.low %v1687_v50, %v1691_v51 }
 0x1c1   :  { %v11092_v52 = vcombine.high %v1694_v56, %v1698_v57  ;;  %v11091_v4 = vcombine.low %v1694_v56, %v1698_v57 }
 0x1c2   :  { %4648 = vmatprep.mubr.bf16.mxu0 %v13109_v62  ;;  %4811 = vmatpush1.bf16.msra.mxu1 %v11021_v58  ;;  %v11086_v58 = vcombine.high %v1687_v50, %v1691_v51 }
 0x1c3   :  { %4812 = vmatprep.mubr.bf16.mxu1 %v13109_v62  ;;  %4649 = vmatmul.mubr.bf16.vlgmr.msra.gmra.mrb[8].mxu0 %v13107_v61 }
 0x1c4   :  { %4821 = vmatprep.subr.bf16.mxu1 %v11030_v63  ;;  %4658 = vmatpush1.bf16.msra.mxu0 %v11027_v33  ;;  %v1662_v33 = vld [vmem:[#allocation8 + $0x500] sm:$0xff]  ;;  %v1699_v63 = vld [vmem:[#allocation8 + $0x628] sm:$0xff] }
 0x1c5   :  { %4813 = vmatmul.mubr.bf16.vlgmr.msra.gmra.mrb[12].mxu1 %v13107_v61  ;;  %4659 = vmatprep.subr.bf16.mxu0 %v11036_v2  ;;  %v11060_v23 = vcombine.high %v1662_v33, %v1666_v17  ;;  %v11059_v35 = vcombine.low %v1662_v33, %v1666_v17  ;;  %v1702_v2 = vld [vmem:[#allocation8 + $0x640] sm:$0xff]  ;;  %v11094_v3 = vcombine.high %v1695_v60, %v1699_v63 }
 0x1c6   :  { %4822 = vmatpush1.bf16.msra.mxu1 %v11029_v53  ;;  %v1706_v53 = vld [vmem:[#allocation8 + $0x660] sm:$0xff] }
 0x1c7   :  { %4823 = vmatprep.subr.bf16.mxu1 %v11038_v5  ;;  %v1703_v5 = vld [vmem:[#allocation8 + $0x648] sm:$0xff]  ;;  %v11100_v7 = vcombine.high %v1702_v2, %v1706_v53  ;;  %v11099_v34 = vcombine.low %v1702_v2, %v1706_v53 }
 0x1c8   :  { %4660 = vmatpush1.bf16.msra.mxu0 %v11035_v6  ;;  %v1707_v6 = vld [vmem:[#allocation8 + $0x668] sm:$0xff] }
 0x1c9   :  { %4661 = vmatprep.subr.bf16.mxu0 %v11044_v9  ;;  %v11093_v9 = vcombine.low %v1695_v60, %v1699_v63  ;;  %v11101_v17 = vcombine.low %v1703_v5, %v1707_v6 }
 0x1ca   :  { %4824 = vmatpush1.bf16.msra.mxu1 %v11037_v10  ;;  %v1710_v10 = vld [vmem:[#allocation8 + $0x680] sm:$0xff] }
 0x1cb   :  { %4825 = vmatprep.subr.bf16.mxu1 %v11046_v14  ;;  %v11102_v14 = vcombine.high %v1703_v5, %v1707_v6  ;;  %v11108_v33 = vcombine.high %v1710_v10, %v1714_v11  ;;  %v11107_v21 = vcombine.low %v1710_v10, %v1714_v11 }
 0x1cc   :  { %4662 = vmatpush1.bf16.msra.mxu0 %v11043_v15 }
 0x1cd   :  { %4663 = vmatprep.subr.bf16.mxu0 %v11052_v30  ;;  %v1715_v30 = vld [vmem:[#allocation8 + $0x6a8] sm:$0xff] }
 0x1ce   :  { %4826 = vmatpush1.bf16.msra.mxu1 %v11045_v31  ;;  %v11110_v20 = vcombine.high %v1711_v16, %v1715_v30  ;;  %v11109_v26 = vcombine.low %v1711_v16, %v1715_v30  ;;  %v13129_v16 = vsub.s32 3, %v13091_v22 }
 0x1cf   :  { %4827 = vmatprep.subr.bf16.mxu1 %v11054_v18  ;;  %v1718_v18 = vld [vmem:[#allocation8 + $0x6c0] sm:$0xff] }
 0x1d0   :  { %4664 = vmatpush1.bf16.msra.mxu0 %v11051_v19  ;;  %v1722_v19 = vld [vmem:[#allocation8 + $0x6e0] sm:$0xff] }
 0x1d1   :  { %4665 = vmatprep.subr.bf16.mxu0 %v11060_v23  ;;  %v1719_v23 = vld [vmem:[#allocation8 + $0x6c8] sm:$0xff]  ;;  %v11116_v25 = vcombine.high %v1718_v18, %v1722_v19  ;;  %v11115_v12 = vcombine.low %v1718_v18, %v1722_v19 }
 0x1d2   :  { %4828 = vmatpush1.bf16.msra.mxu1 %v11053_v24  ;;  %v1723_v24 = vld [vmem:[#allocation8 + $0x6e8] sm:$0xff] }
 0x1d3   :  { %4829 = vmatprep.subr.bf16.mxu1 %v11062_v28  ;;  %v1726_v28 = vld [vmem:[#allocation8 + $0x700] sm:$0xff]  ;;  %v11118_v36 = vcombine.high %v1719_v23, %v1723_v24  ;;  %v11117_v39 = vcombine.low %v1719_v23, %v1723_v24 }
 0x1d4   :  { %4666 = vmatpush1.bf16.msra.mxu0 %v11059_v35  ;;  %v1730_v35 = vld [vmem:[#allocation8 + $0x720] sm:$0xff] }
 0x1d5   :  { %4667 = vmatprep.subr.bf16.mxu0 %v11068_v37  ;;  %v1727_v37 = vld [vmem:[#allocation8 + $0x708] sm:$0xff]  ;;  %v11124_v38 = vcombine.high %v1726_v28, %v1730_v35  ;;  %v11123_v43 = vcombine.low %v1726_v28, %v1730_v35  ;;  %v1770_v35 = vld [vmem:[#allocation8 + $0x860] sm:$0xff] }
 0x1d6   :  { %4830 = vmatpush1.bf16.msra.mxu1 %v11061_v0  ;;  %v1731_v0 = vld [vmem:[#allocation8 + $0x728] sm:$0xff] }
 0x1d7   :  { %4831 = vmatprep.subr.bf16.mxu1 %v11070_v40  ;;  %v1734_v40 = vld [vmem:[#allocation8 + $0x740] sm:$0xff]  ;;  %v11126_v42 = vcombine.high %v1727_v37, %v1731_v0  ;;  %v11125_v47 = vcombine.low %v1727_v37, %v1731_v0 }
 0x1d8   :  { %4668 = vmatpush1.bf16.msra.mxu0 %v11067_v41  ;;  %v1738_v41 = vld [vmem:[#allocation8 + $0x760] sm:$0xff] }
 0x1d9   :  { %4669 = vmatprep.subr.bf16.mxu0 %v11076_v44  ;;  %v1735_v44 = vld [vmem:[#allocation8 + $0x748] sm:$0xff]  ;;  %v11132_v46 = vcombine.high %v1734_v40, %v1738_v41  ;;  %v11131_v51 = vcombine.low %v1734_v40, %v1738_v41 }
 0x1da   :  { %4832 = vmatpush1.bf16.msra.mxu1 %v11069_v45  ;;  %v1739_v45 = vld [vmem:[#allocation8 + $0x768] sm:$0xff] }
 0x1db   :  { %4833 = vmatprep.subr.bf16.mxu1 %v11078_v48  ;;  %v1742_v48 = vld [vmem:[#allocation8 + $0x780] sm:$0xff]  ;;  %v11134_v50 = vcombine.high %v1735_v44, %v1739_v45  ;;  %v11133_v57 = vcombine.low %v1735_v44, %v1739_v45  ;;  %v1775_v44 = vld [vmem:[#allocation8 + $0x888] sm:$0xff] }
 0x1dc   :  { %4670 = vmatpush1.bf16.msra.mxu0 %v11075_v49  ;;  %v1746_v49 = vld [vmem:[#allocation8 + $0x7a0] sm:$0xff]  ;;  %v1779_v45 = vld [vmem:[#allocation8 + $0x8a8] sm:$0xff] }
 0x1dd   :  { %4671 = vmatprep.subr.bf16.mxu0 %v11084_v54  ;;  %v1743_v54 = vld [vmem:[#allocation8 + $0x788] sm:$0xff]  ;;  %v11140_v56 = vcombine.high %v1742_v48, %v1746_v49  ;;  %v11139_v63 = vcombine.low %v1742_v48, %v1746_v49 }
 0x1de   :  { %4834 = vmatpush1.bf16.msra.mxu1 %v11077_v55  ;;  %v1747_v55 = vld [vmem:[#allocation8 + $0x7a8] sm:$0xff] }
 0x1df   :  { %4835 = vmatprep.subr.bf16.mxu1 %v11086_v58  ;;  %v1750_v58 = vld [vmem:[#allocation8 + $0x7c0] sm:$0xff]  ;;  %v11142_v60 = vcombine.high %v1743_v54, %v1747_v55  ;;  %v11141_v53 = vcombine.low %v1743_v54, %v1747_v55  ;;  %v1783_v55 = vld [vmem:[#allocation8 + $0x8c8] sm:$0xff] }
 0x1e0   :  { %4672 = vmatpush1.bf16.msra.mxu0 %v11083_v59  ;;  %v1754_v59 = vld [vmem:[#allocation8 + $0x7e0] sm:$0xff] }
 0x1e1   :  { %4673 = vmatprep.subr.bf16.mxu0 %v11092_v52  ;;  %v13118_v8 = vpop.f32.mrb[4].mxu0  ;;  %v1751_v52 = vld [vmem:[#allocation8 + $0x7c8] sm:$0xff]  ;;  %v11148_v2 = vcombine.high %v1750_v58, %v1754_v59  ;;  %v11147_v6 = vcombine.low %v1750_v58, %v1754_v59  ;;  %v1786_v54 = vld [vmem:[#allocation8 + $0x8e0] sm:$0xff]  ;;  %v11173_v58 = vcombine.low %v1775_v44, %v1779_v45 }
 0x1e2   :  { %4836 = vmatpush1.bf16.msra.mxu1 %v11085_v1  ;;  %v13120_v13 = vpop.f32.mrb[5].mxu0  ;;  %v1755_v1 = vld [vmem:[#allocation8 + $0x7e8] sm:$0xff] }
 0x1e3   :  { %4837 = vmatprep.subr.bf16.mxu1 %v11094_v3  ;;  %v1401_v15 = vpop.f32.mrb[6].mxu0  ;;  %v1758_v3 = vld [vmem:[#allocation8 + $0x800] sm:$0xff]  ;;  %v11150_v5 = vcombine.high %v1751_v52, %v1755_v1  ;;  %v11149_v11 = vcombine.low %v1751_v52, %v1755_v1  ;;  %v1791_v1 = vld [vmem:[#allocation8 + $0x908] sm:$0xff] }
 0x1e4   :  { %4674 = vmatpush1.bf16.msra.mxu0 %v11091_v4  ;;  %v1402_v31 = vpop.f32.mrb[7].mxu0  ;;  %v1762_v4 = vld [vmem:[#allocation8 + $0x820] sm:$0xff]  ;;  %v13123_v15 = vsub.s32 5, %v13091_v22 }
 0x1e5   :  { %4675 = vmatprep.subr.bf16.mxu0 %v11100_v7  ;;  %v1759_v7 = vld [vmem:[#allocation8 + $0x808] sm:$0xff]  ;;  %v11156_v10 = vcombine.high %v1758_v3, %v1762_v4  ;;  %v1794_v52 = vld [vmem:[#allocation8 + $0x920] sm:$0xff] }
 0x1e6   :  { %4838 = vmatpush1.bf16.msra.mxu1 %v11093_v9  ;;  %v1763_v9 = vld [vmem:[#allocation8 + $0x828] sm:$0xff]  ;;  %v337_v30 = vrot.slane %v13096_v29, %v13123_v15 }
 0x1e7   :  { %4839 = vmatprep.subr.bf16.mxu1 %v11102_v14  ;;  %v11158_v14 = vcombine.high %v1759_v7, %v1763_v9 }
 0x1e8   :  { %4676 = vmatpush1.bf16.msra.mxu0 %v11099_v34  ;;  %v13126_v34 = vsub.s32 2, %v13091_v22  ;;  %v12213_v18 = vadd.f32 %v13120_v13, %v337_v30 }
 0x1e9   :  { %4677 = vmatprep.subr.bf16.mxu0 %v11108_v33  ;;  %v329_v33 = vrot.slane %v13096_v29, %v13129_v16 }
 0x1ea   :  { %4840 = vmatpush1.bf16.msra.mxu1 %v11101_v17  ;;  %v325_v31 = vrot.slane %v13096_v29, %v13126_v34  ;;  %v1491_v37 = vmax.f32 %v12213_v18, 0.0  ;;  %v1807_v18 = vld [vmem:[#allocation8 + $0x988] sm:$0xff] }
 0x1eb   :  { %4841 = vmatprep.subr.bf16.mxu1 %v11110_v20 }
 0x1ec   :  { %4678 = vmatpush1.bf16.msra.mxu0 %v11107_v21 }
 0x1ed   :  { %4679 = vmatprep.subr.bf16.mxu0 %v11116_v25 }
 0x1ee   :  { %4842 = vmatpush1.bf16.msra.mxu1 %v11109_v26  ;;  %v1766_v26 = vld [vmem:[#allocation8 + $0x840] sm:$0xff] }
 0x1ef   :  { %4843 = vmatprep.subr.bf16.mxu1 %v11118_v36  ;;  %v1767_v36 = vld [vmem:[#allocation8 + $0x848] sm:$0xff]  ;;  %v11164_v41 = vcombine.high %v1766_v26, %v1770_v35 }
 0x1f0   :  { %4680 = vmatpush1.bf16.msra.mxu0 %v11115_v12  ;;  %v1771_v12 = vld [vmem:[#allocation8 + $0x868] sm:$0xff] }
 0x1f1   :  { %4681 = vmatprep.subr.bf16.mxu0 %v11124_v38  ;;  %v11155_v38 = vcombine.low %v1758_v3, %v1762_v4  ;;  %v11166_v13 = vcombine.high %v1767_v36, %v1771_v12  ;;  %v11165_v48 = vcombine.low %v1767_v36, %v1771_v12 }
 0x1f2   :  { %4844 = vmatpush1.bf16.msra.mxu1 %v11117_v39  ;;  %v11157_v39 = vcombine.low %v1759_v7, %v1763_v9  ;;  %v1802_v7 = vld [vmem:[#allocation8 + $0x960] sm:$0xff]  ;;  %v1799_v9 = vld [vmem:[#allocation8 + $0x948] sm:$0xff] }
 0x1f3   :  { %4845 = vmatprep.subr.bf16.mxu1 %v11126_v42  ;;  %v1774_v42 = vld [vmem:[#allocation8 + $0x880] sm:$0xff] }
 0x1f4   :  { %4682 = vmatpush1.bf16.msra.mxu0 %v11123_v43  ;;  %v1778_v43 = vld [vmem:[#allocation8 + $0x8a0] sm:$0xff] }
 0x1f5   :  { %4683 = vmatprep.subr.bf16.mxu0 %v11132_v46  ;;  %v13144_v46 = vpack.c.bf16 %v1491_v37, %v1491_v37  ;;  %v11172_v49 = vcombine.high %v1774_v42, %v1778_v43 }
 0x1f6   :  { %4846 = vmatpush1.bf16.msra.mxu1 %v11125_v47  ;;  %v11163_v47 = vcombine.low %v1766_v26, %v1770_v35  ;;  %v1818_v26 = vld [vmem:[#allocation8 + $0x9e0] sm:$0xff]  ;;  %v1819_v35 = vld [vmem:[#allocation8 + $0x9e8] sm:$0xff] }
 0x1f7   :  { %4847 = vmatprep.subr.bf16.mxu1 %v11134_v50  ;;  %v11174_v50 = vcombine.high %v1775_v44, %v1779_v45 }
 0x1f8   :  { %4684 = vmatpush1.bf16.msra.mxu0 %v11131_v51  ;;  %v1782_v51 = vld [vmem:[#allocation8 + $0x8c0] sm:$0xff] }
 0x1f9   :  { %4685 = vmatprep.subr.bf16.mxu0 %v11140_v56  ;;  %v1787_v56 = vld [vmem:[#allocation8 + $0x8e8] sm:$0xff]  ;;  %v11180_v59 = vcombine.high %v1782_v51, %v1786_v54 }
 0x1fa   :  { %4848 = vmatpush1.bf16.msra.mxu1 %v11133_v57  ;;  %v11171_v57 = vcombine.low %v1774_v42, %v1778_v43  ;;  %v11181_v3 = vcombine.low %v1783_v55, %v1787_v56  ;;  %v1827_v42 = vld [vmem:[#allocation8 + $0xa28] sm:$0xff] }
 0x1fb   :  { %4849 = vmatprep.subr.bf16.mxu1 %v11142_v60  ;;  %v11182_v60 = vcombine.high %v1783_v55, %v1787_v56 }
 0x1fc   :  { %4686 = vmatpush1.bf16.msra.mxu0 %v11139_v63  ;;  %v1790_v63 = vld [vmem:[#allocation8 + $0x900] sm:$0xff] }
 0x1fd   :  { %4687 = vmatprep.subr.bf16.mxu0 %v11148_v2  ;;  %v1795_v2 = vld [vmem:[#allocation8 + $0x928] sm:$0xff]  ;;  %v11188_v4 = vcombine.high %v1790_v63, %v1794_v52 }
 0x1fe   :  { %4850 = vmatpush1.bf16.msra.mxu1 %v11141_v53  ;;  %v11179_v53 = vcombine.low %v1782_v51, %v1786_v54  ;;  %v1835_v51 = vld [vmem:[#allocation8 + $0xa68] sm:$0xff] }
 0x1ff   :  { %4851 = vmatprep.subr.bf16.mxu1 %v11150_v5  ;;  %v11190_v5 = vcombine.high %v1791_v1, %v1795_v2 }
 0x200   :  { %4688 = vmatpush1.bf16.msra.mxu0 %v11147_v6  ;;  %v1798_v6 = vld [vmem:[#allocation8 + $0x940] sm:$0xff] }
 0x201   :  { %4698 = vmatprep.subr.bf16.mxu0 %v11156_v10  ;;  %v1803_v10 = vld [vmem:[#allocation8 + $0x968] sm:$0xff]  ;;  %v11196_v30 = vcombine.high %v1798_v6, %v1802_v7 }
 0x202   :  { %4852 = vmatpush1.bf16.msra.mxu1 %v11149_v11  ;;  %v11187_v11 = vcombine.low %v1790_v63, %v1794_v52  ;;  %v1843_v63 = vld [vmem:[#allocation8 + $0xaa8] sm:$0xff] }
 0x203   :  { %4862 = vmatprep.subr.bf16.mxu1 %v11158_v14  ;;  %v11189_v14 = vcombine.low %v1791_v1, %v1795_v2 }
 0x208   :  { %v1315_v17 = vpop.f32.mrb[4].mxu1 }
 0x209   :  { %v12210_v19 = vadd.f32 %v1315_v17, %v325_v31  ;;  %v1317_v20 = vpop.f32.mrb[5].mxu1  ;;  %v11198_v31 = vcombine.high %v1799_v9, %v1803_v10  ;;  %v1810_v17 = vld [vmem:[#allocation8 + $0x9a0] sm:$0xff] }
 0x20a   :  { %v12211_v21 = vadd.f32 %v1317_v20, %v329_v33  ;;  %v1319_v23 = vpop.f32.mrb[6].mxu1  ;;  %v1806_v33 = vld [vmem:[#allocation8 + $0x980] sm:$0xff]  ;;  %v11195_v20 = vcombine.low %v1798_v6, %v1802_v7  ;;  %v1851_v6 = vld [vmem:[#allocation8 + $0xae8] sm:$0xff] }
 0x20b   :  { %v1488_v24 = vmax.f32 %v12210_v19, 0.0  ;;  %v1320_v25 = vpop.f32.mrb[7].mxu1  ;;  %v1811_v19 = vld [vmem:[#allocation8 + $0x9a8] sm:$0xff]  ;;  %v11204_v23 = vcombine.high %v1806_v33, %v1810_v17  ;;  %v11203_v36 = vcombine.low %v1806_v33, %v1810_v17 }
 0x20c   :  { %v1489_v28 = vmax.f32 %v12211_v21, 0.0  ;;  %v11197_v21 = vcombine.low %v1799_v9, %v1803_v10  ;;  %v1814_v25 = vld [vmem:[#allocation8 + $0x9c0] sm:$0xff]  ;;  %v11205_v12 = vcombine.low %v1807_v18, %v1811_v19  ;;  %v1859_v33 = vld [vmem:[#allocation8 + $0xb28] sm:$0xff] }
 0x20d   :  { %v13140_v40 = vpack.c.bf16 %v1488_v24, %v1488_v24  ;;  %v11206_v24 = vcombine.high %v1807_v18, %v1811_v19  ;;  %v11212_v37 = vcombine.high %v1814_v25, %v1818_v26  ;;  %v11211_v43 = vcombine.low %v1814_v25, %v1818_v26  ;;  %v1867_v25 = vld [vmem:[#allocation8 + $0xb68] sm:$0xff] }
 0x20e   :  { %v13138_v0 = vpack.c.bf16 %v1489_v28, %v1489_v28  ;;  %v1815_v28 = vld [vmem:[#allocation8 + $0x9c8] sm:$0xff] }
 0x20f   :  { %v11213_v44 = vcombine.low %v1815_v28, %v1819_v35 }
 0x210   :  { %4689 = vmatprep.mubr.bf16.mxu0 %v13138_v0  ;;  %4853 = vmatprep.mubr.bf16.mxu1 %v13138_v0 }
 0x211   :  { %4690 = vmatmul.mubr.bf16.vlgmr.msra.gmra.mrb[8].mxu0 %v13140_v40  ;;  %4854 = vmatmul.mubr.bf16.vlgmr.msra.gmra.mrb[12].mxu1 %v13140_v40 }
 0x212   :  { %4699 = vmatpush1.bf16.msra.mxu0 %v11155_v38  ;;  %4863 = vmatpush1.bf16.msra.mxu1 %v11157_v39  ;;  %v11214_v38 = vcombine.high %v1815_v28, %v1819_v35  ;;  %v1822_v39 = vld [vmem:[#allocation8 + $0xa00] sm:$0xff]  ;;  %v13151_v35 = vsub.s32 4, %v13091_v22 }
 0x213   :  { %4700 = vmatprep.subr.bf16.mxu0 %v11164_v41  ;;  %4864 = vmatprep.subr.bf16.mxu1 %v11166_v13  ;;  %v1826_v41 = vld [vmem:[#allocation8 + $0xa20] sm:$0xff]  ;;  %v1823_v13 = vld [vmem:[#allocation8 + $0xa08] sm:$0xff] }
 0x214   :  { %4730 = vmatprep.mubr.bf16.mxu0 %v13144_v46  ;;  %4894 = vmatprep.mubr.bf16.mxu1 %v13144_v46  ;;  %v11220_v45 = vcombine.high %v1822_v39, %v1826_v41  ;;  %v11219_v54 = vcombine.low %v1822_v39, %v1826_v41  ;;  %v11221_v55 = vcombine.low %v1823_v13, %v1827_v42  ;;  %v1871_v39 = vld [vmem:[#allocation8 + $0xb88] sm:$0xff] }
 0x215   :  { %v1875_v41 = vld [vmem:[#allocation8 + $0xba8] sm:$0xff] }
 0x216   :  { %4701 = vmatpush1.bf16.msra.mxu0 %v11163_v47  ;;  %4865 = vmatpush1.bf16.msra.mxu1 %v11165_v48  ;;  %v11222_v47 = vcombine.high %v1823_v13, %v1827_v42  ;;  %v1830_v48 = vld [vmem:[#allocation8 + $0xa40] sm:$0xff] }
 0x217   :  { %4702 = vmatprep.subr.bf16.mxu0 %v11172_v49  ;;  %4866 = vmatprep.subr.bf16.mxu1 %v11174_v50  ;;  %v1834_v49 = vld [vmem:[#allocation8 + $0xa60] sm:$0xff]  ;;  %v1831_v50 = vld [vmem:[#allocation8 + $0xa48] sm:$0xff] }
 0x218   :  { %v11228_v56 = vcombine.high %v1830_v48, %v1834_v49  ;;  %v11227_v52 = vcombine.low %v1830_v48, %v1834_v49  ;;  %v11229_v1 = vcombine.low %v1831_v50, %v1835_v51  ;;  %v1882_v48 = vld [vmem:[#allocation8 + $0xbe0] sm:$0xff]  ;;  %v1879_v49 = vld [vmem:[#allocation8 + $0xbc8] sm:$0xff] }
 0x21a   :  { %4703 = vmatpush1.bf16.msra.mxu0 %v11171_v57  ;;  %4867 = vmatpush1.bf16.msra.mxu1 %v11173_v58  ;;  %v11230_v57 = vcombine.high %v1831_v50, %v1835_v51  ;;  %v1838_v58 = vld [vmem:[#allocation8 + $0xa80] sm:$0xff]  ;;  %v1883_v50 = vld [vmem:[#allocation8 + $0xbe8] sm:$0xff] }
 0x21b   :  { %4704 = vmatprep.subr.bf16.mxu0 %v11180_v59  ;;  %4868 = vmatprep.subr.bf16.mxu1 %v11182_v60  ;;  %v1842_v59 = vld [vmem:[#allocation8 + $0xaa0] sm:$0xff]  ;;  %v1839_v60 = vld [vmem:[#allocation8 + $0xa88] sm:$0xff] }
 0x21c   :  { %v11236_v2 = vcombine.high %v1838_v58, %v1842_v59  ;;  %v11235_v7 = vcombine.low %v1838_v58, %v1842_v59  ;;  %v11237_v9 = vcombine.low %v1839_v60, %v1843_v63  ;;  %v1886_v58 = vld [vmem:[#allocation8 + $0xc00] sm:$0xff] }
 0x21d   :  { %v1890_v59 = vld [vmem:[#allocation8 + $0xc20] sm:$0xff] }
 0x21e   :  { %4705 = vmatpush1.bf16.msra.mxu0 %v11179_v53  ;;  %4869 = vmatpush1.bf16.msra.mxu1 %v11181_v3  ;;  %v11238_v53 = vcombine.high %v1839_v60, %v1843_v63  ;;  %v1846_v3 = vld [vmem:[#allocation8 + $0xac0] sm:$0xff]  ;;  %v1887_v60 = vld [vmem:[#allocation8 + $0xc08] sm:$0xff] }
 0x21f   :  { %4706 = vmatprep.subr.bf16.mxu0 %v11188_v4  ;;  %4870 = vmatprep.subr.bf16.mxu1 %v11190_v5  ;;  %v1850_v4 = vld [vmem:[#allocation8 + $0xae0] sm:$0xff]  ;;  %v1847_v5 = vld [vmem:[#allocation8 + $0xac8] sm:$0xff] }
 0x220   :  { %v11244_v10 = vcombine.high %v1846_v3, %v1850_v4  ;;  %v11243_v17 = vcombine.low %v1846_v3, %v1850_v4  ;;  %v11245_v18 = vcombine.low %v1847_v5, %v1851_v6  ;;  %v1891_v63 = vld [vmem:[#allocation8 + $0xc28] sm:$0xff]  ;;  %v1894_v4 = vld [vmem:[#allocation8 + $0xc40] sm:$0xff] }
 0x221   :  { %v11286_v3 = vcombine.high %v1887_v60, %v1891_v63 }
 0x222   :  { %4707 = vmatpush1.bf16.msra.mxu0 %v11187_v11  ;;  %4871 = vmatpush1.bf16.msra.mxu1 %v11189_v14  ;;  %v11246_v11 = vcombine.high %v1847_v5, %v1851_v6  ;;  %v1854_v14 = vld [vmem:[#allocation8 + $0xb00] sm:$0xff]  ;;  %v1899_v6 = vld [vmem:[#allocation8 + $0xc68] sm:$0xff] }
 0x223   :  { %4708 = vmatprep.subr.bf16.mxu0 %v11196_v30  ;;  %4872 = vmatprep.subr.bf16.mxu1 %v11198_v31  ;;  %v1858_v30 = vld [vmem:[#allocation8 + $0xb20] sm:$0xff]  ;;  %v1855_v31 = vld [vmem:[#allocation8 + $0xb08] sm:$0xff] }
 0x224   :  { %v11252_v19 = vcombine.high %v1854_v14, %v1858_v30  ;;  %v11251_v26 = vcombine.low %v1854_v14, %v1858_v30  ;;  %v11253_v28 = vcombine.low %v1855_v31, %v1859_v33  ;;  %v1898_v5 = vld [vmem:[#allocation8 + $0xc60] sm:$0xff] }
 0x225   :  { %v1902_v30 = vld [vmem:[#allocation8 + $0xc80] sm:$0xff] }
 0x226   :  { %4709 = vmatpush1.bf16.msra.mxu0 %v11195_v20  ;;  %4873 = vmatpush1.bf16.msra.mxu1 %v11197_v21  ;;  %v11254_v20 = vcombine.high %v1855_v31, %v1859_v33  ;;  %v1862_v21 = vld [vmem:[#allocation8 + $0xb40] sm:$0xff]  ;;  %v1903_v33 = vld [vmem:[#allocation8 + $0xc88] sm:$0xff] }
 0x227   :  { %4710 = vmatprep.subr.bf16.mxu0 %v11204_v23  ;;  %4874 = vmatprep.subr.bf16.mxu1 %v11206_v24  ;;  %v1866_v23 = vld [vmem:[#allocation8 + $0xb60] sm:$0xff]  ;;  %v1863_v24 = vld [vmem:[#allocation8 + $0xb48] sm:$0xff] }
 0x228   :  { %v11259_v13 = vcombine.low %v1862_v21, %v1866_v23  ;;  %v11261_v42 = vcombine.low %v1863_v24, %v1867_v25  ;;  %v1906_v31 = vld [vmem:[#allocation8 + $0xca0] sm:$0xff] }
 0x22a   :  { %4711 = vmatpush1.bf16.msra.mxu0 %v11203_v36  ;;  %4875 = vmatpush1.bf16.msra.mxu1 %v11205_v12  ;;  %v11260_v36 = vcombine.high %v1862_v21, %v1866_v23  ;;  %v11262_v12 = vcombine.high %v1863_v24, %v1867_v25  ;;  %v11300_v21 = vcombine.high %v1902_v30, %v1906_v31  ;;  %v1910_v24 = vld [vmem:[#allocation8 + $0xcc0] sm:$0xff] }
 0x22b   :  { %4712 = vmatprep.subr.bf16.mxu0 %v11212_v37  ;;  %4876 = vmatprep.subr.bf16.mxu1 %v11214_v38  ;;  %v1870_v37 = vld [vmem:[#allocation8 + $0xb80] sm:$0xff] }
 0x22c   :  { %v1874_v38 = vld [vmem:[#allocation8 + $0xba0] sm:$0xff] }
 0x22d   :  { %v11267_v51 = vcombine.low %v1870_v37, %v1874_v38  ;;  %v1914_v25 = vld [vmem:[#allocation8 + $0xce0] sm:$0xff] }
 0x22e   :  { %4713 = vmatpush1.bf16.msra.mxu0 %v11211_v43  ;;  %4877 = vmatpush1.bf16.msra.mxu1 %v11213_v44  ;;  %v333_v43 = vrot.slane %v13096_v29, %v13151_v35  ;;  %v11268_v44 = vcombine.high %v1870_v37, %v1874_v38  ;;  %v11308_v38 = vcombine.high %v1910_v24, %v1914_v25 }
 0x22f   :  { %4714 = vmatprep.subr.bf16.mxu0 %v11220_v45  ;;  %4878 = vmatprep.subr.bf16.mxu1 %v11222_v47  ;;  %v11270_v45 = vcombine.high %v1871_v39, %v1875_v41  ;;  %v1878_v47 = vld [vmem:[#allocation8 + $0xbc0] sm:$0xff] }
 0x232   :  { %4715 = vmatpush1.bf16.msra.mxu0 %v11219_v54  ;;  %4879 = vmatpush1.bf16.msra.mxu1 %v11221_v55  ;;  %v11269_v54 = vcombine.low %v1871_v39, %v1875_v41  ;;  %v12212_v55 = vadd.f32 %v13118_v8, %v333_v43  ;;  %v1895_v8 = vld [vmem:[#allocation8 + $0xc48] sm:$0xff]  ;;  %v1918_v41 = vld [vmem:[#allocation8 + $0xd00] sm:$0xff] }
 0x233   :  { %4716 = vmatprep.subr.bf16.mxu0 %v11228_v56  ;;  %4880 = vmatprep.subr.bf16.mxu1 %v11230_v57  ;;  %v11276_v56 = vcombine.high %v1878_v47, %v1882_v48  ;;  %v11278_v57 = vcombine.high %v1879_v49, %v1883_v50  ;;  %v11294_v14 = vcombine.high %v1895_v8, %v1899_v6  ;;  %v1923_v43 = vld [vmem:[#allocation8 + $0xd28] sm:$0xff] }
 0x236   :  { %4717 = vmatpush1.bf16.msra.mxu0 %v11227_v52  ;;  %4881 = vmatpush1.bf16.msra.mxu1 %v11229_v1  ;;  %v11275_v52 = vcombine.low %v1878_v47, %v1882_v48  ;;  %v11277_v1 = vcombine.low %v1879_v49, %v1883_v50  ;;  %v11307_v47 = vcombine.low %v1910_v24, %v1914_v25  ;;  %v1951_v24 = vld [vmem:[#allocation8 + $0xe08] sm:$0xff] }
 0x237   :  { %4718 = vmatprep.subr.bf16.mxu0 %v11236_v2  ;;  %4882 = vmatprep.subr.bf16.mxu1 %v11238_v53  ;;  %v1490_v2 = vmax.f32 %v12212_v55, 0.0  ;;  %v11284_v53 = vcombine.high %v1886_v58, %v1890_v59  ;;  %v1955_v25 = vld [vmem:[#allocation8 + $0xe28] sm:$0xff] }
 0x23a   :  { %4719 = vmatpush1.bf16.msra.mxu0 %v11235_v7  ;;  %4883 = vmatpush1.bf16.msra.mxu1 %v11237_v9  ;;  %v11283_v7 = vcombine.low %v1886_v58, %v1890_v59  ;;  %v11285_v9 = vcombine.low %v1887_v60, %v1891_v63  ;;  %v1931_v58 = vld [vmem:[#allocation8 + $0xd68] sm:$0xff] }
 0x23b   :  { %4720 = vmatprep.subr.bf16.mxu0 %v11244_v10  ;;  %4884 = vmatprep.subr.bf16.mxu1 %v11246_v11  ;;  %v13156_v10 = vpack.c.bf16 %v1490_v2, %v1490_v2  ;;  %v11292_v11 = vcombine.high %v1894_v4, %v1898_v5 }
 0x23e   :  { %4721 = vmatpush1.bf16.msra.mxu0 %v11243_v17  ;;  %4885 = vmatpush1.bf16.msra.mxu1 %v11245_v18  ;;  %v1907_v17 = vld [vmem:[#allocation8 + $0xca8] sm:$0xff]  ;;  %v11291_v18 = vcombine.low %v1894_v4, %v1898_v5 }
 0x23f   :  { %4722 = vmatprep.subr.bf16.mxu0 %v11252_v19  ;;  %4886 = vmatprep.subr.bf16.mxu1 %v11254_v20  ;;  %v11293_v19 = vcombine.low %v1895_v8, %v1899_v6  ;;  %v13161_v20 = vsub.s32 7, %v13091_v22  ;;  %v11302_v23 = vcombine.high %v1903_v33, %v1907_v17  ;;  %v1935_v4 = vld [vmem:[#allocation8 + $0xd88] sm:$0xff] }
 0x240   :  { %v1939_v5 = vld [vmem:[#allocation8 + $0xda8] sm:$0xff] }
 0x241   :  { %v345_v37 = vrot.slane %v13096_v29, %v13161_v20 }
 0x242   :  { %4723 = vmatpush1.bf16.msra.mxu0 %v11251_v26  ;;  %4887 = vmatpush1.bf16.msra.mxu1 %v11253_v28  ;;  %v1911_v26 = vld [vmem:[#allocation8 + $0xcc8] sm:$0xff] }
 0x243   :  { %4724 = vmatprep.subr.bf16.mxu0 %v11260_v36  ;;  %4888 = vmatprep.subr.bf16.mxu1 %v11262_v12  ;;  %v1915_v28 = vld [vmem:[#allocation8 + $0xce8] sm:$0xff]  ;;  %v11299_v36 = vcombine.low %v1902_v30, %v1906_v31  ;;  %v11301_v12 = vcombine.low %v1903_v33, %v1907_v17  ;;  %v11333_v17 = vcombine.low %v1935_v4, %v1939_v5 }
 0x244   :  { %v11310_v39 = vcombine.high %v1911_v26, %v1915_v28  ;;  %v11309_v48 = vcombine.low %v1911_v26, %v1915_v28  ;;  %v1943_v30 = vld [vmem:[#allocation8 + $0xdc8] sm:$0xff] }
 0x245   :  { %v1947_v31 = vld [vmem:[#allocation8 + $0xde8] sm:$0xff] }
 0x246   :  { %4725 = vmatpush1.bf16.msra.mxu0 %v11259_v13  ;;  %4889 = vmatpush1.bf16.msra.mxu1 %v11261_v42  ;;  %v1922_v13 = vld [vmem:[#allocation8 + $0xd20] sm:$0xff]  ;;  %v1919_v42 = vld [vmem:[#allocation8 + $0xd08] sm:$0xff]  ;;  %v11341_v28 = vcombine.low %v1943_v30, %v1947_v31 }
 0x247   :  { %4726 = vmatprep.subr.bf16.mxu0 %v11268_v44  ;;  %4890 = vmatprep.subr.bf16.mxu1 %v11270_v45  ;;  %v11316_v29 = vcombine.high %v1918_v41, %v1922_v13  ;;  %v11315_v60 = vcombine.low %v1918_v41, %v1922_v13  ;;  %v11317_v63 = vcombine.low %v1919_v42, %v1923_v43  ;;  %v1963_v41 = vld [vmem:[#allocation8 + $0xe68] sm:$0xff] }
 0x24a   :  { %4727 = vmatpush1.bf16.msra.mxu0 %v11267_v51  ;;  %4891 = vmatpush1.bf16.msra.mxu1 %v11269_v54  ;;  %v11318_v51 = vcombine.high %v1919_v42, %v1923_v43  ;;  %v1926_v54 = vld [vmem:[#allocation8 + $0xd40] sm:$0xff]  ;;  %v11349_v42 = vcombine.low %v1951_v24, %v1955_v25 }
 0x24b   :  { %4728 = vmatprep.subr.bf16.mxu0 %v11276_v56  ;;  %4892 = vmatprep.subr.bf16.mxu1 %v11278_v57  ;;  %v1930_v56 = vld [vmem:[#allocation8 + $0xd60] sm:$0xff]  ;;  %v1927_v57 = vld [vmem:[#allocation8 + $0xd48] sm:$0xff] }
 0x24c   :  { %v11326_v2 = vcombine.high %v1927_v57, %v1931_v58  ;;  %v11323_v8 = vcombine.low %v1926_v54, %v1930_v56  ;;  %v11325_v6 = vcombine.low %v1927_v57, %v1931_v58  ;;  %v1978_v57 = vld [vmem:[#allocation8 + $0xee0] sm:$0xff]  ;;  %v1975_v58 = vld [vmem:[#allocation8 + $0xec8] sm:$0xff] }
 0x24e   :  { %4729 = vmatpush1.bf16.msra.mxu0 %v11275_v52  ;;  %4893 = vmatpush1.bf16.msra.mxu1 %v11277_v1  ;;  %v11324_v1 = vcombine.high %v1926_v54, %v1930_v56  ;;  %v1974_v56 = vld [vmem:[#allocation8 + $0xec0] sm:$0xff] }
 0x24f   :  { %4739 = vmatprep.subr.bf16.mxu0 %v11284_v53  ;;  %4903 = vmatprep.subr.bf16.mxu1 %v11286_v3  ;;  %v1934_v53 = vld [vmem:[#allocation8 + $0xd80] sm:$0xff] }
 0x250   :  { %v1938_v3 = vld [vmem:[#allocation8 + $0xda0] sm:$0xff] }
 0x251   :  { %4731 = vmatmul.mubr.bf16.vlgmr.msra.gmra.mrb[8].mxu0 %v13156_v10  ;;  %4895 = vmatmul.mubr.bf16.vlgmr.msra.gmra.mrb[12].mxu1 %v13156_v10  ;;  %v11331_v33 = vcombine.low %v1934_v53, %v1938_v3 }
 0x252   :  { %4740 = vmatpush1.bf16.msra.mxu0 %v11283_v7  ;;  %4904 = vmatpush1.bf16.msra.mxu1 %v11285_v9  ;;  %v11332_v7 = vcombine.high %v1934_v53, %v1938_v3  ;;  %v11334_v9 = vcombine.high %v1935_v4, %v1939_v5  ;;  %v1982_v53 = vld [vmem:[#allocation8 + $0xf00] sm:$0xff]  ;;  %v1983_v4 = vld [vmem:[#allocation8 + $0xf08] sm:$0xff] }
 0x253   :  { %4741 = vmatprep.subr.bf16.mxu0 %v11292_v11  ;;  %4905 = vmatprep.subr.bf16.mxu1 %v11294_v14  ;;  %v1942_v11 = vld [vmem:[#allocation8 + $0xdc0] sm:$0xff]  ;;  %v1987_v5 = vld [vmem:[#allocation8 + $0xf28] sm:$0xff] }
 0x254   :  { %v1946_v14 = vld [vmem:[#allocation8 + $0xde0] sm:$0xff] }
 0x255   :  { %v11339_v26 = vcombine.low %v1942_v11, %v1946_v14  ;;  %v1986_v3 = vld [vmem:[#allocation8 + $0xf20] sm:$0xff] }
 0x256   :  { %4742 = vmatpush1.bf16.msra.mxu0 %v11291_v18  ;;  %4906 = vmatpush1.bf16.msra.mxu1 %v11293_v19  ;;  %v11340_v18 = vcombine.high %v1942_v11, %v1946_v14  ;;  %v11342_v19 = vcombine.high %v1943_v30, %v1947_v31  ;;  %v1990_v11 = vld [vmem:[#allocation8 + $0xf40] sm:$0xff]  ;;  %v1991_v30 = vld [vmem:[#allocation8 + $0xf48] sm:$0xff] }
 0x257   :  { %4743 = vmatprep.subr.bf16.mxu0 %v11300_v21  ;;  %4907 = vmatprep.subr.bf16.mxu1 %v11302_v23  ;;  %v1950_v21 = vld [vmem:[#allocation8 + $0xe00] sm:$0xff]  ;;  %v1995_v31 = vld [vmem:[#allocation8 + $0xf68] sm:$0xff] }
 0x258   :  { %v13165_v44 = vpop.f32.mrb[8].mxu1  ;;  %v1954_v23 = vld [vmem:[#allocation8 + $0xe20] sm:$0xff] }
 0x259   :  { %v1481_v45 = vpop.f32.mrb[9].mxu1  ;;  %v11347_v13 = vcombine.low %v1950_v21, %v1954_v23  ;;  %v1994_v14 = vld [vmem:[#allocation8 + $0xf60] sm:$0xff] }
 0x25a   :  { %4744 = vmatpush1.bf16.msra.mxu0 %v11299_v36  ;;  %4908 = vmatpush1.bf16.msra.mxu1 %v11301_v12  ;;  %v12215_v49 = vadd.f32 %v1481_v45, %v345_v37  ;;  %v1483_v50 = vpop.f32.mrb[10].mxu1  ;;  %v11348_v36 = vcombine.high %v1950_v21, %v1954_v23  ;;  %v11350_v12 = vcombine.high %v1951_v24, %v1955_v25  ;;  %v1958_v37 = vld [vmem:[#allocation8 + $0xe40] sm:$0xff]  ;;  %v1999_v25 = vld [vmem:[#allocation8 + $0xf88] sm:$0xff] }
 0x25b   :  { %4745 = vmatprep.subr.bf16.mxu0 %v11308_v38  ;;  %4909 = vmatprep.subr.bf16.mxu1 %v11310_v39  ;;  %v1484_v55 = vpop.f32.mrb[11].mxu1  ;;  %v1962_v38 = vld [vmem:[#allocation8 + $0xe60] sm:$0xff]  ;;  %v1959_v39 = vld [vmem:[#allocation8 + $0xe48] sm:$0xff]  ;;  %v11390_v21 = vcombine.high %v1991_v30, %v1995_v31 }
 0x25c   :  { %v1493_v59 = vmax.f32 %v12215_v49, 0.0  ;;  %v11356_v43 = vcombine.high %v1958_v37, %v1962_v38  ;;  %v11358_v45 = vcombine.high %v1959_v39, %v1963_v41  ;;  %v1967_v49 = vld [vmem:[#allocation8 + $0xe88] sm:$0xff]  ;;  %v1998_v23 = vld [vmem:[#allocation8 + $0xf80] sm:$0xff] }
 0x25d   :  { %v1971_v50 = vld [vmem:[#allocation8 + $0xea8] sm:$0xff]  ;;  %v2002_v24 = vld [vmem:[#allocation8 + $0xfa0] sm:$0xff] }
 0x25e   :  { %4746 = vmatpush1.bf16.msra.mxu0 %v11307_v47  ;;  %4910 = vmatpush1.bf16.msra.mxu1 %v11309_v48  ;;  %v13167_v52 = vpack.c.bf16 %v1493_v59, %v1493_v59  ;;  %v1966_v47 = vld [vmem:[#allocation8 + $0xe80] sm:$0xff]  ;;  %v11366_v55 = vcombine.high %v1967_v49, %v1971_v50  ;;  %v1979_v59 = vld [vmem:[#allocation8 + $0xee8] sm:$0xff] }
 0x25f   :  { %4747 = vmatprep.subr.bf16.mxu0 %v11316_v29  ;;  %4911 = vmatprep.subr.bf16.mxu1 %v11318_v51  ;;  %v1970_v48 = vld [vmem:[#allocation8 + $0xea0] sm:$0xff]  ;;  %v11355_v29 = vcombine.low %v1958_v37, %v1962_v38  ;;  %v11357_v51 = vcombine.low %v1959_v39, %v1963_v41  ;;  %v11396_v38 = vcombine.high %v1998_v23, %v2002_v24 }
 0x260   :  { %4771 = vmatprep.mubr.bf16.mxu0 %v13167_v52  ;;  %4935 = vmatprep.mubr.bf16.mxu1 %v13167_v52  ;;  %v11364_v54 = vcombine.high %v1966_v47, %v1970_v48  ;;  %v2006_v39 = vld [vmem:[#allocation8 + $0xfc0] sm:$0xff] }
 0x261   :  { %v2010_v41 = vld [vmem:[#allocation8 + $0xfe0] sm:$0xff] }
 0x262   :  { %4748 = vmatpush1.bf16.msra.mxu0 %v11315_v60  ;;  %4912 = vmatpush1.bf16.msra.mxu1 %v11317_v63  ;;  %v11363_v60 = vcombine.low %v1966_v47, %v1970_v48  ;;  %v11365_v63 = vcombine.low %v1967_v49, %v1971_v50  ;;  %v11404_v48 = vcombine.high %v2006_v39, %v2010_v41  ;;  %v1504_v50 = vld [vmem:[#allocation8 + $0x10] sm:$0xff] }
 0x263   :  { %4749 = vmatprep.subr.bf16.mxu0 %v11324_v1  ;;  %4913 = vmatprep.subr.bf16.mxu1 %v11326_v2  ;;  %v11372_v1 = vcombine.high %v1974_v56, %v1978_v57  ;;  %v11374_v2 = vcombine.high %v1975_v58, %v1979_v59 }
 0x266   :  { %4750 = vmatpush1.bf16.msra.mxu0 %v11323_v8  ;;  %4914 = vmatpush1.bf16.msra.mxu1 %v11325_v6  ;;  %v11371_v8 = vcombine.low %v1974_v56, %v1978_v57  ;;  %v11373_v6 = vcombine.low %v1975_v58, %v1979_v59 }
 0x267   :  { %4751 = vmatprep.subr.bf16.mxu0 %v11332_v7  ;;  %4915 = vmatprep.subr.bf16.mxu1 %v11334_v9  ;;  %v11380_v7 = vcombine.high %v1982_v53, %v1986_v3  ;;  %v11382_v9 = vcombine.high %v1983_v4, %v1987_v5 }
 0x26a   :  { %4752 = vmatpush1.bf16.msra.mxu0 %v11331_v33  ;;  %4916 = vmatpush1.bf16.msra.mxu1 %v11333_v17  ;;  %v11379_v33 = vcombine.low %v1982_v53, %v1986_v3  ;;  %v11381_v17 = vcombine.low %v1983_v4, %v1987_v5 }
 0x26b   :  { %4753 = vmatprep.subr.bf16.mxu0 %v11340_v18  ;;  %4917 = vmatprep.subr.bf16.mxu1 %v11342_v19  ;;  %v13172_v18 = vsub.s32 6, %v13091_v22  ;;  %v11388_v19 = vcombine.high %v1990_v11, %v1994_v14 }
 0x26e   :  { %4754 = vmatpush1.bf16.msra.mxu0 %v11339_v26  ;;  %4918 = vmatpush1.bf16.msra.mxu1 %v11341_v28  ;;  %v2003_v26 = vld [vmem:[#allocation8 + $0xfa8] sm:$0xff]  ;;  %v11387_v28 = vcombine.low %v1990_v11, %v1994_v14 }
 0x26f   :  { %4755 = vmatprep.subr.bf16.mxu0 %v11348_v36  ;;  %4919 = vmatprep.subr.bf16.mxu1 %v11350_v12  ;;  %v11389_v36 = vcombine.low %v1991_v30, %v1995_v31  ;;  %v12637_v12 = vld [vmem:[#allocation7] sm:$0xff]  ;;  %v11398_v22 = vcombine.high %v1999_v25, %v2003_v26 }
 0x270   :  { %v341_v37 = vrot.slane %v12637_v12, %v13172_v18  ;;  %v1541_v12 = vld [vmem:[#allocation8 + $0x138] sm:$0xff] }
 0x272   :  { %4756 = vmatpush1.bf16.msra.mxu0 %v11347_v13  ;;  %4920 = vmatpush1.bf16.msra.mxu1 %v11349_v42  ;;  %v2007_v13 = vld [vmem:[#allocation8 + $0xfc8] sm:$0xff]  ;;  %v12214_v47 = vadd.f32 %v13165_v44, %v341_v37  ;;  %v1513_v44 = vld [vmem:[#allocation8 + $0x58] sm:$0xff] }
 0x273   :  { %4757 = vmatprep.subr.bf16.mxu0 %v11356_v43  ;;  %4921 = vmatprep.subr.bf16.mxu1 %v11358_v45  ;;  %v2011_v42 = vld [vmem:[#allocation8 + $0xfe8] sm:$0xff]  ;;  %v11395_v43 = vcombine.low %v1998_v23, %v2002_v24  ;;  %v11397_v45 = vcombine.low %v1999_v25, %v2003_v26 }
 0x274   :  { %v11406_v49 = vcombine.high %v2007_v13, %v2011_v42  ;;  %v11405_v56 = vcombine.low %v2007_v13, %v2011_v42  ;;  %v1492_v57 = vmax.f32 %v12214_v47, 0.0  ;;  %v1548_v13 = vld [vmem:[#allocation8 + $0x170] sm:$0xff]  ;;  %v1545_v42 = vld [vmem:[#allocation8 + $0x158] sm:$0xff] }
 0x276   :  { %4758 = vmatpush1.bf16.msra.mxu0 %v11355_v29  ;;  %4922 = vmatpush1.bf16.msra.mxu1 %v11357_v51  ;;  %v1508_v29 = vld [vmem:[#allocation8 + $0x30] sm:$0xff]  ;;  %v1505_v51 = vld [vmem:[#allocation8 + $0x18] sm:$0xff]  ;;  %v13176_v53 = vpack.c.bf16 %v1492_v57, %v1492_v57 }
 0x277   :  { %4759 = vmatprep.subr.bf16.mxu0 %v11364_v54  ;;  %4923 = vmatprep.subr.bf16.mxu1 %v11366_v55  ;;  %v1509_v54 = vld [vmem:[#allocation8 + $0x38] sm:$0xff]  ;;  %v11403_v55 = vcombine.low %v2006_v39, %v2010_v41  ;;  %v10904_v58 = vcombine.high %v1504_v50, %v1508_v29  ;;  %v1544_v41 = vld [vmem:[#allocation8 + $0x150] sm:$0xff] }
 0x278   :  { %v10906_v59 = vcombine.high %v1505_v51, %v1509_v54  ;;  %v10905_v3 = vcombine.low %v1505_v51, %v1509_v54  ;;  %v1553_v51 = vld [vmem:[#allocation8 + $0x198] sm:$0xff] }
 0x279   :  { %v1557_v54 = vld [vmem:[#allocation8 + $0x1b8] sm:$0xff] }
 0x27a   :  { %4760 = vmatpush1.bf16.msra.mxu0 %v11363_v60  ;;  %4924 = vmatpush1.bf16.msra.mxu1 %v11365_v63  ;;  %v1512_v60 = vld [vmem:[#allocation8 + $0x50] sm:$0xff] }
 0x27b   :  { %4761 = vmatprep.subr.bf16.mxu0 %v11372_v1  ;;  %4925 = vmatprep.subr.bf16.mxu1 %v11374_v2  ;;  %v1516_v63 = vld [vmem:[#allocation8 + $0x70] sm:$0xff]  ;;  %v1517_v1 = vld [vmem:[#allocation8 + $0x78] sm:$0xff]  ;;  %v10903_v2 = vcombine.low %v1504_v50, %v1508_v29 }
 0x27c   :  { %v10912_v4 = vcombine.high %v1512_v60, %v1516_v63  ;;  %v10914_v5 = vcombine.high %v1513_v44, %v1517_v1  ;;  %v10911_v11 = vcombine.low %v1512_v60, %v1516_v63  ;;  %v10913_v14 = vcombine.low %v1513_v44, %v1517_v1  ;;  %v1552_v50 = vld [vmem:[#allocation8 + $0x190] sm:$0xff]  ;;  %v1561_v63 = vld [vmem:[#allocation8 + $0x1d8] sm:$0xff] }
 0x27d   :  { %v1556_v29 = vld [vmem:[#allocation8 + $0x1b0] sm:$0xff]  ;;  %v1565_v44 = vld [vmem:[#allocation8 + $0x1f8] sm:$0xff] }
 0x27e   :  { %4762 = vmatpush1.bf16.msra.mxu0 %v11371_v8  ;;  %4926 = vmatpush1.bf16.msra.mxu1 %v11373_v6  ;;  %v1520_v8 = vld [vmem:[#allocation8 + $0x90] sm:$0xff]  ;;  %v10952_v57 = vcombine.high %v1552_v50, %v1556_v29  ;;  %v10951_v1 = vcombine.low %v1552_v50, %v1556_v29  ;;  %v1601_v29 = vld [vmem:[#allocation8 + $0x318] sm:$0xff] }
 0x27f   :  { %4763 = vmatprep.subr.bf16.mxu0 %v11380_v7  ;;  %4927 = vmatprep.subr.bf16.mxu1 %v11382_v9  ;;  %v1524_v6 = vld [vmem:[#allocation8 + $0xb0] sm:$0xff]  ;;  %v1521_v7 = vld [vmem:[#allocation8 + $0x98] sm:$0xff] }
 0x280   :  { %v1525_v9 = vld [vmem:[#allocation8 + $0xb8] sm:$0xff]  ;;  %v10920_v30 = vcombine.high %v1520_v8, %v1524_v6  ;;  %v10919_v23 = vcombine.low %v1520_v8, %v1524_v6  ;;  %v1564_v60 = vld [vmem:[#allocation8 + $0x1f0] sm:$0xff] }
 0x281   :  { %v10922_v31 = vcombine.high %v1521_v7, %v1525_v9  ;;  %v10921_v24 = vcombine.low %v1521_v7, %v1525_v9  ;;  %v1572_v8 = vld [vmem:[#allocation8 + $0x230] sm:$0xff]  ;;  %v1569_v6 = vld [vmem:[#allocation8 + $0x218] sm:$0xff] }
 0x282   :  { %4764 = vmatpush1.bf16.msra.mxu0 %v11379_v33  ;;  %4928 = vmatpush1.bf16.msra.mxu1 %v11381_v17  ;;  %v1528_v33 = vld [vmem:[#allocation8 + $0xd0] sm:$0xff]  ;;  %v1573_v7 = vld [vmem:[#allocation8 + $0x238] sm:$0xff] }
 0x283   :  { %4765 = vmatprep.subr.bf16.mxu0 %v11388_v19  ;;  %4929 = vmatprep.subr.bf16.mxu1 %v11390_v21  ;;  %v1532_v17 = vld [vmem:[#allocation8 + $0xf0] sm:$0xff]  ;;  %v1529_v19 = vld [vmem:[#allocation8 + $0xd8] sm:$0xff] }
 0x284   :  { %v1533_v21 = vld [vmem:[#allocation8 + $0xf8] sm:$0xff]  ;;  %v10928_v25 = vcombine.high %v1528_v33, %v1532_v17  ;;  %v10927_v37 = vcombine.low %v1528_v33, %v1532_v17  ;;  %v1580_v33 = vld [vmem:[#allocation8 + $0x270] sm:$0xff] }
 0x285   :  { %v10930_v26 = vcombine.high %v1529_v19, %v1533_v21  ;;  %v1577_v17 = vld [vmem:[#allocation8 + $0x258] sm:$0xff]  ;;  %v1604_v50 = vld [vmem:[#allocation8 + $0x330] sm:$0xff] }
 0x286   :  { %4766 = vmatpush1.bf16.msra.mxu0 %v11387_v28  ;;  %4930 = vmatpush1.bf16.msra.mxu1 %v11389_v36  ;;  %v1536_v28 = vld [vmem:[#allocation8 + $0x110] sm:$0xff] }
 0x287   :  { %4767 = vmatprep.subr.bf16.mxu0 %v11396_v38  ;;  %4931 = vmatprep.subr.bf16.mxu1 %v11398_v22  ;;  %v1540_v36 = vld [vmem:[#allocation8 + $0x130] sm:$0xff]  ;;  %v10929_v38 = vcombine.low %v1529_v19, %v1533_v21  ;;  %v1581_v19 = vld [vmem:[#allocation8 + $0x278] sm:$0xff] }
 0x288   :  { %v10936_v22 = vcombine.high %v1536_v28, %v1540_v36 }
 0x28a   :  { %4768 = vmatpush1.bf16.msra.mxu0 %v11395_v43  ;;  %4932 = vmatpush1.bf16.msra.mxu1 %v11397_v45  ;;  %v1549_v43 = vld [vmem:[#allocation8 + $0x178] sm:$0xff]  ;;  %v10935_v45 = vcombine.low %v1536_v28, %v1540_v36  ;;  %v1588_v28 = vld [vmem:[#allocation8 + $0x2b0] sm:$0xff] }
 0x28b   :  { %4769 = vmatprep.subr.bf16.mxu0 %v11404_v48  ;;  %4933 = vmatprep.subr.bf16.mxu1 %v11406_v49  ;;  %v10944_v48 = vcombine.high %v1544_v41, %v1548_v13  ;;  %v10946_v49 = vcombine.high %v1545_v42, %v1549_v43  ;;  %v1585_v36 = vld [vmem:[#allocation8 + $0x298] sm:$0xff] }
 0x28e   :  { %4770 = vmatpush1.bf16.msra.mxu0 %v11403_v55  ;;  %4934 = vmatpush1.bf16.msra.mxu1 %v11405_v56  ;;  %v10943_v55 = vcombine.low %v1544_v41, %v1548_v13  ;;  %v10945_v56 = vcombine.low %v1545_v42, %v1549_v43  ;;  %v1596_v41 = vld [vmem:[#allocation8 + $0x2f0] sm:$0xff]  ;;  %v1593_v13 = vld [vmem:[#allocation8 + $0x2d8] sm:$0xff] }
 0x28f   :  { %4944 = vmatprep.subr.bf16.mxu0 %v10904_v58  ;;  %5108 = vmatprep.subr.bf16.mxu1 %v10906_v59  ;;  %v10954_v58 = vcombine.high %v1553_v51, %v1557_v54  ;;  %v1560_v59 = vld [vmem:[#allocation8 + $0x1d0] sm:$0xff]  ;;  %v1597_v42 = vld [vmem:[#allocation8 + $0x2f8] sm:$0xff] }
 0x290   :  { %v10959_v9 = vcombine.low %v1560_v59, %v1564_v60 }
 0x291   :  { %4772 = vmatmul.mubr.bf16.vlgmr.msra.gmra.mrb[8].mxu0 %v13176_v53  ;;  %4936 = vmatmul.mubr.bf16.vlgmr.msra.gmra.mrb[12].mxu1 %v13176_v53 }
 0x292   :  { %4945 = vmatpush1.bf16.msra.mxu0 %v10903_v2  ;;  %4976 = vmatprep.mubr.bf16.mxu0 %v13109_v62  ;;  %v10953_v2 = vcombine.low %v1553_v51, %v1557_v54  ;;  %v1605_v51 = vld [vmem:[#allocation8 + $0x338] sm:$0xff] }
 0x293   :  { %5109 = vmatpush1.bf16.msra.mxu1 %v10905_v3  ;;  %5140 = vmatprep.mubr.bf16.mxu1 %v13109_v62  ;;  %v1537_v62 = vld [vmem:[#allocation8 + $0x118] sm:$0xff]  ;;  %v10960_v3 = vcombine.high %v1560_v59, %v1564_v60  ;;  %v1612_v59 = vld [vmem:[#allocation8 + $0x370] sm:$0xff] }
 0x294   :  { %4946 = vmatprep.subr.bf16.mxu0 %v10912_v4  ;;  %5110 = vmatprep.subr.bf16.mxu1 %v10914_v5  ;;  %v10938_v39 = vcombine.high %v1537_v62, %v1541_v12  ;;  %v10937_v47 = vcombine.low %v1537_v62, %v1541_v12  ;;  %v10962_v4 = vcombine.high %v1561_v63, %v1565_v44  ;;  %v1568_v5 = vld [vmem:[#allocation8 + $0x210] sm:$0xff]  ;;  %v1589_v62 = vld [vmem:[#allocation8 + $0x2b8] sm:$0xff] }
 0x295   :  { %v10967_v21 = vcombine.low %v1568_v5, %v1572_v8  ;;  %v1609_v60 = vld [vmem:[#allocation8 + $0x358] sm:$0xff] }
 0x296   :  { %4947 = vmatpush1.bf16.msra.mxu0 %v10911_v11  ;;  %v10961_v11 = vcombine.low %v1561_v63, %v1565_v44  ;;  %v1613_v63 = vld [vmem:[#allocation8 + $0x378] sm:$0xff] }
 0x297   :  { %5111 = vmatpush1.bf16.msra.mxu1 %v10913_v14  ;;  %4948 = vmatprep.subr.bf16.mxu0 %v10920_v30  ;;  %v10968_v14 = vcombine.high %v1568_v5, %v1572_v8  ;;  %v10970_v30 = vcombine.high %v1569_v6, %v1573_v7  ;;  %v1620_v5 = vld [vmem:[#allocation8 + $0x3b0] sm:$0xff]  ;;  %v1617_v8 = vld [vmem:[#allocation8 + $0x398] sm:$0xff] }
 0x298   :  { %5112 = vmatprep.subr.bf16.mxu1 %v10922_v31  ;;  %v1576_v31 = vld [vmem:[#allocation8 + $0x250] sm:$0xff] }
 0x299   :  { %v10975_v12 = vcombine.low %v1576_v31, %v1580_v33 }
 0x29a   :  { %4949 = vmatpush1.bf16.msra.mxu0 %v10919_v23  ;;  %v10969_v23 = vcombine.low %v1569_v6, %v1573_v7  ;;  %v1621_v6 = vld [vmem:[#allocation8 + $0x3b8] sm:$0xff] }
 0x29b   :  { %5113 = vmatpush1.bf16.msra.mxu1 %v10921_v24  ;;  %4950 = vmatprep.subr.bf16.mxu0 %v10928_v25  ;;  %v10976_v24 = vcombine.high %v1576_v31, %v1580_v33  ;;  %v10978_v25 = vcombine.high %v1577_v17, %v1581_v19  ;;  %v1628_v31 = vld [vmem:[#allocation8 + $0x3f0] sm:$0xff]  ;;  %v1625_v33 = vld [vmem:[#allocation8 + $0x3d8] sm:$0xff] }
 0x29c   :  { %5114 = vmatprep.subr.bf16.mxu1 %v10930_v26  ;;  %v1584_v26 = vld [vmem:[#allocation8 + $0x290] sm:$0xff] }
 0x29d   :  { %v10983_v43 = vcombine.low %v1584_v26, %v1588_v28 }
 0x29e   :  { %4951 = vmatpush1.bf16.msra.mxu0 %v10927_v37  ;;  %v10977_v37 = vcombine.low %v1577_v17, %v1581_v19  ;;  %v1629_v17 = vld [vmem:[#allocation8 + $0x3f8] sm:$0xff] }
 0x29f   :  { %5115 = vmatpush1.bf16.msra.mxu1 %v10929_v38  ;;  %4952 = vmatprep.subr.bf16.mxu0 %v10936_v22  ;;  %v10984_v38 = vcombine.high %v1584_v26, %v1588_v28  ;;  %v10986_v22 = vcombine.high %v1585_v36, %v1589_v62  ;;  %v1636_v26 = vld [vmem:[#allocation8 + $0x430] sm:$0xff]  ;;  %v1633_v28 = vld [vmem:[#allocation8 + $0x418] sm:$0xff] }
 0x2a0   :  { %5116 = vmatprep.subr.bf16.mxu1 %v10938_v39  ;;  %v1592_v39 = vld [vmem:[#allocation8 + $0x2d0] sm:$0xff] }
 0x2a1   :  { %v10991_v54 = vcombine.low %v1592_v39, %v1596_v41 }
 0x2a2   :  { %4953 = vmatpush1.bf16.msra.mxu0 %v10935_v45  ;;  %v10985_v45 = vcombine.low %v1585_v36, %v1589_v62  ;;  %v1637_v36 = vld [vmem:[#allocation8 + $0x438] sm:$0xff] }
 0x2a3   :  { %5117 = vmatpush1.bf16.msra.mxu1 %v10937_v47  ;;  %4954 = vmatprep.subr.bf16.mxu0 %v10944_v48  ;;  %v10992_v47 = vcombine.high %v1592_v39, %v1596_v41  ;;  %v10994_v48 = vcombine.high %v1593_v13, %v1597_v42  ;;  %v1644_v39 = vld [vmem:[#allocation8 + $0x470] sm:$0xff] }
 0x2a4   :  { %5118 = vmatprep.subr.bf16.mxu1 %v10946_v49  ;;  %v1600_v49 = vld [vmem:[#allocation8 + $0x310] sm:$0xff] }
 0x2a5   :  { %v10999_v44 = vcombine.low %v1600_v49, %v1604_v50 }
 0x2a6   :  { %4955 = vmatpush1.bf16.msra.mxu0 %v10943_v55  ;;  %v10993_v55 = vcombine.low %v1593_v13, %v1597_v42  ;;  %v1641_v13 = vld [vmem:[#allocation8 + $0x458] sm:$0xff] }
 0x2a7   :  { %5119 = vmatpush1.bf16.msra.mxu1 %v10945_v56  ;;  %4956 = vmatprep.subr.bf16.mxu0 %v10952_v57  ;;  %v11000_v56 = vcombine.high %v1600_v49, %v1604_v50  ;;  %v11002_v57 = vcombine.high %v1601_v29, %v1605_v51  ;;  %v1645_v42 = vld [vmem:[#allocation8 + $0x478] sm:$0xff] }
 0x2a8   :  { %5120 = vmatprep.subr.bf16.mxu1 %v10954_v58  ;;  %v1608_v58 = vld [vmem:[#allocation8 + $0x350] sm:$0xff]  ;;  %v11042_v49 = vcombine.high %v1641_v13, %v1645_v42  ;;  %v1649_v50 = vld [vmem:[#allocation8 + $0x498] sm:$0xff] }
 0x2a9   :  { %v11007_v7 = vcombine.low %v1608_v58, %v1612_v59 }
 0x2aa   :  { %4957 = vmatpush1.bf16.msra.mxu0 %v10951_v1  ;;  %v11001_v1 = vcombine.low %v1601_v29, %v1605_v51  ;;  %v1653_v29 = vld [vmem:[#allocation8 + $0x4b8] sm:$0xff] }
 0x2ab   :  { %5121 = vmatpush1.bf16.msra.mxu1 %v10953_v2  ;;  %4958 = vmatprep.subr.bf16.mxu0 %v10960_v3  ;;  %v11008_v2 = vcombine.high %v1608_v58, %v1612_v59  ;;  %v11010_v3 = vcombine.high %v1609_v60, %v1613_v63  ;;  %v1660_v58 = vld [vmem:[#allocation8 + $0x4f0] sm:$0xff]  ;;  %v1657_v59 = vld [vmem:[#allocation8 + $0x4d8] sm:$0xff] }
 0x2ac   :  { %5122 = vmatprep.subr.bf16.mxu1 %v10962_v4  ;;  %v1616_v4 = vld [vmem:[#allocation8 + $0x390] sm:$0xff] }
 0x2ad   :  { %v11015_v19 = vcombine.low %v1616_v4, %v1620_v5 }
 0x2ae   :  { %4959 = vmatpush1.bf16.msra.mxu0 %v10959_v9  ;;  %v11009_v9 = vcombine.low %v1609_v60, %v1613_v63  ;;  %v1661_v60 = vld [vmem:[#allocation8 + $0x4f8] sm:$0xff] }
 0x2af   :  { %5123 = vmatpush1.bf16.msra.mxu1 %v10961_v11  ;;  %4960 = vmatprep.subr.bf16.mxu0 %v10968_v14  ;;  %v11016_v11 = vcombine.high %v1616_v4, %v1620_v5  ;;  %v11018_v14 = vcombine.high %v1617_v8, %v1621_v6  ;;  %v1665_v4 = vld [vmem:[#allocation8 + $0x518] sm:$0xff] }
 0x2b0   :  { %5124 = vmatprep.subr.bf16.mxu1 %v10970_v30  ;;  %v1624_v30 = vld [vmem:[#allocation8 + $0x3d0] sm:$0xff]  ;;  %v1669_v5 = vld [vmem:[#allocation8 + $0x538] sm:$0xff] }
 0x2b1   :  { %v11023_v62 = vcombine.low %v1624_v30, %v1628_v31 }
 0x2b2   :  { %4961 = vmatpush1.bf16.msra.mxu0 %v10967_v21  ;;  %v11017_v21 = vcombine.low %v1617_v8, %v1621_v6  ;;  %v11057_v8 = vcombine.low %v1657_v59, %v1661_v60 }
 0x2b3   :  { %5125 = vmatpush1.bf16.msra.mxu1 %v10969_v23  ;;  %4962 = vmatprep.subr.bf16.mxu0 %v10976_v24  ;;  %v11024_v23 = vcombine.high %v1624_v30, %v1628_v31  ;;  %v11026_v24 = vcombine.high %v1625_v33, %v1629_v17  ;;  %v1677_v30 = vld [vmem:[#allocation8 + $0x578] sm:$0xff] }
 0x2b4   :  { %5126 = vmatprep.subr.bf16.mxu1 %v10978_v25  ;;  %v1632_v25 = vld [vmem:[#allocation8 + $0x410] sm:$0xff] }
 0x2b5   :  { %v11031_v41 = vcombine.low %v1632_v25, %v1636_v26 }
 0x2b6   :  { %4963 = vmatpush1.bf16.msra.mxu0 %v10975_v12  ;;  %v11025_v12 = vcombine.low %v1625_v33, %v1629_v17  ;;  %v11065_v33 = vcombine.low %v1665_v4, %v1669_v5 }
 0x2b7   :  { %5127 = vmatpush1.bf16.msra.mxu1 %v10977_v37  ;;  %4964 = vmatprep.subr.bf16.mxu0 %v10984_v38  ;;  %v11032_v37 = vcombine.high %v1632_v25, %v1636_v26  ;;  %v11034_v38 = vcombine.high %v1633_v28, %v1637_v36  ;;  %v1685_v25 = vld [vmem:[#allocation8 + $0x5b8] sm:$0xff] }
 0x2b8   :  { %5128 = vmatprep.subr.bf16.mxu1 %v10986_v22  ;;  %v1640_v22 = vld [vmem:[#allocation8 + $0x450] sm:$0xff] }
 0x2b9   :  { %v11039_v51 = vcombine.low %v1640_v22, %v1644_v39 }
 0x2ba   :  { %4965 = vmatpush1.bf16.msra.mxu0 %v10983_v43  ;;  %v11033_v43 = vcombine.low %v1633_v28, %v1637_v36 }
 0x2bb   :  { %5129 = vmatpush1.bf16.msra.mxu1 %v10985_v45  ;;  %4966 = vmatprep.subr.bf16.mxu0 %v10992_v47  ;;  %v11040_v45 = vcombine.high %v1640_v22, %v1644_v39  ;;  %v1648_v47 = vld [vmem:[#allocation8 + $0x490] sm:$0xff]  ;;  %v1693_v22 = vld [vmem:[#allocation8 + $0x5f8] sm:$0xff] }
 0x2bc   :  { %5130 = vmatprep.subr.bf16.mxu1 %v10994_v48  ;;  %v1652_v48 = vld [vmem:[#allocation8 + $0x4b0] sm:$0xff] }
 0x2bd   :  { %v11047_v63 = vcombine.low %v1648_v47, %v1652_v48 }
 0x2be   :  { %4967 = vmatpush1.bf16.msra.mxu0 %v10991_v54  ;;  %v11041_v54 = vcombine.low %v1641_v13, %v1645_v42 }
 0x2bf   :  { %5131 = vmatpush1.bf16.msra.mxu1 %v10993_v55  ;;  %4968 = vmatprep.subr.bf16.mxu0 %v11000_v56  ;;  %v11048_v55 = vcombine.high %v1648_v47, %v1652_v48  ;;  %v11050_v56 = vcombine.high %v1649_v50, %v1653_v29  ;;  %v1697_v47 = vld [vmem:[#allocation8 + $0x618] sm:$0xff] }
 0x2c0   :  { %5132 = vmatprep.subr.bf16.mxu1 %v11002_v57  ;;  %v1656_v57 = vld [vmem:[#allocation8 + $0x4d0] sm:$0xff]  ;;  %v1701_v48 = vld [vmem:[#allocation8 + $0x638] sm:$0xff] }
 0x2c2   :  { %4969 = vmatpush1.bf16.msra.mxu0 %v10999_v44  ;;  %v11056_v44 = vcombine.high %v1656_v57, %v1660_v58 }
 0x2c3   :  { %5133 = vmatpush1.bf16.msra.mxu1 %v11001_v1  ;;  %4970 = vmatprep.subr.bf16.mxu0 %v11008_v2  ;;  %v11058_v1 = vcombine.high %v1657_v59, %v1661_v60  ;;  %v1664_v2 = vld [vmem:[#allocation8 + $0x510] sm:$0xff]  ;;  %v11097_v59 = vcombine.low %v1697_v47, %v1701_v48 }
 0x2c4   :  { %5134 = vmatprep.subr.bf16.mxu1 %v11010_v3  ;;  %v1668_v3 = vld [vmem:[#allocation8 + $0x530] sm:$0xff] }
 0x2c5   :  { %v11064_v6 = vcombine.high %v1664_v2, %v1668_v3  ;;  %v11063_v31 = vcombine.low %v1664_v2, %v1668_v3  ;;  %v1717_v2 = vld [vmem:[#allocation8 + $0x6b8] sm:$0xff] }
 0x2c6   :  { %4971 = vmatpush1.bf16.msra.mxu0 %v11007_v7  ;;  %v11066_v7 = vcombine.high %v1665_v4, %v1669_v5 }
 0x2c7   :  { %5135 = vmatpush1.bf16.msra.mxu1 %v11009_v9  ;;  %4972 = vmatprep.subr.bf16.mxu0 %v11016_v11  ;;  %v1672_v9 = vld [vmem:[#allocation8 + $0x550] sm:$0xff] }
 0x2c8   :  { %5136 = vmatprep.subr.bf16.mxu1 %v11018_v14  ;;  %v1676_v11 = vld [vmem:[#allocation8 + $0x570] sm:$0xff]  ;;  %v1673_v14 = vld [vmem:[#allocation8 + $0x558] sm:$0xff] }
 0x2c9   :  { %v11072_v17 = vcombine.high %v1672_v9, %v1676_v11  ;;  %v11071_v26 = vcombine.low %v1672_v9, %v1676_v11  ;;  %v11073_v28 = vcombine.low %v1673_v14, %v1677_v30  ;;  %v1725_v9 = vld [vmem:[#allocation8 + $0x6f8] sm:$0xff] }
 0x2ca   :  { %4973 = vmatpush1.bf16.msra.mxu0 %v11015_v19  ;;  %v11074_v19 = vcombine.high %v1673_v14, %v1677_v30 }
 0x2cb   :  { %5137 = vmatpush1.bf16.msra.mxu1 %v11017_v21  ;;  %4974 = vmatprep.subr.bf16.mxu0 %v11024_v23  ;;  %v1680_v21 = vld [vmem:[#allocation8 + $0x590] sm:$0xff] }
 0x2cc   :  { %5138 = vmatprep.subr.bf16.mxu1 %v11026_v24  ;;  %v1684_v23 = vld [vmem:[#allocation8 + $0x5b0] sm:$0xff]  ;;  %v1681_v24 = vld [vmem:[#allocation8 + $0x598] sm:$0xff] }
 0x2cd   :  { %v11080_v36 = vcombine.high %v1680_v21, %v1684_v23  ;;  %v11079_v39 = vcombine.low %v1680_v21, %v1684_v23  ;;  %v1733_v21 = vld [vmem:[#allocation8 + $0x738] sm:$0xff] }
 0x2ce   :  { %4975 = vmatpush1.bf16.msra.mxu0 %v11023_v62  ;;  %v11082_v62 = vcombine.high %v1681_v24, %v1685_v25 }
 0x2cf   :  { %5139 = vmatpush1.bf16.msra.mxu1 %v11025_v12  ;;  %4985 = vmatprep.subr.bf16.mxu0 %v11032_v37  ;;  %v1688_v12 = vld [vmem:[#allocation8 + $0x5d0] sm:$0xff] }
 0x2d0   :  { %5149 = vmatprep.subr.bf16.mxu1 %v11034_v38  ;;  %v1692_v37 = vld [vmem:[#allocation8 + $0x5f0] sm:$0xff]  ;;  %v1689_v38 = vld [vmem:[#allocation8 + $0x5d8] sm:$0xff] }
 0x2d1   :  { %4977 = vmatmul.mubr.bf16.vlgmr.msra.gmra.mrb[12].mxu0 %v13107_v61  ;;  %v11088_v13 = vcombine.high %v1688_v12, %v1692_v37  ;;  %v11090_v42 = vcombine.high %v1689_v38, %v1693_v22 }
 0x2d2   :  { %5141 = vmatmul.mubr.bf16.vlgmr.msra.gmra.mrb[16].mxu1 %v13107_v61  ;;  %4986 = vmatpush1.bf16.msra.mxu0 %v11031_v41  ;;  %v11049_v61 = vcombine.low %v1649_v50, %v1653_v29  ;;  %v11081_v41 = vcombine.low %v1681_v24, %v1685_v25  ;;  %v11089_v50 = vcombine.low %v1689_v38, %v1693_v22 }
 0x2d3   :  { %5017 = vmatprep.mubr.bf16.mxu0 %v13138_v0  ;;  %5150 = vmatpush1.bf16.msra.mxu1 %v11033_v43  ;;  %v1696_v43 = vld [vmem:[#allocation8 + $0x610] sm:$0xff] }
 0x2d4   :  { %5181 = vmatprep.mubr.bf16.mxu1 %v13138_v0  ;;  %4987 = vmatprep.subr.bf16.mxu0 %v11040_v45  ;;  %v11055_v0 = vcombine.low %v1656_v57, %v1660_v58  ;;  %v1700_v45 = vld [vmem:[#allocation8 + $0x630] sm:$0xff]  ;;  %v1709_v57 = vld [vmem:[#allocation8 + $0x678] sm:$0xff] }
 0x2d5   :  { %5151 = vmatprep.subr.bf16.mxu1 %v11042_v49  ;;  %v11087_v49 = vcombine.low %v1688_v12, %v1692_v37  ;;  %v11096_v29 = vcombine.high %v1696_v43, %v1700_v45  ;;  %v11095_v58 = vcombine.low %v1696_v43, %v1700_v45  ;;  %v1741_v12 = vld [vmem:[#allocation8 + $0x778] sm:$0xff] }
 0x2d6   :  { %4988 = vmatpush1.bf16.msra.mxu0 %v11039_v51  ;;  %v11098_v51 = vcombine.high %v1697_v47, %v1701_v48  ;;  %v1749_v43 = vld [vmem:[#allocation8 + $0x7b8] sm:$0xff] }
 0x2d7   :  { %5152 = vmatpush1.bf16.msra.mxu1 %v11041_v54  ;;  %4989 = vmatprep.subr.bf16.mxu0 %v11048_v55  ;;  %v1704_v54 = vld [vmem:[#allocation8 + $0x650] sm:$0xff] }
 0x2d8   :  { %5153 = vmatprep.subr.bf16.mxu1 %v11050_v56  ;;  %v1708_v55 = vld [vmem:[#allocation8 + $0x670] sm:$0xff]  ;;  %v1705_v56 = vld [vmem:[#allocation8 + $0x658] sm:$0xff] }
 0x2d9   :  { %v11104_v60 = vcombine.high %v1704_v54, %v1708_v55  ;;  %v11103_v3 = vcombine.low %v1704_v54, %v1708_v55  ;;  %v11105_v4 = vcombine.low %v1705_v56, %v1709_v57  ;;  %v1757_v54 = vld [vmem:[#allocation8 + $0x7f8] sm:$0xff] }
 0x2da   :  { %4990 = vmatpush1.bf16.msra.mxu0 %v11047_v63  ;;  %v11106_v63 = vcombine.high %v1705_v56, %v1709_v57 }
 0x2db   :  { %5154 = vmatpush1.bf16.msra.mxu1 %v11049_v61  ;;  %4991 = vmatprep.subr.bf16.mxu0 %v11056_v44  ;;  %v1712_v61 = vld [vmem:[#allocation8 + $0x690] sm:$0xff] }
 0x2dc   :  { %5155 = vmatprep.subr.bf16.mxu1 %v11058_v1  ;;  %v1716_v44 = vld [vmem:[#allocation8 + $0x6b0] sm:$0xff]  ;;  %v1713_v1 = vld [vmem:[#allocation8 + $0x698] sm:$0xff] }
 0x2dd   :  { %v11112_v5 = vcombine.high %v1712_v61, %v1716_v44  ;;  %v11111_v11 = vcombine.low %v1712_v61, %v1716_v44  ;;  %v11113_v14 = vcombine.low %v1713_v1, %v1717_v2  ;;  %v1765_v61 = vld [vmem:[#allocation8 + $0x838] sm:$0xff] }
 0x2de   :  { %4992 = vmatpush1.bf16.msra.mxu0 %v11055_v0  ;;  %v11114_v0 = vcombine.high %v1713_v1, %v1717_v2 }
 0x2df   :  { %5156 = vmatpush1.bf16.msra.mxu1 %v11057_v8  ;;  %4993 = vmatprep.subr.bf16.mxu0 %v11064_v6  ;;  %v1720_v8 = vld [vmem:[#allocation8 + $0x6d0] sm:$0xff] }
 0x2e0   :  { %5157 = vmatprep.subr.bf16.mxu1 %v11066_v7  ;;  %v1724_v6 = vld [vmem:[#allocation8 + $0x6f0] sm:$0xff]  ;;  %v1721_v7 = vld [vmem:[#allocation8 + $0x6d8] sm:$0xff] }
 0x2e1   :  { %v11120_v30 = vcombine.high %v1720_v8, %v1724_v6  ;;  %v11119_v23 = vcombine.low %v1720_v8, %v1724_v6  ;;  %v11121_v24 = vcombine.low %v1721_v7, %v1725_v9  ;;  %v1769_v8 = vld [vmem:[#allocation8 + $0x858] sm:$0xff] }
 0x2e2   :  { %4994 = vmatpush1.bf16.msra.mxu0 %v11063_v31  ;;  %v11122_v31 = vcombine.high %v1721_v7, %v1725_v9  ;;  %v1773_v6 = vld [vmem:[#allocation8 + $0x878] sm:$0xff] }
 0x2e3   :  { %5158 = vmatpush1.bf16.msra.mxu1 %v11065_v33  ;;  %4995 = vmatprep.subr.bf16.mxu0 %v11072_v17  ;;  %v1728_v33 = vld [vmem:[#allocation8 + $0x710] sm:$0xff] }
 0x2e4   :  { %5159 = vmatprep.subr.bf16.mxu1 %v11074_v19  ;;  %v1732_v17 = vld [vmem:[#allocation8 + $0x730] sm:$0xff]  ;;  %v1729_v19 = vld [vmem:[#allocation8 + $0x718] sm:$0xff] }
 0x2e5   :  { %v11128_v25 = vcombine.high %v1728_v33, %v1732_v17  ;;  %v11127_v37 = vcombine.low %v1728_v33, %v1732_v17  ;;  %v11129_v38 = vcombine.low %v1729_v19, %v1733_v21  ;;  %v1781_v33 = vld [vmem:[#allocation8 + $0x8b8] sm:$0xff] }
 0x2e6   :  { %4996 = vmatpush1.bf16.msra.mxu0 %v11071_v26  ;;  %v11130_v26 = vcombine.high %v1729_v19, %v1733_v21  ;;  %v11169_v19 = vcombine.low %v1769_v8, %v1773_v6 }
 0x2e7   :  { %5160 = vmatpush1.bf16.msra.mxu1 %v11073_v28  ;;  %4997 = vmatprep.subr.bf16.mxu0 %v11080_v36  ;;  %v1736_v28 = vld [vmem:[#allocation8 + $0x750] sm:$0xff] }
 0x2e8   :  { %5161 = vmatprep.subr.bf16.mxu1 %v11082_v62  ;;  %v1740_v36 = vld [vmem:[#allocation8 + $0x770] sm:$0xff]  ;;  %v1737_v62 = vld [vmem:[#allocation8 + $0x758] sm:$0xff] }
 0x2e9   :  { %v11136_v22 = vcombine.high %v1736_v28, %v1740_v36  ;;  %v11135_v45 = vcombine.low %v1736_v28, %v1740_v36  ;;  %v11137_v47 = vcombine.low %v1737_v62, %v1741_v12  ;;  %v1789_v28 = vld [vmem:[#allocation8 + $0x8f8] sm:$0xff] }
 0x2ea   :  { %4998 = vmatpush1.bf16.msra.mxu0 %v11079_v39  ;;  %v11138_v39 = vcombine.high %v1737_v62, %v1741_v12 }
 0x2eb   :  { %5162 = vmatpush1.bf16.msra.mxu1 %v11081_v41  ;;  %4999 = vmatprep.subr.bf16.mxu0 %v11088_v13  ;;  %v1744_v41 = vld [vmem:[#allocation8 + $0x790] sm:$0xff] }
 0x2ec   :  { %5163 = vmatprep.subr.bf16.mxu1 %v11090_v42  ;;  %v1748_v13 = vld [vmem:[#allocation8 + $0x7b0] sm:$0xff]  ;;  %v1745_v42 = vld [vmem:[#allocation8 + $0x798] sm:$0xff] }
 0x2ed   :  { %v11144_v48 = vcombine.high %v1744_v41, %v1748_v13  ;;  %v11143_v55 = vcombine.low %v1744_v41, %v1748_v13  ;;  %v11145_v56 = vcombine.low %v1745_v42, %v1749_v43 }
 0x2ee   :  { %5000 = vmatpush1.bf16.msra.mxu0 %v11087_v49  ;;  %v11146_v49 = vcombine.high %v1745_v42, %v1749_v43  ;;  %v1800_v43 = vld [vmem:[#allocation8 + $0x950] sm:$0xff] }
 0x2ef   :  { %5164 = vmatpush1.bf16.msra.mxu1 %v11089_v50  ;;  %5001 = vmatprep.subr.bf16.mxu0 %v11096_v29  ;;  %v1752_v50 = vld [vmem:[#allocation8 + $0x7d0] sm:$0xff] }
 0x2f0   :  { %5165 = vmatprep.subr.bf16.mxu1 %v11098_v51  ;;  %v1756_v29 = vld [vmem:[#allocation8 + $0x7f0] sm:$0xff]  ;;  %v1753_v51 = vld [vmem:[#allocation8 + $0x7d8] sm:$0xff] }
 0x2f1   :  { %v11152_v57 = vcombine.high %v1752_v50, %v1756_v29  ;;  %v11151_v44 = vcombine.low %v1752_v50, %v1756_v29  ;;  %v11153_v1 = vcombine.low %v1753_v51, %v1757_v54 }
 0x2f2   :  { %5002 = vmatpush1.bf16.msra.mxu0 %v11095_v58  ;;  %v11154_v58 = vcombine.high %v1753_v51, %v1757_v54  ;;  %v1808_v54 = vld [vmem:[#allocation8 + $0x990] sm:$0xff] }
 0x2f3   :  { %5166 = vmatpush1.bf16.msra.mxu1 %v11097_v59  ;;  %5003 = vmatprep.subr.bf16.mxu0 %v11104_v60  ;;  %v1760_v59 = vld [vmem:[#allocation8 + $0x810] sm:$0xff] }
 0x2f4   :  { %5167 = vmatprep.subr.bf16.mxu1 %v11106_v63  ;;  %v1764_v60 = vld [vmem:[#allocation8 + $0x830] sm:$0xff]  ;;  %v1761_v63 = vld [vmem:[#allocation8 + $0x818] sm:$0xff] }
 0x2f5   :  { %v11160_v2 = vcombine.high %v1760_v59, %v1764_v60  ;;  %v11161_v7 = vcombine.low %v1761_v63, %v1765_v61 }
 0x2f6   :  { %5004 = vmatpush1.bf16.msra.mxu0 %v11103_v3  ;;  %v11162_v3 = vcombine.high %v1761_v63, %v1765_v61  ;;  %v1816_v61 = vld [vmem:[#allocation8 + $0x9d0] sm:$0xff] }
 0x2f7   :  { %5168 = vmatpush1.bf16.msra.mxu1 %v11105_v4  ;;  %5005 = vmatprep.subr.bf16.mxu0 %v11112_v5  ;;  %v1768_v4 = vld [vmem:[#allocation8 + $0x850] sm:$0xff] }
 0x2f8   :  { %5169 = vmatprep.subr.bf16.mxu1 %v11114_v0  ;;  %v1772_v5 = vld [vmem:[#allocation8 + $0x870] sm:$0xff]  ;;  %v11159_v0 = vcombine.low %v1760_v59, %v1764_v60 }
 0x2f9   :  { %v11168_v9 = vcombine.high %v1768_v4, %v1772_v5  ;;  %v11167_v17 = vcombine.low %v1768_v4, %v1772_v5 }
 0x2fa   :  { %5006 = vmatpush1.bf16.msra.mxu0 %v11111_v11  ;;  %v1776_v11 = vld [vmem:[#allocation8 + $0x890] sm:$0xff] }
 0x2fb   :  { %5170 = vmatpush1.bf16.msra.mxu1 %v11113_v14  ;;  %5007 = vmatprep.subr.bf16.mxu0 %v11120_v30  ;;  %v1780_v14 = vld [vmem:[#allocation8 + $0x8b0] sm:$0xff]  ;;  %v11170_v30 = vcombine.high %v1769_v8, %v1773_v6 }
 0x2fc   :  { %5171 = vmatprep.subr.bf16.mxu1 %v11122_v31  ;;  %v1777_v31 = vld [vmem:[#allocation8 + $0x898] sm:$0xff]  ;;  %v11176_v21 = vcombine.high %v1776_v11, %v1780_v14  ;;  %v11175_v36 = vcombine.low %v1776_v11, %v1780_v14  ;;  %v1824_v8 = vld [vmem:[#allocation8 + $0xa10] sm:$0xff] }
 0x2fd   :  { %v1828_v6 = vld [vmem:[#allocation8 + $0xa30] sm:$0xff] }
 0x2fe   :  { %5008 = vmatpush1.bf16.msra.mxu0 %v11119_v23  ;;  %v11178_v23 = vcombine.high %v1777_v31, %v1781_v33 }
 0x2ff   :  { %5172 = vmatpush1.bf16.msra.mxu1 %v11121_v24  ;;  %5009 = vmatprep.subr.bf16.mxu0 %v11128_v25  ;;  %v1784_v24 = vld [vmem:[#allocation8 + $0x8d0] sm:$0xff] }
 0x300   :  { %5173 = vmatprep.subr.bf16.mxu1 %v11130_v26  ;;  %v1788_v25 = vld [vmem:[#allocation8 + $0x8f0] sm:$0xff]  ;;  %v1785_v26 = vld [vmem:[#allocation8 + $0x8d8] sm:$0xff] }
 0x301   :  { %v11184_v62 = vcombine.high %v1784_v24, %v1788_v25  ;;  %v11186_v12 = vcombine.high %v1785_v26, %v1789_v28  ;;  %v11185_v41 = vcombine.low %v1785_v26, %v1789_v28  ;;  %v1840_v28 = vld [vmem:[#allocation8 + $0xa90] sm:$0xff] }
 0x302   :  { %5010 = vmatpush1.bf16.msra.mxu0 %v11127_v37  ;;  %v1792_v37 = vld [vmem:[#allocation8 + $0x910] sm:$0xff] }
 0x303   :  { %5174 = vmatpush1.bf16.msra.mxu1 %v11129_v38  ;;  %5011 = vmatprep.subr.bf16.mxu0 %v11136_v22  ;;  %v1796_v38 = vld [vmem:[#allocation8 + $0x930] sm:$0xff]  ;;  %v1793_v22 = vld [vmem:[#allocation8 + $0x918] sm:$0xff] }
 0x304   :  { %5175 = vmatprep.subr.bf16.mxu1 %v11138_v39  ;;  %v1797_v39 = vld [vmem:[#allocation8 + $0x938] sm:$0xff]  ;;  %v11192_v13 = vcombine.high %v1792_v37, %v1796_v38 }
 0x305   :  { %v11194_v42 = vcombine.high %v1793_v22, %v1797_v39  ;;  %v11193_v50 = vcombine.low %v1793_v22, %v1797_v39  ;;  %v1848_v39 = vld [vmem:[#allocation8 + $0xad0] sm:$0xff] }
 0x306   :  { %5012 = vmatpush1.bf16.msra.mxu0 %v11135_v45  ;;  %v1804_v45 = vld [vmem:[#allocation8 + $0x970] sm:$0xff] }
 0x307   :  { %5176 = vmatpush1.bf16.msra.mxu1 %v11137_v47  ;;  %5013 = vmatprep.subr.bf16.mxu0 %v11144_v48  ;;  %v1801_v47 = vld [vmem:[#allocation8 + $0x958] sm:$0xff]  ;;  %v11200_v29 = vcombine.high %v1800_v43, %v1804_v45 }
 0x308   :  { %5177 = vmatprep.subr.bf16.mxu1 %v11146_v49  ;;  %v1805_v48 = vld [vmem:[#allocation8 + $0x978] sm:$0xff]  ;;  %v11191_v49 = vcombine.low %v1792_v37, %v1796_v38 }
 0x309   :  { %v11202_v51 = vcombine.high %v1801_v47, %v1805_v48  ;;  %v11201_v59 = vcombine.low %v1801_v47, %v1805_v48  ;;  %v1856_v48 = vld [vmem:[#allocation8 + $0xb10] sm:$0xff] }
 0x30a   :  { %5014 = vmatpush1.bf16.msra.mxu0 %v11143_v55  ;;  %v1812_v55 = vld [vmem:[#allocation8 + $0x9b0] sm:$0xff] }
 0x30b   :  { %5178 = vmatpush1.bf16.msra.mxu1 %v11145_v56  ;;  %5015 = vmatprep.subr.bf16.mxu0 %v11152_v57  ;;  %v1809_v56 = vld [vmem:[#allocation8 + $0x998] sm:$0xff]  ;;  %v11208_v60 = vcombine.high %v1808_v54, %v1812_v55 }
 0x30c   :  { %5179 = vmatprep.subr.bf16.mxu1 %v11154_v58  ;;  %v1813_v57 = vld [vmem:[#allocation8 + $0x9b8] sm:$0xff]  ;;  %v11199_v58 = vcombine.low %v1800_v43, %v1804_v45 }
 0x30d   :  { %v11210_v63 = vcombine.high %v1809_v56, %v1813_v57  ;;  %v11209_v4 = vcombine.low %v1809_v56, %v1813_v57  ;;  %v1864_v57 = vld [vmem:[#allocation8 + $0xb50] sm:$0xff] }
 0x30e   :  { %5016 = vmatpush1.bf16.msra.mxu0 %v11151_v44  ;;  %v1820_v44 = vld [vmem:[#allocation8 + $0x9f0] sm:$0xff] }
 0x30f   :  { %5180 = vmatpush1.bf16.msra.mxu1 %v11153_v1  ;;  %5026 = vmatprep.subr.bf16.mxu0 %v11160_v2  ;;  %v1817_v1 = vld [vmem:[#allocation8 + $0x9d8] sm:$0xff]  ;;  %v11216_v5 = vcombine.high %v1816_v61, %v1820_v44  ;;  %v11215_v11 = vcombine.low %v1816_v61, %v1820_v44 }
 0x310   :  { %5190 = vmatprep.subr.bf16.mxu1 %v11162_v3  ;;  %v1821_v2 = vld [vmem:[#allocation8 + $0x9f8] sm:$0xff]  ;;  %v11207_v3 = vcombine.low %v1808_v54, %v1812_v55 }
 0x311   :  { %5018 = vmatmul.mubr.bf16.vlgmr.msra.gmra.mrb[12].mxu0 %v13140_v40  ;;  %v11217_v14 = vcombine.low %v1817_v1, %v1821_v2 }
 0x312   :  { %5182 = vmatmul.mubr.bf16.vlgmr.msra.gmra.mrb[16].mxu1 %v13140_v40  ;;  %5027 = vmatpush1.bf16.msra.mxu0 %v11159_v0  ;;  %v11177_v40 = vcombine.low %v1777_v31, %v1781_v33  ;;  %v11218_v0 = vcombine.high %v1817_v1, %v1821_v2  ;;  %v1832_v33 = vld [vmem:[#allocation8 + $0xa50] sm:$0xff] }
 0x313   :  { %5058 = vmatprep.mubr.bf16.mxu0 %v13144_v46  ;;  %5191 = vmatpush1.bf16.msra.mxu1 %v11161_v7  ;;  %v1825_v7 = vld [vmem:[#allocation8 + $0xa18] sm:$0xff]  ;;  %v1872_v2 = vld [vmem:[#allocation8 + $0xb90] sm:$0xff] }
 0x314   :  { %5222 = vmatprep.mubr.bf16.mxu1 %v13144_v46  ;;  %5028 = vmatprep.subr.bf16.mxu0 %v11168_v9  ;;  %v11183_v46 = vcombine.low %v1784_v24, %v1788_v25  ;;  %v1829_v9 = vld [vmem:[#allocation8 + $0xa38] sm:$0xff] }
 0x315   :  { %5192 = vmatprep.subr.bf16.mxu1 %v11170_v30  ;;  %v11224_v30 = vcombine.high %v1824_v8, %v1828_v6  ;;  %v11226_v31 = vcombine.high %v1825_v7, %v1829_v9  ;;  %v11225_v24 = vcombine.low %v1825_v7, %v1829_v9  ;;  %v1880_v9 = vld [vmem:[#allocation8 + $0xbd0] sm:$0xff] }
 0x316   :  { %5029 = vmatpush1.bf16.msra.mxu0 %v11167_v17  ;;  %v1836_v17 = vld [vmem:[#allocation8 + $0xa70] sm:$0xff] }
 0x317   :  { %5193 = vmatpush1.bf16.msra.mxu1 %v11169_v19  ;;  %5030 = vmatprep.subr.bf16.mxu0 %v11176_v21  ;;  %v1833_v19 = vld [vmem:[#allocation8 + $0xa58] sm:$0xff]  ;;  %v11232_v25 = vcombine.high %v1832_v33, %v1836_v17 }
 0x318   :  { %5194 = vmatprep.subr.bf16.mxu1 %v11178_v23  ;;  %v1837_v21 = vld [vmem:[#allocation8 + $0xa78] sm:$0xff]  ;;  %v11223_v23 = vcombine.low %v1824_v8, %v1828_v6 }
 0x319   :  { %v11234_v26 = vcombine.high %v1833_v19, %v1837_v21  ;;  %v11233_v37 = vcombine.low %v1833_v19, %v1837_v21  ;;  %v1888_v21 = vld [vmem:[#allocation8 + $0xc10] sm:$0xff] }
 0x31a   :  { %5031 = vmatpush1.bf16.msra.mxu0 %v11175_v36  ;;  %v1844_v36 = vld [vmem:[#allocation8 + $0xab0] sm:$0xff] }
 0x31b   :  { %5195 = vmatpush1.bf16.msra.mxu1 %v11177_v40  ;;  %5032 = vmatprep.subr.bf16.mxu0 %v11184_v62  ;;  %v1841_v40 = vld [vmem:[#allocation8 + $0xa98] sm:$0xff]  ;;  %v11240_v38 = vcombine.high %v1840_v28, %v1844_v36 }
 0x31c   :  { %5196 = vmatprep.subr.bf16.mxu1 %v11186_v12  ;;  %v1845_v62 = vld [vmem:[#allocation8 + $0xab8] sm:$0xff]  ;;  %v11231_v12 = vcombine.low %v1832_v33, %v1836_v17 }
 0x31d   :  { %v11242_v22 = vcombine.high %v1841_v40, %v1845_v62  ;;  %v11241_v43 = vcombine.low %v1841_v40, %v1845_v62  ;;  %v1896_v62 = vld [vmem:[#allocation8 + $0xc50] sm:$0xff] }
 0x31e   :  { %5033 = vmatpush1.bf16.msra.mxu0 %v11183_v46  ;;  %v1852_v46 = vld [vmem:[#allocation8 + $0xaf0] sm:$0xff] }
 0x31f   :  { %5197 = vmatpush1.bf16.msra.mxu1 %v11185_v41  ;;  %5034 = vmatprep.subr.bf16.mxu0 %v11192_v13  ;;  %v1849_v41 = vld [vmem:[#allocation8 + $0xad8] sm:$0xff]  ;;  %v11248_v45 = vcombine.high %v1848_v39, %v1852_v46 }
 0x320   :  { %5198 = vmatprep.subr.bf16.mxu1 %v11194_v42  ;;  %v1853_v13 = vld [vmem:[#allocation8 + $0xaf8] sm:$0xff]  ;;  %v11239_v42 = vcombine.low %v1840_v28, %v1844_v36 }
 0x321   :  { %v11250_v47 = vcombine.high %v1849_v41, %v1853_v13  ;;  %v11249_v54 = vcombine.low %v1849_v41, %v1853_v13  ;;  %v1904_v41 = vld [vmem:[#allocation8 + $0xc90] sm:$0xff] }
 0x322   :  { %5035 = vmatpush1.bf16.msra.mxu0 %v11191_v49  ;;  %v1860_v49 = vld [vmem:[#allocation8 + $0xb30] sm:$0xff] }
 0x323   :  { %5199 = vmatpush1.bf16.msra.mxu1 %v11193_v50  ;;  %5036 = vmatprep.subr.bf16.mxu0 %v11200_v29  ;;  %v1857_v50 = vld [vmem:[#allocation8 + $0xb18] sm:$0xff]  ;;  %v11256_v55 = vcombine.high %v1856_v48, %v1860_v49  ;;  %v1908_v13 = vld [vmem:[#allocation8 + $0xcb0] sm:$0xff] }
 0x324   :  { %5200 = vmatprep.subr.bf16.mxu1 %v11202_v51  ;;  %v1861_v29 = vld [vmem:[#allocation8 + $0xb38] sm:$0xff]  ;;  %v11247_v51 = vcombine.low %v1848_v39, %v1852_v46 }
 0x325   :  { %v11258_v56 = vcombine.high %v1857_v50, %v1861_v29  ;;  %v11257_v61 = vcombine.low %v1857_v50, %v1861_v29  ;;  %v1912_v29 = vld [vmem:[#allocation8 + $0xcd0] sm:$0xff] }
 0x326   :  { %5037 = vmatpush1.bf16.msra.mxu0 %v11199_v58  ;;  %v1868_v58 = vld [vmem:[#allocation8 + $0xb70] sm:$0xff] }
 0x327   :  { %5201 = vmatpush1.bf16.msra.mxu1 %v11201_v59  ;;  %5038 = vmatprep.subr.bf16.mxu0 %v11208_v60  ;;  %v1865_v59 = vld [vmem:[#allocation8 + $0xb58] sm:$0xff]  ;;  %v11264_v44 = vcombine.high %v1864_v57, %v1868_v58 }
 0x328   :  { %5202 = vmatprep.subr.bf16.mxu1 %v11210_v63  ;;  %v1869_v60 = vld [vmem:[#allocation8 + $0xb78] sm:$0xff]  ;;  %v11255_v63 = vcombine.low %v1856_v48, %v1860_v49  ;;  %v11304_v49 = vcombine.high %v1904_v41, %v1908_v13 }
 0x329   :  { %v11266_v1 = vcombine.high %v1865_v59, %v1869_v60  ;;  %v11265_v8 = vcombine.low %v1865_v59, %v1869_v60  ;;  %v1920_v59 = vld [vmem:[#allocation8 + $0xd10] sm:$0xff] }
 0x32a   :  { %5039 = vmatpush1.bf16.msra.mxu0 %v11207_v3  ;;  %v1876_v3 = vld [vmem:[#allocation8 + $0xbb0] sm:$0xff] }
 0x32b   :  { %5203 = vmatpush1.bf16.msra.mxu1 %v11209_v4  ;;  %5040 = vmatprep.subr.bf16.mxu0 %v11216_v5  ;;  %v1873_v4 = vld [vmem:[#allocation8 + $0xb98] sm:$0xff]  ;;  %v11272_v6 = vcombine.high %v1872_v2, %v1876_v3  ;;  %v1924_v60 = vld [vmem:[#allocation8 + $0xd30] sm:$0xff] }
 0x32c   :  { %5204 = vmatprep.subr.bf16.mxu1 %v11218_v0  ;;  %v1877_v5 = vld [vmem:[#allocation8 + $0xbb8] sm:$0xff]  ;;  %v11263_v0 = vcombine.low %v1864_v57, %v1868_v58 }
 0x32d   :  { %v11274_v7 = vcombine.high %v1873_v4, %v1877_v5  ;;  %v11273_v33 = vcombine.low %v1873_v4, %v1877_v5  ;;  %v1932_v4 = vld [vmem:[#allocation8 + $0xd70] sm:$0xff]  ;;  %v1929_v5 = vld [vmem:[#allocation8 + $0xd58] sm:$0xff] }
 0x32e   :  { %5041 = vmatpush1.bf16.msra.mxu0 %v11215_v11  ;;  %v1884_v11 = vld [vmem:[#allocation8 + $0xbf0] sm:$0xff] }
 0x32f   :  { %5205 = vmatpush1.bf16.msra.mxu1 %v11217_v14  ;;  %5042 = vmatprep.subr.bf16.mxu0 %v11224_v30  ;;  %v1881_v14 = vld [vmem:[#allocation8 + $0xbd8] sm:$0xff]  ;;  %v11280_v17 = vcombine.high %v1880_v9, %v1884_v11 }
 0x330   :  { %5206 = vmatprep.subr.bf16.mxu1 %v11226_v31  ;;  %v1885_v30 = vld [vmem:[#allocation8 + $0xbf8] sm:$0xff]  ;;  %v11271_v31 = vcombine.low %v1872_v2, %v1876_v3  ;;  %v1928_v3 = vld [vmem:[#allocation8 + $0xd50] sm:$0xff] }
 0x331   :  { %v11282_v19 = vcombine.high %v1881_v14, %v1885_v30  ;;  %v11281_v28 = vcombine.low %v1881_v14, %v1885_v30  ;;  %v1940_v14 = vld [vmem:[#allocation8 + $0xdb0] sm:$0xff]  ;;  %v1937_v30 = vld [vmem:[#allocation8 + $0xd98] sm:$0xff] }
 0x332   :  { %5043 = vmatpush1.bf16.msra.mxu0 %v11223_v23  ;;  %v1892_v23 = vld [vmem:[#allocation8 + $0xc30] sm:$0xff] }
 0x333   :  { %5207 = vmatpush1.bf16.msra.mxu1 %v11225_v24  ;;  %5044 = vmatprep.subr.bf16.mxu0 %v11232_v25  ;;  %v1889_v24 = vld [vmem:[#allocation8 + $0xc18] sm:$0xff]  ;;  %v11288_v36 = vcombine.high %v1888_v21, %v1892_v23 }
 0x334   :  { %5208 = vmatprep.subr.bf16.mxu1 %v11234_v26  ;;  %v1893_v25 = vld [vmem:[#allocation8 + $0xc38] sm:$0xff]  ;;  %v11279_v26 = vcombine.low %v1880_v9, %v1884_v11  ;;  %v1936_v11 = vld [vmem:[#allocation8 + $0xd90] sm:$0xff] }
 0x335   :  { %v11290_v40 = vcombine.high %v1889_v24, %v1893_v25  ;;  %v11289_v39 = vcombine.low %v1889_v24, %v1893_v25  ;;  %v1944_v25 = vld [vmem:[#allocation8 + $0xdd0] sm:$0xff] }
 0x336   :  { %5045 = vmatpush1.bf16.msra.mxu0 %v11231_v12  ;;  %v1900_v12 = vld [vmem:[#allocation8 + $0xc70] sm:$0xff] }
 0x337   :  { %5209 = vmatpush1.bf16.msra.mxu1 %v11233_v37  ;;  %5046 = vmatprep.subr.bf16.mxu0 %v11240_v38  ;;  %v11287_v37 = vcombine.low %v1888_v21, %v1892_v23  ;;  %v1897_v38 = vld [vmem:[#allocation8 + $0xc58] sm:$0xff]  ;;  %v11296_v46 = vcombine.high %v1896_v62, %v1900_v12 }
 0x338   :  { %5210 = vmatprep.subr.bf16.mxu1 %v11242_v22  ;;  %v1901_v22 = vld [vmem:[#allocation8 + $0xc78] sm:$0xff] }
 0x339   :  { %v11297_v48 = vcombine.low %v1897_v38, %v1901_v22 }
 0x33a   :  { %5047 = vmatpush1.bf16.msra.mxu0 %v11239_v42  ;;  %v11298_v42 = vcombine.high %v1897_v38, %v1901_v22  ;;  %v11335_v38 = vcombine.low %v1936_v11, %v1940_v14 }
 0x33b   :  { %5211 = vmatpush1.bf16.msra.mxu1 %v11241_v43  ;;  %5048 = vmatprep.subr.bf16.mxu0 %v11248_v45  ;;  %v1905_v43 = vld [vmem:[#allocation8 + $0xc98] sm:$0xff] }
 0x33c   :  { %5212 = vmatprep.subr.bf16.mxu1 %v11250_v47  ;;  %v1909_v45 = vld [vmem:[#allocation8 + $0xcb8] sm:$0xff]  ;;  %v11295_v47 = vcombine.low %v1896_v62, %v1900_v12 }
 0x33d   :  { %v11306_v50 = vcombine.high %v1905_v43, %v1909_v45  ;;  %v1949_v62 = vld [vmem:[#allocation8 + $0xdf8] sm:$0xff] }
 0x33e   :  { %5049 = vmatpush1.bf16.msra.mxu0 %v11247_v51  ;;  %v1916_v51 = vld [vmem:[#allocation8 + $0xcf0] sm:$0xff] }
 0x33f   :  { %5213 = vmatpush1.bf16.msra.mxu1 %v11249_v54  ;;  %5050 = vmatprep.subr.bf16.mxu0 %v11256_v55  ;;  %v1913_v54 = vld [vmem:[#allocation8 + $0xcd8] sm:$0xff]  ;;  %v11312_v57 = vcombine.high %v1912_v29, %v1916_v51 }
 0x340   :  { %5214 = vmatprep.subr.bf16.mxu1 %v11258_v56  ;;  %v1917_v55 = vld [vmem:[#allocation8 + $0xcf8] sm:$0xff]  ;;  %v11303_v56 = vcombine.low %v1904_v41, %v1908_v13 }
 0x341   :  { %v11314_v58 = vcombine.high %v1913_v54, %v1917_v55 }
 0x342   :  { %5051 = vmatpush1.bf16.msra.mxu0 %v11255_v63  ;;  %v1921_v63 = vld [vmem:[#allocation8 + $0xd18] sm:$0xff] }
 0x343   :  { %5215 = vmatpush1.bf16.msra.mxu1 %v11257_v61  ;;  %5052 = vmatprep.subr.bf16.mxu0 %v11264_v44  ;;  %v1925_v61 = vld [vmem:[#allocation8 + $0xd38] sm:$0xff]  ;;  %v11313_v44 = vcombine.low %v1913_v54, %v1917_v55  ;;  %v1964_v54 = vld [vmem:[#allocation8 + $0xe70] sm:$0xff] }
 0x344   :  { %5216 = vmatprep.subr.bf16.mxu1 %v11266_v1  ;;  %v11320_v1 = vcombine.high %v1920_v59, %v1924_v60  ;;  %v11322_v2 = vcombine.high %v1921_v63, %v1925_v61  ;;  %v1961_v55 = vld [vmem:[#allocation8 + $0xe58] sm:$0xff] }
 0x346   :  { %5053 = vmatpush1.bf16.msra.mxu0 %v11263_v0  ;;  %v1933_v0 = vld [vmem:[#allocation8 + $0xd78] sm:$0xff] }
 0x347   :  { %5217 = vmatpush1.bf16.msra.mxu1 %v11265_v8  ;;  %5054 = vmatprep.subr.bf16.mxu0 %v11272_v6  ;;  %v11319_v8 = vcombine.low %v1920_v59, %v1924_v60  ;;  %v11321_v6 = vcombine.low %v1921_v63, %v1925_v61  ;;  %v11330_v9 = vcombine.high %v1929_v5, %v1933_v0  ;;  %v1968_v60 = vld [vmem:[#allocation8 + $0xe90] sm:$0xff]  ;;  %v1969_v61 = vld [vmem:[#allocation8 + $0xe98] sm:$0xff] }
 0x348   :  { %5218 = vmatprep.subr.bf16.mxu1 %v11274_v7  ;;  %v11328_v7 = vcombine.high %v1928_v3, %v1932_v4  ;;  %v1972_v63 = vld [vmem:[#allocation8 + $0xeb0] sm:$0xff] }
 0x34a   :  { %5055 = vmatpush1.bf16.msra.mxu0 %v11271_v31  ;;  %v1941_v31 = vld [vmem:[#allocation8 + $0xdb8] sm:$0xff] }
 0x34b   :  { %5219 = vmatpush1.bf16.msra.mxu1 %v11273_v33  ;;  %5056 = vmatprep.subr.bf16.mxu0 %v11280_v17  ;;  %v11327_v33 = vcombine.low %v1928_v3, %v1932_v4  ;;  %v11329_v17 = vcombine.low %v1929_v5, %v1933_v0  ;;  %v11338_v24 = vcombine.high %v1937_v30, %v1941_v31  ;;  %v1976_v4 = vld [vmem:[#allocation8 + $0xed0] sm:$0xff]  ;;  %v1977_v0 = vld [vmem:[#allocation8 + $0xed8] sm:$0xff] }
 0x34c   :  { %5220 = vmatprep.subr.bf16.mxu1 %v11282_v19  ;;  %v11336_v19 = vcombine.high %v1936_v11, %v1940_v14  ;;  %v1980_v5 = vld [vmem:[#allocation8 + $0xef0] sm:$0xff] }
 0x34d   :  { %v1984_v14 = vld [vmem:[#allocation8 + $0xf10] sm:$0xff] }
 0x34e   :  { %5057 = vmatpush1.bf16.msra.mxu0 %v11279_v26  ;;  %v1948_v26 = vld [vmem:[#allocation8 + $0xdf0] sm:$0xff] }
 0x34f   :  { %5221 = vmatpush1.bf16.msra.mxu1 %v11281_v28  ;;  %5067 = vmatprep.subr.bf16.mxu0 %v11288_v36  ;;  %v11344_v41 = vcombine.high %v1944_v25, %v1948_v26 }
 0x350   :  { %5231 = vmatprep.subr.bf16.mxu1 %v11290_v40  ;;  %v1945_v40 = vld [vmem:[#allocation8 + $0xdd8] sm:$0xff] }
 0x351   :  { %5059 = vmatmul.mubr.bf16.vlgmr.msra.gmra.mrb[12].mxu0 %v13156_v10  ;;  %v11346_v13 = vcombine.high %v1945_v40, %v1949_v62 }
 0x352   :  { %5223 = vmatmul.mubr.bf16.vlgmr.msra.gmra.mrb[16].mxu1 %v13156_v10  ;;  %5068 = vmatpush1.bf16.msra.mxu0 %v11287_v37  ;;  %v11305_v10 = vcombine.low %v1905_v43, %v1909_v45  ;;  %v1956_v43 = vld [vmem:[#allocation8 + $0xe30] sm:$0xff]  ;;  %v1953_v45 = vld [vmem:[#allocation8 + $0xe18] sm:$0xff] }
 0x353   :  { %5099 = vmatprep.mubr.bf16.mxu0 %v13167_v52  ;;  %5232 = vmatpush1.bf16.msra.mxu1 %v11289_v39 }
 0x354   :  { %5263 = vmatprep.mubr.bf16.mxu1 %v13167_v52  ;;  %5069 = vmatprep.subr.bf16.mxu0 %v11296_v46  ;;  %v11311_v52 = vcombine.low %v1912_v29, %v1916_v51  ;;  %v11337_v46 = vcombine.low %v1937_v30, %v1941_v31  ;;  %v1960_v51 = vld [vmem:[#allocation8 + $0xe50] sm:$0xff]  ;;  %v1985_v31 = vld [vmem:[#allocation8 + $0xf18] sm:$0xff] }
 0x355   :  { %5233 = vmatprep.subr.bf16.mxu1 %v11298_v42  ;;  %v1952_v42 = vld [vmem:[#allocation8 + $0xe10] sm:$0xff] }
 0x356   :  { %5070 = vmatpush1.bf16.msra.mxu0 %v11295_v47  ;;  %v1957_v47 = vld [vmem:[#allocation8 + $0xe38] sm:$0xff]  ;;  %v1988_v30 = vld [vmem:[#allocation8 + $0xf30] sm:$0xff] }
 0x357   :  { %5234 = vmatpush1.bf16.msra.mxu1 %v11297_v48  ;;  %5071 = vmatprep.subr.bf16.mxu0 %v11304_v49  ;;  %v11343_v48 = vcombine.low %v1944_v25, %v1948_v26  ;;  %v11345_v49 = vcombine.low %v1945_v40, %v1949_v62  ;;  %v11354_v29 = vcombine.high %v1953_v45, %v1957_v47  ;;  %v1992_v26 = vld [vmem:[#allocation8 + $0xf50] sm:$0xff]  ;;  %v1993_v62 = vld [vmem:[#allocation8 + $0xf58] sm:$0xff] }
 0x358   :  { %5235 = vmatprep.subr.bf16.mxu1 %v11306_v50  ;;  %v11352_v50 = vcombine.high %v1952_v42, %v1956_v43  ;;  %v1996_v40 = vld [vmem:[#allocation8 + $0xf70] sm:$0xff] }
 0x35a   :  { %5072 = vmatpush1.bf16.msra.mxu0 %v11303_v56  ;;  %v1965_v56 = vld [vmem:[#allocation8 + $0xe78] sm:$0xff] }
 0x35b   :  { %5236 = vmatpush1.bf16.msra.mxu1 %v11305_v10  ;;  %5073 = vmatprep.subr.bf16.mxu0 %v11312_v57  ;;  %v11351_v10 = vcombine.low %v1952_v42, %v1956_v43  ;;  %v11353_v57 = vcombine.low %v1953_v45, %v1957_v47  ;;  %v11362_v59 = vcombine.high %v1961_v55, %v1965_v56  ;;  %v2005_v42 = vld [vmem:[#allocation8 + $0xfb8] sm:$0xff]  ;;  %v13202_v43 = vld [vmem:[#allocation10] sm:$0xff] }
 0x35c   :  { %5237 = vmatprep.subr.bf16.mxu1 %v11314_v58  ;;  %v11360_v58 = vcombine.high %v1960_v51, %v1964_v54  ;;  %v11391_v45 = vcombine.low %v1992_v26, %v1996_v40 }
 0x35e   :  { %5074 = vmatpush1.bf16.msra.mxu0 %v11311_v52  ;;  %v1973_v52 = vld [vmem:[#allocation8 + $0xeb8] sm:$0xff] }
 0x35f   :  { %5238 = vmatpush1.bf16.msra.mxu1 %v11313_v44  ;;  %5075 = vmatprep.subr.bf16.mxu0 %v11320_v1  ;;  %v11359_v44 = vcombine.low %v1960_v51, %v1964_v54  ;;  %v11361_v1 = vcombine.low %v1961_v55, %v1965_v56  ;;  %v11370_v3 = vcombine.high %v1969_v61, %v1973_v52  ;;  %v2009_v54 = vld [vmem:[#allocation8 + $0xfd8] sm:$0xff] }
 0x360   :  { %5239 = vmatprep.subr.bf16.mxu1 %v11322_v2  ;;  %v11368_v2 = vcombine.high %v1968_v60, %v1972_v63  ;;  %v2023_v51 = vrot.slane %v13202_v43, %v13099_v32  ;;  %v2013_v55 = vld [vmem:[#allocation8 + $0xff8] sm:$0xff] }
 0x362   :  { %5076 = vmatpush1.bf16.msra.mxu0 %v11319_v8  ;;  %v1981_v8 = vld [vmem:[#allocation8 + $0xef8] sm:$0xff] }
 0x363   :  { %5240 = vmatpush1.bf16.msra.mxu1 %v11321_v6  ;;  %5077 = vmatprep.subr.bf16.mxu0 %v11328_v7  ;;  %v11367_v6 = vcombine.low %v1968_v60, %v1972_v63  ;;  %v11369_v7 = vcombine.low %v1969_v61, %v1973_v52  ;;  %v11378_v11 = vcombine.high %v1977_v0, %v1981_v8  ;;  %v5292_v60 = vld [vmem:[#allocation11 + $0x20] sm:$0xff]  ;;  %v5289_v61 = vld [vmem:[#allocation11 + $0x8] sm:$0xff] }
 0x364   :  { %v13194_v21 = vpop.f32.mrb[8].mxu0  ;;  %v13196_v23 = vpop.f32.mrb[12].mxu1  ;;  %5241 = vmatprep.subr.bf16.mxu1 %v11330_v9  ;;  %v11376_v9 = vcombine.high %v1976_v4, %v1980_v5  ;;  %v5293_v52 = vld [vmem:[#allocation11 + $0x28] sm:$0xff] }
 0x365   :  { %v13198_v28 = vpop.f32.mrb[9].mxu0  ;;  %v13200_v36 = vpop.f32.mrb[13].mxu1 }
 0x366   :  { %v4777_v12 = vpop.f32.mrb[10].mxu0  ;;  %v4941_v37 = vpop.f32.mrb[14].mxu1  ;;  %5078 = vmatpush1.bf16.msra.mxu0 %v11327_v33  ;;  %v1989_v33 = vld [vmem:[#allocation8 + $0xf38] sm:$0xff]  ;;  %v12217_v63 = vadd.f32 %v13198_v28, %v2023_v51  ;;  %v11413_v28 = vcombine.low %v5289_v61, %v5293_v52  ;;  %v5329_v51 = vld [vmem:[#allocation11 + $0x148] sm:$0xff] }
 0x367   :  { %5242 = vmatpush1.bf16.msra.mxu1 %v11329_v17  ;;  %v4778_v22 = vpop.f32.mrb[11].mxu0  ;;  %v4942_v39 = vpop.f32.mrb[15].mxu1  ;;  %5079 = vmatprep.subr.bf16.mxu0 %v11336_v19  ;;  %v11375_v17 = vcombine.low %v1976_v4, %v1980_v5  ;;  %v11377_v19 = vcombine.low %v1977_v0, %v1981_v8  ;;  %v11386_v25 = vcombine.high %v1985_v31, %v1989_v33  ;;  %v1997_v12 = vld [vmem:[#allocation8 + $0xf78] sm:$0xff]  ;;  %v5296_v5 = vld [vmem:[#allocation11 + $0x40] sm:$0xff] }
 0x368   :  { %5243 = vmatprep.subr.bf16.mxu1 %v11338_v24  ;;  %v11384_v24 = vcombine.high %v1984_v14, %v1988_v30  ;;  %v11383_v37 = vcombine.low %v1984_v14, %v1988_v30  ;;  %v11392_v22 = vcombine.high %v1992_v26, %v1996_v40  ;;  %v11394_v39 = vcombine.high %v1993_v62, %v1997_v12  ;;  %v5300_v0 = vld [vmem:[#allocation11 + $0x60] sm:$0xff] }
 0x369   :  { %v11393_v47 = vcombine.low %v1993_v62, %v1997_v12  ;;  %v5273_v4 = vmax.f32 %v12217_v63, 0.0  ;;  %v5308_v14 = vld [vmem:[#allocation11 + $0xa0] sm:$0xff]  ;;  %v5313_v12 = vld [vmem:[#allocation11 + $0xc8] sm:$0xff] }
 0x36a   :  { %5080 = vmatpush1.bf16.msra.mxu0 %v11335_v38  ;;  %v11385_v38 = vcombine.low %v1985_v31, %v1989_v33  ;;  %v5305_v33 = vld [vmem:[#allocation11 + $0x88] sm:$0xff]  ;;  %v5312_v40 = vld [vmem:[#allocation11 + $0xc0] sm:$0xff] }
 0x36b   :  { %5244 = vmatpush1.bf16.msra.mxu1 %v11337_v46  ;;  %5081 = vmatprep.subr.bf16.mxu0 %v11344_v41  ;;  %v2000_v46 = vld [vmem:[#allocation8 + $0xf90] sm:$0xff]  ;;  %v13207_v30 = vpack.c.bf16 %v5273_v4, %v5273_v4  ;;  %v5316_v62 = vld [vmem:[#allocation11 + $0xe0] sm:$0xff] }
 0x36c   :  { %5245 = vmatprep.subr.bf16.mxu1 %v11346_v13  ;;  %v2004_v41 = vld [vmem:[#allocation8 + $0xfb0] sm:$0xff]  ;;  %v2001_v13 = vld [vmem:[#allocation8 + $0xf98] sm:$0xff] }
 0x36d   :  { %v11399_v56 = vcombine.low %v2000_v46, %v2004_v41  ;;  %v5341_v63 = vld [vmem:[#allocation11 + $0x1a8] sm:$0xff] }
 0x36e   :  { %5082 = vmatpush1.bf16.msra.mxu0 %v11343_v48  ;;  %v11400_v48 = vcombine.high %v2000_v46, %v2004_v41  ;;  %v5320_v46 = vld [vmem:[#allocation11 + $0x100] sm:$0xff]  ;;  %v5345_v4 = vld [vmem:[#allocation11 + $0x1c8] sm:$0xff] }
 0x36f   :  { %5246 = vmatpush1.bf16.msra.mxu1 %v11345_v49  ;;  %5083 = vmatprep.subr.bf16.mxu0 %v11352_v50  ;;  %v11402_v49 = vcombine.high %v2001_v13, %v2005_v42  ;;  %v2008_v50 = vld [vmem:[#allocation8 + $0xfd0] sm:$0xff]  ;;  %v5324_v41 = vld [vmem:[#allocation11 + $0x120] sm:$0xff] }
 0x370   :  { %5247 = vmatprep.subr.bf16.mxu1 %v11354_v29  ;;  %v2012_v29 = vld [vmem:[#allocation8 + $0xff0] sm:$0xff] }
 0x372   :  { %5084 = vmatpush1.bf16.msra.mxu0 %v11351_v10  ;;  %v11401_v10 = vcombine.low %v2001_v13, %v2005_v42  ;;  %v5321_v13 = vld [vmem:[#allocation11 + $0x108] sm:$0xff] }
 0x373   :  { %5248 = vmatpush1.bf16.msra.mxu1 %v11353_v57  ;;  %5085 = vmatprep.subr.bf16.mxu0 %v11360_v58  ;;  %v11408_v57 = vcombine.high %v2008_v50, %v2012_v29  ;;  %v11410_v58 = vcombine.high %v2009_v54, %v2013_v55  ;;  %v5325_v42 = vld [vmem:[#allocation11 + $0x128] sm:$0xff] }
 0x374   :  { %5249 = vmatprep.subr.bf16.mxu1 %v11362_v59  ;;  %v5288_v59 = vld [vmem:[#allocation11] sm:$0xff] }
 0x375   :  { %v11411_v8 = vcombine.low %v5288_v59, %v5292_v60 }
 0x376   :  { %5086 = vmatpush1.bf16.msra.mxu0 %v11359_v44  ;;  %v11407_v44 = vcombine.low %v2008_v50, %v2012_v29  ;;  %v5328_v50 = vld [vmem:[#allocation11 + $0x140] sm:$0xff] }
 0x377   :  { %5250 = vmatpush1.bf16.msra.mxu1 %v11361_v1  ;;  %5087 = vmatprep.subr.bf16.mxu0 %v11368_v2  ;;  %v11409_v1 = vcombine.low %v2009_v54, %v2013_v55  ;;  %v11412_v2 = vcombine.high %v5288_v59, %v5292_v60  ;;  %v5332_v29 = vld [vmem:[#allocation11 + $0x160] sm:$0xff]  ;;  %v5333_v54 = vld [vmem:[#allocation11 + $0x168] sm:$0xff]  ;;  %v11443_v55 = vcombine.low %v5320_v46, %v5324_v41 }
 0x378   :  { %5251 = vmatprep.subr.bf16.mxu1 %v11370_v3  ;;  %v11414_v3 = vcombine.high %v5289_v61, %v5293_v52  ;;  %v5340_v59 = vld [vmem:[#allocation11 + $0x1a0] sm:$0xff]  ;;  %v5337_v60 = vld [vmem:[#allocation11 + $0x188] sm:$0xff]  ;;  %v11451_v61 = vcombine.low %v5328_v50, %v5332_v29  ;;  %v11453_v52 = vcombine.low %v5329_v51, %v5333_v54 }
 0x37a   :  { %5088 = vmatpush1.bf16.msra.mxu0 %v11367_v6  ;;  %v5297_v6 = vld [vmem:[#allocation11 + $0x48] sm:$0xff] }
 0x37b   :  { %5252 = vmatpush1.bf16.msra.mxu1 %v11369_v7  ;;  %5089 = vmatprep.subr.bf16.mxu0 %v11376_v9  ;;  %v5301_v7 = vld [vmem:[#allocation11 + $0x68] sm:$0xff]  ;;  %v11420_v9 = vcombine.high %v5296_v5, %v5300_v0 }
 0x37c   :  { %5253 = vmatprep.subr.bf16.mxu1 %v11378_v11  ;;  %v5304_v11 = vld [vmem:[#allocation11 + $0x80] sm:$0xff]  ;;  %v11422_v31 = vcombine.high %v5297_v6, %v5301_v7 }
 0x37e   :  { %5090 = vmatpush1.bf16.msra.mxu0 %v11375_v17  ;;  %v5309_v17 = vld [vmem:[#allocation11 + $0xa8] sm:$0xff] }
 0x37f   :  { %5254 = vmatpush1.bf16.msra.mxu1 %v11377_v19  ;;  %5091 = vmatprep.subr.bf16.mxu0 %v11384_v24  ;;  %v11419_v19 = vcombine.low %v5296_v5, %v5300_v0  ;;  %v11421_v24 = vcombine.low %v5297_v6, %v5301_v7  ;;  %v11430_v26 = vcombine.high %v5305_v33, %v5309_v17  ;;  %v5349_v5 = vld [vmem:[#allocation11 + $0x1e8] sm:$0xff] }
 0x380   :  { %5255 = vmatprep.subr.bf16.mxu1 %v11386_v25  ;;  %v11428_v25 = vcombine.high %v5304_v11, %v5308_v14  ;;  %v11470_v7 = vcombine.high %v5345_v4, %v5349_v5 }
 0x382   :  { %5092 = vmatpush1.bf16.msra.mxu0 %v11383_v37  ;;  %v5317_v37 = vld [vmem:[#allocation11 + $0xe8] sm:$0xff] }
 0x383   :  { %5256 = vmatpush1.bf16.msra.mxu1 %v11385_v38  ;;  %5093 = vmatprep.subr.bf16.mxu0 %v11392_v22  ;;  %v11427_v38 = vcombine.low %v5304_v11, %v5308_v14  ;;  %v11436_v22 = vcombine.high %v5312_v40, %v5316_v62  ;;  %v5353_v11 = vld [vmem:[#allocation11 + $0x208] sm:$0xff] }
 0x384   :  { %5257 = vmatprep.subr.bf16.mxu1 %v11394_v39  ;;  %v11438_v39 = vcombine.high %v5313_v12, %v5317_v37  ;;  %v5357_v14 = vld [vmem:[#allocation11 + $0x228] sm:$0xff] }
 0x386   :  { %5094 = vmatpush1.bf16.msra.mxu0 %v11391_v45  ;;  %v11435_v45 = vcombine.low %v5312_v40, %v5316_v62  ;;  %v5365_v40 = vld [vmem:[#allocation11 + $0x268] sm:$0xff] }
 0x387   :  { %5258 = vmatpush1.bf16.msra.mxu1 %v11393_v47  ;;  %5095 = vmatprep.subr.bf16.mxu0 %v11400_v48  ;;  %v11437_v47 = vcombine.low %v5313_v12, %v5317_v37  ;;  %v11444_v48 = vcombine.high %v5320_v46, %v5324_v41  ;;  %v11477_v12 = vcombine.low %v5353_v11, %v5357_v14  ;;  %v5373_v46 = vld [vmem:[#allocation11 + $0x2a8] sm:$0xff] }
 0x388   :  { %5259 = vmatprep.subr.bf16.mxu1 %v11402_v49  ;;  %v11446_v49 = vcombine.high %v5321_v13, %v5325_v42 }
 0x38a   :  { %5096 = vmatpush1.bf16.msra.mxu0 %v11399_v56  ;;  %v11445_v56 = vcombine.low %v5321_v13, %v5325_v42 }
 0x38b   :  { %5260 = vmatpush1.bf16.msra.mxu1 %v11401_v10  ;;  %5097 = vmatprep.subr.bf16.mxu0 %v11408_v57  ;;  %v11452_v10 = vcombine.high %v5328_v50, %v5332_v29  ;;  %v11454_v57 = vcombine.high %v5329_v51, %v5333_v54  ;;  %v5381_v50 = vld [vmem:[#allocation11 + $0x2e8] sm:$0xff] }
 0x38c   :  { %5261 = vmatprep.subr.bf16.mxu1 %v11410_v58  ;;  %v5336_v58 = vld [vmem:[#allocation11 + $0x180] sm:$0xff] }
 0x38d   :  { %v11459_v0 = vcombine.low %v5336_v58, %v5340_v59 }
 0x38e   :  { %5098 = vmatpush1.bf16.msra.mxu0 %v11407_v44  ;;  %v11460_v44 = vcombine.high %v5336_v58, %v5340_v59  ;;  %v5389_v58 = vld [vmem:[#allocation11 + $0x328] sm:$0xff] }
 0x38f   :  { %5262 = vmatpush1.bf16.msra.mxu1 %v11409_v1  ;;  %8402 = vmatprep.subr.bf16.mxu0 %v11412_v2  ;;  %v11462_v1 = vcombine.high %v5337_v60, %v5341_v63  ;;  %v5344_v2 = vld [vmem:[#allocation11 + $0x1c0] sm:$0xff] }
 0x390   :  { %8566 = vmatprep.subr.bf16.mxu1 %v11414_v3  ;;  %v5348_v3 = vld [vmem:[#allocation11 + $0x1e0] sm:$0xff] }
 0x391   :  { %5100 = vmatmul.mubr.bf16.vlgmr.msra.gmra.mrb[12].mxu0 %v13176_v53  ;;  %v11468_v6 = vcombine.high %v5344_v2, %v5348_v3 }
 0x392   :  { %5264 = vmatmul.mubr.bf16.vlgmr.msra.gmra.mrb[16].mxu1 %v13176_v53  ;;  %8403 = vmatpush1.bf16.msra.mxu0 %v11411_v8  ;;  %v11429_v53 = vcombine.low %v5305_v33, %v5309_v17  ;;  %v11461_v8 = vcombine.low %v5337_v60, %v5341_v63  ;;  %v11469_v33 = vcombine.low %v5345_v4, %v5349_v5 }
 0x393   :  { %8434 = vmatprep.mubr.bf16.mxu0 %v13207_v30  ;;  %8567 = vmatpush1.bf16.msra.mxu1 %v11413_v28  ;;  %v5352_v28 = vld [vmem:[#allocation11 + $0x200] sm:$0xff] }
 0x394   :  { %8598 = vmatprep.mubr.bf16.mxu1 %v13207_v30  ;;  %8404 = vmatprep.subr.bf16.mxu0 %v11420_v9  ;;  %v5356_v9 = vld [vmem:[#allocation11 + $0x220] sm:$0xff] }
 0x395   :  { %8568 = vmatprep.subr.bf16.mxu1 %v11422_v31  ;;  %v11467_v31 = vcombine.low %v5344_v2, %v5348_v3  ;;  %v11476_v17 = vcombine.high %v5352_v28, %v5356_v9  ;;  %v11475_v62 = vcombine.low %v5352_v28, %v5356_v9  ;;  %v5397_v2 = vld [vmem:[#allocation11 + $0x368] sm:$0xff] }
 0x396   :  { %8405 = vmatpush1.bf16.msra.mxu0 %v11419_v19  ;;  %v11478_v19 = vcombine.high %v5353_v11, %v5357_v14  ;;  %v5405_v28 = vld [vmem:[#allocation11 + $0x3a8] sm:$0xff]  ;;  %v2019_v11 = vrot.slane %v13202_v43, %v13094_v27 }
 0x397   :  { %8569 = vmatpush1.bf16.msra.mxu1 %v11421_v24  ;;  %8406 = vmatprep.subr.bf16.mxu0 %v11428_v25  ;;  %v5360_v24 = vld [vmem:[#allocation11 + $0x240] sm:$0xff] }
 0x398   :  { %8570 = vmatprep.subr.bf16.mxu1 %v11430_v26  ;;  %v5364_v25 = vld [vmem:[#allocation11 + $0x260] sm:$0xff]  ;;  %v5361_v26 = vld [vmem:[#allocation11 + $0x248] sm:$0xff] }
 0x399   :  { %v11484_v37 = vcombine.high %v5360_v24, %v5364_v25  ;;  %v11483_v41 = vcombine.low %v5360_v24, %v5364_v25  ;;  %v11485_v13 = vcombine.low %v5361_v26, %v5365_v40  ;;  %v2031_v24 = vrot.slane %v13202_v43, %v13129_v16  ;;  %v5409_v25 = vld [vmem:[#allocation11 + $0x3c8] sm:$0xff] }
 0x39a   :  { %8407 = vmatpush1.bf16.msra.mxu0 %v11427_v38  ;;  %v11486_v38 = vcombine.high %v5361_v26, %v5365_v40  ;;  %v5413_v26 = vld [vmem:[#allocation11 + $0x3e8] sm:$0xff] }
 0x39b   :  { %8571 = vmatpush1.bf16.msra.mxu1 %v11429_v53  ;;  %8408 = vmatprep.subr.bf16.mxu0 %v11436_v22  ;;  %v5368_v53 = vld [vmem:[#allocation11 + $0x280] sm:$0xff] }
 0x39c   :  { %8572 = vmatprep.subr.bf16.mxu1 %v11438_v39  ;;  %v5372_v22 = vld [vmem:[#allocation11 + $0x2a0] sm:$0xff]  ;;  %v5369_v39 = vld [vmem:[#allocation11 + $0x288] sm:$0xff] }
 0x39d   :  { %v11492_v42 = vcombine.high %v5368_v53, %v5372_v22  ;;  %v11491_v29 = vcombine.low %v5368_v53, %v5372_v22  ;;  %v11493_v51 = vcombine.low %v5369_v39, %v5373_v46  ;;  %v5416_v53 = vld [vmem:[#allocation11 + $0x400] sm:$0xff] }
 0x39e   :  { %8409 = vmatpush1.bf16.msra.mxu0 %v11435_v45  ;;  %v11494_v45 = vcombine.high %v5369_v39, %v5373_v46  ;;  %v5420_v22 = vld [vmem:[#allocation11 + $0x420] sm:$0xff]  ;;  %v12219_v39 = vadd.f32 %v13200_v36, %v2031_v24  ;;  %v5417_v46 = vld [vmem:[#allocation11 + $0x408] sm:$0xff] }
 0x39f   :  { %8573 = vmatpush1.bf16.msra.mxu1 %v11437_v47  ;;  %8410 = vmatprep.subr.bf16.mxu0 %v11444_v48  ;;  %v5376_v47 = vld [vmem:[#allocation11 + $0x2c0] sm:$0xff] }
 0x3a0   :  { %8574 = vmatprep.subr.bf16.mxu1 %v11446_v49  ;;  %v5380_v48 = vld [vmem:[#allocation11 + $0x2e0] sm:$0xff]  ;;  %v5377_v49 = vld [vmem:[#allocation11 + $0x2c8] sm:$0xff] }
 0x3a1   :  { %v11500_v54 = vcombine.high %v5376_v47, %v5380_v48  ;;  %v11499_v59 = vcombine.low %v5376_v47, %v5380_v48  ;;  %v11501_v60 = vcombine.low %v5377_v49, %v5381_v50  ;;  %v11540_v47 = vcombine.high %v5416_v53, %v5420_v22  ;;  %v5456_v24 = vld [vmem:[#allocation11 + $0x540] sm:$0xff] }
 0x3a2   :  { %8411 = vmatpush1.bf16.msra.mxu0 %v11443_v55  ;;  %v11502_v55 = vcombine.high %v5377_v49, %v5381_v50  ;;  %v5275_v48 = vmax.f32 %v12219_v39, 0.0  ;;  %v5424_v49 = vld [vmem:[#allocation11 + $0x440] sm:$0xff]  ;;  %v5465_v39 = vld [vmem:[#allocation11 + $0x588] sm:$0xff] }
 0x3a3   :  { %8575 = vmatpush1.bf16.msra.mxu1 %v11445_v56  ;;  %8412 = vmatprep.subr.bf16.mxu0 %v11452_v10  ;;  %v5384_v56 = vld [vmem:[#allocation11 + $0x300] sm:$0xff] }
 0x3a4   :  { %8576 = vmatprep.subr.bf16.mxu1 %v11454_v57  ;;  %v5388_v10 = vld [vmem:[#allocation11 + $0x320] sm:$0xff]  ;;  %v5385_v57 = vld [vmem:[#allocation11 + $0x308] sm:$0xff] }
 0x3a5   :  { %v11508_v63 = vcombine.high %v5384_v56, %v5388_v10  ;;  %v11507_v3 = vcombine.low %v5384_v56, %v5388_v10  ;;  %v11509_v4 = vcombine.low %v5385_v57, %v5389_v58  ;;  %v5428_v50 = vld [vmem:[#allocation11 + $0x460] sm:$0xff] }
 0x3a6   :  { %8413 = vmatpush1.bf16.msra.mxu0 %v11451_v61  ;;  %v11510_v61 = vcombine.high %v5385_v57, %v5389_v58  ;;  %v11548_v56 = vcombine.high %v5424_v49, %v5428_v50  ;;  %v5432_v10 = vld [vmem:[#allocation11 + $0x480] sm:$0xff]  ;;  %v13221_v58 = vpack.c.bf16 %v5275_v48, %v5275_v48  ;;  %v5473_v48 = vld [vmem:[#allocation11 + $0x5c8] sm:$0xff] }
 0x3a7   :  { %8577 = vmatpush1.bf16.msra.mxu1 %v11453_v52  ;;  %8414 = vmatprep.subr.bf16.mxu0 %v11460_v44  ;;  %v5392_v52 = vld [vmem:[#allocation11 + $0x340] sm:$0xff] }
 0x3a8   :  { %8578 = vmatprep.subr.bf16.mxu1 %v11462_v1  ;;  %v5396_v44 = vld [vmem:[#allocation11 + $0x360] sm:$0xff]  ;;  %v5393_v1 = vld [vmem:[#allocation11 + $0x348] sm:$0xff] }
 0x3a9   :  { %v11516_v5 = vcombine.high %v5392_v52, %v5396_v44  ;;  %v11515_v9 = vcombine.low %v5392_v52, %v5396_v44  ;;  %v11517_v14 = vcombine.low %v5393_v1, %v5397_v2  ;;  %v5436_v57 = vld [vmem:[#allocation11 + $0x4a0] sm:$0xff] }
 0x3aa   :  { %8415 = vmatpush1.bf16.msra.mxu0 %v11459_v0  ;;  %v11518_v0 = vcombine.high %v5393_v1, %v5397_v2  ;;  %v11556_v44 = vcombine.high %v5432_v10, %v5436_v57  ;;  %v5440_v2 = vld [vmem:[#allocation11 + $0x4c0] sm:$0xff] }
 0x3ab   :  { %8579 = vmatpush1.bf16.msra.mxu1 %v11461_v8  ;;  %8416 = vmatprep.subr.bf16.mxu0 %v11468_v6  ;;  %v5400_v8 = vld [vmem:[#allocation11 + $0x380] sm:$0xff] }
 0x3ac   :  { %8580 = vmatprep.subr.bf16.mxu1 %v11470_v7  ;;  %v5404_v6 = vld [vmem:[#allocation11 + $0x3a0] sm:$0xff]  ;;  %v5401_v7 = vld [vmem:[#allocation11 + $0x388] sm:$0xff] }
 0x3ad   :  { %v11523_v40 = vcombine.low %v5400_v8, %v5404_v6 }
 0x3ae   :  { %8417 = vmatpush1.bf16.msra.mxu0 %v11467_v31  ;;  %v11524_v31 = vcombine.high %v5400_v8, %v5404_v6 }
 0x3af   :  { %8581 = vmatpush1.bf16.msra.mxu1 %v11469_v33  ;;  %8418 = vmatprep.subr.bf16.mxu0 %v11476_v17  ;;  %v11526_v33 = vcombine.high %v5401_v7, %v5405_v28  ;;  %v5408_v17 = vld [vmem:[#allocation11 + $0x3c0] sm:$0xff] }
 0x3b0   :  { %8582 = vmatprep.subr.bf16.mxu1 %v11478_v19  ;;  %v5412_v19 = vld [vmem:[#allocation11 + $0x3e0] sm:$0xff] }
 0x3b2   :  { %8419 = vmatpush1.bf16.msra.mxu0 %v11475_v62  ;;  %v12216_v62 = vadd.f32 %v13194_v21, %v2019_v11  ;;  %v5449_v11 = vld [vmem:[#allocation11 + $0x508] sm:$0xff] }
 0x3b3   :  { %8583 = vmatpush1.bf16.msra.mxu1 %v11477_v12  ;;  %8420 = vmatprep.subr.bf16.mxu0 %v11484_v37  ;;  %v11525_v12 = vcombine.low %v5401_v7, %v5405_v28  ;;  %v11532_v37 = vcombine.high %v5408_v17, %v5412_v19  ;;  %v5448_v28 = vld [vmem:[#allocation11 + $0x500] sm:$0xff] }
 0x3b4   :  { %8584 = vmatprep.subr.bf16.mxu1 %v11486_v38  ;;  %v11534_v38 = vcombine.high %v5409_v25, %v5413_v26 }
 0x3b6   :  { %8421 = vmatpush1.bf16.msra.mxu0 %v11483_v41  ;;  %v5421_v41 = vld [vmem:[#allocation11 + $0x428] sm:$0xff] }
 0x3b7   :  { %8585 = vmatpush1.bf16.msra.mxu1 %v11485_v13  ;;  %8422 = vmatprep.subr.bf16.mxu0 %v11492_v42  ;;  %v11531_v13 = vcombine.low %v5408_v17, %v5412_v19  ;;  %v5272_v42 = vmax.f32 %v12216_v62, 0.0  ;;  %v11542_v21 = vcombine.high %v5417_v46, %v5421_v41  ;;  %v11541_v36 = vcombine.low %v5417_v46, %v5421_v41  ;;  %v5469_v46 = vld [vmem:[#allocation11 + $0x5a8] sm:$0xff] }
 0x3b8   :  { %8586 = vmatprep.subr.bf16.mxu1 %v11494_v45  ;;  %v11533_v45 = vcombine.low %v5409_v25, %v5413_v26  ;;  %v5460_v25 = vld [vmem:[#allocation11 + $0x560] sm:$0xff]  ;;  %v5457_v26 = vld [vmem:[#allocation11 + $0x548] sm:$0xff] }
 0x3b9   :  { %v11579_v41 = vcombine.low %v5456_v24, %v5460_v25 }
 0x3ba   :  { %8423 = vmatpush1.bf16.msra.mxu0 %v11491_v29  ;;  %v11539_v29 = vcombine.low %v5416_v53, %v5420_v22  ;;  %v5464_v53 = vld [vmem:[#allocation11 + $0x580] sm:$0xff] }
 0x3bb   :  { %8587 = vmatpush1.bf16.msra.mxu1 %v11493_v51  ;;  %8424 = vmatprep.subr.bf16.mxu0 %v11500_v54  ;;  %v5425_v51 = vld [vmem:[#allocation11 + $0x448] sm:$0xff]  ;;  %v5468_v22 = vld [vmem:[#allocation11 + $0x5a0] sm:$0xff] }
 0x3bc   :  { %8588 = vmatprep.subr.bf16.mxu1 %v11502_v55  ;;  %v5429_v54 = vld [vmem:[#allocation11 + $0x468] sm:$0xff]  ;;  %v13219_v55 = vpack.c.bf16 %v5272_v42, %v5272_v42  ;;  %v11588_v42 = vcombine.high %v5464_v53, %v5468_v22 }
 0x3bd   :  { %v11549_v52 = vcombine.low %v5425_v51, %v5429_v54 }
 0x3be   :  { %8425 = vmatpush1.bf16.msra.mxu0 %v11499_v59  ;;  %v11550_v59 = vcombine.high %v5425_v51, %v5429_v54 }
 0x3bf   :  { %8589 = vmatpush1.bf16.msra.mxu1 %v11501_v60  ;;  %8426 = vmatprep.subr.bf16.mxu0 %v11508_v63  ;;  %v5433_v60 = vld [vmem:[#allocation11 + $0x488] sm:$0xff] }
 0x3c0   :  { %8590 = vmatprep.subr.bf16.mxu1 %v11510_v61  ;;  %v5437_v63 = vld [vmem:[#allocation11 + $0x4a8] sm:$0xff]  ;;  %v11547_v61 = vcombine.low %v5424_v49, %v5428_v50  ;;  %v11587_v50 = vcombine.low %v5464_v53, %v5468_v22 }
 0x3c1   :  { %v11558_v1 = vcombine.high %v5433_v60, %v5437_v63  ;;  %v11557_v8 = vcombine.low %v5433_v60, %v5437_v63  ;;  %v5477_v49 = vld [vmem:[#allocation11 + $0x5e8] sm:$0xff] }
 0x3c2   :  { %8427 = vmatpush1.bf16.msra.mxu0 %v11507_v3  ;;  %v5444_v3 = vld [vmem:[#allocation11 + $0x4e0] sm:$0xff]  ;;  %v11598_v54 = vcombine.high %v5473_v48, %v5477_v49  ;;  %v11597_v60 = vcombine.low %v5473_v48, %v5477_v49  ;;  %v5517_v53 = vld [vmem:[#allocation11 + $0x728] sm:$0xff] }
 0x3c3   :  { %8591 = vmatpush1.bf16.msra.mxu1 %v11509_v4  ;;  %8428 = vmatprep.subr.bf16.mxu0 %v11516_v5  ;;  %v5441_v4 = vld [vmem:[#allocation11 + $0x4c8] sm:$0xff]  ;;  %v11564_v6 = vcombine.high %v5440_v2, %v5444_v3 }
 0x3c4   :  { %8592 = vmatprep.subr.bf16.mxu1 %v11518_v0  ;;  %v5445_v5 = vld [vmem:[#allocation11 + $0x4e8] sm:$0xff]  ;;  %v11555_v0 = vcombine.low %v5432_v10, %v5436_v57 }
 0x3c5   :  { %v11566_v7 = vcombine.high %v5441_v4, %v5445_v5  ;;  %v5481_v10 = vld [vmem:[#allocation11 + $0x608] sm:$0xff] }
 0x3c6   :  { %8429 = vmatpush1.bf16.msra.mxu0 %v11515_v9  ;;  %v5452_v9 = vld [vmem:[#allocation11 + $0x520] sm:$0xff]  ;;  %v5485_v57 = vld [vmem:[#allocation11 + $0x628] sm:$0xff] }
 0x3c7   :  { %8593 = vmatpush1.bf16.msra.mxu1 %v11517_v14  ;;  %8430 = vmatprep.subr.bf16.mxu0 %v11524_v31  ;;  %v5453_v14 = vld [vmem:[#allocation11 + $0x528] sm:$0xff]  ;;  %v11563_v31 = vcombine.low %v5440_v2, %v5444_v3  ;;  %v11572_v17 = vcombine.high %v5448_v28, %v5452_v9  ;;  %v11571_v62 = vcombine.low %v5448_v28, %v5452_v9 }
 0x3c8   :  { %8594 = vmatprep.subr.bf16.mxu1 %v11526_v33  ;;  %v11565_v33 = vcombine.low %v5441_v4, %v5445_v5  ;;  %v11574_v19 = vcombine.high %v5449_v11, %v5453_v14  ;;  %v5493_v2 = vld [vmem:[#allocation11 + $0x668] sm:$0xff]  ;;  %v11605_v4 = vcombine.low %v5481_v10, %v5485_v57 }
 0x3c9   :  { %v5501_v28 = vld [vmem:[#allocation11 + $0x6a8] sm:$0xff] }
 0x3ca   :  { %8431 = vmatpush1.bf16.msra.mxu0 %v11523_v40  ;;  %v5461_v40 = vld [vmem:[#allocation11 + $0x568] sm:$0xff] }
 0x3cb   :  { %8595 = vmatpush1.bf16.msra.mxu1 %v11525_v12  ;;  %8432 = vmatprep.subr.bf16.mxu0 %v11532_v37  ;;  %v11573_v12 = vcombine.low %v5449_v11, %v5453_v14  ;;  %v11580_v37 = vcombine.high %v5456_v24, %v5460_v25  ;;  %v5509_v24 = vld [vmem:[#allocation11 + $0x6e8] sm:$0xff] }
 0x3cc   :  { %8596 = vmatprep.subr.bf16.mxu1 %v11534_v38  ;;  %v11582_v38 = vcombine.high %v5457_v26, %v5461_v40 }
 0x3ce   :  { %8433 = vmatpush1.bf16.msra.mxu0 %v11531_v13  ;;  %v11581_v13 = vcombine.low %v5457_v26, %v5461_v40 }
 0x3cf   :  { %8597 = vmatpush1.bf16.msra.mxu1 %v11533_v45  ;;  %8443 = vmatprep.subr.bf16.mxu0 %v11540_v47  ;;  %v11590_v45 = vcombine.high %v5465_v39, %v5469_v46  ;;  %v5472_v47 = vld [vmem:[#allocation11 + $0x5c0] sm:$0xff] }
 0x3d0   :  { %8607 = vmatprep.subr.bf16.mxu1 %v11542_v21  ;;  %v5476_v21 = vld [vmem:[#allocation11 + $0x5e0] sm:$0xff] }
 0x3d1   :  { %8435 = vmatmul.mubr.bf16.vlgmr.msra.gmra.mrb[16].mxu0 %v13219_v55  ;;  %v11596_v51 = vcombine.high %v5472_v47, %v5476_v21 }
 0x3d2   :  { %8599 = vmatmul.mubr.bf16.vlgmr.msra.gmra.mrb[20].mxu1 %v13219_v55  ;;  %8444 = vmatpush1.bf16.msra.mxu0 %v11539_v29  ;;  %v11589_v29 = vcombine.low %v5465_v39, %v5469_v46 }
 0x3d3   :  { %8475 = vmatprep.mubr.bf16.mxu0 %v13221_v58  ;;  %8608 = vmatpush1.bf16.msra.mxu1 %v11541_v36  ;;  %v5480_v36 = vld [vmem:[#allocation11 + $0x600] sm:$0xff] }
 0x3d4   :  { %8639 = vmatprep.mubr.bf16.mxu1 %v13221_v58  ;;  %8445 = vmatprep.subr.bf16.mxu0 %v11548_v56  ;;  %v5484_v56 = vld [vmem:[#allocation11 + $0x620] sm:$0xff] }
 0x3d5   :  { %8609 = vmatprep.subr.bf16.mxu1 %v11550_v59  ;;  %v11595_v59 = vcombine.low %v5472_v47, %v5476_v21  ;;  %v11604_v63 = vcombine.high %v5480_v36, %v5484_v56  ;;  %v11603_v3 = vcombine.low %v5480_v36, %v5484_v56  ;;  %v5525_v47 = vld [vmem:[#allocation11 + $0x768] sm:$0xff] }
 0x3d6   :  { %8446 = vmatpush1.bf16.msra.mxu0 %v11547_v61  ;;  %v11606_v61 = vcombine.high %v5481_v10, %v5485_v57  ;;  %v5533_v36 = vld [vmem:[#allocation11 + $0x7a8] sm:$0xff]  ;;  %v2027_v10 = vrot.slane %v13202_v43, %v13126_v34 }
 0x3d7   :  { %8610 = vmatpush1.bf16.msra.mxu1 %v11549_v52  ;;  %8447 = vmatprep.subr.bf16.mxu0 %v11556_v44  ;;  %v5488_v52 = vld [vmem:[#allocation11 + $0x640] sm:$0xff] }
 0x3d8   :  { %8611 = vmatprep.subr.bf16.mxu1 %v11558_v1  ;;  %v5492_v44 = vld [vmem:[#allocation11 + $0x660] sm:$0xff]  ;;  %v5489_v1 = vld [vmem:[#allocation11 + $0x648] sm:$0xff] }
 0x3d9   :  { %v11612_v5 = vcombine.high %v5488_v52, %v5492_v44  ;;  %v11611_v9 = vcombine.low %v5488_v52, %v5492_v44  ;;  %v11613_v11 = vcombine.low %v5489_v1, %v5493_v2  ;;  %v5537_v52 = vld [vmem:[#allocation11 + $0x7c8] sm:$0xff] }
 0x3da   :  { %8448 = vmatpush1.bf16.msra.mxu0 %v11555_v0  ;;  %v11614_v0 = vcombine.high %v5489_v1, %v5493_v2  ;;  %v5541_v44 = vld [vmem:[#allocation11 + $0x7e8] sm:$0xff]  ;;  %v12218_v2 = vadd.f32 %v13196_v23, %v2027_v10  ;;  %v5552_v23 = vld [vmem:[#allocation11 + $0x840] sm:$0xff] }
 0x3db   :  { %8612 = vmatpush1.bf16.msra.mxu1 %v11557_v8  ;;  %8449 = vmatprep.subr.bf16.mxu0 %v11564_v6  ;;  %v5496_v8 = vld [vmem:[#allocation11 + $0x680] sm:$0xff]  ;;  %v11662_v43 = vcombine.high %v5537_v52, %v5541_v44 }
 0x3dc   :  { %8613 = vmatprep.subr.bf16.mxu1 %v11566_v7  ;;  %v5500_v6 = vld [vmem:[#allocation11 + $0x6a0] sm:$0xff]  ;;  %v5497_v7 = vld [vmem:[#allocation11 + $0x688] sm:$0xff] }
 0x3dd   :  { %v11620_v14 = vcombine.high %v5496_v8, %v5500_v6  ;;  %v11619_v25 = vcombine.low %v5496_v8, %v5500_v6  ;;  %v11621_v26 = vcombine.low %v5497_v7, %v5501_v28  ;;  %v5545_v8 = vld [vmem:[#allocation11 + $0x808] sm:$0xff] }
 0x3de   :  { %8450 = vmatpush1.bf16.msra.mxu0 %v11563_v31  ;;  %v11622_v31 = vcombine.high %v5497_v7, %v5501_v28  ;;  %v5549_v6 = vld [vmem:[#allocation11 + $0x828] sm:$0xff]  ;;  %v5274_v28 = vmax.f32 %v12218_v2, 0.0 }
 0x3df   :  { %8614 = vmatpush1.bf16.msra.mxu1 %v11565_v33  ;;  %8451 = vmatprep.subr.bf16.mxu0 %v11572_v17  ;;  %v5504_v33 = vld [vmem:[#allocation11 + $0x6c0] sm:$0xff] }
 0x3e0   :  { %8615 = vmatprep.subr.bf16.mxu1 %v11574_v19  ;;  %v5508_v17 = vld [vmem:[#allocation11 + $0x6e0] sm:$0xff]  ;;  %v5505_v19 = vld [vmem:[#allocation11 + $0x6c8] sm:$0xff] }
 0x3e1   :  { %v11628_v40 = vcombine.high %v5504_v33, %v5508_v17  ;;  %v11627_v22 = vcombine.low %v5504_v33, %v5508_v17  ;;  %v11629_v39 = vcombine.low %v5505_v19, %v5509_v24  ;;  %v5553_v33 = vld [vmem:[#allocation11 + $0x848] sm:$0xff] }
 0x3e2   :  { %8452 = vmatpush1.bf16.msra.mxu0 %v11571_v62  ;;  %v11630_v62 = vcombine.high %v5505_v19, %v5509_v24  ;;  %v5557_v17 = vld [vmem:[#allocation11 + $0x868] sm:$0xff]  ;;  %v13230_v24 = vpack.c.bf16 %v5274_v28, %v5274_v28  ;;  %v5600_v28 = vld [vmem:[#allocation11 + $0x9c0] sm:$0xff] }
 0x3e3   :  { %8616 = vmatpush1.bf16.msra.mxu1 %v11573_v12  ;;  %8453 = vmatprep.subr.bf16.mxu0 %v11580_v37  ;;  %v5512_v12 = vld [vmem:[#allocation11 + $0x700] sm:$0xff] }
 0x3e4   :  { %8617 = vmatprep.subr.bf16.mxu1 %v11582_v38  ;;  %v5516_v37 = vld [vmem:[#allocation11 + $0x720] sm:$0xff]  ;;  %v5513_v38 = vld [vmem:[#allocation11 + $0x708] sm:$0xff] }
 0x3e5   :  { %v11636_v46 = vcombine.high %v5512_v12, %v5516_v37  ;;  %v11635_v21 = vcombine.low %v5512_v12, %v5516_v37  ;;  %v11637_v48 = vcombine.low %v5513_v38, %v5517_v53  ;;  %v5564_v12 = vld [vmem:[#allocation11 + $0x8a0] sm:$0xff]  ;;  %v5561_v37 = vld [vmem:[#allocation11 + $0x888] sm:$0xff] }
 0x3e6   :  { %8454 = vmatpush1.bf16.msra.mxu0 %v11579_v41  ;;  %v11638_v41 = vcombine.high %v5513_v38, %v5517_v53  ;;  %v5565_v38 = vld [vmem:[#allocation11 + $0x8a8] sm:$0xff] }
 0x3e7   :  { %8618 = vmatpush1.bf16.msra.mxu1 %v11581_v13  ;;  %8455 = vmatprep.subr.bf16.mxu0 %v11588_v42  ;;  %v5520_v13 = vld [vmem:[#allocation11 + $0x740] sm:$0xff] }
 0x3e8   :  { %8619 = vmatprep.subr.bf16.mxu1 %v11590_v45  ;;  %v5524_v42 = vld [vmem:[#allocation11 + $0x760] sm:$0xff]  ;;  %v5521_v45 = vld [vmem:[#allocation11 + $0x748] sm:$0xff] }
 0x3e9   :  { %v11644_v49 = vcombine.high %v5520_v13, %v5524_v42  ;;  %v11643_v56 = vcombine.low %v5520_v13, %v5524_v42  ;;  %v11645_v57 = vcombine.low %v5521_v45, %v5525_v47  ;;  %v5572_v13 = vld [vmem:[#allocation11 + $0x8e0] sm:$0xff]  ;;  %v5569_v42 = vld [vmem:[#allocation11 + $0x8c8] sm:$0xff] }
 0x3ea   :  { %8456 = vmatpush1.bf16.msra.mxu0 %v11587_v50  ;;  %v11646_v50 = vcombine.high %v5521_v45, %v5525_v47  ;;  %v5573_v45 = vld [vmem:[#allocation11 + $0x8e8] sm:$0xff] }
 0x3eb   :  { %8620 = vmatpush1.bf16.msra.mxu1 %v11589_v29  ;;  %8457 = vmatprep.subr.bf16.mxu0 %v11596_v51  ;;  %v5528_v29 = vld [vmem:[#allocation11 + $0x780] sm:$0xff] }
 0x3ec   :  { %8621 = vmatprep.subr.bf16.mxu1 %v11598_v54  ;;  %v5532_v51 = vld [vmem:[#allocation11 + $0x7a0] sm:$0xff]  ;;  %v5529_v54 = vld [vmem:[#allocation11 + $0x788] sm:$0xff] }
 0x3ed   :  { %v11651_v1 = vcombine.low %v5528_v29, %v5532_v51 }
 0x3ee   :  { %8458 = vmatpush1.bf16.msra.mxu0 %v11595_v59  ;;  %v11652_v59 = vcombine.high %v5528_v29, %v5532_v51  ;;  %v5580_v29 = vld [vmem:[#allocation11 + $0x920] sm:$0xff]  ;;  %v5577_v51 = vld [vmem:[#allocation11 + $0x908] sm:$0xff] }
 0x3ef   :  { %8622 = vmatpush1.bf16.msra.mxu1 %v11597_v60  ;;  %8459 = vmatprep.subr.bf16.mxu0 %v11604_v63  ;;  %v11654_v60 = vcombine.high %v5529_v54, %v5533_v36  ;;  %v5536_v63 = vld [vmem:[#allocation11 + $0x7c0] sm:$0xff] }
 0x3f0   :  { %8623 = vmatprep.subr.bf16.mxu1 %v11606_v61  ;;  %v5540_v61 = vld [vmem:[#allocation11 + $0x7e0] sm:$0xff] }
 0x3f1   :  { %v11659_v7 = vcombine.low %v5536_v63, %v5540_v61 }
 0x3f2   :  { %8460 = vmatpush1.bf16.msra.mxu0 %v11603_v3  ;;  %v11653_v3 = vcombine.low %v5529_v54, %v5533_v36  ;;  %v5581_v54 = vld [vmem:[#allocation11 + $0x928] sm:$0xff] }
 0x3f3   :  { %8624 = vmatpush1.bf16.msra.mxu1 %v11605_v4  ;;  %8461 = vmatprep.subr.bf16.mxu0 %v11612_v5  ;;  %v11660_v4 = vcombine.high %v5536_v63, %v5540_v61  ;;  %v5544_v5 = vld [vmem:[#allocation11 + $0x800] sm:$0xff]  ;;  %v5585_v63 = vld [vmem:[#allocation11 + $0x948] sm:$0xff] }
 0x3f4   :  { %8625 = vmatprep.subr.bf16.mxu1 %v11614_v0  ;;  %v5548_v0 = vld [vmem:[#allocation11 + $0x820] sm:$0xff]  ;;  %v5589_v61 = vld [vmem:[#allocation11 + $0x968] sm:$0xff] }
 0x3f5   :  { %v11667_v19 = vcombine.low %v5544_v5, %v5548_v0  ;;  %v11710_v2 = vcombine.high %v5585_v63, %v5589_v61 }
 0x3f6   :  { %8462 = vmatpush1.bf16.msra.mxu0 %v11611_v9  ;;  %v11661_v9 = vcombine.low %v5537_v52, %v5541_v44  ;;  %v11701_v44 = vcombine.low %v5577_v51, %v5581_v54 }
 0x3f7   :  { %8626 = vmatpush1.bf16.msra.mxu1 %v11613_v11  ;;  %8463 = vmatprep.subr.bf16.mxu0 %v11620_v14  ;;  %v11668_v11 = vcombine.high %v5544_v5, %v5548_v0  ;;  %v11670_v14 = vcombine.high %v5545_v8, %v5549_v6  ;;  %v5597_v5 = vld [vmem:[#allocation11 + $0x9a8] sm:$0xff] }
 0x3f8   :  { %8627 = vmatprep.subr.bf16.mxu1 %v11622_v31  ;;  %v5556_v31 = vld [vmem:[#allocation11 + $0x860] sm:$0xff] }
 0x3f9   :  { %v11675_v53 = vcombine.low %v5552_v23, %v5556_v31 }
 0x3fa   :  { %8464 = vmatpush1.bf16.msra.mxu0 %v11619_v25  ;;  %v11669_v25 = vcombine.low %v5545_v8, %v5549_v6  ;;  %v11709_v8 = vcombine.low %v5585_v63, %v5589_v61 }
 0x3fb   :  { %8628 = vmatpush1.bf16.msra.mxu1 %v11621_v26  ;;  %8465 = vmatprep.subr.bf16.mxu0 %v11628_v40  ;;  %v11676_v26 = vcombine.high %v5552_v23, %v5556_v31  ;;  %v11678_v40 = vcombine.high %v5553_v33, %v5557_v17 }
 0x3fc   :  { %8629 = vmatprep.subr.bf16.mxu1 %v11630_v62  ;;  %v5560_v62 = vld [vmem:[#allocation11 + $0x880] sm:$0xff] }
 0x3fd   :  { %v11683_v47 = vcombine.low %v5560_v62, %v5564_v12 }
 0x3fe   :  { %8466 = vmatpush1.bf16.msra.mxu0 %v11627_v22  ;;  %v11677_v22 = vcombine.low %v5553_v33, %v5557_v17 }
 0x3ff   :  { %8630 = vmatpush1.bf16.msra.mxu1 %v11629_v39  ;;  %8467 = vmatprep.subr.bf16.mxu0 %v11636_v46  ;;  %v11684_v39 = vcombine.high %v5560_v62, %v5564_v12  ;;  %v11686_v46 = vcombine.high %v5561_v37, %v5565_v38 }
 0x400   :  { %8631 = vmatprep.subr.bf16.mxu1 %v11638_v41  ;;  %v5568_v41 = vld [vmem:[#allocation11 + $0x8c0] sm:$0xff] }
 0x401   :  { %v11691_v36 = vcombine.low %v5568_v41, %v5572_v13 }
 0x402   :  { %8468 = vmatpush1.bf16.msra.mxu0 %v11635_v21  ;;  %v11685_v21 = vcombine.low %v5561_v37, %v5565_v38 }
 0x403   :  { %8632 = vmatpush1.bf16.msra.mxu1 %v11637_v48  ;;  %8469 = vmatprep.subr.bf16.mxu0 %v11644_v49  ;;  %v11692_v48 = vcombine.high %v5568_v41, %v5572_v13  ;;  %v11694_v49 = vcombine.high %v5569_v42, %v5573_v45 }
 0x404   :  { %8633 = vmatprep.subr.bf16.mxu1 %v11646_v50  ;;  %v5576_v50 = vld [vmem:[#allocation11 + $0x900] sm:$0xff] }
 0x405   :  { %v11700_v10 = vcombine.high %v5576_v50, %v5580_v29  ;;  %v11699_v52 = vcombine.low %v5576_v50, %v5580_v29 }
 0x406   :  { %8470 = vmatpush1.bf16.msra.mxu0 %v11643_v56  ;;  %v11693_v56 = vcombine.low %v5569_v42, %v5573_v45 }
 0x407   :  { %8634 = vmatpush1.bf16.msra.mxu1 %v11645_v57  ;;  %8471 = vmatprep.subr.bf16.mxu0 %v11652_v59  ;;  %v11702_v57 = vcombine.high %v5577_v51, %v5581_v54  ;;  %v5584_v59 = vld [vmem:[#allocation11 + $0x940] sm:$0xff] }
 0x408   :  { %8635 = vmatprep.subr.bf16.mxu1 %v11654_v60  ;;  %v5588_v60 = vld [vmem:[#allocation11 + $0x960] sm:$0xff] }
 0x409   :  { %v11707_v0 = vcombine.low %v5584_v59, %v5588_v60 }
 0x40a   :  { %8472 = vmatpush1.bf16.msra.mxu0 %v11651_v1  ;;  %v11708_v1 = vcombine.high %v5584_v59, %v5588_v60 }
 0x40b   :  { %8636 = vmatpush1.bf16.msra.mxu1 %v11653_v3  ;;  %8473 = vmatprep.subr.bf16.mxu0 %v11660_v4  ;;  %v5592_v3 = vld [vmem:[#allocation11 + $0x980] sm:$0xff] }
 0x40c   :  { %8637 = vmatprep.subr.bf16.mxu1 %v11662_v43  ;;  %v5596_v4 = vld [vmem:[#allocation11 + $0x9a0] sm:$0xff]  ;;  %v5593_v43 = vld [vmem:[#allocation11 + $0x988] sm:$0xff] }
 0x40d   :  { %v11716_v6 = vcombine.high %v5592_v3, %v5596_v4  ;;  %v11715_v23 = vcombine.low %v5592_v3, %v5596_v4  ;;  %v11717_v31 = vcombine.low %v5593_v43, %v5597_v5 }
 0x40e   :  { %8474 = vmatpush1.bf16.msra.mxu0 %v11659_v7  ;;  %v11718_v7 = vcombine.high %v5593_v43, %v5597_v5 }
 0x40f   :  { %8638 = vmatpush1.bf16.msra.mxu1 %v11661_v9  ;;  %8484 = vmatprep.subr.bf16.mxu0 %v11668_v11  ;;  %v5604_v9 = vld [vmem:[#allocation11 + $0x9e0] sm:$0xff]  ;;  %v5601_v11 = vld [vmem:[#allocation11 + $0x9c8] sm:$0xff] }
 0x410   :  { %8648 = vmatprep.subr.bf16.mxu1 %v11670_v14  ;;  %v5605_v14 = vld [vmem:[#allocation11 + $0x9e8] sm:$0xff]  ;;  %v11724_v33 = vcombine.high %v5600_v28, %v5604_v9  ;;  %v11723_v62 = vcombine.low %v5600_v28, %v5604_v9 }
 0x411   :  { %8476 = vmatmul.mubr.bf16.vlgmr.msra.gmra.mrb[16].mxu0 %v13230_v24  ;;  %v11726_v17 = vcombine.high %v5601_v11, %v5605_v14  ;;  %v11725_v12 = vcombine.low %v5601_v11, %v5605_v14 }
 0x412   :  { %8640 = vmatmul.mubr.bf16.vlgmr.msra.gmra.mrb[20].mxu1 %v13230_v24  ;;  %8485 = vmatpush1.bf16.msra.mxu0 %v11667_v19  ;;  %v5608_v19 = vld [vmem:[#allocation11 + $0xa00] sm:$0xff] }
 0x413   :  { %8649 = vmatpush1.bf16.msra.mxu1 %v11669_v25  ;;  %8486 = vmatprep.subr.bf16.mxu0 %v11676_v26  ;;  %v5612_v25 = vld [vmem:[#allocation11 + $0xa20] sm:$0xff]  ;;  %v5609_v26 = vld [vmem:[#allocation11 + $0xa08] sm:$0xff] }
 0x414   :  { %8650 = vmatprep.subr.bf16.mxu1 %v11678_v40  ;;  %v5613_v40 = vld [vmem:[#allocation11 + $0xa28] sm:$0xff]  ;;  %v11732_v37 = vcombine.high %v5608_v19, %v5612_v25  ;;  %v11731_v41 = vcombine.low %v5608_v19, %v5612_v25 }
 0x415   :  { %v11734_v38 = vcombine.high %v5609_v26, %v5613_v40  ;;  %v11733_v13 = vcombine.low %v5609_v26, %v5613_v40 }
 0x416   :  { %8487 = vmatpush1.bf16.msra.mxu0 %v11675_v53  ;;  %v5616_v53 = vld [vmem:[#allocation11 + $0xa40] sm:$0xff] }
 0x417   :  { %8651 = vmatpush1.bf16.msra.mxu1 %v11677_v22  ;;  %8488 = vmatprep.subr.bf16.mxu0 %v11684_v39  ;;  %v5620_v22 = vld [vmem:[#allocation11 + $0xa60] sm:$0xff]  ;;  %v5617_v39 = vld [vmem:[#allocation11 + $0xa48] sm:$0xff] }
 0x418   :  { %8652 = vmatprep.subr.bf16.mxu1 %v11686_v46  ;;  %v5621_v46 = vld [vmem:[#allocation11 + $0xa68] sm:$0xff]  ;;  %v11740_v42 = vcombine.high %v5616_v53, %v5620_v22  ;;  %v11739_v50 = vcombine.low %v5616_v53, %v5620_v22 }
 0x419   :  { %v11742_v45 = vcombine.high %v5617_v39, %v5621_v46  ;;  %v11741_v29 = vcombine.low %v5617_v39, %v5621_v46 }
 0x41a   :  { %8489 = vmatpush1.bf16.msra.mxu0 %v11683_v47  ;;  %v5624_v47 = vld [vmem:[#allocation11 + $0xa80] sm:$0xff] }
 0x41b   :  { %8653 = vmatpush1.bf16.msra.mxu1 %v11685_v21  ;;  %8490 = vmatprep.subr.bf16.mxu0 %v11692_v48  ;;  %v5628_v21 = vld [vmem:[#allocation11 + $0xaa0] sm:$0xff]  ;;  %v5625_v48 = vld [vmem:[#allocation11 + $0xa88] sm:$0xff] }
 0x41c   :  { %8654 = vmatprep.subr.bf16.mxu1 %v11694_v49  ;;  %v5629_v49 = vld [vmem:[#allocation11 + $0xaa8] sm:$0xff]  ;;  %v11748_v51 = vcombine.high %v5624_v47, %v5628_v21  ;;  %v11747_v59 = vcombine.low %v5624_v47, %v5628_v21 }
 0x41d   :  { %v11750_v54 = vcombine.high %v5625_v48, %v5629_v49  ;;  %v11749_v60 = vcombine.low %v5625_v48, %v5629_v49 }
 0x41e   :  { %8491 = vmatpush1.bf16.msra.mxu0 %v11691_v36  ;;  %v5632_v36 = vld [vmem:[#allocation11 + $0xac0] sm:$0xff] }
 0x41f   :  { %8655 = vmatpush1.bf16.msra.mxu1 %v11693_v56  ;;  %8492 = vmatprep.subr.bf16.mxu0 %v11700_v10  ;;  %v5636_v56 = vld [vmem:[#allocation11 + $0xae0] sm:$0xff]  ;;  %v5633_v10 = vld [vmem:[#allocation11 + $0xac8] sm:$0xff] }
 0x420   :  { %8656 = vmatprep.subr.bf16.mxu1 %v11702_v57  ;;  %v5637_v57 = vld [vmem:[#allocation11 + $0xae8] sm:$0xff]  ;;  %v11756_v63 = vcombine.high %v5632_v36, %v5636_v56  ;;  %v11755_v3 = vcombine.low %v5632_v36, %v5636_v56 }
 0x421   :  { %v11758_v61 = vcombine.high %v5633_v10, %v5637_v57  ;;  %v11757_v4 = vcombine.low %v5633_v10, %v5637_v57 }
 0x422   :  { %8493 = vmatpush1.bf16.msra.mxu0 %v11699_v52  ;;  %v5640_v52 = vld [vmem:[#allocation11 + $0xb00] sm:$0xff] }
 0x423   :  { %8657 = vmatpush1.bf16.msra.mxu1 %v11701_v44  ;;  %8494 = vmatprep.subr.bf16.mxu0 %v11708_v1  ;;  %v5644_v44 = vld [vmem:[#allocation11 + $0xb20] sm:$0xff]  ;;  %v5641_v1 = vld [vmem:[#allocation11 + $0xb08] sm:$0xff] }
 0x424   :  { %8658 = vmatprep.subr.bf16.mxu1 %v11710_v2  ;;  %v5645_v2 = vld [vmem:[#allocation11 + $0xb28] sm:$0xff]  ;;  %v11764_v43 = vcombine.high %v5640_v52, %v5644_v44  ;;  %v11763_v28 = vcombine.low %v5640_v52, %v5644_v44 }
 0x425   :  { %v11766_v5 = vcombine.high %v5641_v1, %v5645_v2  ;;  %v11765_v9 = vcombine.low %v5641_v1, %v5645_v2 }
 0x426   :  { %8495 = vmatpush1.bf16.msra.mxu0 %v11707_v0  ;;  %v5648_v0 = vld [vmem:[#allocation11 + $0xb40] sm:$0xff] }
 0x427   :  { %8659 = vmatpush1.bf16.msra.mxu1 %v11709_v8  ;;  %8496 = vmatprep.subr.bf16.mxu0 %v11716_v6  ;;  %v5652_v8 = vld [vmem:[#allocation11 + $0xb60] sm:$0xff]  ;;  %v5649_v6 = vld [vmem:[#allocation11 + $0xb48] sm:$0xff] }
 0x428   :  { %8660 = vmatprep.subr.bf16.mxu1 %v11718_v7  ;;  %v5653_v7 = vld [vmem:[#allocation11 + $0xb68] sm:$0xff]  ;;  %v11772_v11 = vcombine.high %v5648_v0, %v5652_v8  ;;  %v11771_v19 = vcombine.low %v5648_v0, %v5652_v8 }
 0x429   :  { %v11774_v14 = vcombine.high %v5649_v6, %v5653_v7  ;;  %v11773_v25 = vcombine.low %v5649_v6, %v5653_v7  ;;  %v5681_v0 = vld [vmem:[#allocation11 + $0xc48] sm:$0xff] }
 0x42a   :  { %8497 = vmatpush1.bf16.msra.mxu0 %v11715_v23  ;;  %v5656_v23 = vld [vmem:[#allocation11 + $0xb80] sm:$0xff]  ;;  %v5685_v8 = vld [vmem:[#allocation11 + $0xc68] sm:$0xff] }
 0x42b   :  { %8661 = vmatpush1.bf16.msra.mxu1 %v11717_v31  ;;  %8498 = vmatprep.subr.bf16.mxu0 %v11724_v33  ;;  %v5660_v31 = vld [vmem:[#allocation11 + $0xba0] sm:$0xff]  ;;  %v5657_v33 = vld [vmem:[#allocation11 + $0xb88] sm:$0xff] }
 0x42c   :  { %8662 = vmatprep.subr.bf16.mxu1 %v11726_v17  ;;  %v5661_v17 = vld [vmem:[#allocation11 + $0xba8] sm:$0xff]  ;;  %v11780_v26 = vcombine.high %v5656_v23, %v5660_v31  ;;  %v11779_v53 = vcombine.low %v5656_v23, %v5660_v31  ;;  %v11806_v23 = vcombine.high %v5681_v0, %v5685_v8  ;;  %v5692_v31 = vld [vmem:[#allocation11 + $0xca0] sm:$0xff] }
 0x42d   :  { %v11782_v40 = vcombine.high %v5657_v33, %v5661_v17  ;;  %v11781_v22 = vcombine.low %v5657_v33, %v5661_v17  ;;  %v5689_v33 = vld [vmem:[#allocation11 + $0xc88] sm:$0xff] }
 0x42e   :  { %8499 = vmatpush1.bf16.msra.mxu0 %v11723_v62  ;;  %v5664_v62 = vld [vmem:[#allocation11 + $0xbc0] sm:$0xff]  ;;  %v5693_v17 = vld [vmem:[#allocation11 + $0xca8] sm:$0xff] }
 0x42f   :  { %8663 = vmatpush1.bf16.msra.mxu1 %v11725_v12  ;;  %8500 = vmatprep.subr.bf16.mxu0 %v11732_v37  ;;  %v5668_v12 = vld [vmem:[#allocation11 + $0xbe0] sm:$0xff]  ;;  %v5665_v37 = vld [vmem:[#allocation11 + $0xbc8] sm:$0xff] }
 0x430   :  { %8664 = vmatprep.subr.bf16.mxu1 %v11734_v38  ;;  %v5669_v38 = vld [vmem:[#allocation11 + $0xbe8] sm:$0xff]  ;;  %v11788_v39 = vcombine.high %v5664_v62, %v5668_v12  ;;  %v11787_v47 = vcombine.low %v5664_v62, %v5668_v12  ;;  %v11814_v62 = vcombine.high %v5689_v33, %v5693_v17  ;;  %v5696_v12 = vld [vmem:[#allocation11 + $0xcc0] sm:$0xff] }
 0x431   :  { %v11790_v46 = vcombine.high %v5665_v37, %v5669_v38  ;;  %v11789_v21 = vcombine.low %v5665_v37, %v5669_v38  ;;  %v5700_v37 = vld [vmem:[#allocation11 + $0xce0] sm:$0xff]  ;;  %v5697_v38 = vld [vmem:[#allocation11 + $0xcc8] sm:$0xff] }
 0x432   :  { %8501 = vmatpush1.bf16.msra.mxu0 %v11731_v41  ;;  %v5672_v41 = vld [vmem:[#allocation11 + $0xc00] sm:$0xff] }
 0x433   :  { %8665 = vmatpush1.bf16.msra.mxu1 %v11733_v13  ;;  %8502 = vmatprep.subr.bf16.mxu0 %v11740_v42  ;;  %v5676_v13 = vld [vmem:[#allocation11 + $0xc20] sm:$0xff]  ;;  %v5673_v42 = vld [vmem:[#allocation11 + $0xc08] sm:$0xff] }
 0x434   :  { %8666 = vmatprep.subr.bf16.mxu1 %v11742_v45  ;;  %v5677_v45 = vld [vmem:[#allocation11 + $0xc28] sm:$0xff]  ;;  %v11796_v48 = vcombine.high %v5672_v41, %v5676_v13  ;;  %v11795_v7 = vcombine.low %v5672_v41, %v5676_v13  ;;  %v5704_v13 = vld [vmem:[#allocation11 + $0xd00] sm:$0xff] }
 0x435   :  { %v11798_v49 = vcombine.high %v5673_v42, %v5677_v45 }
 0x436   :  { %8503 = vmatpush1.bf16.msra.mxu0 %v11739_v50  ;;  %v13234_v50 = vld [vmem:[#allocation10] sm:$0xff] }
 0x437   :  { %8667 = vmatpush1.bf16.msra.mxu1 %v11741_v29  ;;  %8504 = vmatprep.subr.bf16.mxu0 %v11748_v51  ;;  %v2035_v29 = vrot.slane %v13234_v50, %v13151_v35  ;;  %v2039_v51 = vrot.slane %v13234_v50, %v13123_v15 }
 0x438   :  { %8668 = vmatprep.subr.bf16.mxu1 %v11750_v54  ;;  %v2047_v54 = vrot.slane %v13234_v50, %v13161_v20 }
 0x43a   :  { %8505 = vmatpush1.bf16.msra.mxu0 %v11747_v59 }
 0x43b   :  { %8669 = vmatpush1.bf16.msra.mxu1 %v11749_v60  ;;  %8506 = vmatprep.subr.bf16.mxu0 %v11756_v63 }
 0x43c   :  { %8670 = vmatprep.subr.bf16.mxu1 %v11758_v61 }
 0x43e   :  { %8507 = vmatpush1.bf16.msra.mxu0 %v11755_v3 }
 0x43f   :  { %8671 = vmatpush1.bf16.msra.mxu1 %v11757_v4  ;;  %8508 = vmatprep.subr.bf16.mxu0 %v11764_v43  ;;  %v5680_v4 = vld [vmem:[#allocation11 + $0xc40] sm:$0xff] }
 0x440   :  { %8672 = vmatprep.subr.bf16.mxu1 %v11766_v5  ;;  %v5684_v5 = vld [vmem:[#allocation11 + $0xc60] sm:$0xff] }
 0x442   :  { %8509 = vmatpush1.bf16.msra.mxu0 %v11763_v28  ;;  %v11797_v28 = vcombine.low %v5673_v42, %v5677_v45  ;;  %v5708_v42 = vld [vmem:[#allocation11 + $0xd20] sm:$0xff]  ;;  %v5705_v45 = vld [vmem:[#allocation11 + $0xd08] sm:$0xff] }
 0x443   :  { %8673 = vmatpush1.bf16.msra.mxu1 %v11765_v9  ;;  %8510 = vmatprep.subr.bf16.mxu0 %v11772_v11  ;;  %v5688_v11 = vld [vmem:[#allocation11 + $0xc80] sm:$0xff] }
 0x444   :  { %8674 = vmatprep.subr.bf16.mxu1 %v11774_v14  ;;  %v11804_v14 = vcombine.high %v5680_v4, %v5684_v5 }
 0x446   :  { %8511 = vmatpush1.bf16.msra.mxu0 %v11771_v19 }
 0x447   :  { %8675 = vmatpush1.bf16.msra.mxu1 %v11773_v25  ;;  %8512 = vmatprep.subr.bf16.mxu0 %v11780_v26  ;;  %v11803_v25 = vcombine.low %v5680_v4, %v5684_v5  ;;  %v11805_v26 = vcombine.low %v5681_v0, %v5685_v8  ;;  %v5728_v5 = vld [vmem:[#allocation11 + $0xdc0] sm:$0xff]  ;;  %v5729_v8 = vld [vmem:[#allocation11 + $0xdc8] sm:$0xff] }
 0x448   :  { %8676 = vmatprep.subr.bf16.mxu1 %v11782_v40  ;;  %v11812_v40 = vcombine.high %v5688_v11, %v5692_v31  ;;  %v5732_v0 = vld [vmem:[#allocation11 + $0xde0] sm:$0xff] }
 0x44a   :  { %8513 = vmatpush1.bf16.msra.mxu0 %v11779_v53  ;;  %v5701_v53 = vld [vmem:[#allocation11 + $0xce8] sm:$0xff] }
 0x44b   :  { %8677 = vmatpush1.bf16.msra.mxu1 %v11781_v22  ;;  %8514 = vmatprep.subr.bf16.mxu0 %v11788_v39  ;;  %v11811_v22 = vcombine.low %v5688_v11, %v5692_v31  ;;  %v11813_v39 = vcombine.low %v5689_v33, %v5693_v17  ;;  %v11822_v41 = vcombine.high %v5697_v38, %v5701_v53  ;;  %v5736_v31 = vld [vmem:[#allocation11 + $0xe00] sm:$0xff]  ;;  %v5737_v17 = vld [vmem:[#allocation11 + $0xe08] sm:$0xff] }
 0x44c   :  { %8678 = vmatprep.subr.bf16.mxu1 %v11790_v46  ;;  %v11820_v46 = vcombine.high %v5696_v12, %v5700_v37  ;;  %v5740_v33 = vld [vmem:[#allocation11 + $0xe20] sm:$0xff] }
 0x44e   :  { %8515 = vmatpush1.bf16.msra.mxu0 %v11787_v47  ;;  %v5709_v47 = vld [vmem:[#allocation11 + $0xd28] sm:$0xff] }
 0x44f   :  { %8679 = vmatpush1.bf16.msra.mxu1 %v11789_v21  ;;  %8525 = vmatprep.subr.bf16.mxu0 %v11796_v48  ;;  %v11819_v21 = vcombine.low %v5696_v12, %v5700_v37  ;;  %v11821_v48 = vcombine.low %v5697_v38, %v5701_v53  ;;  %v5744_v37 = vld [vmem:[#allocation11 + $0xe40] sm:$0xff]  ;;  %v5745_v53 = vld [vmem:[#allocation11 + $0xe48] sm:$0xff] }
 0x450   :  { %8689 = vmatprep.subr.bf16.mxu1 %v11798_v49  ;;  %v11828_v49 = vcombine.high %v5704_v13, %v5708_v42  ;;  %v5748_v38 = vld [vmem:[#allocation11 + $0xe60] sm:$0xff] }
 0x464   :  { %v5101_v36 = vpop.f32.mrb[12].mxu0 }
 0x465   :  { %v12220_v56 = vadd.f32 %v5101_v36, %v2035_v29  ;;  %v13242_v10 = vpop.f32.mrb[16].mxu1  ;;  %v5103_v57 = vpop.f32.mrb[13].mxu0  ;;  %v11830_v29 = vcombine.high %v5705_v45, %v5709_v47  ;;  %v5713_v36 = vld [vmem:[#allocation11 + $0xd48] sm:$0xff] }
 0x466   :  { %v12221_v59 = vadd.f32 %v5103_v57, %v2039_v51  ;;  %v5267_v60 = vpop.f32.mrb[17].mxu1  ;;  %v5105_v63 = vpop.f32.mrb[14].mxu0  ;;  %v5712_v51 = vld [vmem:[#allocation11 + $0xd40] sm:$0xff]  ;;  %v11827_v57 = vcombine.low %v5704_v13, %v5708_v42 }
 0x467   :  { %v5276_v61 = vmax.f32 %v12220_v56, 0.0  ;;  %v12223_v52 = vadd.f32 %v5267_v60, %v2047_v54  ;;  %v5269_v44 = vpop.f32.mrb[18].mxu1  ;;  %v5106_v1 = vpop.f32.mrb[15].mxu0  ;;  %v5716_v54 = vld [vmem:[#allocation11 + $0xd60] sm:$0xff]  ;;  %v5717_v56 = vld [vmem:[#allocation11 + $0xd68] sm:$0xff] }
 0x468   :  { %v5277_v2 = vmax.f32 %v12221_v59, 0.0  ;;  %v5270_v3 = vpop.f32.mrb[19].mxu1  ;;  %v11829_v59 = vcombine.low %v5705_v45, %v5709_v47  ;;  %v11836_v60 = vcombine.high %v5712_v51, %v5716_v54  ;;  %v11838_v63 = vcombine.high %v5713_v36, %v5717_v56  ;;  %v5721_v44 = vld [vmem:[#allocation11 + $0xd88] sm:$0xff]  ;;  %v5752_v42 = vld [vmem:[#allocation11 + $0xe80] sm:$0xff] }
 0x469   :  { %v5279_v43 = vmax.f32 %v12223_v52, 0.0  ;;  %v13246_v9 = vpack.c.bf16 %v5276_v61, %v5276_v61  ;;  %v5720_v61 = vld [vmem:[#allocation11 + $0xd80] sm:$0xff]  ;;  %v5725_v1 = vld [vmem:[#allocation11 + $0xda8] sm:$0xff]  ;;  %v11837_v3 = vcombine.low %v5713_v36, %v5717_v56 }
 0x46a   :  { %v13244_v6 = vpack.c.bf16 %v5277_v2, %v5277_v2  ;;  %v5724_v52 = vld [vmem:[#allocation11 + $0xda0] sm:$0xff]  ;;  %v11835_v2 = vcombine.low %v5712_v51, %v5716_v54  ;;  %v11845_v11 = vcombine.low %v5721_v44, %v5725_v1  ;;  %v5753_v47 = vld [vmem:[#allocation11 + $0xe88] sm:$0xff] }
 0x46b   :  { %v13250_v19 = vpack.c.bf16 %v5279_v43, %v5279_v43  ;;  %v11844_v4 = vcombine.high %v5720_v61, %v5724_v52  ;;  %v11846_v43 = vcombine.high %v5721_v44, %v5725_v1  ;;  %v5756_v45 = vld [vmem:[#allocation11 + $0xea0] sm:$0xff]  ;;  %v5761_v56 = vld [vmem:[#allocation11 + $0xec8] sm:$0xff] }
 0x46c   :  { %8516 = vmatprep.mubr.bf16.mxu0 %v13244_v6  ;;  %8680 = vmatprep.mubr.bf16.mxu1 %v13244_v6  ;;  %v5760_v54 = vld [vmem:[#allocation11 + $0xec0] sm:$0xff]  ;;  %v5769_v1 = vld [vmem:[#allocation11 + $0xf08] sm:$0xff] }
 0x46d   :  { %8517 = vmatmul.mubr.bf16.vlgmr.msra.gmra.mrb[16].mxu0 %v13246_v9  ;;  %8681 = vmatmul.mubr.bf16.vlgmr.msra.gmra.mrb[20].mxu1 %v13246_v9  ;;  %v5764_v36 = vld [vmem:[#allocation11 + $0xee0] sm:$0xff] }
 0x46e   :  { %8526 = vmatpush1.bf16.msra.mxu0 %v11795_v7  ;;  %8690 = vmatpush1.bf16.msra.mxu1 %v11797_v28  ;;  %v5733_v7 = vld [vmem:[#allocation11 + $0xde8] sm:$0xff]  ;;  %v11843_v28 = vcombine.low %v5720_v61, %v5724_v52  ;;  %v5768_v52 = vld [vmem:[#allocation11 + $0xf00] sm:$0xff] }
 0x46f   :  { %8557 = vmatprep.mubr.bf16.mxu0 %v13250_v19  ;;  %8721 = vmatprep.mubr.bf16.mxu1 %v13250_v19  ;;  %v5772_v44 = vld [vmem:[#allocation11 + $0xf20] sm:$0xff] }
 0x470   :  { %8527 = vmatprep.subr.bf16.mxu0 %v11804_v14  ;;  %8691 = vmatprep.subr.bf16.mxu1 %v11806_v23  ;;  %v11852_v14 = vcombine.high %v5728_v5, %v5732_v0  ;;  %v11854_v23 = vcombine.high %v5729_v8, %v5733_v7 }
 0x472   :  { %8528 = vmatpush1.bf16.msra.mxu0 %v11803_v25  ;;  %8692 = vmatpush1.bf16.msra.mxu1 %v11805_v26  ;;  %v5741_v25 = vld [vmem:[#allocation11 + $0xe28] sm:$0xff]  ;;  %v11851_v26 = vcombine.low %v5728_v5, %v5732_v0  ;;  %v5776_v0 = vld [vmem:[#allocation11 + $0xf40] sm:$0xff] }
 0x473   :  { %8529 = vmatprep.subr.bf16.mxu0 %v11812_v40  ;;  %8693 = vmatprep.subr.bf16.mxu1 %v11814_v62  ;;  %v11853_v40 = vcombine.low %v5729_v8, %v5733_v7  ;;  %v11860_v62 = vcombine.high %v5736_v31, %v5740_v33  ;;  %v11862_v12 = vcombine.high %v5737_v17, %v5741_v25  ;;  %v5780_v8 = vld [vmem:[#allocation11 + $0xf60] sm:$0xff]  ;;  %v5777_v7 = vld [vmem:[#allocation11 + $0xf48] sm:$0xff] }
 0x476   :  { %8530 = vmatpush1.bf16.msra.mxu0 %v11811_v22  ;;  %8694 = vmatpush1.bf16.msra.mxu1 %v11813_v39  ;;  %v5749_v22 = vld [vmem:[#allocation11 + $0xe68] sm:$0xff]  ;;  %v11859_v39 = vcombine.low %v5736_v31, %v5740_v33  ;;  %v5784_v33 = vld [vmem:[#allocation11 + $0xf80] sm:$0xff] }
 0x477   :  { %8531 = vmatprep.subr.bf16.mxu0 %v11820_v46  ;;  %8695 = vmatprep.subr.bf16.mxu1 %v11822_v41  ;;  %v11861_v46 = vcombine.low %v5737_v17, %v5741_v25  ;;  %v11868_v41 = vcombine.high %v5744_v37, %v5748_v38  ;;  %v11870_v13 = vcombine.high %v5745_v53, %v5749_v22  ;;  %v5788_v17 = vld [vmem:[#allocation11 + $0xfa0] sm:$0xff]  ;;  %v5785_v25 = vld [vmem:[#allocation11 + $0xf88] sm:$0xff] }
 0x47a   :  { %8532 = vmatpush1.bf16.msra.mxu0 %v11819_v21  ;;  %8696 = vmatpush1.bf16.msra.mxu1 %v11821_v48  ;;  %v5757_v21 = vld [vmem:[#allocation11 + $0xea8] sm:$0xff]  ;;  %v11867_v48 = vcombine.low %v5744_v37, %v5748_v38  ;;  %v11908_v37 = vcombine.high %v5784_v33, %v5788_v17 }
 0x47b   :  { %8533 = vmatprep.subr.bf16.mxu0 %v11828_v49  ;;  %8697 = vmatprep.subr.bf16.mxu1 %v11830_v29  ;;  %v11869_v49 = vcombine.low %v5745_v53, %v5749_v22  ;;  %v11876_v29 = vcombine.high %v5752_v42, %v5756_v45  ;;  %v11878_v51 = vcombine.high %v5753_v47, %v5757_v21  ;;  %v5792_v53 = vld [vmem:[#allocation11 + $0xfc0] sm:$0xff] }
 0x47c   :  { %v5796_v22 = vld [vmem:[#allocation11 + $0xfe0] sm:$0xff] }
 0x47e   :  { %8534 = vmatpush1.bf16.msra.mxu0 %v11827_v57  ;;  %8698 = vmatpush1.bf16.msra.mxu1 %v11829_v59  ;;  %v5765_v57 = vld [vmem:[#allocation11 + $0xee8] sm:$0xff]  ;;  %v11875_v59 = vcombine.low %v5752_v42, %v5756_v45  ;;  %v11916_v45 = vcombine.high %v5792_v53, %v5796_v22 }
 0x47f   :  { %8535 = vmatprep.subr.bf16.mxu0 %v11836_v60  ;;  %8699 = vmatprep.subr.bf16.mxu1 %v11838_v63  ;;  %v11877_v60 = vcombine.low %v5753_v47, %v5757_v21  ;;  %v11884_v63 = vcombine.high %v5760_v54, %v5764_v36  ;;  %v11886_v61 = vcombine.high %v5761_v56, %v5765_v57  ;;  %v5290_v21 = vld [vmem:[#allocation11 + $0x10] sm:$0xff] }
 0x482   :  { %8536 = vmatpush1.bf16.msra.mxu0 %v11835_v2  ;;  %8700 = vmatpush1.bf16.msra.mxu1 %v11837_v3  ;;  %v5773_v2 = vld [vmem:[#allocation11 + $0xf28] sm:$0xff]  ;;  %v11883_v3 = vcombine.low %v5760_v54, %v5764_v36 }
 0x483   :  { %8537 = vmatprep.subr.bf16.mxu0 %v11844_v4  ;;  %8701 = vmatprep.subr.bf16.mxu1 %v11846_v43  ;;  %v11885_v4 = vcombine.low %v5761_v56, %v5765_v57  ;;  %v11892_v43 = vcombine.high %v5768_v52, %v5772_v44  ;;  %v11894_v5 = vcombine.high %v5769_v1, %v5773_v2  ;;  %v5298_v57 = vld [vmem:[#allocation11 + $0x50] sm:$0xff] }
 0x486   :  { %8538 = vmatpush1.bf16.msra.mxu0 %v11843_v28  ;;  %8702 = vmatpush1.bf16.msra.mxu1 %v11845_v11  ;;  %v5781_v28 = vld [vmem:[#allocation11 + $0xf68] sm:$0xff]  ;;  %v11891_v11 = vcombine.low %v5768_v52, %v5772_v44 }
 0x487   :  { %8539 = vmatprep.subr.bf16.mxu0 %v11852_v14  ;;  %8703 = vmatprep.subr.bf16.mxu1 %v11854_v23  ;;  %v11893_v14 = vcombine.low %v5769_v1, %v5773_v2  ;;  %v11900_v23 = vcombine.high %v5776_v0, %v5780_v8  ;;  %v11902_v31 = vcombine.high %v5777_v7, %v5781_v28  ;;  %v5306_v2 = vld [vmem:[#allocation11 + $0x90] sm:$0xff] }
 0x48a   :  { %8540 = vmatpush1.bf16.msra.mxu0 %v11851_v26  ;;  %8704 = vmatpush1.bf16.msra.mxu1 %v11853_v40  ;;  %v5789_v26 = vld [vmem:[#allocation11 + $0xfa8] sm:$0xff]  ;;  %v11899_v40 = vcombine.low %v5776_v0, %v5780_v8 }
 0x48b   :  { %8541 = vmatprep.subr.bf16.mxu0 %v11860_v62  ;;  %8705 = vmatprep.subr.bf16.mxu1 %v11862_v12  ;;  %v11901_v62 = vcombine.low %v5777_v7, %v5781_v28  ;;  %v2043_v12 = vrot.slane %v13234_v50, %v13172_v18  ;;  %v11910_v38 = vcombine.high %v5785_v25, %v5789_v26  ;;  %v5294_v50 = vld [vmem:[#allocation11 + $0x30] sm:$0xff] }
 0x48c   :  { %v11416_v36 = vcombine.high %v5290_v21, %v5294_v50  ;;  %v5314_v28 = vld [vmem:[#allocation11 + $0xd0] sm:$0xff] }
 0x48d   :  { %v12222_v42 = vadd.f32 %v13242_v10, %v2043_v12  ;;  %v5299_v10 = vld [vmem:[#allocation11 + $0x58] sm:$0xff] }
 0x48e   :  { %8542 = vmatpush1.bf16.msra.mxu0 %v11859_v39  ;;  %8706 = vmatpush1.bf16.msra.mxu1 %v11861_v46  ;;  %v5793_v39 = vld [vmem:[#allocation11 + $0xfc8] sm:$0xff] }
 0x48f   :  { %8543 = vmatprep.subr.bf16.mxu0 %v11868_v41  ;;  %8707 = vmatprep.subr.bf16.mxu1 %v11870_v13  ;;  %v5797_v46 = vld [vmem:[#allocation11 + $0xfe8] sm:$0xff]  ;;  %v11907_v41 = vcombine.low %v5784_v33, %v5788_v17  ;;  %v11909_v13 = vcombine.low %v5785_v25, %v5789_v26  ;;  %v5278_v54 = vmax.f32 %v12222_v42, 0.0  ;;  %v5322_v26 = vld [vmem:[#allocation11 + $0x110] sm:$0xff] }
 0x490   :  { %v11918_v47 = vcombine.high %v5793_v39, %v5797_v46 }
 0x492   :  { %8544 = vmatpush1.bf16.msra.mxu0 %v11867_v48  ;;  %8708 = vmatpush1.bf16.msra.mxu1 %v11869_v49  ;;  %v5291_v48 = vld [vmem:[#allocation11 + $0x18] sm:$0xff] }
 0x493   :  { %8545 = vmatprep.subr.bf16.mxu0 %v11876_v29  ;;  %8709 = vmatprep.subr.bf16.mxu1 %v11878_v51  ;;  %v5295_v49 = vld [vmem:[#allocation11 + $0x38] sm:$0xff]  ;;  %v11915_v29 = vcombine.low %v5792_v53, %v5796_v22  ;;  %v11917_v51 = vcombine.low %v5793_v39, %v5797_v46  ;;  %v5330_v22 = vld [vmem:[#allocation11 + $0x150] sm:$0xff] }
 0x494   :  { %v11418_v56 = vcombine.high %v5291_v48, %v5295_v49  ;;  %v11417_v52 = vcombine.low %v5291_v48, %v5295_v49  ;;  %v5334_v39 = vld [vmem:[#allocation11 + $0x170] sm:$0xff]  ;;  %v5331_v46 = vld [vmem:[#allocation11 + $0x158] sm:$0xff] }
 0x495   :  { %v5339_v48 = vld [vmem:[#allocation11 + $0x198] sm:$0xff] }
 0x496   :  { %8546 = vmatpush1.bf16.msra.mxu0 %v11875_v59  ;;  %8710 = vmatpush1.bf16.msra.mxu1 %v11877_v60  ;;  %v5302_v59 = vld [vmem:[#allocation11 + $0x70] sm:$0xff]  ;;  %v5303_v60 = vld [vmem:[#allocation11 + $0x78] sm:$0xff] }
 0x497   :  { %8547 = vmatprep.subr.bf16.mxu0 %v11884_v63  ;;  %8711 = vmatprep.subr.bf16.mxu1 %v11886_v61  ;;  %v11415_v63 = vcombine.low %v5290_v21, %v5294_v50  ;;  %v13259_v61 = vpack.c.bf16 %v5278_v54, %v5278_v54  ;;  %v11424_v44 = vcombine.high %v5298_v57, %v5302_v59  ;;  %v5338_v21 = vld [vmem:[#allocation11 + $0x190] sm:$0xff]  ;;  %v5343_v49 = vld [vmem:[#allocation11 + $0x1b8] sm:$0xff] }
 0x498   :  { %v11426_v1 = vcombine.high %v5299_v10, %v5303_v60  ;;  %v11425_v0 = vcombine.low %v5299_v10, %v5303_v60  ;;  %v5342_v50 = vld [vmem:[#allocation11 + $0x1b0] sm:$0xff]  ;;  %v5351_v10 = vld [vmem:[#allocation11 + $0x1f8] sm:$0xff] }
 0x499   :  { %v11464_v54 = vcombine.high %v5338_v21, %v5342_v50  ;;  %v11463_v60 = vcombine.low %v5338_v21, %v5342_v50  ;;  %v5390_v21 = vld [vmem:[#allocation11 + $0x330] sm:$0xff]  ;;  %v5387_v50 = vld [vmem:[#allocation11 + $0x318] sm:$0xff] }
 0x49a   :  { %8548 = vmatpush1.bf16.msra.mxu0 %v11883_v3  ;;  %8712 = vmatpush1.bf16.msra.mxu1 %v11885_v4  ;;  %v5310_v3 = vld [vmem:[#allocation11 + $0xb0] sm:$0xff]  ;;  %v5307_v4 = vld [vmem:[#allocation11 + $0x98] sm:$0xff] }
 0x49b   :  { %8549 = vmatprep.subr.bf16.mxu0 %v11892_v43  ;;  %8713 = vmatprep.subr.bf16.mxu1 %v11894_v5  ;;  %v5311_v43 = vld [vmem:[#allocation11 + $0xb8] sm:$0xff]  ;;  %v11423_v5 = vcombine.low %v5298_v57, %v5302_v59  ;;  %v11432_v8 = vcombine.high %v5306_v2, %v5310_v3  ;;  %v5350_v57 = vld [vmem:[#allocation11 + $0x1f0] sm:$0xff] }
 0x49c   :  { %v11434_v7 = vcombine.high %v5307_v4, %v5311_v43  ;;  %v11433_v33 = vcombine.low %v5307_v4, %v5311_v43  ;;  %v5347_v59 = vld [vmem:[#allocation11 + $0x1d8] sm:$0xff] }
 0x49d   :  { %v5359_v4 = vld [vmem:[#allocation11 + $0x238] sm:$0xff] }
 0x49e   :  { %8550 = vmatpush1.bf16.msra.mxu0 %v11891_v11  ;;  %8714 = vmatpush1.bf16.msra.mxu1 %v11893_v14  ;;  %v5318_v11 = vld [vmem:[#allocation11 + $0xf0] sm:$0xff]  ;;  %v5315_v14 = vld [vmem:[#allocation11 + $0xd8] sm:$0xff] }
 0x49f   :  { %8551 = vmatprep.subr.bf16.mxu0 %v11900_v23  ;;  %8715 = vmatprep.subr.bf16.mxu1 %v11902_v31  ;;  %v5319_v23 = vld [vmem:[#allocation11 + $0xf8] sm:$0xff]  ;;  %v11431_v31 = vcombine.low %v5306_v2, %v5310_v3  ;;  %v11440_v17 = vcombine.high %v5314_v28, %v5318_v11  ;;  %v11439_v12 = vcombine.low %v5314_v28, %v5318_v11  ;;  %v5358_v2 = vld [vmem:[#allocation11 + $0x230] sm:$0xff] }
 0x4a0   :  { %v11442_v25 = vcombine.high %v5315_v14, %v5319_v23  ;;  %v5355_v3 = vld [vmem:[#allocation11 + $0x218] sm:$0xff]  ;;  %v5366_v28 = vld [vmem:[#allocation11 + $0x270] sm:$0xff] }
 0x4a1   :  { %v5363_v11 = vld [vmem:[#allocation11 + $0x258] sm:$0xff] }
 0x4a2   :  { %8552 = vmatpush1.bf16.msra.mxu0 %v11899_v40  ;;  %8716 = vmatpush1.bf16.msra.mxu1 %v11901_v62  ;;  %v5326_v40 = vld [vmem:[#allocation11 + $0x130] sm:$0xff]  ;;  %v5327_v62 = vld [vmem:[#allocation11 + $0x138] sm:$0xff] }
 0x4a3   :  { %8553 = vmatprep.subr.bf16.mxu0 %v11908_v37  ;;  %8717 = vmatprep.subr.bf16.mxu1 %v11910_v38  ;;  %v11441_v37 = vcombine.low %v5315_v14, %v5319_v23  ;;  %v11448_v38 = vcombine.high %v5322_v26, %v5326_v40  ;;  %v5367_v14 = vld [vmem:[#allocation11 + $0x278] sm:$0xff] }
 0x4a6   :  { %8554 = vmatpush1.bf16.msra.mxu0 %v11907_v41  ;;  %8718 = vmatpush1.bf16.msra.mxu1 %v11909_v13  ;;  %v5335_v41 = vld [vmem:[#allocation11 + $0x178] sm:$0xff]  ;;  %v11447_v13 = vcombine.low %v5322_v26, %v5326_v40  ;;  %v5374_v26 = vld [vmem:[#allocation11 + $0x2b0] sm:$0xff] }
 0x4a7   :  { %8555 = vmatprep.subr.bf16.mxu0 %v11916_v45  ;;  %8719 = vmatprep.subr.bf16.mxu1 %v11918_v47  ;;  %v11456_v45 = vcombine.high %v5330_v22, %v5334_v39  ;;  %v11458_v47 = vcombine.high %v5331_v46, %v5335_v41  ;;  %v5371_v40 = vld [vmem:[#allocation11 + $0x298] sm:$0xff] }
 0x4aa   :  { %8556 = vmatpush1.bf16.msra.mxu0 %v11915_v29  ;;  %8720 = vmatpush1.bf16.msra.mxu1 %v11917_v51  ;;  %v11455_v29 = vcombine.low %v5330_v22, %v5334_v39  ;;  %v11457_v51 = vcombine.low %v5331_v46, %v5335_v41  ;;  %v5382_v22 = vld [vmem:[#allocation11 + $0x2f0] sm:$0xff]  ;;  %v5379_v39 = vld [vmem:[#allocation11 + $0x2d8] sm:$0xff] }
 0x4ab   :  { %8730 = vmatprep.subr.bf16.mxu0 %v11416_v36  ;;  %8894 = vmatprep.subr.bf16.mxu1 %v11418_v56  ;;  %v11466_v36 = vcombine.high %v5339_v48, %v5343_v49  ;;  %v5346_v56 = vld [vmem:[#allocation11 + $0x1d0] sm:$0xff]  ;;  %v5383_v46 = vld [vmem:[#allocation11 + $0x2f8] sm:$0xff] }
 0x4ac   :  { %v11471_v43 = vcombine.low %v5346_v56, %v5350_v57 }
 0x4ad   :  { %8558 = vmatmul.mubr.bf16.vlgmr.msra.gmra.mrb[16].mxu0 %v13259_v61  ;;  %8722 = vmatmul.mubr.bf16.vlgmr.msra.gmra.mrb[20].mxu1 %v13259_v61 }
 0x4ae   :  { %8731 = vmatpush1.bf16.msra.mxu0 %v11415_v63  ;;  %8762 = vmatprep.mubr.bf16.mxu0 %v13207_v30  ;;  %v11465_v63 = vcombine.low %v5339_v48, %v5343_v49  ;;  %v5391_v48 = vld [vmem:[#allocation11 + $0x338] sm:$0xff] }
 0x4af   :  { %8895 = vmatpush1.bf16.msra.mxu1 %v11417_v52  ;;  %8926 = vmatprep.mubr.bf16.mxu1 %v13207_v30  ;;  %v5323_v30 = vld [vmem:[#allocation11 + $0x118] sm:$0xff]  ;;  %v11472_v52 = vcombine.high %v5346_v56, %v5350_v57  ;;  %v5398_v56 = vld [vmem:[#allocation11 + $0x370] sm:$0xff] }
 0x4b0   :  { %8732 = vmatprep.subr.bf16.mxu0 %v11424_v44  ;;  %8896 = vmatprep.subr.bf16.mxu1 %v11426_v1  ;;  %v11450_v53 = vcombine.high %v5323_v30, %v5327_v62  ;;  %v11449_v42 = vcombine.low %v5323_v30, %v5327_v62  ;;  %v11474_v44 = vcombine.high %v5347_v59, %v5351_v10  ;;  %v5354_v1 = vld [vmem:[#allocation11 + $0x210] sm:$0xff]  ;;  %v5375_v30 = vld [vmem:[#allocation11 + $0x2b8] sm:$0xff] }
 0x4b1   :  { %v11479_v23 = vcombine.low %v5354_v1, %v5358_v2  ;;  %v5395_v57 = vld [vmem:[#allocation11 + $0x358] sm:$0xff] }
 0x4b2   :  { %8733 = vmatpush1.bf16.msra.mxu0 %v11423_v5  ;;  %v11473_v5 = vcombine.low %v5347_v59, %v5351_v10  ;;  %v5399_v59 = vld [vmem:[#allocation11 + $0x378] sm:$0xff] }
 0x4b3   :  { %8897 = vmatpush1.bf16.msra.mxu1 %v11425_v0  ;;  %8734 = vmatprep.subr.bf16.mxu0 %v11432_v8  ;;  %v11480_v0 = vcombine.high %v5354_v1, %v5358_v2  ;;  %v11482_v8 = vcombine.high %v5355_v3, %v5359_v4  ;;  %v5406_v1 = vld [vmem:[#allocation11 + $0x3b0] sm:$0xff]  ;;  %v5403_v2 = vld [vmem:[#allocation11 + $0x398] sm:$0xff] }
 0x4b4   :  { %8898 = vmatprep.subr.bf16.mxu1 %v11434_v7  ;;  %v5362_v7 = vld [vmem:[#allocation11 + $0x250] sm:$0xff] }
 0x4b5   :  { %v11487_v62 = vcombine.low %v5362_v7, %v5366_v28 }
 0x4b6   :  { %8735 = vmatpush1.bf16.msra.mxu0 %v11431_v31  ;;  %v11481_v31 = vcombine.low %v5355_v3, %v5359_v4  ;;  %v5407_v3 = vld [vmem:[#allocation11 + $0x3b8] sm:$0xff] }
 0x4b7   :  { %8899 = vmatpush1.bf16.msra.mxu1 %v11433_v33  ;;  %8736 = vmatprep.subr.bf16.mxu0 %v11440_v17  ;;  %v11488_v33 = vcombine.high %v5362_v7, %v5366_v28  ;;  %v11490_v17 = vcombine.high %v5363_v11, %v5367_v14  ;;  %v5414_v7 = vld [vmem:[#allocation11 + $0x3f0] sm:$0xff]  ;;  %v5411_v28 = vld [vmem:[#allocation11 + $0x3d8] sm:$0xff] }
 0x4b8   :  { %8900 = vmatprep.subr.bf16.mxu1 %v11442_v25  ;;  %v5370_v25 = vld [vmem:[#allocation11 + $0x290] sm:$0xff] }
 0x4b9   :  { %v11495_v41 = vcombine.low %v5370_v25, %v5374_v26 }
 0x4ba   :  { %8737 = vmatpush1.bf16.msra.mxu0 %v11439_v12  ;;  %v11489_v12 = vcombine.low %v5363_v11, %v5367_v14  ;;  %v5415_v11 = vld [vmem:[#allocation11 + $0x3f8] sm:$0xff] }
 0x4bb   :  { %8901 = vmatpush1.bf16.msra.mxu1 %v11441_v37  ;;  %8738 = vmatprep.subr.bf16.mxu0 %v11448_v38  ;;  %v11496_v37 = vcombine.high %v5370_v25, %v5374_v26  ;;  %v11498_v38 = vcombine.high %v5371_v40, %v5375_v30  ;;  %v5422_v25 = vld [vmem:[#allocation11 + $0x430] sm:$0xff]  ;;  %v5419_v26 = vld [vmem:[#allocation11 + $0x418] sm:$0xff] }
 0x4bc   :  { %8902 = vmatprep.subr.bf16.mxu1 %v11450_v53  ;;  %v5378_v53 = vld [vmem:[#allocation11 + $0x2d0] sm:$0xff] }
 0x4bd   :  { %v11503_v49 = vcombine.low %v5378_v53, %v5382_v22 }
 0x4be   :  { %8739 = vmatpush1.bf16.msra.mxu0 %v11447_v13  ;;  %v11497_v13 = vcombine.low %v5371_v40, %v5375_v30  ;;  %v5423_v40 = vld [vmem:[#allocation11 + $0x438] sm:$0xff] }
 0x4bf   :  { %8903 = vmatpush1.bf16.msra.mxu1 %v11449_v42  ;;  %8740 = vmatprep.subr.bf16.mxu0 %v11456_v45  ;;  %v11504_v42 = vcombine.high %v5378_v53, %v5382_v22  ;;  %v11506_v45 = vcombine.high %v5379_v39, %v5383_v46  ;;  %v5430_v53 = vld [vmem:[#allocation11 + $0x470] sm:$0xff] }
 0x4c0   :  { %8904 = vmatprep.subr.bf16.mxu1 %v11458_v47  ;;  %v5386_v47 = vld [vmem:[#allocation11 + $0x310] sm:$0xff] }
 0x4c1   :  { %v11511_v10 = vcombine.low %v5386_v47, %v5390_v21 }
 0x4c2   :  { %8741 = vmatpush1.bf16.msra.mxu0 %v11455_v29  ;;  %v11505_v29 = vcombine.low %v5379_v39, %v5383_v46  ;;  %v5427_v39 = vld [vmem:[#allocation11 + $0x458] sm:$0xff] }
 0x4c3   :  { %8905 = vmatpush1.bf16.msra.mxu1 %v11457_v51  ;;  %8742 = vmatprep.subr.bf16.mxu0 %v11464_v54  ;;  %v11512_v51 = vcombine.high %v5386_v47, %v5390_v21  ;;  %v11514_v54 = vcombine.high %v5387_v50, %v5391_v48  ;;  %v5431_v46 = vld [vmem:[#allocation11 + $0x478] sm:$0xff] }
 0x4c4   :  { %8906 = vmatprep.subr.bf16.mxu1 %v11466_v36  ;;  %v5394_v36 = vld [vmem:[#allocation11 + $0x350] sm:$0xff]  ;;  %v11554_v47 = vcombine.high %v5427_v39, %v5431_v46  ;;  %v5435_v21 = vld [vmem:[#allocation11 + $0x498] sm:$0xff] }
 0x4c5   :  { %v11519_v4 = vcombine.low %v5394_v36, %v5398_v56 }
 0x4c6   :  { %8743 = vmatpush1.bf16.msra.mxu0 %v11463_v60  ;;  %v11513_v60 = vcombine.low %v5387_v50, %v5391_v48  ;;  %v5439_v50 = vld [vmem:[#allocation11 + $0x4b8] sm:$0xff] }
 0x4c7   :  { %8907 = vmatpush1.bf16.msra.mxu1 %v11465_v63  ;;  %8744 = vmatprep.subr.bf16.mxu0 %v11472_v52  ;;  %v11520_v63 = vcombine.high %v5394_v36, %v5398_v56  ;;  %v11522_v52 = vcombine.high %v5395_v57, %v5399_v59  ;;  %v5446_v36 = vld [vmem:[#allocation11 + $0x4f0] sm:$0xff]  ;;  %v5443_v56 = vld [vmem:[#allocation11 + $0x4d8] sm:$0xff] }
 0x4c8   :  { %8908 = vmatprep.subr.bf16.mxu1 %v11474_v44  ;;  %v5402_v44 = vld [vmem:[#allocation11 + $0x390] sm:$0xff] }
 0x4c9   :  { %v11527_v14 = vcombine.low %v5402_v44, %v5406_v1 }
 0x4ca   :  { %8745 = vmatpush1.bf16.msra.mxu0 %v11471_v43  ;;  %v11521_v43 = vcombine.low %v5395_v57, %v5399_v59  ;;  %v5447_v57 = vld [vmem:[#allocation11 + $0x4f8] sm:$0xff] }
 0x4cb   :  { %8909 = vmatpush1.bf16.msra.mxu1 %v11473_v5  ;;  %8746 = vmatprep.subr.bf16.mxu0 %v11480_v0  ;;  %v11528_v5 = vcombine.high %v5402_v44, %v5406_v1  ;;  %v11530_v0 = vcombine.high %v5403_v2, %v5407_v3  ;;  %v5451_v44 = vld [vmem:[#allocation11 + $0x518] sm:$0xff] }
 0x4cc   :  { %8910 = vmatprep.subr.bf16.mxu1 %v11482_v8  ;;  %v5410_v8 = vld [vmem:[#allocation11 + $0x3d0] sm:$0xff]  ;;  %v5455_v1 = vld [vmem:[#allocation11 + $0x538] sm:$0xff] }
 0x4cd   :  { %v11535_v30 = vcombine.low %v5410_v8, %v5414_v7 }
 0x4ce   :  { %8747 = vmatpush1.bf16.msra.mxu0 %v11479_v23  ;;  %v11529_v23 = vcombine.low %v5403_v2, %v5407_v3  ;;  %v11569_v2 = vcombine.low %v5443_v56, %v5447_v57 }
 0x4cf   :  { %8911 = vmatpush1.bf16.msra.mxu1 %v11481_v31  ;;  %8748 = vmatprep.subr.bf16.mxu0 %v11488_v33  ;;  %v11536_v31 = vcombine.high %v5410_v8, %v5414_v7  ;;  %v11538_v33 = vcombine.high %v5411_v28, %v5415_v11  ;;  %v5463_v8 = vld [vmem:[#allocation11 + $0x578] sm:$0xff] }
 0x4d0   :  { %8912 = vmatprep.subr.bf16.mxu1 %v11490_v17  ;;  %v5418_v17 = vld [vmem:[#allocation11 + $0x410] sm:$0xff] }
 0x4d1   :  { %v11543_v22 = vcombine.low %v5418_v17, %v5422_v25 }
 0x4d2   :  { %8749 = vmatpush1.bf16.msra.mxu0 %v11487_v62  ;;  %v11537_v62 = vcombine.low %v5411_v28, %v5415_v11  ;;  %v11577_v28 = vcombine.low %v5451_v44, %v5455_v1 }
 0x4d3   :  { %8913 = vmatpush1.bf16.msra.mxu1 %v11489_v12  ;;  %8750 = vmatprep.subr.bf16.mxu0 %v11496_v37  ;;  %v11544_v12 = vcombine.high %v5418_v17, %v5422_v25  ;;  %v11546_v37 = vcombine.high %v5419_v26, %v5423_v40  ;;  %v5471_v17 = vld [vmem:[#allocation11 + $0x5b8] sm:$0xff] }
 0x4d4   :  { %8914 = vmatprep.subr.bf16.mxu1 %v11498_v38  ;;  %v5426_v38 = vld [vmem:[#allocation11 + $0x450] sm:$0xff] }
 0x4d5   :  { %v11551_v48 = vcombine.low %v5426_v38, %v5430_v53 }
 0x4d6   :  { %8751 = vmatpush1.bf16.msra.mxu0 %v11495_v41  ;;  %v11545_v41 = vcombine.low %v5419_v26, %v5423_v40 }
 0x4d7   :  { %8915 = vmatpush1.bf16.msra.mxu1 %v11497_v13  ;;  %8752 = vmatprep.subr.bf16.mxu0 %v11504_v42  ;;  %v11552_v13 = vcombine.high %v5426_v38, %v5430_v53  ;;  %v5434_v42 = vld [vmem:[#allocation11 + $0x490] sm:$0xff]  ;;  %v5479_v38 = vld [vmem:[#allocation11 + $0x5f8] sm:$0xff] }
 0x4d8   :  { %8916 = vmatprep.subr.bf16.mxu1 %v11506_v45  ;;  %v5438_v45 = vld [vmem:[#allocation11 + $0x4b0] sm:$0xff] }
 0x4d9   :  { %v11559_v59 = vcombine.low %v5434_v42, %v5438_v45 }
 0x4da   :  { %8753 = vmatpush1.bf16.msra.mxu0 %v11503_v49  ;;  %v11553_v49 = vcombine.low %v5427_v39, %v5431_v46 }
 0x4db   :  { %8917 = vmatpush1.bf16.msra.mxu1 %v11505_v29  ;;  %8754 = vmatprep.subr.bf16.mxu0 %v11512_v51  ;;  %v11560_v29 = vcombine.high %v5434_v42, %v5438_v45  ;;  %v11562_v51 = vcombine.high %v5435_v21, %v5439_v50  ;;  %v5483_v42 = vld [vmem:[#allocation11 + $0x618] sm:$0xff] }
 0x4dc   :  { %8918 = vmatprep.subr.bf16.mxu1 %v11514_v54  ;;  %v5442_v54 = vld [vmem:[#allocation11 + $0x4d0] sm:$0xff]  ;;  %v5487_v45 = vld [vmem:[#allocation11 + $0x638] sm:$0xff] }
 0x4de   :  { %8755 = vmatpush1.bf16.msra.mxu0 %v11511_v10  ;;  %v11568_v10 = vcombine.high %v5442_v54, %v5446_v36 }
 0x4df   :  { %8919 = vmatpush1.bf16.msra.mxu1 %v11513_v60  ;;  %8756 = vmatprep.subr.bf16.mxu0 %v11520_v63  ;;  %v11570_v60 = vcombine.high %v5443_v56, %v5447_v57  ;;  %v5450_v63 = vld [vmem:[#allocation11 + $0x510] sm:$0xff]  ;;  %v11609_v56 = vcombine.low %v5483_v42, %v5487_v45 }
 0x4e0   :  { %8920 = vmatprep.subr.bf16.mxu1 %v11522_v52  ;;  %v5454_v52 = vld [vmem:[#allocation11 + $0x530] sm:$0xff] }
 0x4e1   :  { %v11576_v3 = vcombine.high %v5450_v63, %v5454_v52  ;;  %v11575_v7 = vcombine.low %v5450_v63, %v5454_v52  ;;  %v5503_v63 = vld [vmem:[#allocation11 + $0x6b8] sm:$0xff] }
 0x4e2   :  { %8757 = vmatpush1.bf16.msra.mxu0 %v11519_v4  ;;  %v11578_v4 = vcombine.high %v5451_v44, %v5455_v1 }
 0x4e3   :  { %8921 = vmatpush1.bf16.msra.mxu1 %v11521_v43  ;;  %8758 = vmatprep.subr.bf16.mxu0 %v11528_v5  ;;  %v5458_v43 = vld [vmem:[#allocation11 + $0x550] sm:$0xff] }
 0x4e4   :  { %8922 = vmatprep.subr.bf16.mxu1 %v11530_v0  ;;  %v5462_v5 = vld [vmem:[#allocation11 + $0x570] sm:$0xff]  ;;  %v5459_v0 = vld [vmem:[#allocation11 + $0x558] sm:$0xff] }
 0x4e5   :  { %v11584_v11 = vcombine.high %v5458_v43, %v5462_v5  ;;  %v11583_v25 = vcombine.low %v5458_v43, %v5462_v5  ;;  %v11585_v26 = vcombine.low %v5459_v0, %v5463_v8  ;;  %v5511_v43 = vld [vmem:[#allocation11 + $0x6f8] sm:$0xff] }
 0x4e6   :  { %8759 = vmatpush1.bf16.msra.mxu0 %v11527_v14  ;;  %v11586_v14 = vcombine.high %v5459_v0, %v5463_v8 }
 0x4e7   :  { %8923 = vmatpush1.bf16.msra.mxu1 %v11529_v23  ;;  %8760 = vmatprep.subr.bf16.mxu0 %v11536_v31  ;;  %v5466_v23 = vld [vmem:[#allocation11 + $0x590] sm:$0xff] }
 0x4e8   :  { %8924 = vmatprep.subr.bf16.mxu1 %v11538_v33  ;;  %v5470_v31 = vld [vmem:[#allocation11 + $0x5b0] sm:$0xff]  ;;  %v5467_v33 = vld [vmem:[#allocation11 + $0x598] sm:$0xff] }
 0x4e9   :  { %v11592_v40 = vcombine.high %v5466_v23, %v5470_v31  ;;  %v11591_v53 = vcombine.low %v5466_v23, %v5470_v31  ;;  %v5519_v23 = vld [vmem:[#allocation11 + $0x738] sm:$0xff] }
 0x4ea   :  { %8761 = vmatpush1.bf16.msra.mxu0 %v11535_v30  ;;  %v11594_v30 = vcombine.high %v5467_v33, %v5471_v17 }
 0x4eb   :  { %8925 = vmatpush1.bf16.msra.mxu1 %v11537_v62  ;;  %8771 = vmatprep.subr.bf16.mxu0 %v11544_v12  ;;  %v5474_v62 = vld [vmem:[#allocation11 + $0x5d0] sm:$0xff] }
 0x4ec   :  { %8935 = vmatprep.subr.bf16.mxu1 %v11546_v37  ;;  %v5478_v12 = vld [vmem:[#allocation11 + $0x5f0] sm:$0xff]  ;;  %v5475_v37 = vld [vmem:[#allocation11 + $0x5d8] sm:$0xff] }
 0x4ed   :  { %8763 = vmatmul.mubr.bf16.vlgmr.msra.gmra.mrb[20].mxu0 %v13219_v55  ;;  %v11600_v39 = vcombine.high %v5474_v62, %v5478_v12  ;;  %v11602_v46 = vcombine.high %v5475_v37, %v5479_v38 }
 0x4ee   :  { %8927 = vmatmul.mubr.bf16.vlgmr.msra.gmra.mrb[24].mxu1 %v13219_v55  ;;  %8772 = vmatpush1.bf16.msra.mxu0 %v11543_v22  ;;  %v11561_v55 = vcombine.low %v5435_v21, %v5439_v50  ;;  %v11593_v22 = vcombine.low %v5467_v33, %v5471_v17  ;;  %v11601_v21 = vcombine.low %v5475_v37, %v5479_v38 }
 0x4ef   :  { %8803 = vmatprep.mubr.bf16.mxu0 %v13221_v58  ;;  %8936 = vmatpush1.bf16.msra.mxu1 %v11545_v41  ;;  %v5482_v41 = vld [vmem:[#allocation11 + $0x610] sm:$0xff] }
 0x4f0   :  { %8967 = vmatprep.mubr.bf16.mxu1 %v13221_v58  ;;  %8773 = vmatprep.subr.bf16.mxu0 %v11552_v13  ;;  %v11567_v58 = vcombine.low %v5442_v54, %v5446_v36  ;;  %v5486_v13 = vld [vmem:[#allocation11 + $0x630] sm:$0xff]  ;;  %v5495_v54 = vld [vmem:[#allocation11 + $0x678] sm:$0xff] }
 0x4f1   :  { %8937 = vmatprep.subr.bf16.mxu1 %v11554_v47  ;;  %v11599_v47 = vcombine.low %v5474_v62, %v5478_v12  ;;  %v11608_v50 = vcombine.high %v5482_v41, %v5486_v13  ;;  %v11607_v36 = vcombine.low %v5482_v41, %v5486_v13  ;;  %v5527_v62 = vld [vmem:[#allocation11 + $0x778] sm:$0xff] }
 0x4f2   :  { %8774 = vmatpush1.bf16.msra.mxu0 %v11551_v48  ;;  %v11610_v48 = vcombine.high %v5483_v42, %v5487_v45  ;;  %v5535_v41 = vld [vmem:[#allocation11 + $0x7b8] sm:$0xff] }
 0x4f3   :  { %8938 = vmatpush1.bf16.msra.mxu1 %v11553_v49  ;;  %8775 = vmatprep.subr.bf16.mxu0 %v11560_v29  ;;  %v5490_v49 = vld [vmem:[#allocation11 + $0x650] sm:$0xff] }
 0x4f4   :  { %8939 = vmatprep.subr.bf16.mxu1 %v11562_v51  ;;  %v5494_v29 = vld [vmem:[#allocation11 + $0x670] sm:$0xff]  ;;  %v5491_v51 = vld [vmem:[#allocation11 + $0x658] sm:$0xff] }
 0x4f5   :  { %v11616_v57 = vcombine.high %v5490_v49, %v5494_v29  ;;  %v11615_v52 = vcombine.low %v5490_v49, %v5494_v29  ;;  %v11617_v44 = vcombine.low %v5491_v51, %v5495_v54  ;;  %v5543_v49 = vld [vmem:[#allocation11 + $0x7f8] sm:$0xff] }
 0x4f6   :  { %8776 = vmatpush1.bf16.msra.mxu0 %v11559_v59  ;;  %v11618_v59 = vcombine.high %v5491_v51, %v5495_v54 }
 0x4f7   :  { %8940 = vmatpush1.bf16.msra.mxu1 %v11561_v55  ;;  %8777 = vmatprep.subr.bf16.mxu0 %v11568_v10  ;;  %v5498_v55 = vld [vmem:[#allocation11 + $0x690] sm:$0xff] }
 0x4f8   :  { %8941 = vmatprep.subr.bf16.mxu1 %v11570_v60  ;;  %v5502_v10 = vld [vmem:[#allocation11 + $0x6b0] sm:$0xff]  ;;  %v5499_v60 = vld [vmem:[#allocation11 + $0x698] sm:$0xff] }
 0x4f9   :  { %v11624_v1 = vcombine.high %v5498_v55, %v5502_v10  ;;  %v11623_v5 = vcombine.low %v5498_v55, %v5502_v10  ;;  %v11625_v0 = vcombine.low %v5499_v60, %v5503_v63  ;;  %v5551_v55 = vld [vmem:[#allocation11 + $0x838] sm:$0xff] }
 0x4fa   :  { %8778 = vmatpush1.bf16.msra.mxu0 %v11567_v58  ;;  %v11626_v58 = vcombine.high %v5499_v60, %v5503_v63 }
 0x4fb   :  { %8942 = vmatpush1.bf16.msra.mxu1 %v11569_v2  ;;  %8779 = vmatprep.subr.bf16.mxu0 %v11576_v3  ;;  %v5506_v2 = vld [vmem:[#allocation11 + $0x6d0] sm:$0xff] }
 0x4fc   :  { %8943 = vmatprep.subr.bf16.mxu1 %v11578_v4  ;;  %v5510_v3 = vld [vmem:[#allocation11 + $0x6f0] sm:$0xff]  ;;  %v5507_v4 = vld [vmem:[#allocation11 + $0x6d8] sm:$0xff] }
 0x4fd   :  { %v11632_v8 = vcombine.high %v5506_v2, %v5510_v3  ;;  %v11631_v31 = vcombine.low %v5506_v2, %v5510_v3  ;;  %v11633_v33 = vcombine.low %v5507_v4, %v5511_v43  ;;  %v5555_v2 = vld [vmem:[#allocation11 + $0x858] sm:$0xff] }
 0x4fe   :  { %8780 = vmatpush1.bf16.msra.mxu0 %v11575_v7  ;;  %v11634_v7 = vcombine.high %v5507_v4, %v5511_v43  ;;  %v5559_v3 = vld [vmem:[#allocation11 + $0x878] sm:$0xff] }
 0x4ff   :  { %8944 = vmatpush1.bf16.msra.mxu1 %v11577_v28  ;;  %8781 = vmatprep.subr.bf16.mxu0 %v11584_v11  ;;  %v5514_v28 = vld [vmem:[#allocation11 + $0x710] sm:$0xff] }
 0x500   :  { %8945 = vmatprep.subr.bf16.mxu1 %v11586_v14  ;;  %v5518_v11 = vld [vmem:[#allocation11 + $0x730] sm:$0xff]  ;;  %v5515_v14 = vld [vmem:[#allocation11 + $0x718] sm:$0xff] }
 0x501   :  { %v11640_v17 = vcombine.high %v5514_v28, %v5518_v11  ;;  %v11639_v12 = vcombine.low %v5514_v28, %v5518_v11  ;;  %v11641_v37 = vcombine.low %v5515_v14, %v5519_v23  ;;  %v5567_v28 = vld [vmem:[#allocation11 + $0x8b8] sm:$0xff] }
 0x502   :  { %8782 = vmatpush1.bf16.msra.mxu0 %v11583_v25  ;;  %v11642_v25 = vcombine.high %v5515_v14, %v5519_v23  ;;  %v11681_v14 = vcombine.low %v5555_v2, %v5559_v3 }
 0x503   :  { %8946 = vmatpush1.bf16.msra.mxu1 %v11585_v26  ;;  %8783 = vmatprep.subr.bf16.mxu0 %v11592_v40  ;;  %v5522_v26 = vld [vmem:[#allocation11 + $0x750] sm:$0xff] }
 0x504   :  { %8947 = vmatprep.subr.bf16.mxu1 %v11594_v30  ;;  %v5526_v40 = vld [vmem:[#allocation11 + $0x770] sm:$0xff]  ;;  %v5523_v30 = vld [vmem:[#allocation11 + $0x758] sm:$0xff] }
 0x505   :  { %v11648_v38 = vcombine.high %v5522_v26, %v5526_v40  ;;  %v11647_v13 = vcombine.low %v5522_v26, %v5526_v40  ;;  %v11649_v42 = vcombine.low %v5523_v30, %v5527_v62  ;;  %v5575_v26 = vld [vmem:[#allocation11 + $0x8f8] sm:$0xff] }
 0x506   :  { %8784 = vmatpush1.bf16.msra.mxu0 %v11591_v53  ;;  %v11650_v53 = vcombine.high %v5523_v30, %v5527_v62 }
 0x507   :  { %8948 = vmatpush1.bf16.msra.mxu1 %v11593_v22  ;;  %8785 = vmatprep.subr.bf16.mxu0 %v11600_v39  ;;  %v5530_v22 = vld [vmem:[#allocation11 + $0x790] sm:$0xff] }
 0x508   :  { %8949 = vmatprep.subr.bf16.mxu1 %v11602_v46  ;;  %v5534_v39 = vld [vmem:[#allocation11 + $0x7b0] sm:$0xff]  ;;  %v5531_v46 = vld [vmem:[#allocation11 + $0x798] sm:$0xff] }
 0x509   :  { %v11656_v45 = vcombine.high %v5530_v22, %v5534_v39  ;;  %v11655_v29 = vcombine.low %v5530_v22, %v5534_v39  ;;  %v11657_v51 = vcombine.low %v5531_v46, %v5535_v41 }
 0x50a   :  { %8786 = vmatpush1.bf16.msra.mxu0 %v11599_v47  ;;  %v11658_v47 = vcombine.high %v5531_v46, %v5535_v41  ;;  %v5586_v41 = vld [vmem:[#allocation11 + $0x950] sm:$0xff] }
 0x50b   :  { %8950 = vmatpush1.bf16.msra.mxu1 %v11601_v21  ;;  %8787 = vmatprep.subr.bf16.mxu0 %v11608_v50  ;;  %v5538_v21 = vld [vmem:[#allocation11 + $0x7d0] sm:$0xff] }
 0x50c   :  { %8951 = vmatprep.subr.bf16.mxu1 %v11610_v48  ;;  %v5542_v50 = vld [vmem:[#allocation11 + $0x7f0] sm:$0xff]  ;;  %v5539_v48 = vld [vmem:[#allocation11 + $0x7d8] sm:$0xff] }
 0x50d   :  { %v11664_v54 = vcombine.high %v5538_v21, %v5542_v50  ;;  %v11663_v10 = vcombine.low %v5538_v21, %v5542_v50  ;;  %v11665_v60 = vcombine.low %v5539_v48, %v5543_v49 }
 0x50e   :  { %8788 = vmatpush1.bf16.msra.mxu0 %v11607_v36  ;;  %v11666_v36 = vcombine.high %v5539_v48, %v5543_v49  ;;  %v5594_v49 = vld [vmem:[#allocation11 + $0x990] sm:$0xff] }
 0x50f   :  { %8952 = vmatpush1.bf16.msra.mxu1 %v11609_v56  ;;  %8789 = vmatprep.subr.bf16.mxu0 %v11616_v57  ;;  %v5546_v56 = vld [vmem:[#allocation11 + $0x810] sm:$0xff] }
 0x510   :  { %8953 = vmatprep.subr.bf16.mxu1 %v11618_v59  ;;  %v5550_v57 = vld [vmem:[#allocation11 + $0x830] sm:$0xff]  ;;  %v5547_v59 = vld [vmem:[#allocation11 + $0x818] sm:$0xff] }
 0x511   :  { %v11672_v63 = vcombine.high %v5546_v56, %v5550_v57  ;;  %v11673_v4 = vcombine.low %v5547_v59, %v5551_v55 }
 0x512   :  { %8790 = vmatpush1.bf16.msra.mxu0 %v11615_v52  ;;  %v11674_v52 = vcombine.high %v5547_v59, %v5551_v55  ;;  %v5602_v55 = vld [vmem:[#allocation11 + $0x9d0] sm:$0xff] }
 0x513   :  { %8954 = vmatpush1.bf16.msra.mxu1 %v11617_v44  ;;  %8791 = vmatprep.subr.bf16.mxu0 %v11624_v1  ;;  %v5554_v44 = vld [vmem:[#allocation11 + $0x850] sm:$0xff] }
 0x514   :  { %8955 = vmatprep.subr.bf16.mxu1 %v11626_v58  ;;  %v5558_v1 = vld [vmem:[#allocation11 + $0x870] sm:$0xff]  ;;  %v11671_v58 = vcombine.low %v5546_v56, %v5550_v57 }
 0x515   :  { %v11680_v43 = vcombine.high %v5554_v44, %v5558_v1  ;;  %v11679_v11 = vcombine.low %v5554_v44, %v5558_v1 }
 0x516   :  { %8792 = vmatpush1.bf16.msra.mxu0 %v11623_v5  ;;  %v5562_v5 = vld [vmem:[#allocation11 + $0x890] sm:$0xff] }
 0x517   :  { %8956 = vmatpush1.bf16.msra.mxu1 %v11625_v0  ;;  %8793 = vmatprep.subr.bf16.mxu0 %v11632_v8  ;;  %v5566_v0 = vld [vmem:[#allocation11 + $0x8b0] sm:$0xff]  ;;  %v11682_v8 = vcombine.high %v5555_v2, %v5559_v3 }
 0x518   :  { %8957 = vmatprep.subr.bf16.mxu1 %v11634_v7  ;;  %v5563_v7 = vld [vmem:[#allocation11 + $0x898] sm:$0xff]  ;;  %v11688_v23 = vcombine.high %v5562_v5, %v5566_v0  ;;  %v11687_v40 = vcombine.low %v5562_v5, %v5566_v0  ;;  %v5610_v2 = vld [vmem:[#allocation11 + $0xa10] sm:$0xff] }
 0x519   :  { %v5614_v3 = vld [vmem:[#allocation11 + $0xa30] sm:$0xff] }
 0x51a   :  { %8794 = vmatpush1.bf16.msra.mxu0 %v11631_v31  ;;  %v11690_v31 = vcombine.high %v5563_v7, %v5567_v28 }
 0x51b   :  { %8958 = vmatpush1.bf16.msra.mxu1 %v11633_v33  ;;  %8795 = vmatprep.subr.bf16.mxu0 %v11640_v17  ;;  %v5570_v33 = vld [vmem:[#allocation11 + $0x8d0] sm:$0xff] }
 0x51c   :  { %8959 = vmatprep.subr.bf16.mxu1 %v11642_v25  ;;  %v5574_v17 = vld [vmem:[#allocation11 + $0x8f0] sm:$0xff]  ;;  %v5571_v25 = vld [vmem:[#allocation11 + $0x8d8] sm:$0xff] }
 0x51d   :  { %v11696_v30 = vcombine.high %v5570_v33, %v5574_v17  ;;  %v11698_v62 = vcombine.high %v5571_v25, %v5575_v26  ;;  %v11697_v22 = vcombine.low %v5571_v25, %v5575_v26  ;;  %v5626_v26 = vld [vmem:[#allocation11 + $0xa90] sm:$0xff] }
 0x51e   :  { %8796 = vmatpush1.bf16.msra.mxu0 %v11639_v12  ;;  %v5578_v12 = vld [vmem:[#allocation11 + $0x910] sm:$0xff] }
 0x51f   :  { %8960 = vmatpush1.bf16.msra.mxu1 %v11641_v37  ;;  %8797 = vmatprep.subr.bf16.mxu0 %v11648_v38  ;;  %v5582_v37 = vld [vmem:[#allocation11 + $0x930] sm:$0xff]  ;;  %v5579_v38 = vld [vmem:[#allocation11 + $0x918] sm:$0xff] }
 0x520   :  { %8961 = vmatprep.subr.bf16.mxu1 %v11650_v53  ;;  %v5583_v53 = vld [vmem:[#allocation11 + $0x938] sm:$0xff]  ;;  %v11704_v39 = vcombine.high %v5578_v12, %v5582_v37 }
 0x521   :  { %v11706_v46 = vcombine.high %v5579_v38, %v5583_v53  ;;  %v11705_v21 = vcombine.low %v5579_v38, %v5583_v53  ;;  %v5634_v53 = vld [vmem:[#allocation11 + $0xad0] sm:$0xff] }
 0x522   :  { %8798 = vmatpush1.bf16.msra.mxu0 %v11647_v13  ;;  %v5590_v13 = vld [vmem:[#allocation11 + $0x970] sm:$0xff] }
 0x523   :  { %8962 = vmatpush1.bf16.msra.mxu1 %v11649_v42  ;;  %8799 = vmatprep.subr.bf16.mxu0 %v11656_v45  ;;  %v5587_v42 = vld [vmem:[#allocation11 + $0x958] sm:$0xff]  ;;  %v11712_v50 = vcombine.high %v5586_v41, %v5590_v13 }
 0x524   :  { %8963 = vmatprep.subr.bf16.mxu1 %v11658_v47  ;;  %v5591_v45 = vld [vmem:[#allocation11 + $0x978] sm:$0xff]  ;;  %v11703_v47 = vcombine.low %v5578_v12, %v5582_v37 }
 0x525   :  { %v11714_v48 = vcombine.high %v5587_v42, %v5591_v45  ;;  %v11713_v56 = vcombine.low %v5587_v42, %v5591_v45  ;;  %v5642_v45 = vld [vmem:[#allocation11 + $0xb10] sm:$0xff] }
 0x526   :  { %8800 = vmatpush1.bf16.msra.mxu0 %v11655_v29  ;;  %v5598_v29 = vld [vmem:[#allocation11 + $0x9b0] sm:$0xff] }
 0x527   :  { %8964 = vmatpush1.bf16.msra.mxu1 %v11657_v51  ;;  %8801 = vmatprep.subr.bf16.mxu0 %v11664_v54  ;;  %v5595_v51 = vld [vmem:[#allocation11 + $0x998] sm:$0xff]  ;;  %v11720_v57 = vcombine.high %v5594_v49, %v5598_v29 }
 0x528   :  { %8965 = vmatprep.subr.bf16.mxu1 %v11666_v36  ;;  %v5599_v54 = vld [vmem:[#allocation11 + $0x9b8] sm:$0xff]  ;;  %v11711_v36 = vcombine.low %v5586_v41, %v5590_v13 }
 0x529   :  { %v11722_v59 = vcombine.high %v5595_v51, %v5599_v54  ;;  %v11721_v44 = vcombine.low %v5595_v51, %v5599_v54  ;;  %v5650_v54 = vld [vmem:[#allocation11 + $0xb50] sm:$0xff] }
 0x52a   :  { %8802 = vmatpush1.bf16.msra.mxu0 %v11663_v10  ;;  %v5606_v10 = vld [vmem:[#allocation11 + $0x9f0] sm:$0xff] }
 0x52b   :  { %8966 = vmatpush1.bf16.msra.mxu1 %v11665_v60  ;;  %8812 = vmatprep.subr.bf16.mxu0 %v11672_v63  ;;  %v5603_v60 = vld [vmem:[#allocation11 + $0x9d8] sm:$0xff]  ;;  %v11728_v1 = vcombine.high %v5602_v55, %v5606_v10  ;;  %v11727_v5 = vcombine.low %v5602_v55, %v5606_v10 }
 0x52c   :  { %8976 = vmatprep.subr.bf16.mxu1 %v11674_v52  ;;  %v5607_v63 = vld [vmem:[#allocation11 + $0x9f8] sm:$0xff]  ;;  %v11719_v52 = vcombine.low %v5594_v49, %v5598_v29 }
 0x52d   :  { %8804 = vmatmul.mubr.bf16.vlgmr.msra.gmra.mrb[20].mxu0 %v13230_v24  ;;  %v11729_v0 = vcombine.low %v5603_v60, %v5607_v63 }
 0x52e   :  { %8968 = vmatmul.mubr.bf16.vlgmr.msra.gmra.mrb[24].mxu1 %v13230_v24  ;;  %8813 = vmatpush1.bf16.msra.mxu0 %v11671_v58  ;;  %v11689_v24 = vcombine.low %v5563_v7, %v5567_v28  ;;  %v11730_v58 = vcombine.high %v5603_v60, %v5607_v63  ;;  %v5618_v28 = vld [vmem:[#allocation11 + $0xa50] sm:$0xff] }
 0x52f   :  { %8844 = vmatprep.mubr.bf16.mxu0 %v13244_v6  ;;  %8977 = vmatpush1.bf16.msra.mxu1 %v11673_v4  ;;  %v5611_v4 = vld [vmem:[#allocation11 + $0xa18] sm:$0xff]  ;;  %v5658_v63 = vld [vmem:[#allocation11 + $0xb90] sm:$0xff] }
 0x530   :  { %9008 = vmatprep.mubr.bf16.mxu1 %v13244_v6  ;;  %8814 = vmatprep.subr.bf16.mxu0 %v11680_v43  ;;  %v11695_v6 = vcombine.low %v5570_v33, %v5574_v17  ;;  %v5615_v43 = vld [vmem:[#allocation11 + $0xa38] sm:$0xff] }
 0x531   :  { %8978 = vmatprep.subr.bf16.mxu1 %v11682_v8  ;;  %v11736_v8 = vcombine.high %v5610_v2, %v5614_v3  ;;  %v11738_v7 = vcombine.high %v5611_v4, %v5615_v43  ;;  %v11737_v33 = vcombine.low %v5611_v4, %v5615_v43  ;;  %v5666_v43 = vld [vmem:[#allocation11 + $0xbd0] sm:$0xff] }
 0x532   :  { %8815 = vmatpush1.bf16.msra.mxu0 %v11679_v11  ;;  %v5622_v11 = vld [vmem:[#allocation11 + $0xa70] sm:$0xff] }
 0x533   :  { %8979 = vmatpush1.bf16.msra.mxu1 %v11681_v14  ;;  %8816 = vmatprep.subr.bf16.mxu0 %v11688_v23  ;;  %v5619_v14 = vld [vmem:[#allocation11 + $0xa58] sm:$0xff]  ;;  %v11744_v17 = vcombine.high %v5618_v28, %v5622_v11 }
 0x534   :  { %8980 = vmatprep.subr.bf16.mxu1 %v11690_v31  ;;  %v5623_v23 = vld [vmem:[#allocation11 + $0xa78] sm:$0xff]  ;;  %v11735_v31 = vcombine.low %v5610_v2, %v5614_v3 }
 0x535   :  { %v11746_v25 = vcombine.high %v5619_v14, %v5623_v23  ;;  %v11745_v12 = vcombine.low %v5619_v14, %v5623_v23  ;;  %v5674_v23 = vld [vmem:[#allocation11 + $0xc10] sm:$0xff] }
 0x536   :  { %8817 = vmatpush1.bf16.msra.mxu0 %v11687_v40  ;;  %v5630_v40 = vld [vmem:[#allocation11 + $0xab0] sm:$0xff] }
 0x537   :  { %8981 = vmatpush1.bf16.msra.mxu1 %v11689_v24  ;;  %8818 = vmatprep.subr.bf16.mxu0 %v11696_v30  ;;  %v5627_v24 = vld [vmem:[#allocation11 + $0xa98] sm:$0xff]  ;;  %v11752_v37 = vcombine.high %v5626_v26, %v5630_v40 }
 0x538   :  { %8982 = vmatprep.subr.bf16.mxu1 %v11698_v62  ;;  %v5631_v30 = vld [vmem:[#allocation11 + $0xab8] sm:$0xff]  ;;  %v11743_v62 = vcombine.low %v5618_v28, %v5622_v11 }
 0x539   :  { %v11754_v38 = vcombine.high %v5627_v24, %v5631_v30  ;;  %v11753_v41 = vcombine.low %v5627_v24, %v5631_v30  ;;  %v5682_v30 = vld [vmem:[#allocation11 + $0xc50] sm:$0xff] }
 0x53a   :  { %8819 = vmatpush1.bf16.msra.mxu0 %v11695_v6  ;;  %v5638_v6 = vld [vmem:[#allocation11 + $0xaf0] sm:$0xff] }
 0x53b   :  { %8983 = vmatpush1.bf16.msra.mxu1 %v11697_v22  ;;  %8820 = vmatprep.subr.bf16.mxu0 %v11704_v39  ;;  %v5635_v22 = vld [vmem:[#allocation11 + $0xad8] sm:$0xff]  ;;  %v11760_v13 = vcombine.high %v5634_v53, %v5638_v6 }
 0x53c   :  { %8984 = vmatprep.subr.bf16.mxu1 %v11706_v46  ;;  %v5639_v39 = vld [vmem:[#allocation11 + $0xaf8] sm:$0xff]  ;;  %v11751_v46 = vcombine.low %v5626_v26, %v5630_v40 }
 0x53d   :  { %v11762_v42 = vcombine.high %v5635_v22, %v5639_v39  ;;  %v11761_v49 = vcombine.low %v5635_v22, %v5639_v39  ;;  %v5690_v22 = vld [vmem:[#allocation11 + $0xc90] sm:$0xff] }
 0x53e   :  { %8821 = vmatpush1.bf16.msra.mxu0 %v11703_v47  ;;  %v5646_v47 = vld [vmem:[#allocation11 + $0xb30] sm:$0xff] }
 0x53f   :  { %8985 = vmatpush1.bf16.msra.mxu1 %v11705_v21  ;;  %8822 = vmatprep.subr.bf16.mxu0 %v11712_v50  ;;  %v5643_v21 = vld [vmem:[#allocation11 + $0xb18] sm:$0xff]  ;;  %v11768_v29 = vcombine.high %v5642_v45, %v5646_v47  ;;  %v5694_v39 = vld [vmem:[#allocation11 + $0xcb0] sm:$0xff] }
 0x540   :  { %8986 = vmatprep.subr.bf16.mxu1 %v11714_v48  ;;  %v5647_v50 = vld [vmem:[#allocation11 + $0xb38] sm:$0xff]  ;;  %v11759_v48 = vcombine.low %v5634_v53, %v5638_v6 }
 0x541   :  { %v11770_v51 = vcombine.high %v5643_v21, %v5647_v50  ;;  %v11769_v55 = vcombine.low %v5643_v21, %v5647_v50  ;;  %v5698_v50 = vld [vmem:[#allocation11 + $0xcd0] sm:$0xff] }
 0x542   :  { %8823 = vmatpush1.bf16.msra.mxu0 %v11711_v36  ;;  %v5654_v36 = vld [vmem:[#allocation11 + $0xb70] sm:$0xff] }
 0x543   :  { %8987 = vmatpush1.bf16.msra.mxu1 %v11713_v56  ;;  %8824 = vmatprep.subr.bf16.mxu0 %v11720_v57  ;;  %v5651_v56 = vld [vmem:[#allocation11 + $0xb58] sm:$0xff]  ;;  %v11776_v10 = vcombine.high %v5650_v54, %v5654_v36 }
 0x544   :  { %8988 = vmatprep.subr.bf16.mxu1 %v11722_v59  ;;  %v5655_v57 = vld [vmem:[#allocation11 + $0xb78] sm:$0xff]  ;;  %v11767_v59 = vcombine.low %v5642_v45, %v5646_v47  ;;  %v11816_v47 = vcombine.high %v5690_v22, %v5694_v39 }
 0x545   :  { %v11778_v60 = vcombine.high %v5651_v56, %v5655_v57  ;;  %v11777_v2 = vcombine.low %v5651_v56, %v5655_v57  ;;  %v5706_v56 = vld [vmem:[#allocation11 + $0xd10] sm:$0xff] }
 0x546   :  { %8825 = vmatpush1.bf16.msra.mxu0 %v11719_v52  ;;  %v5662_v52 = vld [vmem:[#allocation11 + $0xbb0] sm:$0xff] }
 0x547   :  { %8989 = vmatpush1.bf16.msra.mxu1 %v11721_v44  ;;  %8826 = vmatprep.subr.bf16.mxu0 %v11728_v1  ;;  %v5659_v44 = vld [vmem:[#allocation11 + $0xb98] sm:$0xff]  ;;  %v11784_v3 = vcombine.high %v5658_v63, %v5662_v52  ;;  %v5710_v57 = vld [vmem:[#allocation11 + $0xd30] sm:$0xff] }
 0x548   :  { %8990 = vmatprep.subr.bf16.mxu1 %v11730_v58  ;;  %v5663_v1 = vld [vmem:[#allocation11 + $0xbb8] sm:$0xff]  ;;  %v11775_v58 = vcombine.low %v5650_v54, %v5654_v36 }
 0x549   :  { %v11786_v4 = vcombine.high %v5659_v44, %v5663_v1  ;;  %v11785_v28 = vcombine.low %v5659_v44, %v5663_v1  ;;  %v5718_v44 = vld [vmem:[#allocation11 + $0xd70] sm:$0xff]  ;;  %v5715_v1 = vld [vmem:[#allocation11 + $0xd58] sm:$0xff] }
 0x54a   :  { %8827 = vmatpush1.bf16.msra.mxu0 %v11727_v5  ;;  %v5670_v5 = vld [vmem:[#allocation11 + $0xbf0] sm:$0xff] }
 0x54b   :  { %8991 = vmatpush1.bf16.msra.mxu1 %v11729_v0  ;;  %8828 = vmatprep.subr.bf16.mxu0 %v11736_v8  ;;  %v5667_v0 = vld [vmem:[#allocation11 + $0xbd8] sm:$0xff]  ;;  %v11792_v11 = vcombine.high %v5666_v43, %v5670_v5 }
 0x54c   :  { %8992 = vmatprep.subr.bf16.mxu1 %v11738_v7  ;;  %v5671_v8 = vld [vmem:[#allocation11 + $0xbf8] sm:$0xff]  ;;  %v11783_v7 = vcombine.low %v5658_v63, %v5662_v52  ;;  %v5714_v52 = vld [vmem:[#allocation11 + $0xd50] sm:$0xff] }
 0x54d   :  { %v11794_v14 = vcombine.high %v5667_v0, %v5671_v8  ;;  %v11793_v26 = vcombine.low %v5667_v0, %v5671_v8  ;;  %v5726_v0 = vld [vmem:[#allocation11 + $0xdb0] sm:$0xff]  ;;  %v5723_v8 = vld [vmem:[#allocation11 + $0xd98] sm:$0xff] }
 0x54e   :  { %8829 = vmatpush1.bf16.msra.mxu0 %v11735_v31  ;;  %v5678_v31 = vld [vmem:[#allocation11 + $0xc30] sm:$0xff] }
 0x54f   :  { %8993 = vmatpush1.bf16.msra.mxu1 %v11737_v33  ;;  %8830 = vmatprep.subr.bf16.mxu0 %v11744_v17  ;;  %v5675_v33 = vld [vmem:[#allocation11 + $0xc18] sm:$0xff]  ;;  %v11800_v40 = vcombine.high %v5674_v23, %v5678_v31 }
 0x550   :  { %8994 = vmatprep.subr.bf16.mxu1 %v11746_v25  ;;  %v5679_v17 = vld [vmem:[#allocation11 + $0xc38] sm:$0xff]  ;;  %v11791_v25 = vcombine.low %v5666_v43, %v5670_v5  ;;  %v5722_v5 = vld [vmem:[#allocation11 + $0xd90] sm:$0xff] }
 0x551   :  { %v11802_v24 = vcombine.high %v5675_v33, %v5679_v17  ;;  %v11801_v53 = vcombine.low %v5675_v33, %v5679_v17  ;;  %v5730_v17 = vld [vmem:[#allocation11 + $0xdd0] sm:$0xff] }
 0x552   :  { %8831 = vmatpush1.bf16.msra.mxu0 %v11743_v62  ;;  %v5686_v62 = vld [vmem:[#allocation11 + $0xc70] sm:$0xff] }
 0x553   :  { %8995 = vmatpush1.bf16.msra.mxu1 %v11745_v12  ;;  %8832 = vmatprep.subr.bf16.mxu0 %v11752_v37  ;;  %v11799_v12 = vcombine.low %v5674_v23, %v5678_v31  ;;  %v5683_v37 = vld [vmem:[#allocation11 + $0xc58] sm:$0xff]  ;;  %v11808_v6 = vcombine.high %v5682_v30, %v5686_v62 }
 0x554   :  { %8996 = vmatprep.subr.bf16.mxu1 %v11754_v38  ;;  %v5687_v38 = vld [vmem:[#allocation11 + $0xc78] sm:$0xff] }
 0x555   :  { %v11809_v45 = vcombine.low %v5683_v37, %v5687_v38 }
 0x556   :  { %8833 = vmatpush1.bf16.msra.mxu0 %v11751_v46  ;;  %v11810_v46 = vcombine.high %v5683_v37, %v5687_v38  ;;  %v11847_v37 = vcombine.low %v5722_v5, %v5726_v0 }
 0x557   :  { %8997 = vmatpush1.bf16.msra.mxu1 %v11753_v41  ;;  %8834 = vmatprep.subr.bf16.mxu0 %v11760_v13  ;;  %v5691_v41 = vld [vmem:[#allocation11 + $0xc98] sm:$0xff] }
 0x558   :  { %8998 = vmatprep.subr.bf16.mxu1 %v11762_v42  ;;  %v5695_v13 = vld [vmem:[#allocation11 + $0xcb8] sm:$0xff]  ;;  %v11807_v42 = vcombine.low %v5682_v30, %v5686_v62 }
 0x559   :  { %v11818_v21 = vcombine.high %v5691_v41, %v5695_v13  ;;  %v5735_v30 = vld [vmem:[#allocation11 + $0xdf8] sm:$0xff] }
 0x55a   :  { %8835 = vmatpush1.bf16.msra.mxu0 %v11759_v48  ;;  %v5702_v48 = vld [vmem:[#allocation11 + $0xcf0] sm:$0xff] }
 0x55b   :  { %8999 = vmatpush1.bf16.msra.mxu1 %v11761_v49  ;;  %8836 = vmatprep.subr.bf16.mxu0 %v11768_v29  ;;  %v5699_v49 = vld [vmem:[#allocation11 + $0xcd8] sm:$0xff]  ;;  %v11824_v54 = vcombine.high %v5698_v50, %v5702_v48 }
 0x55c   :  { %9000 = vmatprep.subr.bf16.mxu1 %v11770_v51  ;;  %v5703_v29 = vld [vmem:[#allocation11 + $0xcf8] sm:$0xff]  ;;  %v11815_v51 = vcombine.low %v5690_v22, %v5694_v39 }
 0x55d   :  { %v11826_v36 = vcombine.high %v5699_v49, %v5703_v29 }
 0x55e   :  { %8837 = vmatpush1.bf16.msra.mxu0 %v11767_v59  ;;  %v5707_v59 = vld [vmem:[#allocation11 + $0xd18] sm:$0xff] }
 0x55f   :  { %9001 = vmatpush1.bf16.msra.mxu1 %v11769_v55  ;;  %8838 = vmatprep.subr.bf16.mxu0 %v11776_v10  ;;  %v5711_v55 = vld [vmem:[#allocation11 + $0xd38] sm:$0xff]  ;;  %v11825_v10 = vcombine.low %v5699_v49, %v5703_v29  ;;  %v5750_v49 = vld [vmem:[#allocation11 + $0xe70] sm:$0xff] }
 0x560   :  { %9002 = vmatprep.subr.bf16.mxu1 %v11778_v60  ;;  %v11832_v60 = vcombine.high %v5706_v56, %v5710_v57  ;;  %v11834_v63 = vcombine.high %v5707_v59, %v5711_v55  ;;  %v5747_v29 = vld [vmem:[#allocation11 + $0xe58] sm:$0xff] }
 0x562   :  { %8839 = vmatpush1.bf16.msra.mxu0 %v11775_v58  ;;  %v5719_v58 = vld [vmem:[#allocation11 + $0xd78] sm:$0xff] }
 0x563   :  { %9003 = vmatpush1.bf16.msra.mxu1 %v11777_v2  ;;  %8840 = vmatprep.subr.bf16.mxu0 %v11784_v3  ;;  %v11831_v2 = vcombine.low %v5706_v56, %v5710_v57  ;;  %v11833_v3 = vcombine.low %v5707_v59, %v5711_v55  ;;  %v11842_v43 = vcombine.high %v5715_v1, %v5719_v58  ;;  %v5754_v57 = vld [vmem:[#allocation11 + $0xe90] sm:$0xff]  ;;  %v5755_v55 = vld [vmem:[#allocation11 + $0xe98] sm:$0xff] }
 0x564   :  { %9004 = vmatprep.subr.bf16.mxu1 %v11786_v4  ;;  %v11840_v4 = vcombine.high %v5714_v52, %v5718_v44  ;;  %v5758_v59 = vld [vmem:[#allocation11 + $0xeb0] sm:$0xff] }
 0x566   :  { %8841 = vmatpush1.bf16.msra.mxu0 %v11783_v7  ;;  %v5727_v7 = vld [vmem:[#allocation11 + $0xdb8] sm:$0xff] }
 0x567   :  { %9005 = vmatpush1.bf16.msra.mxu1 %v11785_v28  ;;  %8842 = vmatprep.subr.bf16.mxu0 %v11792_v11  ;;  %v11839_v28 = vcombine.low %v5714_v52, %v5718_v44  ;;  %v11841_v11 = vcombine.low %v5715_v1, %v5719_v58  ;;  %v11850_v33 = vcombine.high %v5723_v8, %v5727_v7  ;;  %v5762_v44 = vld [vmem:[#allocation11 + $0xed0] sm:$0xff]  ;;  %v5763_v58 = vld [vmem:[#allocation11 + $0xed8] sm:$0xff] }
 0x568   :  { %9006 = vmatprep.subr.bf16.mxu1 %v11794_v14  ;;  %v11848_v14 = vcombine.high %v5722_v5, %v5726_v0  ;;  %v5766_v1 = vld [vmem:[#allocation11 + $0xef0] sm:$0xff] }
 0x569   :  { %v5770_v0 = vld [vmem:[#allocation11 + $0xf10] sm:$0xff] }
 0x56a   :  { %8843 = vmatpush1.bf16.msra.mxu0 %v11791_v25  ;;  %v5734_v25 = vld [vmem:[#allocation11 + $0xdf0] sm:$0xff] }
 0x56b   :  { %9007 = vmatpush1.bf16.msra.mxu1 %v11793_v26  ;;  %8853 = vmatprep.subr.bf16.mxu0 %v11800_v40  ;;  %v11856_v22 = vcombine.high %v5730_v17, %v5734_v25 }
 0x56c   :  { %9017 = vmatprep.subr.bf16.mxu1 %v11802_v24  ;;  %v5731_v24 = vld [vmem:[#allocation11 + $0xdd8] sm:$0xff] }
 0x56d   :  { %8845 = vmatmul.mubr.bf16.vlgmr.msra.gmra.mrb[20].mxu0 %v13246_v9  ;;  %v11858_v39 = vcombine.high %v5731_v24, %v5735_v30 }
 0x56e   :  { %9009 = vmatmul.mubr.bf16.vlgmr.msra.gmra.mrb[24].mxu1 %v13246_v9  ;;  %8854 = vmatpush1.bf16.msra.mxu0 %v11799_v12  ;;  %v11817_v9 = vcombine.low %v5691_v41, %v5695_v13  ;;  %v5742_v41 = vld [vmem:[#allocation11 + $0xe30] sm:$0xff]  ;;  %v5739_v13 = vld [vmem:[#allocation11 + $0xe18] sm:$0xff] }
 0x56f   :  { %8885 = vmatprep.mubr.bf16.mxu0 %v13250_v19  ;;  %9018 = vmatpush1.bf16.msra.mxu1 %v11801_v53 }
 0x570   :  { %9049 = vmatprep.mubr.bf16.mxu1 %v13250_v19  ;;  %8855 = vmatprep.subr.bf16.mxu0 %v11808_v6  ;;  %v11823_v19 = vcombine.low %v5698_v50, %v5702_v48  ;;  %v11849_v6 = vcombine.low %v5723_v8, %v5727_v7  ;;  %v5746_v48 = vld [vmem:[#allocation11 + $0xe50] sm:$0xff]  ;;  %v5771_v7 = vld [vmem:[#allocation11 + $0xf18] sm:$0xff] }
 0x571   :  { %9019 = vmatprep.subr.bf16.mxu1 %v11810_v46  ;;  %v5738_v46 = vld [vmem:[#allocation11 + $0xe10] sm:$0xff] }
 0x572   :  { %8856 = vmatpush1.bf16.msra.mxu0 %v11807_v42  ;;  %v5743_v42 = vld [vmem:[#allocation11 + $0xe38] sm:$0xff]  ;;  %v5774_v8 = vld [vmem:[#allocation11 + $0xf30] sm:$0xff] }
 0x573   :  { %9020 = vmatpush1.bf16.msra.mxu1 %v11809_v45  ;;  %8857 = vmatprep.subr.bf16.mxu0 %v11816_v47  ;;  %v11855_v45 = vcombine.low %v5730_v17, %v5734_v25  ;;  %v11857_v47 = vcombine.low %v5731_v24, %v5735_v30  ;;  %v11866_v50 = vcombine.high %v5739_v13, %v5743_v42  ;;  %v5778_v25 = vld [vmem:[#allocation11 + $0xf50] sm:$0xff]  ;;  %v5779_v30 = vld [vmem:[#allocation11 + $0xf58] sm:$0xff] }
 0x574   :  { %9021 = vmatprep.subr.bf16.mxu1 %v11818_v21  ;;  %v11864_v21 = vcombine.high %v5738_v46, %v5742_v41  ;;  %v5782_v24 = vld [vmem:[#allocation11 + $0xf70] sm:$0xff] }
 0x576   :  { %8858 = vmatpush1.bf16.msra.mxu0 %v11815_v51  ;;  %v5751_v51 = vld [vmem:[#allocation11 + $0xe78] sm:$0xff] }
 0x577   :  { %9022 = vmatpush1.bf16.msra.mxu1 %v11817_v9  ;;  %8859 = vmatprep.subr.bf16.mxu0 %v11824_v54  ;;  %v11863_v9 = vcombine.low %v5738_v46, %v5742_v41  ;;  %v11865_v54 = vcombine.low %v5739_v13, %v5743_v42  ;;  %v11874_v56 = vcombine.high %v5747_v29, %v5751_v51  ;;  %v5791_v46 = vld [vmem:[#allocation11 + $0xfb8] sm:$0xff]  ;;  %v13285_v41 = vld [vmem:[#allocation13] sm:$0xff] }
 0x578   :  { %9023 = vmatprep.subr.bf16.mxu1 %v11826_v36  ;;  %v11872_v36 = vcombine.high %v5746_v48, %v5750_v49  ;;  %v11903_v13 = vcombine.low %v5778_v25, %v5782_v24 }
 0x57a   :  { %8860 = vmatpush1.bf16.msra.mxu0 %v11823_v19  ;;  %v5759_v19 = vld [vmem:[#allocation11 + $0xeb8] sm:$0xff] }
 0x57b   :  { %9024 = vmatpush1.bf16.msra.mxu1 %v11825_v10  ;;  %8861 = vmatprep.subr.bf16.mxu0 %v11832_v60  ;;  %v11871_v10 = vcombine.low %v5746_v48, %v5750_v49  ;;  %v11873_v60 = vcombine.low %v5747_v29, %v5751_v51  ;;  %v11882_v52 = vcombine.high %v5755_v55, %v5759_v19  ;;  %v5795_v49 = vld [vmem:[#allocation11 + $0xfd8] sm:$0xff] }
 0x57c   :  { %9025 = vmatprep.subr.bf16.mxu1 %v11834_v63  ;;  %v11880_v63 = vcombine.high %v5754_v57, %v5758_v59  ;;  %v5809_v48 = vrot.slane %v13285_v41, %v13099_v32  ;;  %v5799_v29 = vld [vmem:[#allocation11 + $0xff8] sm:$0xff] }
 0x57e   :  { %8862 = vmatpush1.bf16.msra.mxu0 %v11831_v2  ;;  %v5767_v2 = vld [vmem:[#allocation11 + $0xef8] sm:$0xff] }
 0x57f   :  { %9026 = vmatpush1.bf16.msra.mxu1 %v11833_v3  ;;  %8863 = vmatprep.subr.bf16.mxu0 %v11840_v4  ;;  %v11879_v3 = vcombine.low %v5754_v57, %v5758_v59  ;;  %v11881_v4 = vcombine.low %v5755_v55, %v5759_v19  ;;  %v11890_v5 = vcombine.high %v5763_v58, %v5767_v2  ;;  %v12371_v55 = vld [vmem:[#allocation14 + $0x4] ss:$12 sps:$4 sm:$0xff]   ;;  %v12372_v19 = vld [vmem:[#allocation14 + $0xc8] ss:$12 sps:$4 sm:$0xff]  }
 0x580   :  { %v13277_v23 = vpop.f32.mrb[16].mxu0  ;;  %v13279_v31 = vpop.f32.mrb[20].mxu1  ;;  %9027 = vmatprep.subr.bf16.mxu1 %v11842_v43  ;;  %v11888_v43 = vcombine.high %v5762_v44, %v5766_v1  ;;  %v11921_v59 = vcombine.low %v5795_v49, %v5799_v29 }
 0x581   :  { %v13281_v26 = vpop.f32.mrb[17].mxu0  ;;  %v13283_v40 = vpop.f32.mrb[21].mxu1 }
 0x582   :  { %v8563_v62 = vpop.f32.mrb[18].mxu0  ;;  %v8727_v12 = vpop.f32.mrb[22].mxu1  ;;  %8864 = vmatpush1.bf16.msra.mxu0 %v11839_v28  ;;  %v5775_v28 = vld [vmem:[#allocation11 + $0xf38] sm:$0xff] }
 0x583   :  { %9028 = vmatpush1.bf16.msra.mxu1 %v11841_v11  ;;  %v8564_v38 = vpop.f32.mrb[19].mxu0  ;;  %v8728_v53 = vpop.f32.mrb[23].mxu1  ;;  %8865 = vmatprep.subr.bf16.mxu0 %v11848_v14  ;;  %v11887_v11 = vcombine.low %v5762_v44, %v5766_v1  ;;  %v11889_v14 = vcombine.low %v5763_v58, %v5767_v2  ;;  %v11898_v17 = vcombine.high %v5771_v7, %v5775_v28  ;;  %v5783_v62 = vld [vmem:[#allocation11 + $0xf78] sm:$0xff]  ;;  %v12374_v1 = vld [vmem:[#allocation14 + $0x18] ss:$12 sps:$4 sm:$0xff]  }
 0x584   :  { %9029 = vmatprep.subr.bf16.mxu1 %v11850_v33  ;;  %v11896_v33 = vcombine.high %v5770_v0, %v5774_v8  ;;  %v11895_v12 = vcombine.low %v5770_v0, %v5774_v8  ;;  %v11904_v38 = vcombine.high %v5778_v25, %v5782_v24  ;;  %v11906_v53 = vcombine.high %v5779_v30, %v5783_v62  ;;  %v12378_v58 = vld [vmem:[#allocation14 + $0x20] ss:$12 sps:$4 sm:$0xff]   ;;  %v12387_v0 = vld [vmem:[#allocation14 + $0x110] ss:$12 sps:$4 sm:$0xff]   ;;  %v12394_v25 = vld [vmem:[#allocation14 + $0x78] ss:$12 sps:$4 sm:$0xff]  }
 0x585   :  { %v11905_v42 = vcombine.low %v5779_v30, %v5783_v62  ;;  %v12381_v2 = vld [vmem:[#allocation14 + $0x34] ss:$12 sps:$4 sm:$0xff]   ;;  %v12388_v8 = vld [vmem:[#allocation14 + $0x50] ss:$12 sps:$4 sm:$0xff]   ;;  %v5805_v62 = vrot.slane %v13285_v41, %v13094_v27 }
 0x586   :  { %8866 = vmatpush1.bf16.msra.mxu0 %v11847_v37  ;;  %v11897_v37 = vcombine.low %v5771_v7, %v5775_v28  ;;  %v12391_v7 = vld [vmem:[#allocation14 + $0x64] ss:$12 sps:$4 sm:$0xff]   ;;  %v12392_v28 = vld [vmem:[#allocation14 + $0x128] ss:$12 sps:$4 sm:$0xff]   ;;  %v12398_v24 = vld [vmem:[#allocation14 + $0x80] ss:$12 sps:$4 sm:$0xff]  }
 0x587   :  { %9030 = vmatpush1.bf16.msra.mxu1 %v11849_v6  ;;  %8867 = vmatprep.subr.bf16.mxu0 %v11856_v22  ;;  %v5786_v6 = vld [vmem:[#allocation11 + $0xf90] sm:$0xff]  ;;  %v12401_v30 = vld [vmem:[#allocation14 + $0x94] ss:$12 sps:$4 sm:$0xff]  }
 0x588   :  { %9031 = vmatprep.subr.bf16.mxu1 %v11858_v39  ;;  %v5790_v22 = vld [vmem:[#allocation11 + $0xfb0] sm:$0xff]  ;;  %v5787_v39 = vld [vmem:[#allocation11 + $0xf98] sm:$0xff] }
 0x589   :  { %v11911_v51 = vcombine.low %v5786_v6, %v5790_v22 }
 0x58a   :  { %8868 = vmatpush1.bf16.msra.mxu0 %v11855_v45  ;;  %v11912_v45 = vcombine.high %v5786_v6, %v5790_v22  ;;  %v12406_v6 = vld [vmem:[#allocation14 + $0xac] ss:$12 sps:$4 sm:$0xff]   ;;  %v12224_v22 = vadd.f32 %v13277_v23, %v5805_v62 }
 0x58b   :  { %9032 = vmatpush1.bf16.msra.mxu1 %v11857_v47  ;;  %8869 = vmatprep.subr.bf16.mxu0 %v11864_v21  ;;  %v11914_v47 = vcombine.high %v5787_v39, %v5791_v46  ;;  %v5794_v21 = vld [vmem:[#allocation11 + $0xfd0] sm:$0xff] }
 0x58c   :  { %9033 = vmatprep.subr.bf16.mxu1 %v11866_v50  ;;  %v5798_v50 = vld [vmem:[#allocation11 + $0xff0] sm:$0xff] }
 0x58d   :  { %v11919_v57 = vcombine.low %v5794_v21, %v5798_v50  ;;  %v12529_v62 = vld [vmem:[#allocation14 + $0x3e0] ss:$12 sps:$4 sm:$0xff]  }
 0x58e   :  { %8870 = vmatpush1.bf16.msra.mxu0 %v11863_v9  ;;  %v11913_v9 = vcombine.low %v5787_v39, %v5791_v46  ;;  %v12407_v39 = vld [vmem:[#allocation14 + $0x170] ss:$12 sps:$4 sm:$0xff]  }
 0x58f   :  { %9034 = vmatpush1.bf16.msra.mxu1 %v11865_v54  ;;  %8871 = vmatprep.subr.bf16.mxu0 %v11872_v36  ;;  %v11920_v54 = vcombine.high %v5794_v21, %v5798_v50  ;;  %v11922_v36 = vcombine.high %v5795_v49, %v5799_v29  ;;  %v12409_v50 = vld [vmem:[#allocation14 + $0xc0] ss:$12 sps:$4 sm:$0xff]   ;;  %v12416_v49 = vld [vmem:[#allocation14 + $0xdc] ss:$12 sps:$4 sm:$0xff]  }
 0x590   :  { %9035 = vmatprep.subr.bf16.mxu1 %v11874_v56  ;;  %v12225_v56 = vadd.f32 %v13281_v26, %v5809_v48  ;;  %v12377_v26 = vld [vmem:[#allocation14 + $0xe0] ss:$12 sps:$4 sm:$0xff]   ;;  %v12413_v48 = vld [vmem:[#allocation14 + $0x188] ss:$12 sps:$4 sm:$0xff]  }
 0x592   :  { %8872 = vmatpush1.bf16.msra.mxu0 %v11871_v10  ;;  %v9059_v10 = vmax.f32 %v12225_v56, 0.0  ;;  %v12419_v56 = vld [vmem:[#allocation14 + $0xf0] ss:$12 sps:$4 sm:$0xff]  }
 0x593   :  { %9036 = vmatpush1.bf16.msra.mxu1 %v11873_v60  ;;  %8873 = vmatprep.subr.bf16.mxu0 %v11880_v63  ;;  %v12369_v60 = vld [vmem:[#allocation14] ss:$12 sps:$4 sm:$0xff]   ;;  %v12373_v63 = vld [vmem:[#allocation14 + $0x8] ss:$12 sps:$4 sm:$0xff]  }
 0x594   :  { %9037 = vmatprep.subr.bf16.mxu1 %v11882_v52  ;;  %v12376_v52 = vld [vmem:[#allocation14 + $0x1c] ss:$12 sps:$4 sm:$0xff]   ;;  %v9067_v44 = vpack.c.bf16 %v9059_v10, %v9059_v10 }
 0x595   :  { %v12428_v10 = vld [vmem:[#allocation14 + $0x1d0] ss:$12 sps:$4 sm:$0xff]  }
 0x596   :  { %8874 = vmatpush1.bf16.msra.mxu0 %v11879_v3  ;;  %v12382_v3 = vld [vmem:[#allocation14 + $0xf8] ss:$12 sps:$4 sm:$0xff]  }
 0x597   :  { %9038 = vmatpush1.bf16.msra.mxu1 %v11881_v4  ;;  %8875 = vmatprep.subr.bf16.mxu0 %v11888_v43  ;;  %v12379_v4 = vld [vmem:[#allocation14 + $0x30] ss:$12 sps:$4 sm:$0xff]   ;;  %v12383_v43 = vld [vmem:[#allocation14 + $0x38] ss:$12 sps:$4 sm:$0xff]  }
 0x598   :  { %9039 = vmatprep.subr.bf16.mxu1 %v11890_v5  ;;  %v12386_v5 = vld [vmem:[#allocation14 + $0x4c] ss:$12 sps:$4 sm:$0xff]  }
 0x59a   :  { %8876 = vmatpush1.bf16.msra.mxu0 %v11887_v11  ;;  %v12389_v11 = vld [vmem:[#allocation14 + $0x60] ss:$12 sps:$4 sm:$0xff]  }
 0x59b   :  { %9040 = vmatpush1.bf16.msra.mxu1 %v11889_v14  ;;  %8877 = vmatprep.subr.bf16.mxu0 %v11896_v33  ;;  %v12393_v14 = vld [vmem:[#allocation14 + $0x68] ss:$12 sps:$4 sm:$0xff]  }
 0x59c   :  { %9041 = vmatprep.subr.bf16.mxu1 %v11898_v17  ;;  %v12396_v33 = vld [vmem:[#allocation14 + $0x7c] ss:$12 sps:$4 sm:$0xff]   ;;  %v12397_v17 = vld [vmem:[#allocation14 + $0x140] ss:$12 sps:$4 sm:$0xff]  }
 0x59e   :  { %8878 = vmatpush1.bf16.msra.mxu0 %v11895_v12  ;;  %v12402_v12 = vld [vmem:[#allocation14 + $0x158] ss:$12 sps:$4 sm:$0xff]  }
 0x59f   :  { %9042 = vmatpush1.bf16.msra.mxu1 %v11897_v37  ;;  %8879 = vmatprep.subr.bf16.mxu0 %v11904_v38  ;;  %v5817_v37 = vrot.slane %v13285_v41, %v13129_v16  ;;  %v12399_v38 = vld [vmem:[#allocation14 + $0x90] ss:$12 sps:$4 sm:$0xff]   ;;  %v12412_v16 = vld [vmem:[#allocation14 + $0x248] ss:$12 sps:$4 sm:$0xff]  }
 0x5a0   :  { %9043 = vmatprep.subr.bf16.mxu1 %v11906_v53  ;;  %v12403_v53 = vld [vmem:[#allocation14 + $0x98] ss:$12 sps:$4 sm:$0xff]  }
 0x5a1   :  { %v12227_v46 = vadd.f32 %v13283_v40, %v5817_v37  ;;  %v12417_v40 = vld [vmem:[#allocation14 + $0x260] ss:$12 sps:$4 sm:$0xff]  }
 0x5a2   :  { %8880 = vmatpush1.bf16.msra.mxu0 %v11903_v13  ;;  %v12404_v13 = vld [vmem:[#allocation14 + $0xa8] ss:$12 sps:$4 sm:$0xff]  }
 0x5a3   :  { %9044 = vmatpush1.bf16.msra.mxu1 %v11905_v42  ;;  %8881 = vmatprep.subr.bf16.mxu0 %v11912_v45  ;;  %v12408_v42 = vld [vmem:[#allocation14 + $0xb0] ss:$12 sps:$4 sm:$0xff]   ;;  %v9061_v21 = vmax.f32 %v12227_v46, 0.0  ;;  %v12457_v37 = vld [vmem:[#allocation14 + $0x1b4] ss:$12 sps:$4 sm:$0xff]  }
 0x5a4   :  { %9045 = vmatprep.subr.bf16.mxu1 %v11914_v47  ;;  %v12411_v45 = vld [vmem:[#allocation14 + $0xc4] ss:$12 sps:$4 sm:$0xff]   ;;  %v9058_v47 = vmax.f32 %v12224_v22, 0.0  ;;  %v12460_v22 = vld [vmem:[#allocation14 + $0x1cc] ss:$12 sps:$4 sm:$0xff]  }
 0x5a5   :  { %v13300_v29 = vpack.c.bf16 %v9061_v21, %v9061_v21  ;;  %v12539_v46 = vld [vmem:[#allocation14 + $0x410] ss:$12 sps:$4 sm:$0xff]  }
 0x5a6   :  { %8882 = vmatpush1.bf16.msra.mxu0 %v11911_v51  ;;  %v13298_v23 = vpack.c.bf16 %v9058_v47, %v9058_v47  ;;  %v12414_v51 = vld [vmem:[#allocation14 + $0xd8] ss:$12 sps:$4 sm:$0xff]   ;;  %v12544_v47 = vld [vmem:[#allocation14 + $0x428] ss:$12 sps:$4 sm:$0xff]  }
 0x5a7   :  { %9046 = vmatpush1.bf16.msra.mxu1 %v11913_v9  ;;  %8883 = vmatprep.subr.bf16.mxu0 %v11920_v54  ;;  %v12418_v9 = vld [vmem:[#allocation14 + $0x1a0] ss:$12 sps:$4 sm:$0xff]   ;;  %v12466_v21 = vld [vmem:[#allocation14 + $0x1fc] ss:$12 sps:$4 sm:$0xff]  }
 0x5a8   :  { %9047 = vmatprep.subr.bf16.mxu1 %v11922_v36  ;;  %v12421_v54 = vld [vmem:[#allocation14 + $0xf4] ss:$12 sps:$4 sm:$0xff]   ;;  %v12422_v36 = vld [vmem:[#allocation14 + $0x278] ss:$12 sps:$4 sm:$0xff]  }
 0x5aa   :  { %8884 = vmatpush1.bf16.msra.mxu0 %v11919_v57  ;;  %v12423_v57 = vld [vmem:[#allocation14 + $0x1b8] ss:$12 sps:$4 sm:$0xff]  }
 0x5ab   :  { %9048 = vmatpush1.bf16.msra.mxu1 %v11921_v59  ;;  %10371 = vmatprep.subr.bf16.mxu0 %v12371_v55  ;;  %v12426_v59 = vld [vmem:[#allocation14 + $0x10c] ss:$12 sps:$4 sm:$0xff]   ;;  %v12427_v55 = vld [vmem:[#allocation14 + $0x290] ss:$12 sps:$4 sm:$0xff]  }
 0x5ac   :  { %12118 = vmatprep.subr.bf16.mxu1 %v12372_v19  ;;  %v12424_v19 = vld [vmem:[#allocation14 + $0x108] ss:$12 sps:$4 sm:$0xff]  }
 0x5ad   :  { %8886 = vmatmul.mubr.bf16.vlgmr.msra.gmra.mrb[20].mxu0 %v13259_v61 }
 0x5ae   :  { %9050 = vmatmul.mubr.bf16.vlgmr.msra.gmra.mrb[24].mxu1 %v13259_v61  ;;  %10372 = vmatpush1.bf16.msra.mxu0 %v12369_v60  ;;  %v12384_v61 = vld [vmem:[#allocation14 + $0x48] ss:$12 sps:$4 sm:$0xff]   ;;  %v12431_v60 = vld [vmem:[#allocation14 + $0x124] ss:$12 sps:$4 sm:$0xff]  }
 0x5af   :  { %10403 = vmatprep.mubr.bf16.mxu0 %v9067_v44  ;;  %12119 = vmatpush3.bf16.msra.mxu1 %v12373_v63  ;;  %v12432_v63 = vld [vmem:[#allocation14 + $0x2a8] ss:$12 sps:$4 sm:$0xff]  }
 0x5b0   :  { %10567 = vmatprep.mubr.bf16.mxu1 %v9067_v44  ;;  %10373 = vmatprep.subr.bf16.mxu0 %v12376_v52  ;;  %v12429_v52 = vld [vmem:[#allocation14 + $0x120] ss:$12 sps:$4 sm:$0xff]   ;;  %v12433_v44 = vld [vmem:[#allocation14 + $0x1e8] ss:$12 sps:$4 sm:$0xff]  }
 0x5b1   :  { %12120 = vmatprep.subr.bf16.mxu1 %v12377_v26  ;;  %v12436_v26 = vld [vmem:[#allocation14 + $0x13c] ss:$12 sps:$4 sm:$0xff]  }
 0x5b2   :  { %10374 = vmatpush1.bf16.msra.mxu0 %v12374_v1  ;;  %v12437_v1 = vld [vmem:[#allocation14 + $0x2c0] ss:$12 sps:$4 sm:$0xff]  }
 0x5b3   :  { %12121 = vmatpush3.bf16.msra.mxu1 %v12378_v58  ;;  %10375 = vmatprep.subr.bf16.mxu0 %v12381_v2  ;;  %v12434_v58 = vld [vmem:[#allocation14 + $0x138] ss:$12 sps:$4 sm:$0xff]   ;;  %v12438_v2 = vld [vmem:[#allocation14 + $0x200] ss:$12 sps:$4 sm:$0xff]  }
 0x5b4   :  { %12122 = vmatprep.subr.bf16.mxu1 %v12382_v3  ;;  %v12441_v3 = vld [vmem:[#allocation14 + $0x154] ss:$12 sps:$4 sm:$0xff]  }
 0x5b6   :  { %10376 = vmatpush1.bf16.msra.mxu0 %v12379_v4  ;;  %v5813_v4 = vrot.slane %v13285_v41, %v13126_v34 }
 0x5b7   :  { %12123 = vmatpush3.bf16.msra.mxu1 %v12383_v43  ;;  %10377 = vmatprep.subr.bf16.mxu0 %v12386_v5  ;;  %v12442_v43 = vld [vmem:[#allocation14 + $0x2d8] ss:$12 sps:$4 sm:$0xff]   ;;  %v12439_v5 = vld [vmem:[#allocation14 + $0x150] ss:$12 sps:$4 sm:$0xff]  }
 0x5b8   :  { %12124 = vmatprep.subr.bf16.mxu1 %v12387_v0  ;;  %v12443_v0 = vld [vmem:[#allocation14 + $0x218] ss:$12 sps:$4 sm:$0xff]  }
 0x5ba   :  { %10378 = vmatpush1.bf16.msra.mxu0 %v12384_v61  ;;  %v12446_v61 = vld [vmem:[#allocation14 + $0x16c] ss:$12 sps:$4 sm:$0xff]  }
 0x5bb   :  { %12125 = vmatpush3.bf16.msra.mxu1 %v12388_v8  ;;  %10379 = vmatprep.subr.bf16.mxu0 %v12391_v7  ;;  %v12226_v8 = vadd.f32 %v13279_v31, %v5813_v4  ;;  %v12447_v7 = vld [vmem:[#allocation14 + $0x2f0] ss:$12 sps:$4 sm:$0xff]   ;;  %v12525_v31 = vld [vmem:[#allocation14 + $0x308] ss:$12 sps:$4 sm:$0xff]  }
 0x5bc   :  { %12126 = vmatprep.subr.bf16.mxu1 %v12392_v28  ;;  %v12444_v28 = vld [vmem:[#allocation14 + $0x168] ss:$12 sps:$4 sm:$0xff]  }
 0x5bd   :  { %v12493_v4 = vld [vmem:[#allocation14 + $0x2d4] ss:$12 sps:$4 sm:$0xff]  }
 0x5be   :  { %10380 = vmatpush1.bf16.msra.mxu0 %v12389_v11  ;;  %v12448_v11 = vld [vmem:[#allocation14 + $0x230] ss:$12 sps:$4 sm:$0xff]  }
 0x5bf   :  { %12127 = vmatpush3.bf16.msra.mxu1 %v12393_v14  ;;  %10381 = vmatprep.subr.bf16.mxu0 %v12396_v33  ;;  %v12451_v14 = vld [vmem:[#allocation14 + $0x184] ss:$12 sps:$4 sm:$0xff]   ;;  %v9060_v33 = vmax.f32 %v12226_v8, 0.0  ;;  %v12497_v8 = vld [vmem:[#allocation14 + $0x300] ss:$12 sps:$4 sm:$0xff]  }
 0x5c0   :  { %12128 = vmatprep.subr.bf16.mxu1 %v12397_v17  ;;  %v12524_v17 = vld [vmem:[#allocation14 + $0x3c8] ss:$12 sps:$4 sm:$0xff]  }
 0x5c2   :  { %10382 = vmatpush1.bf16.msra.mxu0 %v12394_v25  ;;  %v12449_v25 = vld [vmem:[#allocation14 + $0x180] ss:$12 sps:$4 sm:$0xff]  }
 0x5c3   :  { %12129 = vmatpush3.bf16.msra.mxu1 %v12398_v24  ;;  %10383 = vmatprep.subr.bf16.mxu0 %v12401_v30  ;;  %v12454_v24 = vld [vmem:[#allocation14 + $0x19c] ss:$12 sps:$4 sm:$0xff]   ;;  %v13307_v30 = vpack.c.bf16 %v9060_v33, %v9060_v33  ;;  %v12508_v33 = vld [vmem:[#allocation14 + $0x34c] ss:$12 sps:$4 sm:$0xff]  }
 0x5c4   :  { %12130 = vmatprep.subr.bf16.mxu1 %v12402_v12  ;;  %v12452_v12 = vld [vmem:[#allocation14 + $0x198] ss:$12 sps:$4 sm:$0xff]  }
 0x5c6   :  { %10384 = vmatpush1.bf16.msra.mxu0 %v12399_v38  ;;  %v12530_v38 = vld [vmem:[#allocation14 + $0x320] ss:$12 sps:$4 sm:$0xff]  }
 0x5c7   :  { %12131 = vmatpush3.bf16.msra.mxu1 %v12403_v53  ;;  %10385 = vmatprep.subr.bf16.mxu0 %v12406_v6  ;;  %v12534_v53 = vld [vmem:[#allocation14 + $0x3f8] ss:$12 sps:$4 sm:$0xff]   ;;  %v12455_v6 = vld [vmem:[#allocation14 + $0x1b0] ss:$12 sps:$4 sm:$0xff]  }
 0x5c8   :  { %12132 = vmatprep.subr.bf16.mxu1 %v12407_v39  ;;  %v12535_v39 = vld [vmem:[#allocation14 + $0x338] ss:$12 sps:$4 sm:$0xff]  }
 0x5ca   :  { %10386 = vmatpush1.bf16.msra.mxu0 %v12404_v13  ;;  %v12458_v13 = vld [vmem:[#allocation14 + $0x1c8] ss:$12 sps:$4 sm:$0xff]  }
 0x5cb   :  { %12133 = vmatpush3.bf16.msra.mxu1 %v12408_v42  ;;  %10387 = vmatprep.subr.bf16.mxu0 %v12411_v45  ;;  %v12463_v42 = vld [vmem:[#allocation14 + $0x1e4] ss:$12 sps:$4 sm:$0xff]  }
 0x5cc   :  { %12140 = vmatprep.subr.bf16.mxu1 %v12412_v16  ;;  %v12540_v45 = vld [vmem:[#allocation14 + $0x350] ss:$12 sps:$4 sm:$0xff]   ;;  %v12461_v16 = vld [vmem:[#allocation14 + $0x1e0] ss:$12 sps:$4 sm:$0xff]  }
 0x5ce   :  { %10568 = vmatmul.mubr.bf16.vlgmr.msra.gmra.mrb[28].mxu1 %v13298_v23  ;;  %10388 = vmatpush1.bf16.msra.mxu0 %v12409_v50  ;;  %v12545_v50 = vld [vmem:[#allocation14 + $0x368] ss:$12 sps:$4 sm:$0xff]  }
 0x5cf   :  { %12141 = vmatpush3.bf16.msra.mxu1 %v12413_v48  ;;  %10607 = vmatprep.mubr.bf16.mxu1 %v13300_v29  ;;  %v12549_v48 = vld [vmem:[#allocation14 + $0x440] ss:$12 sps:$4 sm:$0xff]  }
 0x5d0   :  { %10389 = vmatprep.subr.bf16.mxu0 %v12416_v49  ;;  %12142 = vmatprep.subr.bf16.mxu1 %v12417_v40  ;;  %v12469_v49 = vld [vmem:[#allocation14 + $0x214] ss:$12 sps:$4 sm:$0xff]  }
 0x5d1   :  { %v12550_v40 = vld [vmem:[#allocation14 + $0x380] ss:$12 sps:$4 sm:$0xff]  }
 0x5d2   :  { %10390 = vmatpush1.bf16.msra.mxu0 %v12414_v51  ;;  %v12467_v51 = vld [vmem:[#allocation14 + $0x210] ss:$12 sps:$4 sm:$0xff]  }
 0x5d3   :  { %12143 = vmatpush3.bf16.msra.mxu1 %v12418_v9  ;;  %10391 = vmatprep.subr.bf16.mxu0 %v12421_v54  ;;  %v12472_v9 = vld [vmem:[#allocation14 + $0x22c] ss:$12 sps:$4 sm:$0xff]  }
 0x5d4   :  { %12144 = vmatprep.subr.bf16.mxu1 %v12422_v36  ;;  %v12555_v54 = vld [vmem:[#allocation14 + $0x398] ss:$12 sps:$4 sm:$0xff]   ;;  %v12559_v36 = vld [vmem:[#allocation14 + $0x470] ss:$12 sps:$4 sm:$0xff]  }
 0x5d6   :  { %10392 = vmatpush1.bf16.msra.mxu0 %v12419_v56  ;;  %v12470_v56 = vld [vmem:[#allocation14 + $0x228] ss:$12 sps:$4 sm:$0xff]  }
 0x5d7   :  { %12145 = vmatpush3.bf16.msra.mxu1 %v12423_v57  ;;  %10393 = vmatprep.subr.bf16.mxu0 %v12426_v59  ;;  %v12475_v57 = vld [vmem:[#allocation14 + $0x244] ss:$12 sps:$4 sm:$0xff]  }
 0x5d8   :  { %12146 = vmatprep.subr.bf16.mxu1 %v12427_v55  ;;  %v12560_v59 = vld [vmem:[#allocation14 + $0x3b0] ss:$12 sps:$4 sm:$0xff]   ;;  %v12564_v55 = vld [vmem:[#allocation14 + $0x548] ss:$12 sps:$4 sm:$0xff]  }
 0x5da   :  { %10394 = vmatpush1.bf16.msra.mxu0 %v12424_v19  ;;  %v12473_v19 = vld [vmem:[#allocation14 + $0x240] ss:$12 sps:$4 sm:$0xff]  }
 0x5db   :  { %12147 = vmatpush3.bf16.msra.mxu1 %v12428_v10  ;;  %10395 = vmatprep.subr.bf16.mxu0 %v12431_v60  ;;  %v12478_v10 = vld [vmem:[#allocation14 + $0x25c] ss:$12 sps:$4 sm:$0xff]   ;;  %v12476_v60 = vld [vmem:[#allocation14 + $0x258] ss:$12 sps:$4 sm:$0xff]  }
 0x5dc   :  { %12148 = vmatprep.subr.bf16.mxu1 %v12432_v63  ;;  %v12481_v63 = vld [vmem:[#allocation14 + $0x274] ss:$12 sps:$4 sm:$0xff]  }
 0x5de   :  { %10396 = vmatpush1.bf16.msra.mxu0 %v12429_v52  ;;  %v12479_v52 = vld [vmem:[#allocation14 + $0x270] ss:$12 sps:$4 sm:$0xff]  }
 0x5df   :  { %12149 = vmatpush3.bf16.msra.mxu1 %v12433_v44  ;;  %10397 = vmatprep.subr.bf16.mxu0 %v12436_v26  ;;  %v12484_v44 = vld [vmem:[#allocation14 + $0x28c] ss:$12 sps:$4 sm:$0xff]   ;;  %v12482_v26 = vld [vmem:[#allocation14 + $0x288] ss:$12 sps:$4 sm:$0xff]  }
 0x5e0   :  { %12150 = vmatprep.subr.bf16.mxu1 %v12437_v1  ;;  %v12487_v1 = vld [vmem:[#allocation14 + $0x2a4] ss:$12 sps:$4 sm:$0xff]  }
 0x5e2   :  { %10398 = vmatpush1.bf16.msra.mxu0 %v12434_v58  ;;  %v12485_v58 = vld [vmem:[#allocation14 + $0x2a0] ss:$12 sps:$4 sm:$0xff]  }
 0x5e3   :  { %12151 = vmatpush3.bf16.msra.mxu1 %v12438_v2  ;;  %10399 = vmatprep.subr.bf16.mxu0 %v12441_v3  ;;  %v12490_v2 = vld [vmem:[#allocation14 + $0x2bc] ss:$12 sps:$4 sm:$0xff]   ;;  %v12488_v3 = vld [vmem:[#allocation14 + $0x2b8] ss:$12 sps:$4 sm:$0xff]  }
 0x5e4   :  { %12152 = vmatprep.subr.bf16.mxu1 %v12442_v43  ;;  %v12491_v43 = vld [vmem:[#allocation14 + $0x2d0] ss:$12 sps:$4 sm:$0xff]  }
 0x5e6   :  { %10400 = vmatpush1.bf16.msra.mxu0 %v12439_v5  ;;  %v12496_v5 = vld [vmem:[#allocation14 + $0x2ec] ss:$12 sps:$4 sm:$0xff]  }
 0x5e7   :  { %12153 = vmatpush3.bf16.msra.mxu1 %v12443_v0  ;;  %10401 = vmatprep.subr.bf16.mxu0 %v12446_v61  ;;  %v12494_v0 = vld [vmem:[#allocation14 + $0x2e8] ss:$12 sps:$4 sm:$0xff]   ;;  %v12499_v61 = vld [vmem:[#allocation14 + $0x304] ss:$12 sps:$4 sm:$0xff]  }
 0x5e8   :  { %12154 = vmatprep.subr.bf16.mxu1 %v12447_v7  ;;  %v12502_v7 = vld [vmem:[#allocation14 + $0x31c] ss:$12 sps:$4 sm:$0xff]  }
 0x5ea   :  { %10402 = vmatpush1.bf16.msra.mxu0 %v12444_v28  ;;  %v12500_v28 = vld [vmem:[#allocation14 + $0x318] ss:$12 sps:$4 sm:$0xff]  }
 0x5eb   :  { %12155 = vmatpush3.bf16.msra.mxu1 %v12448_v11  ;;  %10412 = vmatprep.subr.bf16.mxu0 %v12451_v14  ;;  %v12505_v11 = vld [vmem:[#allocation14 + $0x334] ss:$12 sps:$4 sm:$0xff]   ;;  %v12503_v14 = vld [vmem:[#allocation14 + $0x330] ss:$12 sps:$4 sm:$0xff]  }
 0x5ec   :  { %12162 = vmatprep.subr.bf16.mxu1 %v12524_v17  ;;  %v12506_v17 = vld [vmem:[#allocation14 + $0x348] ss:$12 sps:$4 sm:$0xff]  }
 0x5ed   :  { %10404 = vmatmul.mubr.bf16.vlgmr.msra.gmra.mrb[24].mxu0 %v13298_v23  ;;  %v12464_v23 = vld [vmem:[#allocation14 + $0x1f8] ss:$12 sps:$4 sm:$0xff]  }
 0x5ee   :  { %10608 = vmatmul.mubr.bf16.vlgmr.msra.gmra.mrb[32].mxu1 %v13307_v30  ;;  %10413 = vmatpush1.bf16.msra.mxu0 %v12449_v25  ;;  %v12511_v25 = vld [vmem:[#allocation14 + $0x364] ss:$12 sps:$4 sm:$0xff]  }
 0x5ef   :  { %10444 = vmatprep.mubr.bf16.mxu0 %v13300_v29  ;;  %10414 = vmatprep.subr.bf16.mxu0 %v12454_v24  ;;  %v12554_v29 = vld [vmem:[#allocation14 + $0x458] ss:$12 sps:$4 sm:$0xff]   ;;  %v12509_v24 = vld [vmem:[#allocation14 + $0x360] ss:$12 sps:$4 sm:$0xff]  }
 0x5f0   :  { %12163 = vmatpush3.bf16.msra.mxu1 %v12525_v31  ;;  %v12514_v31 = vld [vmem:[#allocation14 + $0x37c] ss:$12 sps:$4 sm:$0xff]  }
 0x5f1   :  { %12164 = vmatprep.subr.bf16.mxu1 %v12529_v62  ;;  %v12512_v62 = vld [vmem:[#allocation14 + $0x378] ss:$12 sps:$4 sm:$0xff]  }
 0x5f2   :  { %10415 = vmatpush1.bf16.msra.mxu0 %v12452_v12  ;;  %v12515_v12 = vld [vmem:[#allocation14 + $0x390] ss:$12 sps:$4 sm:$0xff]  }
 0x5f3   :  { %10416 = vmatprep.subr.bf16.mxu0 %v12457_v37  ;;  %v12520_v37 = vld [vmem:[#allocation14 + $0x3ac] ss:$12 sps:$4 sm:$0xff]  }
 0x5f4   :  { %12165 = vmatpush3.bf16.msra.mxu1 %v12530_v38  ;;  %v12518_v38 = vld [vmem:[#allocation14 + $0x3a8] ss:$12 sps:$4 sm:$0xff]  }
 0x5f5   :  { %12166 = vmatprep.subr.bf16.mxu1 %v12534_v53  ;;  %v12523_v53 = vld [vmem:[#allocation14 + $0x3c4] ss:$12 sps:$4 sm:$0xff]  }
 0x5f6   :  { %10417 = vmatpush1.bf16.msra.mxu0 %v12455_v6  ;;  %v12521_v6 = vld [vmem:[#allocation14 + $0x3c0] ss:$12 sps:$4 sm:$0xff]  }
 0x5f7   :  { %10418 = vmatprep.subr.bf16.mxu0 %v12460_v22  ;;  %v12528_v22 = vld [vmem:[#allocation14 + $0x3dc] ss:$12 sps:$4 sm:$0xff]  }
 0x5f8   :  { %12167 = vmatpush3.bf16.msra.mxu1 %v12535_v39  ;;  %v12526_v39 = vld [vmem:[#allocation14 + $0x3d8] ss:$12 sps:$4 sm:$0xff]  }
 0x5f9   :  { %12168 = vmatprep.subr.bf16.mxu1 %v12539_v46  ;;  %v12533_v46 = vld [vmem:[#allocation14 + $0x3f4] ss:$12 sps:$4 sm:$0xff]  }
 0x5fa   :  { %10419 = vmatpush1.bf16.msra.mxu0 %v12458_v13  ;;  %v12531_v13 = vld [vmem:[#allocation14 + $0x3f0] ss:$12 sps:$4 sm:$0xff]  }
 0x5fb   :  { %10420 = vmatprep.subr.bf16.mxu0 %v12463_v42  ;;  %v12538_v42 = vld [vmem:[#allocation14 + $0x40c] ss:$12 sps:$4 sm:$0xff]  }
 0x5fc   :  { %12169 = vmatpush3.bf16.msra.mxu1 %v12540_v45  ;;  %v12536_v45 = vld [vmem:[#allocation14 + $0x408] ss:$12 sps:$4 sm:$0xff]  }
 0x5fd   :  { %12170 = vmatprep.subr.bf16.mxu1 %v12544_v47  ;;  %v12543_v47 = vld [vmem:[#allocation14 + $0x424] ss:$12 sps:$4 sm:$0xff]  }
 0x5fe   :  { %10421 = vmatpush1.bf16.msra.mxu0 %v12461_v16  ;;  %v12541_v16 = vld [vmem:[#allocation14 + $0x420] ss:$12 sps:$4 sm:$0xff]  }
 0x5ff   :  { %10422 = vmatprep.subr.bf16.mxu0 %v12466_v21  ;;  %v12548_v21 = vld [vmem:[#allocation14 + $0x43c] ss:$12 sps:$4 sm:$0xff]  }
 0x600   :  { %12171 = vmatpush3.bf16.msra.mxu1 %v12545_v50  ;;  %v12546_v50 = vld [vmem:[#allocation14 + $0x438] ss:$12 sps:$4 sm:$0xff]  }
 0x601   :  { %12172 = vmatprep.subr.bf16.mxu1 %v12549_v48  ;;  %v12553_v48 = vld [vmem:[#allocation14 + $0x454] ss:$12 sps:$4 sm:$0xff]  }
 0x602   :  { %10423 = vmatpush1.bf16.msra.mxu0 %v12464_v23  ;;  %v12551_v23 = vld [vmem:[#allocation14 + $0x450] ss:$12 sps:$4 sm:$0xff]  }
 0x603   :  { %10424 = vmatprep.subr.bf16.mxu0 %v12469_v49  ;;  %v12558_v49 = vld [vmem:[#allocation14 + $0x46c] ss:$12 sps:$4 sm:$0xff]  }
 0x604   :  { %12173 = vmatpush3.bf16.msra.mxu1 %v12550_v40  ;;  %v12556_v40 = vld [vmem:[#allocation14 + $0x468] ss:$12 sps:$4 sm:$0xff]  }
 0x605   :  { %12174 = vmatprep.subr.bf16.mxu1 %v12554_v29  ;;  %v12563_v29 = vld [vmem:[#allocation14 + $0x484] ss:$12 sps:$4 sm:$0xff]  }
 0x606   :  { %10425 = vmatpush1.bf16.msra.mxu0 %v12467_v51  ;;  %v5821_v51 = vrot.slane %v13285_v41, %v13151_v35 }
 0x607   :  { %10426 = vmatprep.subr.bf16.mxu0 %v12472_v9  ;;  %v5825_v9 = vrot.slane %v13285_v41, %v13123_v15  ;;  %v12561_v15 = vld [vmem:[#allocation14 + $0x480] ss:$12 sps:$4 sm:$0xff]  }
 0x608   :  { %12175 = vmatpush3.bf16.msra.mxu1 %v12555_v54  ;;  %v5833_v54 = vrot.slane %v13285_v41, %v13161_v20  ;;  %v12568_v20 = vld [vmem:[#allocation14 + $0x49c] ss:$12 sps:$4 sm:$0xff]  }
 0x609   :  { %12176 = vmatprep.subr.bf16.mxu1 %v12559_v36 }
 0x60a   :  { %10427 = vmatpush1.bf16.msra.mxu0 %v12470_v56 }
 0x60b   :  { %10428 = vmatprep.subr.bf16.mxu0 %v12475_v57 }
 0x60c   :  { %12177 = vmatpush3.bf16.msra.mxu1 %v12560_v59 }
 0x60d   :  { %12184 = vmatprep.subr.bf16.mxu1 %v12564_v55 }
 0x60e   :  { %10429 = vmatpush1.bf16.msra.mxu0 %v12473_v19 }
 0x60f   :  { %10430 = vmatprep.subr.bf16.mxu0 %v12478_v10 }
 0x612   :  { %10431 = vmatpush1.bf16.msra.mxu0 %v12476_v60 }
 0x613   :  { %10432 = vmatprep.subr.bf16.mxu0 %v12481_v63 }
 0x616   :  { %10433 = vmatpush1.bf16.msra.mxu0 %v12479_v52 }
 0x617   :  { %10434 = vmatprep.subr.bf16.mxu0 %v12484_v44 }
 0x61a   :  { %10435 = vmatpush1.bf16.msra.mxu0 %v12482_v26 }
 0x61b   :  { %10436 = vmatprep.subr.bf16.mxu0 %v12487_v1 }
 0x61e   :  { %10437 = vmatpush1.bf16.msra.mxu0 %v12485_v58 }
 0x61f   :  { %10438 = vmatprep.subr.bf16.mxu0 %v12490_v2  ;;  %v12565_v2 = vld [vmem:[#allocation14 + $0x488] ss:$12 sps:$4 sm:$0xff]  }
 0x622   :  { %10439 = vmatpush1.bf16.msra.mxu0 %v12488_v3 }
 0x623   :  { %10440 = vmatprep.subr.bf16.mxu0 %v12493_v4  ;;  %v12569_v4 = vld [vmem:[#allocation14 + $0x560] ss:$12 sps:$4 sm:$0xff]  }
 0x626   :  { %10441 = vmatpush1.bf16.msra.mxu0 %v12491_v43 }
 0x627   :  { %10442 = vmatprep.subr.bf16.mxu0 %v12496_v5  ;;  %v12566_v5 = vld [vmem:[#allocation14 + $0x498] ss:$12 sps:$4 sm:$0xff]  }
 0x62a   :  { %10443 = vmatpush1.bf16.msra.mxu0 %v12494_v0  ;;  %v12570_v0 = vld [vmem:[#allocation14 + $0x4a0] ss:$12 sps:$4 sm:$0xff]  }
 0x62b   :  { %10453 = vmatprep.subr.bf16.mxu0 %v12499_v61  ;;  %v12573_v61 = vld [vmem:[#allocation14 + $0x4b4] ss:$12 sps:$4 sm:$0xff]  }
 0x62d   :  { %10445 = vmatmul.mubr.bf16.vlgmr.msra.gmra.mrb[24].mxu0 %v13307_v30  ;;  %v12517_v30 = vld [vmem:[#allocation14 + $0x394] ss:$12 sps:$4 sm:$0xff]  }
 0x62e   :  { %10454 = vmatpush1.bf16.msra.mxu0 %v12497_v8  ;;  %v12574_v8 = vld [vmem:[#allocation14 + $0x578] ss:$12 sps:$4 sm:$0xff]  }
 0x62f   :  { %10455 = vmatprep.subr.bf16.mxu0 %v12502_v7  ;;  %v12571_v7 = vld [vmem:[#allocation14 + $0x4b0] ss:$12 sps:$4 sm:$0xff]  }
 0x632   :  { %10456 = vmatpush1.bf16.msra.mxu0 %v12500_v28  ;;  %v12575_v28 = vld [vmem:[#allocation14 + $0x4b8] ss:$12 sps:$4 sm:$0xff]  }
 0x633   :  { %10457 = vmatprep.subr.bf16.mxu0 %v12505_v11  ;;  %v12578_v11 = vld [vmem:[#allocation14 + $0x4cc] ss:$12 sps:$4 sm:$0xff]  }
 0x636   :  { %10458 = vmatpush1.bf16.msra.mxu0 %v12503_v14  ;;  %v12579_v14 = vld [vmem:[#allocation14 + $0x590] ss:$12 sps:$4 sm:$0xff]  }
 0x637   :  { %10459 = vmatprep.subr.bf16.mxu0 %v12508_v33  ;;  %v12576_v33 = vld [vmem:[#allocation14 + $0x4c8] ss:$12 sps:$4 sm:$0xff]  }
 0x63a   :  { %10460 = vmatpush1.bf16.msra.mxu0 %v12506_v17  ;;  %v12580_v17 = vld [vmem:[#allocation14 + $0x4d0] ss:$12 sps:$4 sm:$0xff]  }
 0x63b   :  { %10461 = vmatprep.subr.bf16.mxu0 %v12511_v25  ;;  %v12583_v25 = vld [vmem:[#allocation14 + $0x4e4] ss:$12 sps:$4 sm:$0xff]  }
 0x63e   :  { %10462 = vmatpush1.bf16.msra.mxu0 %v12509_v24  ;;  %v12584_v24 = vld [vmem:[#allocation14 + $0x5a8] ss:$12 sps:$4 sm:$0xff]  }
 0x63f   :  { %10463 = vmatprep.subr.bf16.mxu0 %v12514_v31  ;;  %v12581_v31 = vld [vmem:[#allocation14 + $0x4e0] ss:$12 sps:$4 sm:$0xff]  }
 0x642   :  { %10464 = vmatpush1.bf16.msra.mxu0 %v12512_v62  ;;  %v12585_v62 = vld [vmem:[#allocation14 + $0x4e8] ss:$12 sps:$4 sm:$0xff]  }
 0x643   :  { %10465 = vmatprep.subr.bf16.mxu0 %v12517_v30  ;;  %v12588_v30 = vld [vmem:[#allocation14 + $0x4fc] ss:$12 sps:$4 sm:$0xff]  }
 0x646   :  { %10466 = vmatpush1.bf16.msra.mxu0 %v12515_v12  ;;  %v12589_v12 = vld [vmem:[#allocation14 + $0x5c0] ss:$12 sps:$4 sm:$0xff]  }
 0x647   :  { %10467 = vmatprep.subr.bf16.mxu0 %v12520_v37  ;;  %v12586_v37 = vld [vmem:[#allocation14 + $0x4f8] ss:$12 sps:$4 sm:$0xff]  }
 0x64a   :  { %10468 = vmatpush1.bf16.msra.mxu0 %v12518_v38  ;;  %v12590_v38 = vld [vmem:[#allocation14 + $0x500] ss:$12 sps:$4 sm:$0xff]  }
 0x64b   :  { %10469 = vmatprep.subr.bf16.mxu0 %v12523_v53  ;;  %v5829_v53 = vrot.slane %v13285_v41, %v13172_v18  ;;  %v12600_v18 = vld [vmem:[#allocation14 + $0x530] ss:$12 sps:$4 sm:$0xff]  }
 0x64e   :  { %10470 = vmatpush1.bf16.msra.mxu0 %v12521_v6  ;;  %v12593_v6 = vld [vmem:[#allocation14 + $0x514] ss:$12 sps:$4 sm:$0xff]  }
 0x64f   :  { %10471 = vmatprep.subr.bf16.mxu0 %v12528_v22  ;;  %v12594_v22 = vld [vmem:[#allocation14 + $0x5d8] ss:$12 sps:$4 sm:$0xff]  }
 0x652   :  { %10472 = vmatpush1.bf16.msra.mxu0 %v12526_v39  ;;  %v12591_v39 = vld [vmem:[#allocation14 + $0x510] ss:$12 sps:$4 sm:$0xff]  }
 0x653   :  { %10473 = vmatprep.subr.bf16.mxu0 %v12533_v46  ;;  %v12595_v46 = vld [vmem:[#allocation14 + $0x518] ss:$12 sps:$4 sm:$0xff]  }
 0x656   :  { %10474 = vmatpush1.bf16.msra.mxu0 %v12531_v13 }
 0x657   :  { %10475 = vmatprep.subr.bf16.mxu0 %v12538_v42  ;;  %v12598_v42 = vld [vmem:[#allocation14 + $0x52c] ss:$12 sps:$4 sm:$0xff]  }
 0x65a   :  { %10476 = vmatpush1.bf16.msra.mxu0 %v12536_v45  ;;  %v12599_v45 = vld [vmem:[#allocation14 + $0x5f0] ss:$12 sps:$4 sm:$0xff]  }
 0x65b   :  { %10477 = vmatprep.subr.bf16.mxu0 %v12543_v47 }
 0x65e   :  { %10478 = vmatpush1.bf16.msra.mxu0 %v12541_v16 }
 0x65f   :  { %10479 = vmatprep.subr.bf16.mxu0 %v12548_v21  ;;  %v12596_v21 = vld [vmem:[#allocation14 + $0x528] ss:$12 sps:$4 sm:$0xff]  }
 0x662   :  { %10480 = vmatpush1.bf16.msra.mxu0 %v12546_v50 }
 0x663   :  { %10481 = vmatprep.subr.bf16.mxu0 %v12553_v48 }
 0x666   :  { %10482 = vmatpush1.bf16.msra.mxu0 %v12551_v23  ;;  %v12603_v23 = vld [vmem:[#allocation14 + $0x544] ss:$12 sps:$4 sm:$0xff]  }
 0x667   :  { %10483 = vmatprep.subr.bf16.mxu0 %v12558_v49 }
 0x66a   :  { %10484 = vmatpush1.bf16.msra.mxu0 %v12556_v40  ;;  %v12601_v40 = vld [vmem:[#allocation14 + $0x540] ss:$12 sps:$4 sm:$0xff]  }
 0x66b   :  { %10494 = vmatprep.subr.bf16.mxu0 %v12563_v29 }
 0x680   :  { %v8887_v36 = vpop.f32.mrb[20].mxu0 }
 0x681   :  { %v12228_v56 = vadd.f32 %v8887_v36, %v5821_v51  ;;  %v13319_v57 = vpop.f32.mrb[24].mxu1  ;;  %v8889_v59 = vpop.f32.mrb[21].mxu0  ;;  %v12606_v51 = vld [vmem:[#allocation14 + $0x55c] ss:$12 sps:$4 sm:$0xff]  }
 0x682   :  { %v12229_v55 = vadd.f32 %v8889_v59, %v5825_v9  ;;  %v9053_v19 = vpop.f32.mrb[25].mxu1  ;;  %v8891_v10 = vpop.f32.mrb[22].mxu0  ;;  %v12230_v13 = vadd.f32 %v13319_v57, %v5829_v53  ;;  %v12604_v9 = vld [vmem:[#allocation14 + $0x558] ss:$12 sps:$4 sm:$0xff]   ;;  %v12607_v36 = vld [vmem:[#allocation14 + $0x570] ss:$12 sps:$4 sm:$0xff]  }
 0x683   :  { %v9062_v60 = vmax.f32 %v12228_v56, 0.0  ;;  %v12231_v63 = vadd.f32 %v9053_v19, %v5833_v54  ;;  %v9055_v52 = vpop.f32.mrb[26].mxu1  ;;  %v8892_v44 = vpop.f32.mrb[23].mxu0  ;;  %v12609_v54 = vld [vmem:[#allocation14 + $0x574] ss:$12 sps:$4 sm:$0xff]  }
 0x684   :  { %v9063_v26 = vmax.f32 %v12229_v55, 0.0  ;;  %v9056_v35 = vpop.f32.mrb[27].mxu1  ;;  %v9064_v41 = vmax.f32 %v12230_v13, 0.0  ;;  %v12612_v56 = vld [vmem:[#allocation14 + $0x58c] ss:$12 sps:$4 sm:$0xff]  }
 0x685   :  { %v9065_v1 = vmax.f32 %v12231_v63, 0.0  ;;  %v9070_v3 = vpack.c.bf16 %v9062_v60, %v9062_v60  ;;  %v12610_v57 = vld [vmem:[#allocation14 + $0x588] ss:$12 sps:$4 sm:$0xff]   ;;  %v12615_v59 = vld [vmem:[#allocation14 + $0x5a4] ss:$12 sps:$4 sm:$0xff]  }
 0x686   :  { %v9071_v58 = vpack.c.bf16 %v9063_v26, %v9063_v26  ;;  %v9072_v29 = vpack.c.bf16 %v9064_v41, %v9064_v41  ;;  %v12613_v55 = vld [vmem:[#allocation14 + $0x5a0] ss:$12 sps:$4 sm:$0xff]   ;;  %v12618_v19 = vld [vmem:[#allocation14 + $0x5bc] ss:$12 sps:$4 sm:$0xff]   ;;  %v12616_v10 = vld [vmem:[#allocation14 + $0x5b8] ss:$12 sps:$4 sm:$0xff]  }
 0x687   :  { %v9073_v43 = vpack.c.bf16 %v9065_v1, %v9065_v1  ;;  %v12621_v60 = vld [vmem:[#allocation14 + $0x5d4] ss:$12 sps:$4 sm:$0xff]   ;;  %v12619_v52 = vld [vmem:[#allocation14 + $0x5d0] ss:$12 sps:$4 sm:$0xff]   ;;  %v12624_v26 = vld [vmem:[#allocation14 + $0x5ec] ss:$12 sps:$4 sm:$0xff]  }
 0x688   :  { %10485 = vmatprep.mubr.bf16.mxu0 %v9071_v58  ;;  %10647 = vmatprep.mubr.bf16.mxu1 %v9071_v58  ;;  %v9330_v63 = vld [vmem:[#allocation16] sm:$0x7]  ;;  %v12622_v58 = vld [vmem:[#allocation14 + $0x5e8] ss:$12 sps:$4 sm:$0xff]  }
 0x689   :  { %10486 = vmatmul.mubr.bf16.vlgmr.msra.gmra.mrb[24].mxu0 %v9070_v3  ;;  %10648 = vmatmul.mubr.bf16.vlgmr.msra.gmra.mrb[36].mxu1 %v9070_v3  ;;  %v9343_v44 = vrot.slane %v9330_v63, %v13126_v34 }
 0x68a   :  { %10495 = vmatpush1.bf16.msra.mxu0 %v12561_v15  ;;  %12185 = vmatpush3.bf16.msra.mxu1 %v12565_v2 }
 0x68b   :  { %10526 = vmatprep.mubr.bf16.mxu0 %v9073_v43  ;;  %10687 = vmatprep.mubr.bf16.mxu1 %v9073_v43 }
 0x68c   :  { %10496 = vmatprep.subr.bf16.mxu0 %v12568_v20  ;;  %12186 = vmatprep.subr.bf16.mxu1 %v12569_v4 }
 0x68e   :  { %10497 = vmatpush1.bf16.msra.mxu0 %v12566_v5  ;;  %12187 = vmatpush3.bf16.msra.mxu1 %v12570_v0 }
 0x68f   :  { %10498 = vmatprep.subr.bf16.mxu0 %v12573_v61  ;;  %12188 = vmatprep.subr.bf16.mxu1 %v12574_v8 }
 0x692   :  { %10499 = vmatpush1.bf16.msra.mxu0 %v12571_v7  ;;  %12189 = vmatpush3.bf16.msra.mxu1 %v12575_v28 }
 0x693   :  { %10500 = vmatprep.subr.bf16.mxu0 %v12578_v11  ;;  %12190 = vmatprep.subr.bf16.mxu1 %v12579_v14 }
 0x696   :  { %10501 = vmatpush1.bf16.msra.mxu0 %v12576_v33  ;;  %12191 = vmatpush3.bf16.msra.mxu1 %v12580_v17 }
 0x697   :  { %10502 = vmatprep.subr.bf16.mxu0 %v12583_v25  ;;  %12192 = vmatprep.subr.bf16.mxu1 %v12584_v24 }
 0x69a   :  { %10503 = vmatpush1.bf16.msra.mxu0 %v12581_v31  ;;  %12193 = vmatpush3.bf16.msra.mxu1 %v12585_v62  ;;  %v9335_v62 = vrot.slane %v9330_v63, %v13094_v27 }
 0x69b   :  { %10504 = vmatprep.subr.bf16.mxu0 %v12588_v30  ;;  %12194 = vmatprep.subr.bf16.mxu1 %v12589_v12  ;;  %v9339_v30 = vrot.slane %v9330_v63, %v13099_v32 }
 0x69e   :  { %10505 = vmatpush1.bf16.msra.mxu0 %v12586_v37  ;;  %12195 = vmatpush3.bf16.msra.mxu1 %v12590_v38 }
 0x69f   :  { %10506 = vmatprep.subr.bf16.mxu0 %v12593_v6  ;;  %12196 = vmatprep.subr.bf16.mxu1 %v12594_v22 }
 0x6a1   :  { %v12134_v47 = vpop.f32.mrb[28].mxu1 }
 0x6a2   :  { %10507 = vmatpush1.bf16.msra.mxu0 %v12591_v39  ;;  %v12135_v16 = vpop.f32.mrb[29].mxu1  ;;  %12197 = vmatpush3.bf16.msra.mxu1 %v12595_v46 }
 0x6a3   :  { %v12136_v50 = vadd.f32 %v12135_v16, %v12134_v47  ;;  %v12137_v48 = vpop.f32.mrb[30].mxu1  ;;  %10508 = vmatprep.subr.bf16.mxu0 %v12598_v42  ;;  %12198 = vmatprep.subr.bf16.mxu1 %v12599_v45 }
 0x6a4   :  { %v12138_v49 = vpop.f32.mrb[31].mxu1 }
 0x6a5   :  { %v10570_v15 = vadd.f32 %v12136_v50, %v9343_v44 }
 0x6a6   :  { %10509 = vmatpush1.bf16.msra.mxu0 %v12596_v21  ;;  %12199 = vmatpush3.bf16.msra.mxu1 %v12600_v18 }
 0x6a7   :  { %10510 = vmatprep.subr.bf16.mxu0 %v12603_v23 }
 0x6a9   :  { %10688 = vmatmul.mubr.bf16.vlgmr.msra.gmra.mrb[40].mxu1 %v9072_v29 }
 0x6aa   :  { %10511 = vmatpush1.bf16.msra.mxu0 %v12601_v40 }
 0x6ab   :  { %10512 = vmatprep.subr.bf16.mxu0 %v12606_v51 }
 0x6ae   :  { %10513 = vmatpush1.bf16.msra.mxu0 %v12604_v9 }
 0x6af   :  { %10514 = vmatprep.subr.bf16.mxu0 %v12609_v54 }
 0x6b2   :  { %10515 = vmatpush1.bf16.msra.mxu0 %v12607_v36 }
 0x6b3   :  { %10516 = vmatprep.subr.bf16.mxu0 %v12612_v56 }
 0x6b6   :  { %10517 = vmatpush1.bf16.msra.mxu0 %v12610_v57 }
 0x6b7   :  { %10518 = vmatprep.subr.bf16.mxu0 %v12615_v59 }
 0x6ba   :  { %10519 = vmatpush1.bf16.msra.mxu0 %v12613_v55 }
 0x6bb   :  { %10520 = vmatprep.subr.bf16.mxu0 %v12618_v19 }
 0x6be   :  { %10521 = vmatpush1.bf16.msra.mxu0 %v12616_v10 }
 0x6bf   :  { %10522 = vmatprep.subr.bf16.mxu0 %v12621_v60 }
 0x6c1   :  { %v12156_v35 = vpop.f32.mrb[32].mxu1 }
 0x6c2   :  { %10523 = vmatpush1.bf16.msra.mxu0 %v12619_v52  ;;  %v12157_v1 = vpop.f32.mrb[33].mxu1 }
 0x6c3   :  { %v12158_v2 = vadd.f32 %v12157_v1, %v12156_v35  ;;  %v12159_v3 = vpop.f32.mrb[34].mxu1  ;;  %10524 = vmatprep.subr.bf16.mxu0 %v12624_v26 }
 0x6c4   :  { %v12160_v20 = vpop.f32.mrb[35].mxu1 }
 0x6c5   :  { %v10610_v4 = vadd.f32 %v12158_v2, %v10570_v15 }
 0x6c6   :  { %10525 = vmatpush1.bf16.msra.mxu0 %v12622_v58 }
 0x6c9   :  { %10527 = vmatmul.mubr.bf16.vlgmr.msra.gmra.mrb[24].mxu0 %v9072_v29 }
 0x75c   :  { %v12178_v43 = vpop.f32.mrb[36].mxu1 }
 0x75d   :  { %v12179_v5 = vpop.f32.mrb[37].mxu1 }
 0x75e   :  { %v12180_v0 = vadd.f32 %v12179_v5, %v12178_v43  ;;  %v12181_v61 = vpop.f32.mrb[38].mxu1 }
 0x75f   :  { %v12182_v8 = vpop.f32.mrb[39].mxu1 }
 0x760   :  { %v10650_v34 = vadd.f32 %v12180_v0, %v10610_v4 }
 0x77c   :  { %v12200_v7 = vpop.f32.mrb[40].mxu1 }
 0x77d   :  { %v12201_v28 = vpop.f32.mrb[41].mxu1 }
 0x77e   :  { %v12202_v11 = vadd.f32 %v12201_v28, %v12200_v7  ;;  %v12203_v14 = vpop.f32.mrb[42].mxu1 }
 0x77f   :  { %v12204_v33 = vpop.f32.mrb[43].mxu1 }
 0x780   :  { %v10690_v17 = vadd.f32 %v12202_v11, %v10650_v34 }
 0x782   :  { %v12117_v25 = vmul.f32 -1.442695, %v10690_v17 }
 0x784   :  { %12625 = vpow2.f32 %v12117_v25 }
 0x78e   :  { %v12626_v24 = vpop.eup %12625 }
 0x78f   :  { %v10706_v31 = vadd.f32 1.0, %v12626_v24 }
 0x791   :  { %12627 = vrcp.f32 %v10706_v31 }
 0x79b   :  { %v12628_v12 = vpop.eup %12627 }
 0x79c   :  { %10715 = vst [vmem:[#allocation17 + $0x10] sm:$0xff] %v12628_v12  ;;  %v10528_v37 = vpop.f32.mrb[24].mxu0 }
 0x79d   :  { %v12232_v38 = vadd.f32 %v10528_v37, %v9335_v62  ;;  %v10530_v53 = vpop.f32.mrb[25].mxu0 }
 0x79e   :  { %v12233_v6 = vadd.f32 %v10530_v53, %v9339_v30  ;;  %v10532_v22 = vpop.f32.mrb[26].mxu0 }
 0x79f   :  { %v12115_v39 = vmul.f32 -1.442695, %v12232_v38  ;;  %v10533_v46 = vpop.f32.mrb[27].mxu0 }
 0x7a0   :  { %v12116_v13 = vmul.f32 -1.442695, %v12233_v6 }
 0x7a1   :  { %12629 = vpow2.f32 %v12115_v39 }
 0x7a2   :  { %12631 = vpow2.f32 %v12116_v13 }
 0x7ab   :  { %v12630_v42 = vpop.eup %12629 }
 0x7ac   :  { %v12632_v45 = vpop.eup %12631  ;;  %v10704_v47 = vadd.f32 1.0, %v12630_v42 }
 0x7ad   :  { %v10705_v16 = vadd.f32 1.0, %v12632_v45 }
 0x7ae   :  { %12633 = vrcp.f32 %v10704_v47 }
 0x7af   :  { %12635 = vrcp.f32 %v10705_v16 }
 0x7b8   :  { %v12634_v27 = vpop.eup %12633 }
 0x7b9   :  { %v12636_v32 = vpop.eup %12635  ;;  %10713 = vst [vmem:[#allocation17] sm:$0xff] %v12634_v27 }
 0x7ba   :  { %10714 = vst [vmem:[#allocation17 + $0x8] sm:$0xff] %v12636_v32 }
 0x7bb   :  { %12848 = shalt.err (!%p12845_p6)
}
 0x7bc   :  { %s12849_s18 = scalar_lea.hbm %s13348_s9, 384 }
 0x7bd   :  { %p12850_p7 = scmp.ne.s32.totalorder %s13348_s9, %s12849_s18  ;;  %p12853_p8 = scmp.lt.u32.totalorder %s12849_s18, %s13348_s9 }
 0x7bf   :  { %p12855_p9 = pnand %p12853_p8, %p12850_p7 }
 0x7c1   :  { %12858 = shalt.err (!%p12855_p9)
}
 0x7c2   :  { %10725 = dma.vmem_to_hbm [thread:$0]  %s10723_s25, 384, %s13348_s9, [#allocation4]  }
 0x7c3   :  { %12869 = dma.done.wait [#allocation4], 384  }
 0x7c4   :  { %12870 = vsyncadd [#allocation4], 4294966912 }
 0x7c5   :  { %10729 = vsyncpa [#allocation3], 1 }
 0x7c6   :  { %10730 = vsyncpa [#allocation6], 1 }
 0x7c7   :  { %10731 = vsyncpa [#allocation9], 1 }
 0x7c8   :  { %10732 = vsyncpa [#allocation12], 1 }
 0x7c9   :  { %10733 = vsyncpa [#allocation15], 1 }
 0x7ca   :  { %10734 = vsyncpa [#allocation4], 1 }

</bundles_post_ra>
